<compile_context>
chip_gen: v7x
topology: tpu7x:2x2x1
jax: 0.10.0
libtpu: 0.0.40
codegen_flags: <defaults>
</compile_context>

<pallas_src>
import functools
import math

import jax
import jax.numpy as jnp
from jax.experimental import pallas as pl
from jax.experimental.pallas import tpu as pltpu


# ---------------------------------------------------------------------------
# Fused MBConv + SE kernel (one grid step per image)
# ---------------------------------------------------------------------------

def _mbconv_se_kernel(x_ref, we_ref, be_ref, wd_ref, bd_ref,
                      sw1_ref, sb1_ref, sw2_ref, sb2_ref,
                      wp_ref, bp_ref, o_ref, pad_ref, *, H, W):
    C = x_ref.shape[-1]
    Ce = we_ref.shape[-1]

    x = x_ref[0]                                    # (H, W, C)
    xf = x.reshape(H * W, C)

    # --- 1x1 expand + GELU (single matmul over all H*W tokens) -------------
    e = jnp.dot(xf, we_ref[...], preferred_element_type=jnp.float32) + be_ref[...]
    e = jax.nn.gelu(e, approximate=True)

    # --- 3x3 depthwise conv (pad=1) + GELU, padded in a VMEM scratch --------
    pad_ref[...] = jnp.zeros_like(pad_ref)          # (H+2, W+2, Ce)
    pad_ref[1:H + 1, 1:W + 1, :] = e.reshape(H, W, Ce)
    xp = pad_ref[...]
    wd = wd_ref[...]                                # (3, 3, Ce)
    acc = jnp.zeros((H, W, Ce), jnp.float32)
    for di in range(3):
        for dj in range(3):
            acc = acc + xp[di:di + H, dj:dj + W, :] * wd[di, dj, :]
    acc = jax.nn.gelu(acc + bd_ref[...], approximate=True)

    # --- squeeze-excite ------------------------------------------------------
    af = acc.reshape(H * W, Ce)
    m = jnp.mean(af, axis=0, keepdims=True)                     # (1, Ce)
    h = jnp.maximum(
        jnp.dot(m, sw1_ref[...], preferred_element_type=jnp.float32) + sb1_ref[...],
        0.0)
    s = jax.nn.sigmoid(
        jnp.dot(h, sw2_ref[...], preferred_element_type=jnp.float32) + sb2_ref[...])
    af = af * s

    # --- 1x1 project + residual ---------------------------------------------
    y = jnp.dot(af, wp_ref[...], preferred_element_type=jnp.float32) + bp_ref[...]
    o_ref[0] = (y + xf).reshape(H, W, C).astype(o_ref.dtype)


def mbconv_se(x, p):
    N, H, W, C = x.shape
    Ce = p["we"].shape[1]
    Cr = p["se_w1"].shape[1]
    c2 = lambda n: (0, 0)
    return pl.pallas_call(
        functools.partial(_mbconv_se_kernel, H=H, W=W),
        out_shape=jax.ShapeDtypeStruct((N, H, W, C), x.dtype),
        grid=(N,),
        in_specs=[
            pl.BlockSpec((1, H, W, C), lambda n: (n, 0, 0, 0)),
            pl.BlockSpec((C, Ce), c2), pl.BlockSpec((1, Ce), c2),
            pl.BlockSpec((3, 3, Ce), lambda n: (0, 0, 0)), pl.BlockSpec((1, Ce), c2),
            pl.BlockSpec((Ce, Cr), c2), pl.BlockSpec((1, Cr), c2),
            pl.BlockSpec((Cr, Ce), c2), pl.BlockSpec((1, Ce), c2),
            pl.BlockSpec((Ce, C), c2), pl.BlockSpec((1, C), c2),
        ],
        out_specs=pl.BlockSpec((1, H, W, C), lambda n: (n, 0, 0, 0)),
        scratch_shapes=[pltpu.VMEM((H + 2, W + 2, Ce), jnp.float32)],
        compiler_params=pltpu.CompilerParams(dimension_semantics=("parallel",)),
    )(x, p["we"], p["be"].reshape(1, Ce), p["wd"], p["bd"].reshape(1, Ce),
      p["se_w1"], p["se_b1"].reshape(1, Cr), p["se_w2"], p["se_b2"].reshape(1, Ce),
      p["wp"], p["bp"].reshape(1, C))


# ---------------------------------------------------------------------------
# Fused attention stage kernel: LN1 + QKV + windowed MHSA + proj + residual
#                               + LN2 + MLP + residual, Wb windows per step.
# ---------------------------------------------------------------------------

def _attn_stage_kernel(x_ref, g1_ref, b1_ref, wqkv_ref, bqkv_ref, wo_ref, bo_ref,
                       g2_ref, b2_ref, wm1_ref, bm1_ref, wm2_ref, bm2_ref,
                       o_ref, *, heads):
    x = x_ref[...]                                  # (Wb, T, C)
    Wb, T, C = x.shape
    hd = C // heads
    scale = 1.0 / float(hd) ** 0.5

    # --- LayerNorm 1 ---------------------------------------------------------
    mu = jnp.mean(x, axis=-1, keepdims=True)
    var = jnp.mean((x - mu) ** 2, axis=-1, keepdims=True)
    xn = (x - mu) * jax.lax.rsqrt(var + 1e-5) * g1_ref[...] + b1_ref[...]

    # --- QKV projection: one matmul over all Wb*T tokens of this step --------
    qkv = jnp.dot(xn.reshape(Wb * T, C), wqkv_ref[...],
                  preferred_element_type=jnp.float32) + bqkv_ref[...]
    qkv = qkv.reshape(Wb, T, 3 * C)
    q = qkv[..., 0 * C:1 * C]
    k = qkv[..., 1 * C:2 * C]
    v = qkv[..., 2 * C:3 * C]

    # --- Window-batched attention (heads is a tiny static loop) --------------
    outs = []
    for h in range(heads):
        qh = q[..., h * hd:(h + 1) * hd] * scale
        kh = k[..., h * hd:(h + 1) * hd]
        vh = v[..., h * hd:(h + 1) * hd]
        s = jnp.einsum("wtd,wsd->wts", qh, kh, preferred_element_type=jnp.float32)
        s = s - jnp.max(s, axis=-1, keepdims=True)
        p = jnp.exp(s)
        p = p * pl.reciprocal(jnp.sum(p, axis=-1, keepdims=True), approx=True)
        outs.append(jnp.einsum("wts,wsd->wtd", p, vh,
                               preferred_element_type=jnp.float32))
    o = jnp.concatenate(outs, axis=-1).reshape(Wb * T, C)

    # --- Output projection + residual ----------------------------------------
    o = jnp.dot(o, wo_ref[...], preferred_element_type=jnp.float32) + bo_ref[...]
    x1 = x.reshape(Wb * T, C) + o

    # --- LayerNorm 2 + MLP + residual (fused; no extra HBM round trip) -------
    mu2 = jnp.mean(x1, axis=-1, keepdims=True)
    var2 = jnp.mean((x1 - mu2) ** 2, axis=-1, keepdims=True)
    xn2 = (x1 - mu2) * jax.lax.rsqrt(var2 + 1e-5) * g2_ref[...] + b2_ref[...]
    hdn = jax.nn.gelu(
        jnp.dot(xn2, wm1_ref[...], preferred_element_type=jnp.float32) + bm1_ref[...],
        approximate=True)
    y = jnp.dot(hdn, wm2_ref[...], preferred_element_type=jnp.float32) + bm2_ref[...]
    o_ref[...] = (x1 + y).reshape(Wb, T, C).astype(o_ref.dtype)


def attention_stage(xw, p, heads, windows_per_step=16):
    # xw: (NW, T, C) windows of tokens
    NW, T, C = xw.shape
    Hid = p["w1"].shape[1]
    Wb = math.gcd(NW, windows_per_step)             # batch of windows per grid step
    c2 = lambda i: (0, 0)
    return pl.pallas_call(
        functools.partial(_attn_stage_kernel, heads=heads),
        out_shape=jax.ShapeDtypeStruct((NW, T, C), xw.dtype),
        grid=(NW // Wb,),
        in_specs=[
            pl.BlockSpec((Wb, T, C), lambda i: (i, 0, 0)),
            pl.BlockSpec((1, C), c2), pl.BlockSpec((1, C), c2),
            pl.BlockSpec((C, 3 * C), c2), pl.BlockSpec((1, 3 * C), c2),
            pl.BlockSpec((C, C), c2), pl.BlockSpec((1, C), c2),
            pl.BlockSpec((1, C), c2), pl.BlockSpec((1, C), c2),
            pl.BlockSpec((C, Hid), c2), pl.BlockSpec((1, Hid), c2),
            pl.BlockSpec((Hid, C), c2), pl.BlockSpec((1, C), c2),
        ],
        out_specs=pl.BlockSpec((Wb, T, C), lambda i: (i, 0, 0)),
        compiler_params=pltpu.CompilerParams(dimension_semantics=("parallel",)),
    )(xw, p["ln1_g"].reshape(1, C), p["ln1_b"].reshape(1, C),
      p["wqkv"], p["bqkv"].reshape(1, 3 * C), p["wo"], p["bo"].reshape(1, C),
      p["ln2_g"].reshape(1, C), p["ln2_b"].reshape(1, C),
      p["w1"], p["b1"].reshape(1, Hid), p["w2"], p["b2"].reshape(1, C))


# ---------------------------------------------------------------------------
# Window / grid partitioning (pure XLA reshape/transpose; ~8 KB at these
# shapes, so negligible — see TODO(synk) at top for production-scale plan).
# ---------------------------------------------------------------------------

def window_partition(x, P):
    N, H, W, C = x.shape
    x = x.reshape(N, H // P, P, W // P, P, C).transpose(0, 1, 3, 2, 4, 5)
    return x.reshape(N * (H // P) * (W // P), P * P, C)


def window_unpartition(xw, P, N, H, W, C):
    x = xw.reshape(N, H // P, W // P, P, P, C).transpose(0, 1, 3, 2, 4, 5)
    return x.reshape(N, H, W, C)


def grid_partition(x, G):
    N, H, W, C = x.shape
    x = x.reshape(N, G, H // G, G, W // G, C).transpose(0, 2, 4, 1, 3, 5)
    return x.reshape(N * (H // G) * (W // G), G * G, C)


def grid_unpartition(xg, G, N, H, W, C):
    x = xg.reshape(N, H // G, W // G, G, G, C).transpose(0, 3, 1, 4, 2, 5)
    return x.reshape(N, H, W, C)


# ---------------------------------------------------------------------------
# Parameters
# ---------------------------------------------------------------------------

def _attn_params(key, C, hidden):
    ks = jax.random.split(key, 4)
    return {
        "ln1_g": jnp.ones((C,), jnp.float32),
        "ln1_b": jnp.zeros((C,), jnp.float32),
        "wqkv": 0.1 * jax.random.normal(ks[0], (C, 3 * C), jnp.float32),
        "bqkv": jnp.zeros((3 * C,), jnp.float32),
        "wo": 0.1 * jax.random.normal(ks[1], (C, C), jnp.float32),
        "bo": jnp.zeros((C,), jnp.float32),
        "ln2_g": jnp.ones((C,), jnp.float32),
        "ln2_b": jnp.zeros((C,), jnp.float32),
        "w1": 0.1 * jax.random.normal(ks[2], (C, hidden), jnp.float32),
        "b1": jnp.zeros((hidden,), jnp.float32),
        "w2": 0.1 * jax.random.normal(ks[3], (hidden, C), jnp.float32),
        "b2": jnp.zeros((C,), jnp.float32),
    }


def init_params(key, C, hidden, expansion=4, se_r=4):
    Ce = C * expansion
    Cr = max(Ce // se_r, 1)
    ks = jax.random.split(key, 8)
    return {
        "mbconv": {
            "we": 0.1 * jax.random.normal(ks[0], (C, Ce), jnp.float32),
            "be": jnp.zeros((Ce,), jnp.float32),
            "wd": 0.1 * jax.random.normal(ks[1], (3, 3, Ce), jnp.float32),
            "bd": jnp.zeros((Ce,), jnp.float32),
            "se_w1": 0.1 * jax.random.normal(ks[2], (Ce, Cr), jnp.float32),
            "se_b1": jnp.zeros((Cr,), jnp.float32),
            "se_w2": 0.1 * jax.random.normal(ks[3], (Cr, Ce), jnp.float32),
            "se_b2": jnp.zeros((Ce,), jnp.float32),
            "wp": 0.1 * jax.random.normal(ks[4], (Ce, C), jnp.float32),
            "bp": jnp.zeros((C,), jnp.float32),
        },
        "block_attn": _attn_params(ks[5], C, hidden),
        "grid_attn": _attn_params(ks[6], C, hidden),
    }


# ---------------------------------------------------------------------------
# Forward pass (NCHW in -> NCHW out)
# ---------------------------------------------------------------------------

def adaptive_maxvit_block(x_nchw, params, *, heads=2, window=4):
    x = jnp.transpose(x_nchw, (0, 2, 3, 1))          # NHWC
    N, H, W, C = x.shape

    # --- MBConv with SE (residual = input, matching forward(x, x)) -----------
    x = mbconv_se(x, params["mbconv"])               # fully fused, 1 call

    # --- Adaptive block (window) attention ------------------------------------
    xw = window_partition(x, window)                 # (NW, T, C)
    xw = attention_stage(xw, params["block_attn"], heads)
    x = window_unpartition(xw, window, N, H, W, C)

    # --- Adaptive grid (dilated) attention -------------------------------------
    xg = grid_partition(x, window)
    xg = attention_stage(xg, params["grid_attn"], heads)
    x = grid_unpartition(xg, window, N, H, W, C)

    return jnp.transpose(x, (0, 3, 1, 2))            # back to NCHW


# ---------------------------------------------------------------------------

if __name__ == "__main__":
    key = jax.random.PRNGKey(0)
    k_x, k_p = jax.random.split(key)

    N, C, H, W = 2, 8, 16, 16        # in_features = out_features = 8
    hidden = 32                      # hidden_features
    heads = 2

    x = jax.random.normal(k_x, (N, C, H, W), jnp.float32)
    params = init_params(k_p, C, hidden)

    fwd = jax.jit(functools.partial(adaptive_maxvit_block, heads=heads, window=4))
    out = jax.block_until_ready(fwd(x, params))

    assert out.shape == (N, C, H, W), out.shape
    assert jnp.all(jnp.isfinite(out))
    print("KERNEL_OK")
</pallas_src>

<mosaic_0001>
module attributes {stable_mosaic.version = 11 : i64} {
  func.func @_mbconv_se_kernel(%arg0: i32, %arg1: memref<1x16x16x8xf32, #tpu.memory_space<vmem>>, %arg2: memref<8x32xf32, #tpu.memory_space<vmem>>, %arg3: memref<1x32xf32, #tpu.memory_space<vmem>>, %arg4: memref<3x3x32xf32, #tpu.memory_space<vmem>>, %arg5: memref<1x32xf32, #tpu.memory_space<vmem>>, %arg6: memref<32x8xf32, #tpu.memory_space<vmem>>, %arg7: memref<1x8xf32, #tpu.memory_space<vmem>>, %arg8: memref<8x32xf32, #tpu.memory_space<vmem>>, %arg9: memref<1x32xf32, #tpu.memory_space<vmem>>, %arg10: memref<32x8xf32, #tpu.memory_space<vmem>>, %arg11: memref<1x8xf32, #tpu.memory_space<vmem>>, %arg12: memref<1x16x16x8xf32, #tpu.memory_space<vmem>>, %arg13: memref<18x18x32xf32, #tpu.memory_space<vmem>>) attributes {dimension_semantics = [#tpu.dimension_semantics<parallel>], iteration_bounds = array<i64: 2>, scalar_prefetch = 0 : i64, scratch_operands = 1 : i64, tpu.core_type = #tpu.core_type<tc>, window_params = [{transform_indices = @transform_0, window_bounds = array<i64: 1, 16, 16, 8>}, {pipeline_mode = #tpu.pipeline_mode<synchronous>, transform_indices = @transform_1, window_bounds = array<i64: 8, 32>}, {pipeline_mode = #tpu.pipeline_mode<synchronous>, transform_indices = @transform_2, window_bounds = array<i64: 1, 32>}, {pipeline_mode = #tpu.pipeline_mode<synchronous>, transform_indices = @transform_3, window_bounds = array<i64: 3, 3, 32>}, {pipeline_mode = #tpu.pipeline_mode<synchronous>, transform_indices = @transform_4, window_bounds = array<i64: 1, 32>}, {pipeline_mode = #tpu.pipeline_mode<synchronous>, transform_indices = @transform_5, window_bounds = array<i64: 32, 8>}, {pipeline_mode = #tpu.pipeline_mode<synchronous>, transform_indices = @transform_6, window_bounds = array<i64: 1, 8>}, {pipeline_mode = #tpu.pipeline_mode<synchronous>, transform_indices = @transform_7, window_bounds = array<i64: 8, 32>}, {pipeline_mode = #tpu.pipeline_mode<synchronous>, transform_indices = @transform_8, window_bounds = array<i64: 1, 32>}, {pipeline_mode = #tpu.pipeline_mode<synchronous>, transform_indices = @transform_9, window_bounds = array<i64: 32, 8>}, {pipeline_mode = #tpu.pipeline_mode<synchronous>, transform_indices = @transform_10, window_bounds = array<i64: 1, 8>}, {transform_indices = @transform_11, window_bounds = array<i64: 1, 16, 16, 8>}]} {
    %c0 = arith.constant 0 : index
    %c0_0 = arith.constant 0 : index
    %c0_1 = arith.constant 0 : index
    %c0_2 = arith.constant 0 : index
    %0 = vector.load %arg1[%c0, %c0_0, %c0_1, %c0_2] : memref<1x16x16x8xf32, #tpu.memory_space<vmem>>, vector<1x16x16x8xf32>
    %1 = vector.shape_cast %0 : vector<1x16x16x8xf32> to vector<16x16x8xf32>
    %2 = vector.shape_cast %1 : vector<16x16x8xf32> to vector<256x8xf32>
    %c0_3 = arith.constant 0 : index
    %c0_4 = arith.constant 0 : index
    %3 = vector.load %arg2[%c0_3, %c0_4] : memref<8x32xf32, #tpu.memory_space<vmem>>, vector<8x32xf32>
    %cst = arith.constant dense<0.000000e+00> : vector<256x32xf32>
    %4 = tpu.matmul %2, %3, %cst {dimension_numbers = #tpu.dot_dimension_numbers<[1], [0], [0], [1], [0, 0, 1, 1], [], []>} : vector<256x8xf32>, vector<8x32xf32>, vector<256x32xf32> -> vector<256x32xf32>
    %c0_5 = arith.constant 0 : index
    %c0_6 = arith.constant 0 : index
    %5 = vector.load %arg3[%c0_5, %c0_6] : memref<1x32xf32, #tpu.memory_space<vmem>>, vector<1x32xf32>
    %6 = vector.broadcast %5 : vector<1x32xf32> to vector<256x32xf32>
    %7 = arith.addf %4, %6 : vector<256x32xf32>
    %8 = arith.mulf %7, %7 : vector<256x32xf32>
    %9 = arith.mulf %7, %8 : vector<256x32xf32>
    %cst_7 = arith.constant 4.471500e-02 : f32
    %10 = vector.broadcast %cst_7 : f32 to vector<256x32xf32>
    %11 = arith.mulf %10, %9 : vector<256x32xf32>
    %12 = arith.addf %7, %11 : vector<256x32xf32>
    %cst_8 = arith.constant 0.797884583 : f32
    %13 = vector.broadcast %cst_8 : f32 to vector<256x32xf32>
    %14 = arith.mulf %13, %12 : vector<256x32xf32>
    %15 = math.tanh %14 : vector<256x32xf32>
    %cst_9 = arith.constant 1.000000e+00 : f32
    %16 = vector.broadcast %cst_9 : f32 to vector<256x32xf32>
    %17 = arith.addf %16, %15 : vector<256x32xf32>
    %cst_10 = arith.constant 5.000000e-01 : f32
    %18 = vector.broadcast %cst_10 : f32 to vector<256x32xf32>
    %19 = arith.mulf %18, %17 : vector<256x32xf32>
    %20 = arith.mulf %7, %19 : vector<256x32xf32>
    %cst_11 = arith.constant 0.000000e+00 : f32
    %21 = vector.broadcast %cst_11 : f32 to vector<18x18x32xf32>
    %c0_12 = arith.constant 0 : index
    %c0_13 = arith.constant 0 : index
    %c0_14 = arith.constant 0 : index
    %22 = vector.load %arg13[%c0_12, %c0_13, %c0_14] : memref<18x18x32xf32, #tpu.memory_space<vmem>>, vector<18x18x32xf32>
    tpu.vector_store %arg13[%c0_12, %c0_13, %c0_14], %21 {strides = array<i32>} : memref<18x18x32xf32, #tpu.memory_space<vmem>>, vector<18x18x32xf32>,
    %23 = vector.shape_cast %20 : vector<256x32xf32> to vector<16x16x32xf32>
    %c1 = arith.constant 1 : index
    %c1_15 = arith.constant 1 : index
    %c0_16 = arith.constant 0 : index
    %24 = vector.load %arg13[%c1, %c1_15, %c0_16] : memref<18x18x32xf32, #tpu.memory_space<vmem>>, vector<16x16x32xf32>
    tpu.vector_store %arg13[%c1, %c1_15, %c0_16], %23 {strides = array<i32>} : memref<18x18x32xf32, #tpu.memory_space<vmem>>, vector<16x16x32xf32>,
    %c0_17 = arith.constant 0 : index
    %c0_18 = arith.constant 0 : index
    %c0_19 = arith.constant 0 : index
    %25 = vector.load %arg13[%c0_17, %c0_18, %c0_19] : memref<18x18x32xf32, #tpu.memory_space<vmem>>, vector<18x18x32xf32>
    %c0_20 = arith.constant 0 : index
    %c0_21 = arith.constant 0 : index
    %c0_22 = arith.constant 0 : index
    %26 = vector.load %arg4[%c0_20, %c0_21, %c0_22] : memref<3x3x32xf32, #tpu.memory_space<vmem>>, vector<3x3x32xf32>
    %cst_23 = arith.constant 0.000000e+00 : f32
    %27 = vector.broadcast %cst_23 : f32 to vector<16x16x32xf32>
    %28 = vector.extract_strided_slice %25 {offsets = [0, 0, 0], sizes = [16, 16, 32], strides = [1, 1, 1]} : vector<18x18x32xf32> to vector<16x16x32xf32>
    %29 = vector.extract_strided_slice %26 {offsets = [0, 0, 0], sizes = [1, 1, 32], strides = [1, 1, 1]} : vector<3x3x32xf32> to vector<1x1x32xf32>
    %30 = vector.shape_cast %29 : vector<1x1x32xf32> to vector<32xf32>
    %31 = vector.shape_cast %30 : vector<32xf32> to vector<1x1x32xf32>
    %32 = vector.broadcast %31 : vector<1x1x32xf32> to vector<16x16x32xf32>
    %33 = arith.mulf %28, %32 : vector<16x16x32xf32>
    %34 = arith.addf %27, %33 : vector<16x16x32xf32>
    %35 = vector.extract_strided_slice %25 {offsets = [0, 1, 0], sizes = [16, 16, 32], strides = [1, 1, 1]} : vector<18x18x32xf32> to vector<16x16x32xf32>
    %36 = vector.extract_strided_slice %26 {offsets = [0, 1, 0], sizes = [1, 1, 32], strides = [1, 1, 1]} : vector<3x3x32xf32> to vector<1x1x32xf32>
    %37 = vector.shape_cast %36 : vector<1x1x32xf32> to vector<32xf32>
    %38 = vector.shape_cast %37 : vector<32xf32> to vector<1x1x32xf32>
    %39 = vector.broadcast %38 : vector<1x1x32xf32> to vector<16x16x32xf32>
    %40 = arith.mulf %35, %39 : vector<16x16x32xf32>
    %41 = arith.addf %34, %40 : vector<16x16x32xf32>
    %42 = vector.extract_strided_slice %25 {offsets = [0, 2, 0], sizes = [16, 16, 32], strides = [1, 1, 1]} : vector<18x18x32xf32> to vector<16x16x32xf32>
    %43 = vector.extract_strided_slice %26 {offsets = [0, 2, 0], sizes = [1, 1, 32], strides = [1, 1, 1]} : vector<3x3x32xf32> to vector<1x1x32xf32>
    %44 = vector.shape_cast %43 : vector<1x1x32xf32> to vector<32xf32>
    %45 = vector.shape_cast %44 : vector<32xf32> to vector<1x1x32xf32>
    %46 = vector.broadcast %45 : vector<1x1x32xf32> to vector<16x16x32xf32>
    %47 = arith.mulf %42, %46 : vector<16x16x32xf32>
    %48 = arith.addf %41, %47 : vector<16x16x32xf32>
    %49 = vector.extract_strided_slice %25 {offsets = [1, 0, 0], sizes = [16, 16, 32], strides = [1, 1, 1]} : vector<18x18x32xf32> to vector<16x16x32xf32>
    %50 = vector.extract_strided_slice %26 {offsets = [1, 0, 0], sizes = [1, 1, 32], strides = [1, 1, 1]} : vector<3x3x32xf32> to vector<1x1x32xf32>
    %51 = vector.shape_cast %50 : vector<1x1x32xf32> to vector<32xf32>
    %52 = vector.shape_cast %51 : vector<32xf32> to vector<1x1x32xf32>
    %53 = vector.broadcast %52 : vector<1x1x32xf32> to vector<16x16x32xf32>
    %54 = arith.mulf %49, %53 : vector<16x16x32xf32>
    %55 = arith.addf %48, %54 : vector<16x16x32xf32>
    %56 = vector.extract_strided_slice %25 {offsets = [1, 1, 0], sizes = [16, 16, 32], strides = [1, 1, 1]} : vector<18x18x32xf32> to vector<16x16x32xf32>
    %57 = vector.extract_strided_slice %26 {offsets = [1, 1, 0], sizes = [1, 1, 32], strides = [1, 1, 1]} : vector<3x3x32xf32> to vector<1x1x32xf32>
    %58 = vector.shape_cast %57 : vector<1x1x32xf32> to vector<32xf32>
    %59 = vector.shape_cast %58 : vector<32xf32> to vector<1x1x32xf32>
    %60 = vector.broadcast %59 : vector<1x1x32xf32> to vector<16x16x32xf32>
    %61 = arith.mulf %56, %60 : vector<16x16x32xf32>
    %62 = arith.addf %55, %61 : vector<16x16x32xf32>
    %63 = vector.extract_strided_slice %25 {offsets = [1, 2, 0], sizes = [16, 16, 32], strides = [1, 1, 1]} : vector<18x18x32xf32> to vector<16x16x32xf32>
    %64 = vector.extract_strided_slice %26 {offsets = [1, 2, 0], sizes = [1, 1, 32], strides = [1, 1, 1]} : vector<3x3x32xf32> to vector<1x1x32xf32>
    %65 = vector.shape_cast %64 : vector<1x1x32xf32> to vector<32xf32>
    %66 = vector.shape_cast %65 : vector<32xf32> to vector<1x1x32xf32>
    %67 = vector.broadcast %66 : vector<1x1x32xf32> to vector<16x16x32xf32>
    %68 = arith.mulf %63, %67 : vector<16x16x32xf32>
    %69 = arith.addf %62, %68 : vector<16x16x32xf32>
    %70 = vector.extract_strided_slice %25 {offsets = [2, 0, 0], sizes = [16, 16, 32], strides = [1, 1, 1]} : vector<18x18x32xf32> to vector<16x16x32xf32>
    %71 = vector.extract_strided_slice %26 {offsets = [2, 0, 0], sizes = [1, 1, 32], strides = [1, 1, 1]} : vector<3x3x32xf32> to vector<1x1x32xf32>
    %72 = vector.shape_cast %71 : vector<1x1x32xf32> to vector<32xf32>
    %73 = vector.shape_cast %72 : vector<32xf32> to vector<1x1x32xf32>
    %74 = vector.broadcast %73 : vector<1x1x32xf32> to vector<16x16x32xf32>
    %75 = arith.mulf %70, %74 : vector<16x16x32xf32>
    %76 = arith.addf %69, %75 : vector<16x16x32xf32>
    %77 = vector.extract_strided_slice %25 {offsets = [2, 1, 0], sizes = [16, 16, 32], strides = [1, 1, 1]} : vector<18x18x32xf32> to vector<16x16x32xf32>
    %78 = vector.extract_strided_slice %26 {offsets = [2, 1, 0], sizes = [1, 1, 32], strides = [1, 1, 1]} : vector<3x3x32xf32> to vector<1x1x32xf32>
    %79 = vector.shape_cast %78 : vector<1x1x32xf32> to vector<32xf32>
    %80 = vector.shape_cast %79 : vector<32xf32> to vector<1x1x32xf32>
    %81 = vector.broadcast %80 : vector<1x1x32xf32> to vector<16x16x32xf32>
    %82 = arith.mulf %77, %81 : vector<16x16x32xf32>
    %83 = arith.addf %76, %82 : vector<16x16x32xf32>
    %84 = vector.extract_strided_slice %25 {offsets = [2, 2, 0], sizes = [16, 16, 32], strides = [1, 1, 1]} : vector<18x18x32xf32> to vector<16x16x32xf32>
    %85 = vector.extract_strided_slice %26 {offsets = [2, 2, 0], sizes = [1, 1, 32], strides = [1, 1, 1]} : vector<3x3x32xf32> to vector<1x1x32xf32>
    %86 = vector.shape_cast %85 : vector<1x1x32xf32> to vector<32xf32>
    %87 = vector.shape_cast %86 : vector<32xf32> to vector<1x1x32xf32>
    %88 = vector.broadcast %87 : vector<1x1x32xf32> to vector<16x16x32xf32>
    %89 = arith.mulf %84, %88 : vector<16x16x32xf32>
    %90 = arith.addf %83, %89 : vector<16x16x32xf32>
    %c0_24 = arith.constant 0 : index
    %c0_25 = arith.constant 0 : index
    %91 = vector.load %arg5[%c0_24, %c0_25] : memref<1x32xf32, #tpu.memory_space<vmem>>, vector<1x32xf32>
    %92 = vector.shape_cast %91 : vector<1x32xf32> to vector<1x1x32xf32>
    %93 = vector.broadcast %92 : vector<1x1x32xf32> to vector<16x16x32xf32>
    %94 = arith.addf %90, %93 : vector<16x16x32xf32>
    %95 = arith.mulf %94, %94 : vector<16x16x32xf32>
    %96 = arith.mulf %94, %95 : vector<16x16x32xf32>
    %cst_26 = arith.constant 4.471500e-02 : f32
    %97 = vector.broadcast %cst_26 : f32 to vector<16x16x32xf32>
    %98 = arith.mulf %97, %96 : vector<16x16x32xf32>
    %99 = arith.addf %94, %98 : vector<16x16x32xf32>
    %cst_27 = arith.constant 0.797884583 : f32
    %100 = vector.broadcast %cst_27 : f32 to vector<16x16x32xf32>
    %101 = arith.mulf %100, %99 : vector<16x16x32xf32>
    %102 = math.tanh %101 : vector<16x16x32xf32>
    %cst_28 = arith.constant 1.000000e+00 : f32
    %103 = vector.broadcast %cst_28 : f32 to vector<16x16x32xf32>
    %104 = arith.addf %103, %102 : vector<16x16x32xf32>
    %cst_29 = arith.constant 5.000000e-01 : f32
    %105 = vector.broadcast %cst_29 : f32 to vector<16x16x32xf32>
    %106 = arith.mulf %105, %104 : vector<16x16x32xf32>
    %107 = arith.mulf %94, %106 : vector<16x16x32xf32>
    %108 = vector.shape_cast %107 : vector<16x16x32xf32> to vector<256x32xf32>
    %cst_30 = arith.constant dense<0.000000e+00> : vector<32xf32>
    %109 = vector.multi_reduction <add>, %108, %cst_30 [0] : vector<256x32xf32> to vector<32xf32>
    %110 = vector.shape_cast %109 : vector<32xf32> to vector<1x32xf32>
    %cst_31 = arith.constant 2.560000e+02 : f32
    %111 = vector.broadcast %cst_31 : f32 to vector<1x32xf32>
    %112 = arith.divf %110, %111 : vector<1x32xf32>
    %c0_32 = arith.constant 0 : index
    %c0_33 = arith.constant 0 : index
    %113 = vector.load %arg6[%c0_32, %c0_33] : memref<32x8xf32, #tpu.memory_space<vmem>>, vector<32x8xf32>
    %cst_34 = arith.constant dense<0.000000e+00> : vector<1x8xf32>
    %114 = tpu.matmul %112, %113, %cst_34 {dimension_numbers = #tpu.dot_dimension_numbers<[1], [0], [0], [1], [0, 0, 1, 1], [], []>} : vector<1x32xf32>, vector<32x8xf32>, vector<1x8xf32> -> vector<1x8xf32>
    %c0_35 = arith.constant 0 : index
    %c0_36 = arith.constant 0 : index
    %115 = vector.load %arg7[%c0_35, %c0_36] : memref<1x8xf32, #tpu.memory_space<vmem>>, vector<1x8xf32>
    %116 = arith.addf %114, %115 : vector<1x8xf32>
    %cst_37 = arith.constant 0.000000e+00 : f32
    %117 = vector.broadcast %cst_37 : f32 to vector<1x8xf32>
    %118 = arith.maximumf %116, %117 : vector<1x8xf32>
    %c0_38 = arith.constant 0 : index
    %c0_39 = arith.constant 0 : index
    %119 = vector.load %arg8[%c0_38, %c0_39] : memref<8x32xf32, #tpu.memory_space<vmem>>, vector<8x32xf32>
    %cst_40 = arith.constant dense<0.000000e+00> : vector<1x32xf32>
    %120 = tpu.matmul %118, %119, %cst_40 {dimension_numbers = #tpu.dot_dimension_numbers<[1], [0], [0], [1], [0, 0, 1, 1], [], []>} : vector<1x8xf32>, vector<8x32xf32>, vector<1x32xf32> -> vector<1x32xf32>
    %c0_41 = arith.constant 0 : index
    %c0_42 = arith.constant 0 : index
    %121 = vector.load %arg9[%c0_41, %c0_42] : memref<1x32xf32, #tpu.memory_space<vmem>>, vector<1x32xf32>
    %122 = arith.addf %120, %121 : vector<1x32xf32>
    %123 = arith.negf %122 : vector<1x32xf32>
    %124 = math.exp %123 : vector<1x32xf32>
    %cst_43 = arith.constant 1.000000e+00 : f32
    %125 = vector.broadcast %cst_43 : f32 to vector<1x32xf32>
    %126 = arith.addf %125, %124 : vector<1x32xf32>
    %127 = arith.divf %125, %126 : vector<1x32xf32>
    %128 = vector.broadcast %127 : vector<1x32xf32> to vector<256x32xf32>
    %129 = arith.mulf %108, %128 : vector<256x32xf32>
    %c0_44 = arith.constant 0 : index
    %c0_45 = arith.constant 0 : index
    %130 = vector.load %arg10[%c0_44, %c0_45] : memref<32x8xf32, #tpu.memory_space<vmem>>, vector<32x8xf32>
    %cst_46 = arith.constant dense<0.000000e+00> : vector<256x8xf32>
    %131 = tpu.matmul %129, %130, %cst_46 {dimension_numbers = #tpu.dot_dimension_numbers<[1], [0], [0], [1], [0, 0, 1, 1], [], []>} : vector<256x32xf32>, vector<32x8xf32>, vector<256x8xf32> -> vector<256x8xf32>
    %c0_47 = arith.constant 0 : index
    %c0_48 = arith.constant 0 : index
    %132 = vector.load %arg11[%c0_47, %c0_48] : memref<1x8xf32, #tpu.memory_space<vmem>>, vector<1x8xf32>
    %133 = vector.broadcast %132 : vector<1x8xf32> to vector<256x8xf32>
    %134 = arith.addf %131, %133 : vector<256x8xf32>
    %135 = arith.addf %134, %2 : vector<256x8xf32>
    %136 = vector.shape_cast %135 : vector<256x8xf32> to vector<16x16x8xf32>
    %c0_49 = arith.constant 0 : index
    %c0_50 = arith.constant 0 : index
    %c0_51 = arith.constant 0 : index
    %c0_52 = arith.constant 0 : index
    %137 = vector.load %arg12[%c0_49, %c0_50, %c0_51, %c0_52] : memref<1x16x16x8xf32, #tpu.memory_space<vmem>>, vector<1x16x16x8xf32>
    %138 = vector.shape_cast %137 : vector<1x16x16x8xf32> to vector<16x16x8xf32>
    %139 = vector.shape_cast %136 : vector<16x16x8xf32> to vector<1x16x16x8xf32>
    tpu.vector_store %arg12[%c0_49, %c0_50, %c0_51, %c0_52], %139 {strides = array<i32>} : memref<1x16x16x8xf32, #tpu.memory_space<vmem>>, vector<1x16x16x8xf32>,
    return
  }
  func.func @transform_0(%arg0: i32) -> (i32, i32, i32, i32) {
    %c0_i32 = arith.constant 0 : i32
    %c0_i32_0 = arith.constant 0 : i32
    %c0_i32_1 = arith.constant 0 : i32
    %c0_i32_2 = arith.constant 0 : i32
    return %arg0, %c0_i32, %c0_i32_0, %c0_i32_1 : i32, i32, i32, i32
  }
  func.func @transform_1(%arg0: i32) -> (i32, i32) {
    %c0_i32 = arith.constant 0 : i32
    %c0_i32_0 = arith.constant 0 : i32
    %c0_i32_1 = arith.constant 0 : i32
    return %c0_i32, %c0_i32_0 : i32, i32
  }
  func.func @transform_2(%arg0: i32) -> (i32, i32) {
    %c0_i32 = arith.constant 0 : i32
    %c0_i32_0 = arith.constant 0 : i32
    %c0_i32_1 = arith.constant 0 : i32
    return %c0_i32, %c0_i32_0 : i32, i32
  }
  func.func @transform_3(%arg0: i32) -> (i32, i32, i32) {
    %c0_i32 = arith.constant 0 : i32
    %c0_i32_0 = arith.constant 0 : i32
    %c0_i32_1 = arith.constant 0 : i32
    %c0_i32_2 = arith.constant 0 : i32
    return %c0_i32, %c0_i32_0, %c0_i32_1 : i32, i32, i32
  }
  func.func @transform_4(%arg0: i32) -> (i32, i32) {
    %c0_i32 = arith.constant 0 : i32
    %c0_i32_0 = arith.constant 0 : i32
    %c0_i32_1 = arith.constant 0 : i32
    return %c0_i32, %c0_i32_0 : i32, i32
  }
  func.func @transform_5(%arg0: i32) -> (i32, i32) {
    %c0_i32 = arith.constant 0 : i32
    %c0_i32_0 = arith.constant 0 : i32
    %c0_i32_1 = arith.constant 0 : i32
    return %c0_i32, %c0_i32_0 : i32, i32
  }
  func.func @transform_6(%arg0: i32) -> (i32, i32) {
    %c0_i32 = arith.constant 0 : i32
    %c0_i32_0 = arith.constant 0 : i32
    %c0_i32_1 = arith.constant 0 : i32
    return %c0_i32, %c0_i32_0 : i32, i32
  }
  func.func @transform_7(%arg0: i32) -> (i32, i32) {
    %c0_i32 = arith.constant 0 : i32
    %c0_i32_0 = arith.constant 0 : i32
    %c0_i32_1 = arith.constant 0 : i32
    return %c0_i32, %c0_i32_0 : i32, i32
  }
  func.func @transform_8(%arg0: i32) -> (i32, i32) {
    %c0_i32 = arith.constant 0 : i32
    %c0_i32_0 = arith.constant 0 : i32
    %c0_i32_1 = arith.constant 0 : i32
    return %c0_i32, %c0_i32_0 : i32, i32
  }
  func.func @transform_9(%arg0: i32) -> (i32, i32) {
    %c0_i32 = arith.constant 0 : i32
    %c0_i32_0 = arith.constant 0 : i32
    %c0_i32_1 = arith.constant 0 : i32
    return %c0_i32, %c0_i32_0 : i32, i32
  }
  func.func @transform_10(%arg0: i32) -> (i32, i32) {
    %c0_i32 = arith.constant 0 : i32
    %c0_i32_0 = arith.constant 0 : i32
    %c0_i32_1 = arith.constant 0 : i32
    return %c0_i32, %c0_i32_0 : i32, i32
  }
  func.func @transform_11(%arg0: i32) -> (i32, i32, i32, i32) {
    %c0_i32 = arith.constant 0 : i32
    %c0_i32_0 = arith.constant 0 : i32
    %c0_i32_1 = arith.constant 0 : i32
    %c0_i32_2 = arith.constant 0 : i32
    return %arg0, %c0_i32, %c0_i32_0, %c0_i32_1 : i32, i32, i32, i32
  }
}

module attributes {stable_mosaic.version = 11 : i64} {
  func.func @_attn_stage_kernel(%arg0: i32, %arg1: memref<16x16x8xf32, #tpu.memory_space<vmem>>, %arg2: memref<1x8xf32, #tpu.memory_space<vmem>>, %arg3: memref<1x8xf32, #tpu.memory_space<vmem>>, %arg4: memref<8x24xf32, #tpu.memory_space<vmem>>, %arg5: memref<1x24xf32, #tpu.memory_space<vmem>>, %arg6: memref<8x8xf32, #tpu.memory_space<vmem>>, %arg7: memref<1x8xf32, #tpu.memory_space<vmem>>, %arg8: memref<1x8xf32, #tpu.memory_space<vmem>>, %arg9: memref<1x8xf32, #tpu.memory_space<vmem>>, %arg10: memref<8x32xf32, #tpu.memory_space<vmem>>, %arg11: memref<1x32xf32, #tpu.memory_space<vmem>>, %arg12: memref<32x8xf32, #tpu.memory_space<vmem>>, %arg13: memref<1x8xf32, #tpu.memory_space<vmem>>, %arg14: memref<16x16x8xf32, #tpu.memory_space<vmem>>) attributes {dimension_semantics = [#tpu.dimension_semantics<parallel>], iteration_bounds = array<i64: 2>, scalar_prefetch = 0 : i64, scratch_operands = 0 : i64, tpu.core_type = #tpu.core_type<tc>, window_params = [{transform_indices = @transform_0, window_bounds = array<i64: 16, 16, 8>}, {pipeline_mode = #tpu.pipeline_mode<synchronous>, transform_indices = @transform_1, window_bounds = array<i64: 1, 8>}, {pipeline_mode = #tpu.pipeline_mode<synchronous>, transform_indices = @transform_2, window_bounds = array<i64: 1, 8>}, {pipeline_mode = #tpu.pipeline_mode<synchronous>, transform_indices = @transform_3, window_bounds = array<i64: 8, 24>}, {pipeline_mode = #tpu.pipeline_mode<synchronous>, transform_indices = @transform_4, window_bounds = array<i64: 1, 24>}, {pipeline_mode = #tpu.pipeline_mode<synchronous>, transform_indices = @transform_5, window_bounds = array<i64: 8, 8>}, {pipeline_mode = #tpu.pipeline_mode<synchronous>, transform_indices = @transform_6, window_bounds = array<i64: 1, 8>}, {pipeline_mode = #tpu.pipeline_mode<synchronous>, transform_indices = @transform_7, window_bounds = array<i64: 1, 8>}, {pipeline_mode = #tpu.pipeline_mode<synchronous>, transform_indices = @transform_8, window_bounds = array<i64: 1, 8>}, {pipeline_mode = #tpu.pipeline_mode<synchronous>, transform_indices = @transform_9, window_bounds = array<i64: 8, 32>}, {pipeline_mode = #tpu.pipeline_mode<synchronous>, transform_indices = @transform_10, window_bounds = array<i64: 1, 32>}, {pipeline_mode = #tpu.pipeline_mode<synchronous>, transform_indices = @transform_11, window_bounds = array<i64: 32, 8>}, {pipeline_mode = #tpu.pipeline_mode<synchronous>, transform_indices = @transform_12, window_bounds = array<i64: 1, 8>}, {transform_indices = @transform_13, window_bounds = array<i64: 16, 16, 8>}]} {
    %c0 = arith.constant 0 : index
    %c0_0 = arith.constant 0 : index
    %c0_1 = arith.constant 0 : index
    %0 = vector.load %arg1[%c0, %c0_0, %c0_1] : memref<16x16x8xf32, #tpu.memory_space<vmem>>, vector<16x16x8xf32>
    %cst = arith.constant dense<0.000000e+00> : vector<16x16xf32>
    %1 = vector.multi_reduction <add>, %0, %cst [2] : vector<16x16x8xf32> to vector<16x16xf32>
    %2 = vector.shape_cast %1 : vector<16x16xf32> to vector<16x16x1xf32>
    %cst_2 = arith.constant 8.000000e+00 : f32
    %3 = vector.broadcast %cst_2 : f32 to vector<16x16x1xf32>
    %4 = arith.divf %2, %3 : vector<16x16x1xf32>
    %5 = vector.broadcast %4 : vector<16x16x1xf32> to vector<16x16x8xf32>
    %6 = arith.subf %0, %5 : vector<16x16x8xf32>
    %7 = arith.mulf %6, %6 : vector<16x16x8xf32>
    %cst_3 = arith.constant dense<0.000000e+00> : vector<16x16xf32>
    %8 = vector.multi_reduction <add>, %7, %cst_3 [2] : vector<16x16x8xf32> to vector<16x16xf32>
    %9 = vector.shape_cast %8 : vector<16x16xf32> to vector<16x16x1xf32>
    %cst_4 = arith.constant 8.000000e+00 : f32
    %10 = vector.broadcast %cst_4 : f32 to vector<16x16x1xf32>
    %11 = arith.divf %9, %10 : vector<16x16x1xf32>
    %12 = vector.broadcast %4 : vector<16x16x1xf32> to vector<16x16x8xf32>
    %13 = arith.subf %0, %12 : vector<16x16x8xf32>
    %cst_5 = arith.constant 9.99999974E-6 : f32
    %14 = vector.broadcast %cst_5 : f32 to vector<16x16x1xf32>
    %15 = arith.addf %11, %14 : vector<16x16x1xf32>
    %16 = math.rsqrt %15 : vector<16x16x1xf32>
    %17 = vector.broadcast %16 : vector<16x16x1xf32> to vector<16x16x8xf32>
    %18 = arith.mulf %13, %17 : vector<16x16x8xf32>
    %c0_6 = arith.constant 0 : index
    %c0_7 = arith.constant 0 : index
    %19 = vector.load %arg2[%c0_6, %c0_7] : memref<1x8xf32, #tpu.memory_space<vmem>>, vector<1x8xf32>
    %20 = vector.shape_cast %19 : vector<1x8xf32> to vector<1x1x8xf32>
    %21 = vector.broadcast %20 : vector<1x1x8xf32> to vector<16x16x8xf32>
    %22 = arith.mulf %18, %21 : vector<16x16x8xf32>
    %c0_8 = arith.constant 0 : index
    %c0_9 = arith.constant 0 : index
    %23 = vector.load %arg3[%c0_8, %c0_9] : memref<1x8xf32, #tpu.memory_space<vmem>>, vector<1x8xf32>
    %24 = vector.shape_cast %23 : vector<1x8xf32> to vector<1x1x8xf32>
    %25 = vector.broadcast %24 : vector<1x1x8xf32> to vector<16x16x8xf32>
    %26 = arith.addf %22, %25 : vector<16x16x8xf32>
    %27 = vector.shape_cast %26 : vector<16x16x8xf32> to vector<256x8xf32>
    %c0_10 = arith.constant 0 : index
    %c0_11 = arith.constant 0 : index
    %28 = vector.load %arg4[%c0_10, %c0_11] : memref<8x24xf32, #tpu.memory_space<vmem>>, vector<8x24xf32>
    %cst_12 = arith.constant dense<0.000000e+00> : vector<256x24xf32>
    %29 = tpu.matmul %27, %28, %cst_12 {dimension_numbers = #tpu.dot_dimension_numbers<[1], [0], [0], [1], [0, 0, 1, 1], [], []>} : vector<256x8xf32>, vector<8x24xf32>, vector<256x24xf32> -> vector<256x24xf32>
    %c0_13 = arith.constant 0 : index
    %c0_14 = arith.constant 0 : index
    %30 = vector.load %arg5[%c0_13, %c0_14] : memref<1x24xf32, #tpu.memory_space<vmem>>, vector<1x24xf32>
    %31 = vector.broadcast %30 : vector<1x24xf32> to vector<256x24xf32>
    %32 = arith.addf %29, %31 : vector<256x24xf32>
    %33 = vector.shape_cast %32 : vector<256x24xf32> to vector<16x16x24xf32>
    %34 = vector.extract_strided_slice %33 {offsets = [0, 0, 0], sizes = [16, 16, 8], strides = [1, 1, 1]} : vector<16x16x24xf32> to vector<16x16x8xf32>
    %35 = vector.extract_strided_slice %33 {offsets = [0, 0, 8], sizes = [16, 16, 8], strides = [1, 1, 1]} : vector<16x16x24xf32> to vector<16x16x8xf32>
    %36 = vector.extract_strided_slice %33 {offsets = [0, 0, 16], sizes = [16, 16, 8], strides = [1, 1, 1]} : vector<16x16x24xf32> to vector<16x16x8xf32>
    %37 = vector.extract_strided_slice %34 {offsets = [0, 0, 0], sizes = [16, 16, 4], strides = [1, 1, 1]} : vector<16x16x8xf32> to vector<16x16x4xf32>
    %cst_15 = arith.constant 5.000000e-01 : f32
    %38 = vector.broadcast %cst_15 : f32 to vector<16x16x4xf32>
    %39 = arith.mulf %37, %38 : vector<16x16x4xf32>
    %40 = vector.extract_strided_slice %35 {offsets = [0, 0, 0], sizes = [16, 16, 4], strides = [1, 1, 1]} : vector<16x16x8xf32> to vector<16x16x4xf32>
    %41 = vector.extract_strided_slice %36 {offsets = [0, 0, 0], sizes = [16, 16, 4], strides = [1, 1, 1]} : vector<16x16x8xf32> to vector<16x16x4xf32>
    "tpu.trace_start"() <{level = 10 : i32, message = "wtd,wsd->wts"}> : () -> ()
    %cst_16 = arith.constant dense<0.000000e+00> : vector<16x16x16xf32>
    %42 = tpu.matmul %39, %40, %cst_16 {dimension_numbers = #tpu.dot_dimension_numbers<[2], [2], [1], [1], [0, 0, 0, 1, 1, 1], [0], [0]>} : vector<16x16x4xf32>, vector<16x16x4xf32>, vector<16x16x16xf32> -> vector<16x16x16xf32>
    "tpu.trace_stop"() : () -> ()
    %cst_17 = arith.constant dense<0xFF800000> : vector<16x16xf32>
    %43 = vector.multi_reduction <maximumf>, %42, %cst_17 [2] : vector<16x16x16xf32> to vector<16x16xf32>
    %44 = vector.shape_cast %43 : vector<16x16xf32> to vector<16x16x1xf32>
    %45 = vector.broadcast %44 : vector<16x16x1xf32> to vector<16x16x16xf32>
    %46 = arith.subf %42, %45 : vector<16x16x16xf32>
    %47 = math.exp %46 : vector<16x16x16xf32>
    %cst_18 = arith.constant dense<0.000000e+00> : vector<16x16xf32>
    %48 = vector.multi_reduction <add>, %47, %cst_18 [2] : vector<16x16x16xf32> to vector<16x16xf32>
    %49 = vector.shape_cast %48 : vector<16x16xf32> to vector<16x16x1xf32>
    %50 = tpu.reciprocal %49 {approx = true} : vector<16x16x1xf32> -> vector<16x16x1xf32>
    %51 = vector.broadcast %50 : vector<16x16x1xf32> to vector<16x16x16xf32>
    %52 = arith.mulf %47, %51 : vector<16x16x16xf32>
    "tpu.trace_start"() <{level = 10 : i32, message = "wts,wsd->wtd"}> : () -> ()
    %cst_19 = arith.constant dense<0.000000e+00> : vector<16x16x4xf32>
    %53 = tpu.matmul %52, %41, %cst_19 {dimension_numbers = #tpu.dot_dimension_numbers<[2], [1], [1], [2], [0, 0, 0, 1, 1, 2], [0], [0]>} : vector<16x16x16xf32>, vector<16x16x4xf32>, vector<16x16x4xf32> -> vector<16x16x4xf32>
    "tpu.trace_stop"() : () -> ()
    %54 = vector.extract_strided_slice %34 {offsets = [0, 0, 4], sizes = [16, 16, 4], strides = [1, 1, 1]} : vector<16x16x8xf32> to vector<16x16x4xf32>
    %cst_20 = arith.constant 5.000000e-01 : f32
    %55 = vector.broadcast %cst_20 : f32 to vector<16x16x4xf32>
    %56 = arith.mulf %54, %55 : vector<16x16x4xf32>
    %57 = vector.extract_strided_slice %35 {offsets = [0, 0, 4], sizes = [16, 16, 4], strides = [1, 1, 1]} : vector<16x16x8xf32> to vector<16x16x4xf32>
    %58 = vector.extract_strided_slice %36 {offsets = [0, 0, 4], sizes = [16, 16, 4], strides = [1, 1, 1]} : vector<16x16x8xf32> to vector<16x16x4xf32>
    "tpu.trace_start"() <{level = 10 : i32, message = "wtd,wsd->wts"}> : () -> ()
    %cst_21 = arith.constant dense<0.000000e+00> : vector<16x16x16xf32>
    %59 = tpu.matmul %56, %57, %cst_21 {dimension_numbers = #tpu.dot_dimension_numbers<[2], [2], [1], [1], [0, 0, 0, 1, 1, 1], [0], [0]>} : vector<16x16x4xf32>, vector<16x16x4xf32>, vector<16x16x16xf32> -> vector<16x16x16xf32>
    "tpu.trace_stop"() : () -> ()
    %cst_22 = arith.constant dense<0xFF800000> : vector<16x16xf32>
    %60 = vector.multi_reduction <maximumf>, %59, %cst_22 [2] : vector<16x16x16xf32> to vector<16x16xf32>
    %61 = vector.shape_cast %60 : vector<16x16xf32> to vector<16x16x1xf32>
    %62 = vector.broadcast %61 : vector<16x16x1xf32> to vector<16x16x16xf32>
    %63 = arith.subf %59, %62 : vector<16x16x16xf32>
    %64 = math.exp %63 : vector<16x16x16xf32>
    %cst_23 = arith.constant dense<0.000000e+00> : vector<16x16xf32>
    %65 = vector.multi_reduction <add>, %64, %cst_23 [2] : vector<16x16x16xf32> to vector<16x16xf32>
    %66 = vector.shape_cast %65 : vector<16x16xf32> to vector<16x16x1xf32>
    %67 = tpu.reciprocal %66 {approx = true} : vector<16x16x1xf32> -> vector<16x16x1xf32>
    %68 = vector.broadcast %67 : vector<16x16x1xf32> to vector<16x16x16xf32>
    %69 = arith.mulf %64, %68 : vector<16x16x16xf32>
    "tpu.trace_start"() <{level = 10 : i32, message = "wts,wsd->wtd"}> : () -> ()
    %cst_24 = arith.constant dense<0.000000e+00> : vector<16x16x4xf32>
    %70 = tpu.matmul %69, %58, %cst_24 {dimension_numbers = #tpu.dot_dimension_numbers<[2], [1], [1], [2], [0, 0, 0, 1, 1, 2], [0], [0]>} : vector<16x16x16xf32>, vector<16x16x4xf32>, vector<16x16x4xf32> -> vector<16x16x4xf32>
    "tpu.trace_stop"() : () -> ()
    %71 = tpu.concatenate %53, %70 in 2 : vector<16x16x4xf32>, vector<16x16x4xf32> -> vector<16x16x8xf32>
    %72 = vector.shape_cast %71 : vector<16x16x8xf32> to vector<256x8xf32>
    %c0_25 = arith.constant 0 : index
    %c0_26 = arith.constant 0 : index
    %73 = vector.load %arg6[%c0_25, %c0_26] : memref<8x8xf32, #tpu.memory_space<vmem>>, vector<8x8xf32>
    %cst_27 = arith.constant dense<0.000000e+00> : vector<256x8xf32>
    %74 = tpu.matmul %72, %73, %cst_27 {dimension_numbers = #tpu.dot_dimension_numbers<[1], [0], [0], [1], [0, 0, 1, 1], [], []>} : vector<256x8xf32>, vector<8x8xf32>, vector<256x8xf32> -> vector<256x8xf32>
    %c0_28 = arith.constant 0 : index
    %c0_29 = arith.constant 0 : index
    %75 = vector.load %arg7[%c0_28, %c0_29] : memref<1x8xf32, #tpu.memory_space<vmem>>, vector<1x8xf32>
    %76 = vector.broadcast %75 : vector<1x8xf32> to vector<256x8xf32>
    %77 = arith.addf %74, %76 : vector<256x8xf32>
    %78 = vector.shape_cast %0 : vector<16x16x8xf32> to vector<256x8xf32>
    %79 = arith.addf %78, %77 : vector<256x8xf32>
    %cst_30 = arith.constant dense<0.000000e+00> : vector<256xf32>
    %80 = vector.multi_reduction <add>, %79, %cst_30 [1] : vector<256x8xf32> to vector<256xf32>
    %81 = vector.shape_cast %80 : vector<256xf32> to vector<256x1xf32>
    %cst_31 = arith.constant 8.000000e+00 : f32
    %82 = vector.broadcast %cst_31 : f32 to vector<256x1xf32>
    %83 = arith.divf %81, %82 : vector<256x1xf32>
    %84 = vector.broadcast %83 : vector<256x1xf32> to vector<256x8xf32>
    %85 = arith.subf %79, %84 : vector<256x8xf32>
    %86 = arith.mulf %85, %85 : vector<256x8xf32>
    %cst_32 = arith.constant dense<0.000000e+00> : vector<256xf32>
    %87 = vector.multi_reduction <add>, %86, %cst_32 [1] : vector<256x8xf32> to vector<256xf32>
    %88 = vector.shape_cast %87 : vector<256xf32> to vector<256x1xf32>
    %cst_33 = arith.constant 8.000000e+00 : f32
    %89 = vector.broadcast %cst_33 : f32 to vector<256x1xf32>
    %90 = arith.divf %88, %89 : vector<256x1xf32>
    %91 = vector.broadcast %83 : vector<256x1xf32> to vector<256x8xf32>
    %92 = arith.subf %79, %91 : vector<256x8xf32>
    %cst_34 = arith.constant 9.99999974E-6 : f32
    %93 = vector.broadcast %cst_34 : f32 to vector<256x1xf32>
    %94 = arith.addf %90, %93 : vector<256x1xf32>
    %95 = math.rsqrt %94 : vector<256x1xf32>
    %96 = vector.broadcast %95 : vector<256x1xf32> to vector<256x8xf32>
    %97 = arith.mulf %92, %96 : vector<256x8xf32>
    %c0_35 = arith.constant 0 : index
    %c0_36 = arith.constant 0 : index
    %98 = vector.load %arg8[%c0_35, %c0_36] : memref<1x8xf32, #tpu.memory_space<vmem>>, vector<1x8xf32>
    %99 = vector.broadcast %98 : vector<1x8xf32> to vector<256x8xf32>
    %100 = arith.mulf %97, %99 : vector<256x8xf32>
    %c0_37 = arith.constant 0 : index
    %c0_38 = arith.constant 0 : index
    %101 = vector.load %arg9[%c0_37, %c0_38] : memref<1x8xf32, #tpu.memory_space<vmem>>, vector<1x8xf32>
    %102 = vector.broadcast %101 : vector<1x8xf32> to vector<256x8xf32>
    %103 = arith.addf %100, %102 : vector<256x8xf32>
    %c0_39 = arith.constant 0 : index
    %c0_40 = arith.constant 0 : index
    %104 = vector.load %arg10[%c0_39, %c0_40] : memref<8x32xf32, #tpu.memory_space<vmem>>, vector<8x32xf32>
    %cst_41 = arith.constant dense<0.000000e+00> : vector<256x32xf32>
    %105 = tpu.matmul %103, %104, %cst_41 {dimension_numbers = #tpu.dot_dimension_numbers<[1], [0], [0], [1], [0, 0, 1, 1], [], []>} : vector<256x8xf32>, vector<8x32xf32>, vector<256x32xf32> -> vector<256x32xf32>
    %c0_42 = arith.constant 0 : index
    %c0_43 = arith.constant 0 : index
    %106 = vector.load %arg11[%c0_42, %c0_43] : memref<1x32xf32, #tpu.memory_space<vmem>>, vector<1x32xf32>
    %107 = vector.broadcast %106 : vector<1x32xf32> to vector<256x32xf32>
    %108 = arith.addf %105, %107 : vector<256x32xf32>
    %109 = arith.mulf %108, %108 : vector<256x32xf32>
    %110 = arith.mulf %108, %109 : vector<256x32xf32>
    %cst_44 = arith.constant 4.471500e-02 : f32
    %111 = vector.broadcast %cst_44 : f32 to vector<256x32xf32>
    %112 = arith.mulf %111, %110 : vector<256x32xf32>
    %113 = arith.addf %108, %112 : vector<256x32xf32>
    %cst_45 = arith.constant 0.797884583 : f32
    %114 = vector.broadcast %cst_45 : f32 to vector<256x32xf32>
    %115 = arith.mulf %114, %113 : vector<256x32xf32>
    %116 = math.tanh %115 : vector<256x32xf32>
    %cst_46 = arith.constant 1.000000e+00 : f32
    %117 = vector.broadcast %cst_46 : f32 to vector<256x32xf32>
    %118 = arith.addf %117, %116 : vector<256x32xf32>
    %cst_47 = arith.constant 5.000000e-01 : f32
    %119 = vector.broadcast %cst_47 : f32 to vector<256x32xf32>
    %120 = arith.mulf %119, %118 : vector<256x32xf32>
    %121 = arith.mulf %108, %120 : vector<256x32xf32>
    %c0_48 = arith.constant 0 : index
    %c0_49 = arith.constant 0 : index
    %122 = vector.load %arg12[%c0_48, %c0_49] : memref<32x8xf32, #tpu.memory_space<vmem>>, vector<32x8xf32>
    %cst_50 = arith.constant dense<0.000000e+00> : vector<256x8xf32>
    %123 = tpu.matmul %121, %122, %cst_50 {dimension_numbers = #tpu.dot_dimension_numbers<[1], [0], [0], [1], [0, 0, 1, 1], [], []>} : vector<256x32xf32>, vector<32x8xf32>, vector<256x8xf32> -> vector<256x8xf32>
    %c0_51 = arith.constant 0 : index
    %c0_52 = arith.constant 0 : index
    %124 = vector.load %arg13[%c0_51, %c0_52] : memref<1x8xf32, #tpu.memory_space<vmem>>, vector<1x8xf32>
    %125 = vector.broadcast %124 : vector<1x8xf32> to vector<256x8xf32>
    %126 = arith.addf %123, %125 : vector<256x8xf32>
    %127 = arith.addf %79, %126 : vector<256x8xf32>
    %128 = vector.shape_cast %127 : vector<256x8xf32> to vector<16x16x8xf32>
    %c0_53 = arith.constant 0 : index
    %c0_54 = arith.constant 0 : index
    %c0_55 = arith.constant 0 : index
    %129 = vector.load %arg14[%c0_53, %c0_54, %c0_55] : memref<16x16x8xf32, #tpu.memory_space<vmem>>, vector<16x16x8xf32>
    tpu.vector_store %arg14[%c0_53, %c0_54, %c0_55], %128 {strides = array<i32>} : memref<16x16x8xf32, #tpu.memory_space<vmem>>, vector<16x16x8xf32>,
    return
  }
  func.func @transform_0(%arg0: i32) -> (i32, i32, i32) {
    %c0_i32 = arith.constant 0 : i32
    %c0_i32_0 = arith.constant 0 : i32
    %c0_i32_1 = arith.constant 0 : i32
    return %arg0, %c0_i32, %c0_i32_0 : i32, i32, i32
  }
  func.func @transform_1(%arg0: i32) -> (i32, i32) {
    %c0_i32 = arith.constant 0 : i32
    %c0_i32_0 = arith.constant 0 : i32
    %c0_i32_1 = arith.constant 0 : i32
    return %c0_i32, %c0_i32_0 : i32, i32
  }
  func.func @transform_2(%arg0: i32) -> (i32, i32) {
    %c0_i32 = arith.constant 0 : i32
    %c0_i32_0 = arith.constant 0 : i32
    %c0_i32_1 = arith.constant 0 : i32
    return %c0_i32, %c0_i32_0 : i32, i32
  }
  func.func @transform_3(%arg0: i32) -> (i32, i32) {
    %c0_i32 = arith.constant 0 : i32
    %c0_i32_0 = arith.constant 0 : i32
    %c0_i32_1 = arith.constant 0 : i32
    return %c0_i32, %c0_i32_0 : i32, i32
  }
  func.func @transform_4(%arg0: i32) -> (i32, i32) {
    %c0_i32 = arith.constant 0 : i32
    %c0_i32_0 = arith.constant 0 : i32
    %c0_i32_1 = arith.constant 0 : i32
    return %c0_i32, %c0_i32_0 : i32, i32
  }
  func.func @transform_5(%arg0: i32) -> (i32, i32) {
    %c0_i32 = arith.constant 0 : i32
    %c0_i32_0 = arith.constant 0 : i32
    %c0_i32_1 = arith.constant 0 : i32
    return %c0_i32, %c0_i32_0 : i32, i32
  }
  func.func @transform_6(%arg0: i32) -> (i32, i32) {
    %c0_i32 = arith.constant 0 : i32
    %c0_i32_0 = arith.constant 0 : i32
    %c0_i32_1 = arith.constant 0 : i32
    return %c0_i32, %c0_i32_0 : i32, i32
  }
  func.func @transform_7(%arg0: i32) -> (i32, i32) {
    %c0_i32 = arith.constant 0 : i32
    %c0_i32_0 = arith.constant 0 : i32
    %c0_i32_1 = arith.constant 0 : i32
    return %c0_i32, %c0_i32_0 : i32, i32
  }
  func.func @transform_8(%arg0: i32) -> (i32, i32) {
    %c0_i32 = arith.constant 0 : i32
    %c0_i32_0 = arith.constant 0 : i32
    %c0_i32_1 = arith.constant 0 : i32
    return %c0_i32, %c0_i32_0 : i32, i32
  }
  func.func @transform_9(%arg0: i32) -> (i32, i32) {
    %c0_i32 = arith.constant 0 : i32
    %c0_i32_0 = arith.constant 0 : i32
    %c0_i32_1 = arith.constant 0 : i32
    return %c0_i32, %c0_i32_0 : i32, i32
  }
  func.func @transform_10(%arg0: i32) -> (i32, i32) {
    %c0_i32 = arith.constant 0 : i32
    %c0_i32_0 = arith.constant 0 : i32
    %c0_i32_1 = arith.constant 0 : i32
    return %c0_i32, %c0_i32_0 : i32, i32
  }
  func.func @transform_11(%arg0: i32) -> (i32, i32) {
    %c0_i32 = arith.constant 0 : i32
    %c0_i32_0 = arith.constant 0 : i32
    %c0_i32_1 = arith.constant 0 : i32
    return %c0_i32, %c0_i32_0 : i32, i32
  }
  func.func @transform_12(%arg0: i32) -> (i32, i32) {
    %c0_i32 = arith.constant 0 : i32
    %c0_i32_0 = arith.constant 0 : i32
    %c0_i32_1 = arith.constant 0 : i32
    return %c0_i32, %c0_i32_0 : i32, i32
  }
  func.func @transform_13(%arg0: i32) -> (i32, i32, i32) {
    %c0_i32 = arith.constant 0 : i32
    %c0_i32_0 = arith.constant 0 : i32
    %c0_i32_1 = arith.constant 0 : i32
    return %arg0, %c0_i32, %c0_i32_0 : i32, i32, i32
  }
}

</mosaic_0001>

<bundles_post_ra>
// kernel: adaptive_maxvit_block.3
= control target key start
LH: loop header
LB: loop body
LE: loop exit
PB: predicated region body
PF: predicated region fallthrough
CT: control target
= control target key end

     0   :  { %s4442_s17 = smov 0   ;;  %s7486_s0 = inlined_call_operand.vmem [shape: f32[2,16,16,8], index: 0, kind: input, shape index: {}]   ;;  %s7487_s1 = inlined_call_operand.vmem [shape: f32[8,32], index: 1, kind: input, shape index: {}]   ;;  %s7488_s2 = inlined_call_operand.vmem [shape: f32[1,32], index: 2, kind: input, shape index: {}]   ;;  %s7489_s3 = inlined_call_operand.vmem [shape: f32[3,3,32], index: 3, kind: input, shape index: {}]   ;;  %s7490_s4 = inlined_call_operand.vmem [shape: f32[1,32], index: 4, kind: input, shape index: {}]   ;;  %s7491_s5 = inlined_call_operand.vmem [shape: f32[32,8], index: 5, kind: input, shape index: {}]   ;;  %s7492_s6 = inlined_call_operand.vmem [shape: f32[1,8], index: 6, kind: input, shape index: {}]   ;;  %s7493_s7 = inlined_call_operand.vmem [shape: f32[8,32], index: 7, kind: input, shape index: {}]   ;;  %s7494_s8 = inlined_call_operand.vmem [shape: f32[1,32], index: 8, kind: input, shape index: {}]   ;;  %s7495_s9 = inlined_call_operand.vmem [shape: f32[32,8], index: 9, kind: input, shape index: {}]   ;;  %s7496_s10 = inlined_call_operand.vmem [shape: f32[1,8], index: 10, kind: input, shape index: {}]   ;;  %s7497_s11 = inlined_call_operand.vmem [shape: f32[2,16,16,8], index: 11, kind: output, shape index: {}]  }
   0x1 LB: > { %s3898_s18 = sadd.s32 4294967295, %s4377_s17   ;;  %p3902_p0 = scmp.ge.s32.totalorder %s4377_s17, 1  ;;  %s4377_s17 = sphi %s4442_s17, %s21_s17  }
   0x2   : > { %p337_p1 = scmp.lt.s32.totalorder %s4377_s17, 3 }
   0x4   : > { %p338_p2 = pnand %p3902_p0, %p337_p1 }
   0x6   : > { %341 = sbr.rel (%p338_p2) target bundleno = 1475 (0x5c3), region = 64 }
   0xd   : > { %v419_v0 = vld [vmem:[%s7487_s1] sm:$0xff]  ;;  %p377_p3 = scmp.lt.s32.totalorder %s3898_s18, 1  ;;  %vm427_vm0 = vcmask 64512   ;;  %vm1037_vm1 = vcmask 261120   ;;  %vm1040_vm2 = vcmask 254976   ;;  %v7498_v33 = vmov 0.0  }
   0xe   : > { %4057 = vmatprep.subr.mxu0 %v419_v0  ;;  %1043 = vst.msk [vmem:[#allocation2 + $0x20] sm:$0xff] %vm1037_vm1, %v7498_v33  ;;  %1038 = vst.msk [vmem:[#allocation2] sm:$0xff] %vm1037_vm1, %v7498_v33  ;;  %4118 = vmatprep.subr.mxu1 %v7498_v33  ;;  %v4639_v34 = vld [vmem:[%s7488_s2] ss:$0 sm:$0xff]  ;;  %v1183_v62 = vlaneseq  ;;  %vm1351_vm3 = vcmask 1046528   ;;  %vm1596_vm4 = vcmask 1045504  }
   0xf   : > { %4058 = vmatpush3.msra.mxu0 %v419_v0  ;;  %s7819_s18 = smov (!%p377_p3, %s3898_s18), 1  ;;  %1044 = vst.msk [vmem:[#allocation2 + $0x28] sm:$0x3] %vm1040_vm2, %v7498_v33  ;;  %1041 = vst.msk [vmem:[#allocation2 + $0x10] sm:$0x3] %vm1040_vm2, %v7498_v33  ;;  %vm4381_vm5 = vmmov 0  }
  0x10   : > { %s3979_s21 = sshll.u32 %s7819_s18, 8  ;;  %1039 = vst.msk [vmem:[#allocation2 + $0x8] sm:$0xff] %vm1037_vm1, %v7498_v33  ;;  %1042 = vst.msk [vmem:[#allocation2 + $0x18] sm:$0xff] %vm1037_vm1, %v7498_v33 }
  0x11   : > { %s4461_s24 = scalar_lea.vmem %s7486_s0, %s3979_s21  ;;  %1045 = vst.msk [vmem:[#allocation2 + $0x30] sm:$0xff] %vm1037_vm1, %v7498_v33  ;;  %1046 = vst.msk [vmem:[#allocation2 + $0x38] sm:$0xff] %vm1037_vm1, %v7498_v33  ;;  %s7354_s20 = scalar_lea.vmem %s7497_s11, %s3979_s21 }
  0x12   : > { %v387_v1 = vld [vmem:[%s4461_s24] sm:$0xff]  ;;  %v388_v2 = vld [vmem:[%s4461_s24 + $0x8] sm:$0xff]  ;;  %v389_v3 = vld [vmem:[%s4461_s24 + $0x10] sm:$0xff]  ;;  %1047 = vst.msk [vmem:[#allocation2 + $0x40] sm:$0x3] %vm1040_vm2, %v7498_v33 }
  0x13   : > { %4059 = vmatprep.mubr.msk.f32.mxu0 %vm427_vm0, %v387_v1  ;;  %v390_v4 = vld [vmem:[%s4461_s24 + $0x18] sm:$0xff]  ;;  %v391_v5 = vld [vmem:[%s4461_s24 + $0x20] sm:$0xff]  ;;  %v392_v6 = vld [vmem:[%s4461_s24 + $0x28] sm:$0xff]  ;;  %1048 = vst.msk [vmem:[#allocation2 + $0x48] sm:$0xff] %vm1037_vm1, %v7498_v33 }
  0x14   : > { %4060 = vmatmul.mubr.msk.f32.vlgmr.msra.gmra.mrb[0].mxu0 %vm427_vm0, %v388_v2  ;;  %v393_v7 = vld [vmem:[%s4461_s24 + $0x30] sm:$0xff]  ;;  %v394_v8 = vld [vmem:[%s4461_s24 + $0x38] sm:$0xff]  ;;  %v395_v9 = vld [vmem:[%s4461_s24 + $0x40] sm:$0xff]  ;;  %1049 = vst.msk [vmem:[#allocation2 + $0x50] sm:$0xff] %vm1037_vm1, %v7498_v33 }
  0x15   : > { %4062 = vmatprep.mubr.msk.f32.mxu0 %vm427_vm0, %v389_v3  ;;  %v396_v10 = vld [vmem:[%s4461_s24 + $0x48] sm:$0xff]  ;;  %v397_v11 = vld [vmem:[%s4461_s24 + $0x50] sm:$0xff]  ;;  %v398_v12 = vld [vmem:[%s4461_s24 + $0x58] sm:$0xff]  ;;  %1050 = vst.msk [vmem:[#allocation2 + $0x58] sm:$0x3] %vm1040_vm2, %v7498_v33 }
  0x16   : > { %v399_v13 = vld [vmem:[%s4461_s24 + $0x60] sm:$0xff]  ;;  %v400_v14 = vld [vmem:[%s4461_s24 + $0x68] sm:$0xff]  ;;  %v401_v15 = vld [vmem:[%s4461_s24 + $0x70] sm:$0xff]  ;;  %1051 = vst.msk [vmem:[#allocation2 + $0x60] sm:$0xff] %vm1037_vm1, %v7498_v33 }
  0x17   : > { %v402_v16 = vld [vmem:[%s4461_s24 + $0x78] sm:$0xff]  ;;  %v403_v17 = vld [vmem:[%s4461_s24 + $0x80] sm:$0xff]  ;;  %v404_v18 = vld [vmem:[%s4461_s24 + $0x88] sm:$0xff]  ;;  %1052 = vst.msk [vmem:[#allocation2 + $0x68] sm:$0xff] %vm1037_vm1, %v7498_v33 }
  0x18   : > { %4063 = vmatmul.mubr.msk.f32.gmra.mrb[2].mxu0 %vm427_vm0, %v390_v4  ;;  %v405_v19 = vld [vmem:[%s4461_s24 + $0x90] sm:$0xff]  ;;  %v406_v20 = vld [vmem:[%s4461_s24 + $0x98] sm:$0xff]  ;;  %v407_v21 = vld [vmem:[%s4461_s24 + $0xa0] sm:$0xff]  ;;  %1053 = vst.msk [vmem:[#allocation2 + $0x70] sm:$0x3] %vm1040_vm2, %v7498_v33 }
  0x19   : > { %4065 = vmatprep.mubr.msk.f32.mxu0 %vm427_vm0, %v391_v5  ;;  %v408_v22 = vld [vmem:[%s4461_s24 + $0xa8] sm:$0xff]  ;;  %v409_v23 = vld [vmem:[%s4461_s24 + $0xb0] sm:$0xff]  ;;  %v410_v24 = vld [vmem:[%s4461_s24 + $0xb8] sm:$0xff]  ;;  %1054 = vst.msk [vmem:[#allocation2 + $0x78] sm:$0xff] %vm1037_vm1, %v7498_v33 }
  0x1a   : > { %v411_v25 = vld [vmem:[%s4461_s24 + $0xc0] sm:$0xff]  ;;  %v412_v26 = vld [vmem:[%s4461_s24 + $0xc8] sm:$0xff]  ;;  %v413_v27 = vld [vmem:[%s4461_s24 + $0xd0] sm:$0xff]  ;;  %1055 = vst.msk [vmem:[#allocation2 + $0x80] sm:$0xff] %vm1037_vm1, %v7498_v33 }
  0x1b   : > { %v414_v28 = vld [vmem:[%s4461_s24 + $0xd8] sm:$0xff]  ;;  %v415_v29 = vld [vmem:[%s4461_s24 + $0xe0] sm:$0xff]  ;;  %v416_v30 = vld [vmem:[%s4461_s24 + $0xe8] sm:$0xff]  ;;  %1056 = vst.msk [vmem:[#allocation2 + $0x88] sm:$0x3] %vm1040_vm2, %v7498_v33 }
  0x1c   : > { %4066 = vmatmul.mubr.msk.f32.gmra.mrb[4].mxu0 %vm427_vm0, %v392_v6  ;;  %v417_v31 = vld [vmem:[%s4461_s24 + $0xf0] sm:$0xff]  ;;  %v418_v32 = vld [vmem:[%s4461_s24 + $0xf8] sm:$0xff]  ;;  %1057 = vst.msk [vmem:[#allocation2 + $0x90] sm:$0xff] %vm1037_vm1, %v7498_v33  ;;  %1058 = vst.msk [vmem:[#allocation2 + $0x98] sm:$0xff] %vm1037_vm1, %v7498_v33 }
  0x1d   : > { %4068 = vmatprep.mubr.msk.f32.mxu0 %vm427_vm0, %v393_v7  ;;  %1059 = vst.msk [vmem:[#allocation2 + $0xa0] sm:$0x3] %vm1040_vm2, %v7498_v33  ;;  %1062 = vst.msk [vmem:[#allocation2 + $0xb8] sm:$0x3] %vm1040_vm2, %v7498_v33 }
  0x1e   : > { %1060 = vst.msk [vmem:[#allocation2 + $0xa8] sm:$0xff] %vm1037_vm1, %v7498_v33  ;;  %1061 = vst.msk [vmem:[#allocation2 + $0xb0] sm:$0xff] %vm1037_vm1, %v7498_v33 }
  0x1f   : > { %1063 = vst.msk [vmem:[#allocation2 + $0xc0] sm:$0xff] %vm1037_vm1, %v7498_v33  ;;  %1064 = vst.msk [vmem:[#allocation2 + $0xc8] sm:$0xff] %vm1037_vm1, %v7498_v33 }
  0x20   : > { %4069 = vmatmul.mubr.msk.f32.gmra.mrb[6].mxu0 %vm427_vm0, %v394_v8  ;;  %1065 = vst.msk [vmem:[#allocation2 + $0xd0] sm:$0x3] %vm1040_vm2, %v7498_v33  ;;  %1068 = vst.msk [vmem:[#allocation2 + $0xe8] sm:$0x3] %vm1040_vm2, %v7498_v33 }
  0x21   : > { %4071 = vmatprep.mubr.msk.f32.mxu0 %vm427_vm0, %v395_v9  ;;  %1066 = vst.msk [vmem:[#allocation2 + $0xd8] sm:$0xff] %vm1037_vm1, %v7498_v33  ;;  %1067 = vst.msk [vmem:[#allocation2 + $0xe0] sm:$0xff] %vm1037_vm1, %v7498_v33 }
  0x22   : > { %1069 = vst.msk [vmem:[#allocation2 + $0xf0] sm:$0xff] %vm1037_vm1, %v7498_v33  ;;  %1070 = vst.msk [vmem:[#allocation2 + $0xf8] sm:$0xff] %vm1037_vm1, %v7498_v33 }
  0x23   : > { %1071 = vst.msk [vmem:[#allocation2 + $0x100] sm:$0x3] %vm1040_vm2, %v7498_v33  ;;  %1074 = vst.msk [vmem:[#allocation2 + $0x118] sm:$0x3] %vm1040_vm2, %v7498_v33 }
  0x24   : > { %4072 = vmatmul.mubr.msk.f32.gmra.mrb[8].mxu0 %vm427_vm0, %v396_v10  ;;  %1072 = vst.msk [vmem:[#allocation2 + $0x108] sm:$0xff] %vm1037_vm1, %v7498_v33  ;;  %1073 = vst.msk [vmem:[#allocation2 + $0x110] sm:$0xff] %vm1037_vm1, %v7498_v33  ;;  %v1184_v10 = vshrl.u32 %v1183_v62, 7 }
  0x25   : > { %4074 = vmatprep.mubr.msk.f32.mxu0 %vm427_vm0, %v397_v11  ;;  %1075 = vst.msk [vmem:[#allocation2 + $0x120] sm:$0xff] %vm1037_vm1, %v7498_v33  ;;  %1076 = vst.msk [vmem:[#allocation2 + $0x128] sm:$0xff] %vm1037_vm1, %v7498_v33 }
  0x26   : > { %1077 = vst.msk [vmem:[#allocation2 + $0x130] sm:$0x3] %vm1040_vm2, %v7498_v33  ;;  %1080 = vst.msk [vmem:[#allocation2 + $0x148] sm:$0x3] %vm1040_vm2, %v7498_v33 }
  0x27   : > { %1078 = vst.msk [vmem:[#allocation2 + $0x138] sm:$0xff] %vm1037_vm1, %v7498_v33  ;;  %1079 = vst.msk [vmem:[#allocation2 + $0x140] sm:$0xff] %vm1037_vm1, %v7498_v33 }
  0x28   : > { %4075 = vmatmul.mubr.msk.f32.gmra.mrb[10].mxu0 %vm427_vm0, %v398_v12  ;;  %1081 = vst.msk [vmem:[#allocation2 + $0x150] sm:$0xff] %vm1037_vm1, %v7498_v33  ;;  %1082 = vst.msk [vmem:[#allocation2 + $0x158] sm:$0xff] %vm1037_vm1, %v7498_v33 }
  0x29   : > { %4077 = vmatprep.mubr.msk.f32.mxu0 %vm427_vm0, %v399_v13  ;;  %1083 = vst.msk [vmem:[#allocation2 + $0x160] sm:$0x3] %vm1040_vm2, %v7498_v33  ;;  %1086 = vst.msk [vmem:[#allocation2 + $0x178] sm:$0x3] %vm1040_vm2, %v7498_v33 }
  0x2a   : > { %1084 = vst.msk [vmem:[#allocation2 + $0x168] sm:$0xff] %vm1037_vm1, %v7498_v33  ;;  %1085 = vst.msk [vmem:[#allocation2 + $0x170] sm:$0xff] %vm1037_vm1, %v7498_v33 }
  0x2b   : > { %1087 = vst.msk [vmem:[#allocation2 + $0x180] sm:$0xff] %vm1037_vm1, %v7498_v33  ;;  %1088 = vst.msk [vmem:[#allocation2 + $0x188] sm:$0xff] %vm1037_vm1, %v7498_v33 }
  0x2c   : > { %4078 = vmatmul.mubr.msk.f32.gmra.mrb[12].mxu0 %vm427_vm0, %v400_v14  ;;  %1089 = vst.msk [vmem:[#allocation2 + $0x190] sm:$0x3] %vm1040_vm2, %v7498_v33  ;;  %1092 = vst.msk [vmem:[#allocation2 + $0x1a8] sm:$0x3] %vm1040_vm2, %v7498_v33 }
  0x2d   : > { %4080 = vmatprep.mubr.msk.f32.mxu0 %vm427_vm0, %v401_v15  ;;  %1090 = vst.msk [vmem:[#allocation2 + $0x198] sm:$0xff] %vm1037_vm1, %v7498_v33  ;;  %1091 = vst.msk [vmem:[#allocation2 + $0x1a0] sm:$0xff] %vm1037_vm1, %v7498_v33 }
  0x30   : > { %4081 = vmatmul.mubr.msk.f32.gmra.mrb[14].mxu0 %vm427_vm0, %v402_v16 }
  0x31   : > { %4083 = vmatprep.mubr.msk.f32.mxu0 %vm427_vm0, %v403_v17 }
  0x34   : > { %4084 = vmatmul.mubr.msk.f32.gmra.mrb[16].mxu0 %vm427_vm0, %v404_v18  ;;  %v4683_v18 = vsub.s32 1, %v1184_v10 }
  0x35   : > { %4086 = vmatprep.mubr.msk.f32.mxu0 %vm427_vm0, %v405_v19 }
  0x38   : > { %4087 = vmatmul.mubr.msk.f32.gmra.mrb[18].mxu0 %vm427_vm0, %v406_v20 }
  0x39   : > { %4089 = vmatprep.mubr.msk.f32.mxu0 %vm427_vm0, %v407_v21  ;;  %v1180_v21 = vld [vmem:[%s7489_s3] sm:$0x7] }
  0x3c   : > { %4090 = vmatmul.mubr.msk.f32.gmra.mrb[20].mxu0 %vm427_vm0, %v408_v22 }
  0x3d   : > { %4092 = vmatprep.mubr.msk.f32.mxu0 %vm427_vm0, %v409_v23 }
  0x40   : > { %4093 = vmatmul.mubr.msk.f32.gmra.mrb[22].mxu0 %vm427_vm0, %v410_v24 }
  0x41   : > { %4095 = vmatprep.mubr.msk.f32.mxu0 %vm427_vm0, %v411_v25 }
  0x44   : > { %4096 = vmatmul.mubr.msk.f32.gmra.mrb[24].mxu0 %vm427_vm0, %v412_v26  ;;  %v4693_v26 = vrot.slane %v1180_v21, %v4683_v18 }
  0x45   : > { %4098 = vmatprep.mubr.msk.f32.mxu0 %vm427_vm0, %v413_v27 }
  0x48   : > { %4099 = vmatmul.mubr.msk.f32.gmra.mrb[26].mxu0 %vm427_vm0, %v414_v28  ;;  %v4697_v28 = vsub.s32 2, %v1184_v10 }
  0x49   : > { %4101 = vmatprep.mubr.msk.f32.mxu0 %vm427_vm0, %v415_v29 }
  0x4c   : > { %4102 = vmatmul.mubr.msk.f32.gmra.mrb[28].mxu0 %vm427_vm0, %v416_v30  ;;  %v1126_v30 = vld [vmem:[#allocation2] sm:$0xff] }
  0x4d   : > { %4104 = vmatprep.mubr.msk.f32.mxu0 %vm427_vm0, %v417_v31 }
  0x50   : > { %4105 = vmatmul.mubr.msk.f32.gmra.mrb[30].mxu0 %vm427_vm0, %v418_v32 }
  0xe7   : > { %v4061_v35 = vpop.f32.mrb[0].mxu0 }
  0xe8   : > { %v4642_v36 = vadd.f32 %v4061_v35, %v4639_v34  ;;  %v590_v37 = vpop.f32.mrb[1].mxu0  ;;  %v4701_v35 = vld [vmem:[#allocation2 + $0x8] sm:$0xff] }
  0xe9   : > { %v4645_v38 = vadd.f32 %v4639_v34, %v590_v37 }
  0xea   : > { %v750_v39 = vmul.f32 %v4642_v36, %v4642_v36 }
  0xeb   : > { %v749_v40 = vmul.f32 %v4645_v38, %v4645_v38  ;;  %v4064_v41 = vpop.f32.mrb[2].mxu0 }
  0xec   : > { %v782_v42 = vmul.f32 %v750_v39, %v4642_v36  ;;  %v4653_v43 = vadd.f32 %v4064_v41, %v4639_v34  ;;  %v600_v44 = vpop.f32.mrb[3].mxu0  ;;  %v4703_v41 = vsub.s32 0, %v1184_v10 }
  0xed   : > { %v781_v45 = vmul.f32 %v749_v40, %v4645_v38  ;;  %v4657_v46 = vadd.f32 %v4639_v34, %v600_v44  ;;  %v1128_v40 = vld [vmem:[#allocation2 + $0x10] sm:$0x3] }
  0xee   : > { %v814_v47 = vmul.f32 0.044715, %v782_v42  ;;  %v752_v48 = vmul.f32 %v4653_v43, %v4653_v43  ;;  %7561 = vst [vmem:[#allocation3_spill] sm:$0xff] %v4703_v41 }
  0xef   : > { %v813_v49 = vmul.f32 0.044715, %v781_v45  ;;  %v751_v50 = vmul.f32 %v4657_v46, %v4657_v46  ;;  %v4067_v51 = vpop.f32.mrb[4].mxu0 }
  0xf0   : > { %v846_v52 = vadd.f32 %v814_v47, %v4642_v36  ;;  %v784_v53 = vmul.f32 %v752_v48, %v4653_v43  ;;  %v4666_v54 = vadd.f32 %v4067_v51, %v4639_v34  ;;  %v610_v55 = vpop.f32.mrb[5].mxu0  ;;  %v1255_v47 = vmul.f32 %v4693_v26, %v1126_v30 }
  0xf1   : > { %v845_v56 = vadd.f32 %v813_v49, %v4645_v38  ;;  %v783_v57 = vmul.f32 %v751_v50, %v4657_v46  ;;  %v4671_v58 = vadd.f32 %v4639_v34, %v610_v55  ;;  %v4713_v50 = vrot.slane %v1180_v21, %v4697_v28 }
  0xf2   : > { %v878_v59 = vmul.f32 0.7978846, %v846_v52  ;;  %v816_v60 = vmul.f32 0.044715, %v784_v53  ;;  %v754_v61 = vmul.f32 %v4666_v54, %v4666_v54  ;;  %v1256_v52 = vmul.f32 %v4693_v26, %v4701_v35 }
  0xf3   : > { %v877_v63 = vmul.f32 0.7978846, %v845_v56  ;;  %v815_v0 = vmul.f32 0.044715, %v783_v57  ;;  %v753_v1 = vmul.f32 %v4671_v58, %v4671_v58  ;;  %v4070_v2 = vpop.f32.mrb[6].mxu0 }
  0xf4   : > { %4204 = vtanh.f32 %v878_v59  ;;  %v848_v3 = vadd.f32 %v816_v60, %v4653_v43  ;;  %v786_v4 = vmul.f32 %v754_v61, %v4666_v54  ;;  %v620_v5 = vpop.f32.mrb[7].mxu0  ;;  %v4706_v42 = vadd.f32 %v4070_v2, %v4639_v34 }
  0xf5   : > { %4206 = vtanh.f32 %v877_v63  ;;  %v847_v6 = vadd.f32 %v815_v0, %v4657_v46  ;;  %v785_v7 = vmul.f32 %v753_v1, %v4671_v58  ;;  %v4723_v57 = vadd.f32 %v4639_v34, %v620_v5 }
  0xf6   : > { %v880_v8 = vmul.f32 0.7978846, %v848_v3  ;;  %v818_v9 = vmul.f32 0.044715, %v786_v4  ;;  %v4727_v60 = vrot.slane %v1180_v21, %v4703_v41  ;;  %v756_v61 = vmul.f32 %v4706_v42, %v4706_v42 }
  0xf7   : > { %v879_v11 = vmul.f32 0.7978846, %v847_v6  ;;  %v817_v12 = vmul.f32 0.044715, %v785_v7  ;;  %v4073_v13 = vpop.f32.mrb[8].mxu0  ;;  %v1352_v0 = vrot.slane %v1255_v47, 1  ;;  %v1500_v5 = vmul.f32 %v4713_v50, %v1126_v30 }
  0xf8   : > { %4208 = vtanh.f32 %v880_v8  ;;  %v850_v14 = vadd.f32 %v818_v9, %v4666_v54  ;;  %v630_v15 = vpop.f32.mrb[9].mxu0  ;;  %7562 = vst [vmem:[#allocation4_spill] sm:$0xff] %v4727_v60  ;;  %v4732_v62 = vadd.f32 %v4073_v13, %v4639_v34  ;;  %v1353_v4 = vrot.slane %v1256_v52, 1 }
  0xf9   : > { %4210 = vtanh.f32 %v879_v11  ;;  %v849_v16 = vadd.f32 %v817_v12, %v4671_v58  ;;  %v4736_v3 = vadd.f32 %v4639_v34, %v630_v15  ;;  %v1501_v8 = vmul.f32 %v4713_v50, %v4701_v35 }
  0xfa   : > { %v882_v17 = vmul.f32 0.7978846, %v850_v14  ;;  %v788_v11 = vmul.f32 %v756_v61, %v4706_v42  ;;  %v758_v12 = vmul.f32 %v4732_v62, %v4732_v62 }
  0xfb   : > { %v881_v19 = vmul.f32 0.7978846, %v849_v16  ;;  %v4685_v20 = vpop.f32.mrb[10].mxu0  ;;  %v757_v15 = vmul.f32 %v4736_v3, %v4736_v3  ;;  %v1187_v16 = vmul.f32 %v4727_v60, %v1126_v30 }
  0xfc   : > { %4212 = vtanh.f32 %v882_v17  ;;  %v4690_v22 = vpop.f32.mrb[11].mxu0  ;;  %v1354_v17 = vsel %vm1351_vm3, %v1352_v0, %v1353_v4  ;;  %v820_v30 = vmul.f32 0.044715, %v788_v11 }
  0xfd   : > { %4214 = vtanh.f32 %v881_v19  ;;  %v1502_v19 = vmul.f32 %v4713_v50, %v1128_v40 }
  0xfe   : > { %v4205_v23 = vpop.eup %4204 }
  0xff   : > { %v4207_v24 = vpop.eup %4206  ;;  %v942_v25 = vadd.f32 1.0, %v4205_v23  ;;  %v4695_v27 = vpop.f32.mrb[12].mxu0  ;;  %v1597_v23 = vrot.slane %v1500_v5, 2  ;;  %v1600_v47 = vrot.slane %v1502_v19, 2 }
 0x100   : > { %v941_v29 = vadd.f32 1.0, %v4207_v24  ;;  %v4699_v31 = vpop.f32.mrb[13].mxu0  ;;  %v1598_v24 = vrot.slane %v1501_v8, 2 }
 0x101   : > { %v974_v32 = vmul.f32 0.5, %v942_v25 }
 0x102   : > { %v4209_v37 = vpop.eup %4208  ;;  %v973_v39 = vmul.f32 0.5, %v941_v29 }
 0x103   : > { %v4211_v44 = vpop.eup %4210  ;;  %v1006_v45 = vmul.f32 %v974_v32, %v4642_v36  ;;  %v944_v48 = vadd.f32 1.0, %v4209_v37  ;;  %v4710_v49 = vpop.f32.mrb[14].mxu0  ;;  %v1257_v36 = vmul.f32 %v4693_v26, %v1128_v40  ;;  %v790_v32 = vmul.f32 %v758_v12, %v4732_v62 }
 0x104   : > { %v1005_v51 = vmul.f32 %v973_v39, %v4645_v38  ;;  %v943_v53 = vadd.f32 1.0, %v4211_v44  ;;  %v4718_v55 = vpop.f32.mrb[15].mxu0  ;;  %v1188_v39 = vmul.f32 %v4727_v60, %v4701_v35  ;;  %v789_v40 = vmul.f32 %v757_v15, %v4736_v3 }
 0x105   : > { %1095 = vst.msk [vmem:[#allocation2 + $0x21] sm:$0xff] %vm1037_vm1, %v1006_v45  ;;  %v976_v56 = vmul.f32 0.5, %v944_v48  ;;  %v1355_v13 = vrot.slane %v1257_v36, 1  ;;  %v1464_v45 = vadd.f32 %v1354_v17, %v1187_v16 }
 0x106   : > { %v4213_v59 = vpop.eup %4212  ;;  %1094 = vst.msk [vmem:[#allocation2 + $0x19] sm:$0xff] %vm1037_vm1, %v1005_v51  ;;  %v975_v38 = vmul.f32 0.5, %v943_v53  ;;  %v1599_v51 = vsel %vm1596_vm4, %v1597_v23, %v1598_v24  ;;  %v821_v61 = vmul.f32 0.044715, %v789_v40 }
 0x107   : > { %v4215_v63 = vpop.eup %4214  ;;  %v1008_v1 = vmul.f32 %v976_v56, %v4653_v43  ;;  %v946_v2 = vadd.f32 1.0, %v4213_v59  ;;  %v755_v43 = vmul.f32 %v4723_v57, %v4723_v57  ;;  %v1356_v44 = vsel %vm1351_vm3, %v1353_v4, %v1355_v13 }
 0x108   : > { %v1007_v6 = vmul.f32 %v975_v38, %v4657_v46  ;;  %v945_v7 = vadd.f32 1.0, %v4215_v63  ;;  %v1181_v46 = vld [vmem:[%s7489_s3 + $0x4] sm:$0x7]  ;;  %v852_v56 = vadd.f32 %v820_v30, %v4706_v42  ;;  %v822_v59 = vmul.f32 0.044715, %v790_v32 }
 0x109   : > { %1097 = vst.msk [vmem:[#allocation2 + $0x39] sm:$0xff] %vm1037_vm1, %v1008_v1  ;;  %v978_v9 = vmul.f32 0.5, %v946_v2  ;;  %v787_v25 = vmul.f32 %v755_v43, %v4723_v57  ;;  %v4766_v29 = vrot.slane %v1181_v46, %v4683_v18  ;;  %v4786_v52 = vrot.slane %v1181_v46, %v4703_v41 }
 0x10a   : > { %1096 = vst.msk [vmem:[#allocation2 + $0x31] sm:$0xff] %vm1037_vm1, %v1007_v6  ;;  %v977_v10 = vmul.f32 0.5, %v945_v7  ;;  %v1465_v38 = vadd.f32 %v1356_v44, %v1188_v39  ;;  %v4800_v1 = vrot.slane %v1181_v46, %v4697_v28  ;;  %v1601_v2 = vsel %vm1596_vm4, %v1598_v24, %v1600_v47  ;;  %v1182_v44 = vld [vmem:[%s7489_s3 + $0x8] sm:$0x7] }
 0x10b   : > { %v1010_v14 = vmul.f32 %v978_v9, %v4666_v54  ;;  %v4763_v54 = vadd.f32 %v4685_v20, %v4639_v34  ;;  %v4779_v20 = vadd.f32 %v4639_v34, %v4690_v22  ;;  %v819_v53 = vmul.f32 0.044715, %v787_v25 }
 0x10c   : > { %v1009_v21 = vmul.f32 %v977_v10, %v4671_v58  ;;  %v4782_v48 = vld [vmem:[#allocation2 + $0x28] sm:$0x3]  ;;  %v1709_v4 = vadd.f32 %v1599_v51, %v1464_v45  ;;  %v884_v43 = vmul.f32 0.7978846, %v852_v56  ;;  %v854_v10 = vadd.f32 %v822_v59, %v4732_v62 }
 0x10d   : > { %1099 = vst.msk [vmem:[#allocation2 + $0x51] sm:$0xff] %vm1037_vm1, %v1010_v14  ;;  %v4770_v58 = vld [vmem:[#allocation2 + $0x18] sm:$0xff]  ;;  %v4772_v37 = vld [vmem:[#allocation2 + $0x20] sm:$0xff]  ;;  %v760_v35 = vmul.f32 %v4763_v54, %v4763_v54  ;;  %v759_v63 = vmul.f32 %v4779_v20, %v4779_v20  ;;  %v1815_v0 = vmul.f32 %v4766_v29, %v4782_v48  ;;  %v851_v6 = vadd.f32 %v819_v53, %v4723_v57  ;;  %v4812_v14 = vpop.f32.mrb[16].mxu0 }
 0x10e   : > { %1098 = vst.msk [vmem:[#allocation2 + $0x49] sm:$0xff] %vm1037_vm1, %v1009_v21  ;;  %v1813_v36 = vmul.f32 %v4766_v29, %v4770_v58  ;;  %v1814_v22 = vmul.f32 %v4766_v29, %v4772_v37  ;;  %v1745_v5 = vmul.f32 %v4786_v52, %v4770_v58  ;;  %v1710_v11 = vadd.f32 %v1601_v2, %v1465_v38  ;;  %v4821_v32 = vpop.f32.mrb[17].mxu0 }
 0x10f   : > { %v792_v7 = vmul.f32 %v760_v35, %v4763_v54  ;;  %v1746_v12 = vmul.f32 %v4786_v52, %v4772_v37  ;;  %v853_v46 = vadd.f32 %v821_v61, %v4736_v3  ;;  %v791_v13 = vmul.f32 %v759_v63, %v4779_v20  ;;  %7563 = vst [vmem:[#allocation5_spill] sm:$0xff] %v4812_v14 }
 0x110   : > { %v1909_v8 = vrot.slane %v1813_v36, 1  ;;  %v1910_v9 = vrot.slane %v1814_v22, 1  ;;  %v1912_v15 = vrot.slane %v1815_v0, 1  ;;  %v2057_v16 = vmul.f32 %v4800_v1, %v4770_v58  ;;  %7564 = vst [vmem:[#allocation6_spill] sm:$0xff] %v4821_v32  ;;  %v4842_v2 = vld [vmem:[#allocation2 + $0x40] sm:$0x3] }
 0x111   : > { %v2058_v17 = vmul.f32 %v4800_v1, %v4772_v37  ;;  %v1777_v19 = vadd.f32 %v1745_v5, %v1709_v4  ;;  %v883_v21 = vmul.f32 0.7978846, %v851_v6  ;;  %v824_v23 = vmul.f32 0.044715, %v792_v7 }
 0x112   : > { %v2059_v24 = vmul.f32 %v4800_v1, %v4782_v48  ;;  %v1911_v25 = vsel %vm1351_vm3, %v1909_v8, %v1910_v9  ;;  %4216 = vtanh.f32 %v884_v43  ;;  %v886_v30 = vmul.f32 0.7978846, %v854_v10  ;;  %v4851_v8 = vld [vmem:[#allocation2 + $0x30] sm:$0xff] }
 0x113   : > { %v1258_v39 = vmul.f32 %v4693_v26, %v4770_v58  ;;  %v1778_v40 = vadd.f32 %v1746_v12, %v1710_v11  ;;  %v885_v45 = vmul.f32 0.7978846, %v853_v46  ;;  %v823_v47 = vmul.f32 0.044715, %v791_v13 }
 0x114   : > { %v1259_v51 = vmul.f32 %v4693_v26, %v4772_v37  ;;  %v1913_v53 = vsel %vm1351_vm3, %v1910_v9, %v1912_v15  ;;  %v2153_v35 = vrot.slane %v2057_v16, 2  ;;  %v2154_v36 = vrot.slane %v2058_v17, 2 }
 0x115   : > { %v2021_v22 = vadd.f32 %v1911_v25, %v1777_v19  ;;  %4218 = vtanh.f32 %v883_v21  ;;  %v856_v56 = vadd.f32 %v824_v23, %v4763_v54  ;;  %v4834_v59 = vadd.f32 %v4695_v27, %v4639_v34 }
 0x116   : > { %v2156_v38 = vrot.slane %v2059_v24, 2  ;;  %v4837_v61 = vrot.slane %v1182_v44, %v4683_v18  ;;  %v4840_v63 = vrot.slane %v1182_v44, %v4697_v28  ;;  %4220 = vtanh.f32 %v886_v30  ;;  %v4853_v28 = vld [vmem:[#allocation2 + $0x38] sm:$0xff] }
 0x117   : > { %v2022_v0 = vadd.f32 %v1913_v53, %v1778_v40  ;;  %v4845_v4 = vrot.slane %v1182_v44, %v4703_v41  ;;  %4222 = vtanh.f32 %v885_v45  ;;  %v855_v5 = vadd.f32 %v823_v47, %v4779_v20 }
 0x118   : > { %7565 = vst [vmem:[#allocation7_spill] sm:$0xff] %v4837_v61  ;;  %7566 = vst [vmem:[#allocation8_spill] sm:$0xff] %v4840_v63  ;;  %v1260_v27 = vmul.f32 %v4693_v26, %v4782_v48  ;;  %v1357_v6 = vrot.slane %v1258_v39, 1  ;;  %v1358_v7 = vrot.slane %v1259_v51, 1  ;;  %v2155_v18 = vsel %vm1596_vm4, %v2153_v35, %v2154_v36 }
 0x119   : > { %7567 = vst [vmem:[#allocation9_spill] sm:$0xff] %v4845_v4  ;;  %v1189_v9 = vmul.f32 %v4727_v60, %v4770_v58  ;;  %v2265_v43 = vadd.f32 %v2155_v18, %v2021_v22  ;;  %v888_v10 = vmul.f32 0.7978846, %v856_v56  ;;  %v762_v11 = vmul.f32 %v4834_v59, %v4834_v59 }
 0x11a   : > { %v1503_v12 = vmul.f32 %v4713_v50, %v4770_v58  ;;  %v4863_v46 = vmul.f32 %v4713_v50, %v4772_v37  ;;  %v2157_v13 = vsel %vm1596_vm4, %v2154_v36, %v2156_v38  ;;  %v2371_v15 = vmul.f32 %v4837_v61, %v4842_v2 }
 0x11b   : > { %v2266_v16 = vadd.f32 %v2157_v13, %v2022_v0  ;;  %v2301_v17 = vmul.f32 %v4845_v4, %v4851_v8  ;;  %v2369_v19 = vmul.f32 %v4837_v61, %v4851_v8  ;;  %v2370_v21 = vmul.f32 %v4837_v61, %v4853_v28 }
 0x11c   : > { %v4874_v58 = vpop.eup %4216  ;;  %v1360_v23 = vrot.slane %v1260_v27, 1  ;;  %v1359_v24 = vsel %vm1351_vm3, %v1357_v6, %v1358_v7  ;;  %v2613_v25 = vmul.f32 %v4840_v63, %v4851_v8  ;;  %v2614_v30 = vmul.f32 %v4840_v63, %v4853_v28 }
 0x11d   : > { %v2302_v39 = vmul.f32 %v4845_v4, %v4853_v28  ;;  %v2333_v40 = vadd.f32 %v2301_v17, %v2265_v43  ;;  %v2465_v44 = vrot.slane %v2369_v19, 1  ;;  %v2466_v45 = vrot.slane %v2370_v21, 1 }
 0x11e   : > { %v1602_v47 = vrot.slane %v1503_v12, 2  ;;  %v1603_v51 = vrot.slane %v4863_v46, 2  ;;  %v2468_v53 = vrot.slane %v2371_v15, 1  ;;  %v2615_v35 = vmul.f32 %v4840_v63, %v4842_v2  ;;  %v4899_v46 = vpop.f32.mrb[18].mxu0 }
 0x11f   : > { %v4219_v36 = vpop.eup %4218  ;;  %v1466_v22 = vadd.f32 %v1359_v24, %v1189_v9  ;;  %v2334_v56 = vadd.f32 %v2302_v39, %v2266_v16  ;;  %v4888_v38 = vadd.f32 %v4639_v34, %v4699_v31  ;;  %v4892_v0 = vadd.f32 %v4710_v49, %v4639_v34  ;;  %7568 = vst [vmem:[#allocation10_spill] sm:$0xff] %v4899_v46  ;;  %v4910_v21 = vpop.f32.mrb[19].mxu0 }
 0x120   : > { %v4894_v27 = vpop.eup %4220  ;;  %v1505_v6 = vmul.f32 %v4713_v50, %v4782_v48  ;;  %v2467_v18 = vsel %vm1351_vm3, %v2465_v44, %v2466_v45  ;;  %v2709_v43 = vrot.slane %v2613_v25, 2  ;;  %v2710_v12 = vrot.slane %v2614_v30, 2  ;;  %7569 = vst [vmem:[#allocation11_spill] sm:$0xff] %v4910_v21 }
 0x121   : > { %v4901_v9 = vpop.eup %4222  ;;  %v1361_v31 = vsel %vm1351_vm3, %v1358_v7, %v1360_v23  ;;  %v1816_v13 = vmul.f32 %v4766_v29, %v4851_v8  ;;  %v2577_v49 = vadd.f32 %v2467_v18, %v2333_v40  ;;  %v887_v15 = vmul.f32 0.7978846, %v855_v5 }
 0x122   : > { %v1604_v16 = vsel %vm1596_vm4, %v1602_v47, %v1603_v51  ;;  %v2712_v17 = vrot.slane %v2615_v35, 2  ;;  %v1817_v48 = vmul.f32 %v4766_v29, %v4853_v28  ;;  %v2469_v19 = vsel %vm1351_vm3, %v2466_v45, %v2468_v53 }
 0x123   : > { %v1190_v24 = vmul.f32 %v4727_v60, %v4772_v37  ;;  %v1711_v25 = vadd.f32 %v1604_v16, %v1466_v22  ;;  %v2578_v7 = vadd.f32 %v2469_v19, %v2334_v56  ;;  %v794_v23 = vmul.f32 %v762_v11, %v4834_v59 }
 0x124   : > { %v1605_v30 = vrot.slane %v1505_v6, 2  ;;  %v2711_v5 = vsel %vm1596_vm4, %v2709_v43, %v2710_v12  ;;  %4224 = vtanh.f32 %v888_v10  ;;  %v761_v39 = vmul.f32 %v4888_v38, %v4888_v38  ;;  %v4930_v10 = vld [vmem:[%s7490_s4] ss:$0 sm:$0xff] }
 0x125   : > { %v1467_v40 = vadd.f32 %v1361_v31, %v1190_v24  ;;  %v1747_v44 = vmul.f32 %v4786_v52, %v4851_v8  ;;  %v1914_v45 = vrot.slane %v1816_v13, 1  ;;  %v2821_v47 = vadd.f32 %v2711_v5, %v2577_v49 }
 0x126   : > { %v1915_v53 = vrot.slane %v1817_v48, 1  ;;  %v2060_v37 = vmul.f32 %v4800_v1, %v4851_v8  ;;  %v4924_v11 = vmul.f32 %v4800_v1, %v4853_v28  ;;  %v2713_v35 = vsel %vm1596_vm4, %v2710_v12, %v2712_v17 }
 0x127   : > { %v1779_v22 = vadd.f32 %v1747_v44, %v1711_v25  ;;  %v2822_v56 = vadd.f32 %v2713_v35, %v2578_v7  ;;  %4226 = vtanh.f32 %v887_v15  ;;  %v826_v6 = vmul.f32 0.044715, %v794_v23 }
 0x128   : > { %v1606_v18 = vsel %vm1596_vm4, %v1603_v51, %v1605_v30  ;;  %v1818_v43 = vmul.f32 %v4766_v29, %v4842_v2  ;;  %v4936_v31 = vmul.f32 %v761_v39, %v4888_v38  ;;  %v4940_v12 = vmul.f32 %v4892_v0, %v4892_v0 }
 0x129   : > { %v1712_v13 = vadd.f32 %v1606_v18, %v1467_v40  ;;  %v4944_v49 = vmul.f32 %v4693_v26, %v4842_v2  ;;  %v4947_v15 = vadd.f32 %v4930_v10, %v2821_v47  ;;  %v4951_v51 = vadd.f32 %v4639_v34, %v4718_v55  ;;  %v4964_v55 = vld [vmem:[#allocation2 + $0x48] sm:$0xff] }
 0x12a   : > { %v2062_v16 = vmul.f32 %v4800_v1, %v4842_v2  ;;  %v1916_v17 = vsel %vm1351_vm3, %v1914_v45, %v1915_v53  ;;  %v2158_v48 = vrot.slane %v2060_v37, 2  ;;  %v2159_v19 = vrot.slane %v4924_v11, 2  ;;  %v4977_v37 = vld [vmem:[#allocation2 + $0x50] sm:$0xff] }
 0x12b   : > { %7570 = vst [vmem:[#allocation12_spill] sm:$0xff] %v4951_v51  ;;  %v1261_v24 = vmul.f32 %v4693_v26, %v4851_v8  ;;  %v1748_v25 = vmul.f32 %v4786_v52, %v4853_v28  ;;  %v2023_v7 = vadd.f32 %v1916_v17, %v1779_v22  ;;  %v4962_v23 = vadd.f32 %v4930_v10, %v2822_v56  ;;  %v4986_v56 = vpop.f32.mrb[20].mxu0 }
 0x12c   : > { %v1917_v34 = vrot.slane %v1818_v43, 1  ;;  %v948_v30 = vadd.f32 1.0, %v4874_v58  ;;  %v947_v5 = vadd.f32 1.0, %v4219_v36  ;;  %v4968_v39 = vadd.f32 %v826_v6, %v4834_v59  ;;  %7571 = vst [vmem:[#allocation13_spill] sm:$0xff] %v4986_v56 }
 0x12d   : > { %v4973_v44 = vmul.f32 %v4713_v50, %v4842_v2  ;;  %v1780_v45 = vadd.f32 %v1748_v25, %v1712_v13  ;;  %v2892_v47 = vmul.f32 %v4947_v15, %v4947_v15  ;;  %v2161_v35 = vrot.slane %v2062_v16, 2  ;;  %v4999_v25 = vpop.f32.mrb[21].mxu0 }
 0x12e   : > { %v4225_v11 = vpop.eup %4224  ;;  %v1262_v58 = vmul.f32 %v4693_v26, %v4853_v28  ;;  %v4983_v36 = vmul.f32 %v4713_v50, %v4851_v8  ;;  %v2160_v22 = vsel %vm1596_vm4, %v2158_v48, %v2159_v19  ;;  %v1362_v2 = vrot.slane %v1261_v24, 1  ;;  %7572 = vst [vmem:[#allocation14_spill] sm:$0xff] %v4999_v25 }
 0x12f   : > { %v2893_v6 = vmul.f32 %v4962_v23, %v4962_v23  ;;  %v2267_v18 = vadd.f32 %v2160_v22, %v2023_v7  ;;  %v2303_v43 = vmul.f32 %v4845_v4, %v4964_v55  ;;  %v1918_v13 = vsel %vm1351_vm3, %v1915_v53, %v1917_v34  ;;  %v5006_v53 = vld [vmem:[#allocation2 + $0x58] sm:$0x3] }
 0x130   : > { %v2372_v16 = vmul.f32 %v4837_v61, %v4964_v55  ;;  %v2373_v17 = vmul.f32 %v4837_v61, %v4977_v37  ;;  %v2616_v48 = vmul.f32 %v4840_v63, %v4964_v55  ;;  %v2024_v33 = vadd.f32 %v1918_v13, %v1780_v45 }
 0x131   : > { %v4227_v24 = vpop.eup %4226  ;;  %v2924_v7 = vmul.f32 %v2892_v47, %v4947_v15  ;;  %v2335_v22 = vadd.f32 %v2303_v43, %v2267_v18  ;;  %v5004_v40 = vmul.f32 %v4840_v63, %v4977_v37  ;;  %v980_v21 = vmul.f32 0.5, %v948_v30 }
 0x132   : > { %v2470_v34 = vrot.slane %v2372_v16, 1  ;;  %v2471_v41 = vrot.slane %v2373_v17, 1  ;;  %v2714_v56 = vrot.slane %v2616_v48, 2  ;;  %v1363_v46 = vrot.slane %v1262_v58, 1 }
 0x133   : > { %v2925_v32 = vmul.f32 %v2893_v6, %v4962_v23  ;;  %v2715_v25 = vrot.slane %v5004_v40, 2  ;;  %v979_v14 = vmul.f32 0.5, %v947_v5  ;;  %v1191_v45 = vmul.f32 %v4727_v60, %v4851_v8 }
 0x134   : > { %v2162_v47 = vsel %vm1596_vm4, %v2159_v19, %v2161_v35  ;;  %v2472_v18 = vsel %vm1351_vm3, %v2470_v34, %v2471_v41  ;;  %v1012_v43 = vmul.f32 %v980_v21, %v4706_v42  ;;  %v2956_v13 = vmul.f32 0.044715, %v2924_v7 }
 0x135   : > { %v2374_v16 = vmul.f32 %v4837_v61, %v5006_v53  ;;  %v2268_v30 = vadd.f32 %v2162_v47, %v2024_v33  ;;  %v2579_v58 = vadd.f32 %v2472_v18, %v2335_v22  ;;  %v5019_v6 = vmul.f32 %v4713_v50, %v4853_v28 }
 0x136   : > { %v1607_v5 = vrot.slane %v4983_v36, 2  ;;  %v2716_v8 = vsel %vm1596_vm4, %v2714_v56, %v2715_v25  ;;  %1101 = vst.msk [vmem:[#allocation2 + $0x69] sm:$0xff] %vm1037_vm1, %v1012_v43  ;;  %v1011_v42 = vmul.f32 %v979_v14, %v4723_v57  ;;  %v1364_v21 = vsel %vm1351_vm3, %v1362_v2, %v1363_v46  ;;  %v5033_v56 = vpop.f32.mrb[22].mxu0 }
 0x137   : > { %v2957_v19 = vmul.f32 0.044715, %v2925_v32  ;;  %v2304_v33 = vmul.f32 %v4845_v4, %v4977_v37  ;;  %v2823_v35 = vadd.f32 %v2716_v8, %v2579_v58  ;;  %v950_v17 = vadd.f32 1.0, %v4894_v27 }
 0x138   : > { %1100 = vst.msk [vmem:[#allocation2 + $0x61] sm:$0xff] %vm1037_vm1, %v1011_v42  ;;  %v949_v36 = vadd.f32 1.0, %v4901_v9  ;;  %v952_v48 = vadd.f32 1.0, %v4225_v11  ;;  %v951_v7 = vadd.f32 1.0, %v4227_v24  ;;  %v2988_v22 = vadd.f32 %v2956_v13, %v4947_v15 }
 0x139   : > { %v2473_v57 = vrot.slane %v2374_v16, 1  ;;  %v2618_v14 = vmul.f32 %v4840_v63, %v5006_v53  ;;  %v2336_v32 = vadd.f32 %v2304_v33, %v2268_v30  ;;  %v982_v2 = vmul.f32 0.5, %v950_v17 }
 0x13a   : > { %v981_v34 = vmul.f32 0.5, %v949_v36  ;;  %v984_v47 = vmul.f32 0.5, %v952_v48  ;;  %v983_v18 = vmul.f32 0.5, %v951_v7  ;;  %v7573_v43 = vrot.slane %v4944_v49, 1 }
 0x13b   : > { %v1468_v9 = vadd.f32 %v1364_v21, %v1191_v45  ;;  %v1608_v11 = vrot.slane %v5019_v6, 2  ;;  %v2989_v24 = vadd.f32 %v2957_v19, %v4962_v23  ;;  %v5044_v13 = vadd.f32 %v4930_v10, %v2823_v35 }
 0x13c   : > { %v1366_v27 = vsel %vm1351_vm3, %v1363_v46, %v7573_v43  ;;  %v1014_v16 = vmul.f32 %v982_v2, %v4732_v62  ;;  %v1013_v30 = vmul.f32 %v981_v34, %v4736_v3  ;;  %v1016_v58 = vmul.f32 %v984_v47, %v4763_v54  ;;  %v5097_v43 = vpop.f32.mrb[23].mxu0 }
 0x13d   : > { %v3020_v8 = vmul.f32 0.7978846, %v2988_v22  ;;  %v2717_v42 = vrot.slane %v2618_v14, 2  ;;  %v2474_v49 = vsel %vm1351_vm3, %v2471_v41, %v2473_v57  ;;  %v1015_v46 = vmul.f32 %v983_v18, %v4779_v20 }
 0x13e   : > { %v1192_v45 = vmul.f32 %v4727_v60, %v4853_v28  ;;  %v2580_v6 = vadd.f32 %v2474_v49, %v2336_v32  ;;  %1103 = vst.msk [vmem:[#allocation2 + $0x81] sm:$0xff] %vm1037_vm1, %v1014_v16  ;;  %1102 = vst.msk [vmem:[#allocation2 + $0x79] sm:$0xff] %vm1037_vm1, %v1013_v30  ;;  %v5057_v62 = vmul.f32 0.044715, %v4936_v31  ;;  %v5061_v3 = vmul.f32 %v4940_v12, %v4892_v0 }
 0x13f   : > { %1105 = vst.msk [vmem:[#allocation2 + $0x99] sm:$0xff] %vm1037_vm1, %v1016_v58  ;;  %v1610_v41 = vrot.slane %v4973_v44, 2  ;;  %v1609_v54 = vsel %vm1596_vm4, %v1607_v5, %v1608_v11  ;;  %v1819_v20 = vmul.f32 %v4766_v29, %v4964_v55  ;;  %v1820_v28 = vmul.f32 %v4766_v29, %v4977_v37  ;;  %1104 = vst.msk [vmem:[#allocation2 + $0x91] sm:$0xff] %vm1037_vm1, %v1015_v46 }
 0x140   : > { %v1469_v21 = vadd.f32 %v1366_v27, %v1192_v45  ;;  %v3021_v19 = vmul.f32 0.7978846, %v2989_v24  ;;  %v1713_v31 = vadd.f32 %v1609_v54, %v1468_v9  ;;  %v2894_v33 = vmul.f32 %v5044_v13, %v5044_v13 }
 0x141   : > { %4228 = vtanh.f32 %v3020_v8  ;;  %v1266_v12 = vmul.f32 %v4693_v26, %v5006_v53  ;;  %v1821_v44 = vmul.f32 %v4766_v29, %v5006_v53  ;;  %v2718_v5 = vsel %vm1596_vm4, %v2715_v25, %v2717_v42 }
 0x142   : > { %v1264_v35 = vmul.f32 %v4693_v26, %v4964_v55  ;;  %v1265_v17 = vmul.f32 %v4693_v26, %v4977_v37  ;;  %v1749_v36 = vmul.f32 %v4786_v52, %v4964_v55  ;;  %v2824_v48 = vadd.f32 %v2718_v5, %v2580_v6  ;;  %v5109_v6 = vld [vmem:[#allocation2 + $0x60] sm:$0xff] }
 0x143   : > { %v1919_v7 = vrot.slane %v1819_v20, 1  ;;  %v1920_v22 = vrot.slane %v1820_v28, 1  ;;  %v2063_v57 = vmul.f32 %v4800_v1, %v4964_v55  ;;  %v2064_v40 = vmul.f32 %v4800_v1, %v4977_v37 }
 0x144   : > { %4230 = vtanh.f32 %v3021_v19  ;;  %v1611_v25 = vsel %vm1596_vm4, %v1608_v11, %v1610_v41  ;;  %v1781_v14 = vadd.f32 %v1749_v36, %v1713_v31  ;;  %v2926_v32 = vmul.f32 %v2894_v33, %v5044_v13  ;;  %v5111_v41 = vld [vmem:[#allocation2 + $0x68] sm:$0xff] }
 0x145   : > { %v1370_v2 = vrot.slane %v1266_v12, 1  ;;  %v1509_v34 = vmul.f32 %v4713_v50, %v4964_v55  ;;  %v1714_v47 = vadd.f32 %v1611_v25, %v1469_v21  ;;  %v5095_v18 = vmul.f32 %v4951_v51, %v4951_v51 }
 0x146   : > { %v1367_v27 = vrot.slane %v1264_v35, 1  ;;  %v1368_v9 = vrot.slane %v1265_v17, 1  ;;  %v1510_v24 = vmul.f32 %v4713_v50, %v4977_v37  ;;  %v5102_v11 = vadd.f32 %v4930_v10, %v2824_v48 }
 0x147   : > { %v1750_v16 = vmul.f32 %v4786_v52, %v4977_v37  ;;  %v1921_v30 = vsel %vm1351_vm3, %v1919_v7, %v1920_v22  ;;  %v2163_v58 = vrot.slane %v2063_v57, 2  ;;  %v2164_v8 = vrot.slane %v2064_v40, 2 }
 0x148   : > { %7574 = vst [vmem:[#allocation15_spill] sm:$0xff] %v5102_v11  ;;  %v1922_v42 = vrot.slane %v1821_v44, 1  ;;  %v2065_v49 = vmul.f32 %v4800_v1, %v5006_v53  ;;  %v2025_v46 = vadd.f32 %v1921_v30, %v1781_v14  ;;  %v2958_v45 = vmul.f32 0.044715, %v2926_v32  ;;  %v1140_v32 = vld [vmem:[#allocation2 + $0x70] sm:$0x3] }
 0x149   : > { %v1511_v54 = vmul.f32 %v4713_v50, %v5006_v53  ;;  %v1193_v20 = vmul.f32 %v4727_v60, %v4964_v55  ;;  %v1612_v28 = vrot.slane %v1509_v34, 2  ;;  %v1782_v21 = vadd.f32 %v1750_v16, %v1714_v47 }
 0x14a   : > { %v1369_v19 = vsel %vm1351_vm3, %v1367_v27, %v1368_v9  ;;  %v1371_v31 = vsel %vm1351_vm3, %v1368_v9, %v1370_v2  ;;  %v1613_v33 = vrot.slane %v1510_v24, 2  ;;  %v2895_v12 = vmul.f32 %v5102_v11, %v5102_v11 }
 0x14b   : > { %v4229_v44 = vpop.eup %4228  ;;  %v1194_v5 = vmul.f32 %v4727_v60, %v4977_v37  ;;  %v2165_v35 = vsel %vm1596_vm4, %v2163_v58, %v2164_v8  ;;  %v2375_v53 = vmul.f32 %v4837_v61, %v5109_v6  ;;  %v2376_v55 = vmul.f32 %v4837_v61, %v5111_v41 }
 0x14c   : > { %v2166_v17 = vrot.slane %v2065_v49, 2  ;;  %v1923_v36 = vsel %vm1351_vm3, %v1920_v22, %v1922_v42  ;;  %v2990_v48 = vadd.f32 %v2958_v45, %v5044_v13  ;;  %v2269_v7 = vadd.f32 %v2165_v35, %v2025_v46  ;;  %v5149_v35 = vpop.f32.mrb[24].mxu0 }
 0x14d   : > { %v1615_v57 = vrot.slane %v1511_v54, 2  ;;  %v1470_v40 = vadd.f32 %v1369_v19, %v1193_v20  ;;  %v1471_v25 = vadd.f32 %v1371_v31, %v1194_v5  ;;  %v2026_v14 = vadd.f32 %v1923_v36, %v1782_v21  ;;  %7575 = vst [vmem:[#allocation16_spill] sm:$0xff] %v5149_v35 }
 0x14e   : > { %v4231_v37 = vpop.eup %4230  ;;  %v3084_v2 = vadd.f32 1.0, %v4229_v44  ;;  %v2927_v34 = vmul.f32 %v2895_v12, %v5102_v11  ;;  %v1614_v47 = vsel %vm1596_vm4, %v1612_v28, %v1613_v33  ;;  %v2305_v27 = vmul.f32 %v4845_v4, %v5109_v6 }
 0x14f   : > { %v2475_v9 = vrot.slane %v2375_v53, 1  ;;  %v2476_v24 = vrot.slane %v2376_v55, 1  ;;  %v2619_v22 = vmul.f32 %v4840_v63, %v5109_v6  ;;  %v2620_v16 = vmul.f32 %v4840_v63, %v5111_v41 }
 0x150   : > { %v3022_v30 = vmul.f32 0.7978846, %v2990_v48  ;;  %v2377_v58 = vmul.f32 %v4837_v61, %v1140_v32  ;;  %v2167_v42 = vsel %vm1596_vm4, %v2164_v8, %v2166_v17  ;;  %v2337_v49 = vadd.f32 %v2305_v27, %v2269_v7 }
 0x151   : > { %v3085_v46 = vadd.f32 1.0, %v4231_v37  ;;  %v1616_v45 = vsel %vm1596_vm4, %v1613_v33, %v1615_v57  ;;  %v5141_v54 = vadd.f32 %v1614_v47, %v1470_v40  ;;  %v2270_v20 = vadd.f32 %v2167_v42, %v2026_v14  ;;  %v5164_v14 = vpop.f32.mrb[25].mxu0 }
 0x152   : > { %v3116_v28 = vmul.f32 0.5, %v3084_v2  ;;  %v2959_v21 = vmul.f32 0.044715, %v2927_v34  ;;  %v5143_v19 = vadd.f32 %v1616_v45, %v1471_v25  ;;  %v890_v31 = vmul.f32 0.7978846, %v4968_v39  ;;  %7576 = vst [vmem:[#allocation17_spill] sm:$0xff] %v5164_v14 }
 0x153   : > { %v2306_v12 = vmul.f32 %v4845_v4, %v5111_v41  ;;  %v2477_v44 = vsel %vm1351_vm3, %v2475_v9, %v2476_v24  ;;  %v2719_v5 = vrot.slane %v2619_v22, 2  ;;  %v2720_v8 = vrot.slane %v2620_v16, 2  ;;  %v5183_v45 = vpop.f32.mrb[26].mxu0 }
 0x154   : > { %4232 = vtanh.f32 %v3022_v30  ;;  %v2478_v33 = vrot.slane %v2377_v58, 1  ;;  %v2621_v53 = vmul.f32 %v4840_v63, %v1140_v32  ;;  %v2581_v55 = vadd.f32 %v2477_v44, %v2337_v49  ;;  %7579 = vst [vmem:[#allocation20_spill] sm:$0xff] %v5183_v45 }
 0x155   : > { %v3117_v17 = vmul.f32 0.5, %v3085_v46  ;;  %v1269_v36 = vmul.f32 %v4693_v26, %v1140_v32  ;;  %v5154_v48 = vmul.f32 %v4713_v50, %v1140_v32  ;;  %v2338_v39 = vadd.f32 %v2306_v12, %v2270_v20 }
 0x156   : > { %v2991_v7 = vadd.f32 %v2959_v21, %v5102_v11  ;;  %v5158_v57 = vmul.f32 %v4766_v29, %v1140_v32  ;;  %v1267_v40 = vmul.f32 %v4693_v26, %v5109_v6  ;;  %v1268_v25 = vmul.f32 %v4693_v26, %v5111_v41 }
 0x157   : > { %v5167_v37 = vmul.f32 %v4800_v1, %v1140_v32  ;;  %v2721_v2 = vsel %vm1596_vm4, %v2719_v5, %v2720_v8  ;;  %4234 = vtanh.f32 %v890_v31  ;;  %v5172_v34 = vadd.f32 %v5057_v62, %v4888_v38 }
 0x158   : > { %v5175_v47 = vmul.f32 %v3116_v28, %v4947_v15  ;;  %v2722_v27 = vrot.slane %v2621_v53, 2  ;;  %v2479_v9 = vsel %vm1351_vm3, %v2476_v24, %v2478_v33  ;;  %v2825_v22 = vadd.f32 %v2721_v2, %v2581_v55 }
 0x159   : > { %v5179_v16 = vmul.f32 %v3117_v17, %v4962_v23  ;;  %v1375_v30 = vrot.slane %v1269_v36, 1  ;;  %v2582_v58 = vadd.f32 %v2479_v9, %v2338_v39  ;;  %v3023_v42 = vmul.f32 0.7978846, %v2991_v7  ;;  %v1143_v39 = vld [vmem:[#allocation2 + $0x88] sm:$0x3]  ;;  %v5216_v7 = vpop.f32.mrb[27].mxu0 }
 0x15a   : > { %7577 = vst [vmem:[#allocation18_spill] sm:$0xff] %v5175_v47  ;;  %v1927_v49 = vrot.slane %v5158_v57, 1  ;;  %v1372_v46 = vrot.slane %v1267_v40, 1  ;;  %v1373_v62 = vrot.slane %v1268_v25, 1  ;;  %v5188_v24 = vmul.f32 %v4713_v50, %v5109_v6  ;;  %7581 = vst [vmem:[#allocation22_spill] sm:$0xff] %v5216_v7  ;;  %v5225_v9 = vld [vmem:[#allocation2 + $0x80] sm:$0xff] }
 0x15b   : > { %7578 = vst [vmem:[#allocation19_spill] sm:$0xff] %v5179_v16  ;;  %v1822_v23 = vmul.f32 %v4766_v29, %v5109_v6  ;;  %v1823_v20 = vmul.f32 %v4766_v29, %v5111_v41  ;;  %v1195_v28 = vmul.f32 %v4727_v60, %v5109_v6  ;;  %v5198_v21 = vmul.f32 %v4713_v50, %v5111_v41 }
 0x15c   : > { %v2723_v31 = vsel %vm1596_vm4, %v2720_v8, %v2722_v27  ;;  %v5202_v12 = vadd.f32 %v4930_v10, %v2825_v22  ;;  %v1196_v44 = vmul.f32 %v4727_v60, %v5111_v41  ;;  %v1751_v5 = vmul.f32 %v4786_v52, %v5109_v6  ;;  %v5223_v27 = vld [vmem:[#allocation2 + $0x78] sm:$0xff] }
 0x15d   : > { %v1752_v33 = vmul.f32 %v4786_v52, %v5111_v41  ;;  %v2826_v53 = vadd.f32 %v2723_v31, %v2582_v58  ;;  %4236 = vtanh.f32 %v3023_v42  ;;  %v1374_v17 = vsel %vm1351_vm3, %v1372_v46, %v1373_v62 }
 0x15e   : > { %7580 = vst [vmem:[#allocation21_spill] sm:$0xff] %v5202_v12  ;;  %v4233_v55 = vpop.eup %4232  ;;  %v1376_v36 = vsel %vm1351_vm3, %v1373_v62, %v1375_v30  ;;  %v5214_v8 = vmul.f32 %v4800_v1, %v5109_v6  ;;  %v1617_v57 = vrot.slane %v5188_v24, 2  ;;  %v1924_v40 = vrot.slane %v1822_v23, 1 }
 0x15f   : > { %v1925_v25 = vrot.slane %v1823_v20, 1  ;;  %v5221_v2 = vmul.f32 %v4800_v1, %v5111_v41  ;;  %v1618_v22 = vrot.slane %v5198_v21, 2  ;;  %v1783_v6 = vadd.f32 %v1751_v5, %v5141_v54 }
 0x160   : > { %v1784_v30 = vadd.f32 %v1752_v33, %v5143_v19  ;;  %v2896_v58 = vmul.f32 %v5202_v12, %v5202_v12  ;;  %v3086_v46 = vadd.f32 1.0, %v4233_v55  ;;  %v1472_v62 = vadd.f32 %v1374_v17, %v1195_v28  ;;  %v5259_v17 = vpop.f32.mrb[28].mxu0 }
 0x161   : > { %v5232_v42 = vpop.eup %4234  ;;  %v1473_v24 = vadd.f32 %v1376_v36, %v1196_v44  ;;  %v5235_v41 = vadd.f32 %v4930_v10, %v2826_v53  ;;  %v2168_v23 = vrot.slane %v5214_v8, 2  ;;  %v1272_v20 = vmul.f32 %v4693_v26, %v1143_v39  ;;  %7583 = vst [vmem:[#allocation24_spill] sm:$0xff] %v5259_v17  ;;  %v5266_v15 = vpop.f32.mrb[29].mxu0 }
 0x162   : > { %v1270_v54 = vmul.f32 %v4693_v26, %v5223_v27  ;;  %v1271_v19 = vmul.f32 %v4693_v26, %v5225_v9  ;;  %v1926_v21 = vsel %vm1351_vm3, %v1924_v40, %v1925_v25  ;;  %v2169_v31 = vrot.slane %v5221_v2, 2  ;;  %7584 = vst [vmem:[#allocation25_spill] sm:$0xff] %v5266_v15  ;;  %v5291_v47 = vpop.f32.mrb[30].mxu0 }
 0x163   : > { %7582 = vst [vmem:[#allocation23_spill] sm:$0xff] %v5235_v41  ;;  %v5246_v28 = vmul.f32 %v4713_v50, %v1143_v39  ;;  %v5249_v44 = vmul.f32 %v4766_v29, %v1143_v39  ;;  %v1928_v5 = vsel %vm1351_vm3, %v1925_v25, %v1927_v49  ;;  %v2928_v33 = vmul.f32 %v2896_v58, %v5202_v12 }
 0x164   : > { %v5254_v53 = vmul.f32 %v4800_v1, %v1143_v39  ;;  %v5257_v55 = vmul.f32 %v4837_v61, %v1143_v39  ;;  %v3118_v36 = vmul.f32 0.5, %v3086_v46  ;;  %v2027_v8 = vadd.f32 %v1926_v21, %v1783_v6  ;;  %7587 = vst [vmem:[#allocation28_spill] sm:$0xff] %v5291_v47 }
 0x165   : > { %v2897_v40 = vmul.f32 %v5235_v41, %v5235_v41  ;;  %v5264_v2 = vmul.f32 %v4840_v63, %v1143_v39  ;;  %v2028_v49 = vadd.f32 %v1928_v5, %v1784_v30  ;;  %v1380_v25 = vrot.slane %v1272_v20, 1 }
 0x166   : > { %v1377_v58 = vrot.slane %v1270_v54, 1  ;;  %v1378_v32 = vrot.slane %v1271_v19, 1  ;;  %v1932_v16 = vrot.slane %v5249_v44, 1  ;;  %v5272_v46 = vmul.f32 %v4713_v50, %v5223_v27 }
 0x167   : > { %v5276_v6 = vmul.f32 %v4713_v50, %v5225_v9  ;;  %v5278_v39 = vpop.eup %4236  ;;  %v2960_v21 = vmul.f32 0.044715, %v2928_v33  ;;  %v1197_v54 = vmul.f32 %v4727_v60, %v5223_v27  ;;  %v5285_v19 = vmul.f32 %v3118_v36, %v5044_v13  ;;  %v5299_v36 = vpop.f32.mrb[31].mxu0 }
 0x168   : > { %7585 = vst [vmem:[#allocation26_spill] sm:$0xff] %v5278_v39  ;;  %v2929_v44 = vmul.f32 %v2897_v40, %v5235_v41  ;;  %v1198_v11 = vmul.f32 %v4727_v60, %v5225_v9  ;;  %v1379_v33 = vsel %vm1351_vm3, %v1377_v58, %v1378_v32  ;;  %v1381_v30 = vsel %vm1351_vm3, %v1378_v32, %v1380_v25 }
 0x169   : > { %7586 = vst [vmem:[#allocation27_spill] sm:$0xff] %v5285_v19  ;;  %v1825_v20 = vmul.f32 %v4766_v29, %v5223_v27  ;;  %v1826_v13 = vmul.f32 %v4766_v29, %v5225_v9  ;;  %7588 = vst [vmem:[#allocation29_spill] sm:$0xff] %v5299_v36  ;;  %v1619_v40 = vsel %vm1596_vm4, %v1617_v57, %v1618_v22  ;;  %v7589_v5 = vrot.slane %v5154_v48, 2 }
 0x16a   : > { %v2992_v32 = vadd.f32 %v2960_v21, %v5202_v12  ;;  %v1717_v25 = vadd.f32 %v1619_v40, %v1472_v62  ;;  %v1753_v15 = vmul.f32 %v4786_v52, %v5223_v27  ;;  %v2961_v17 = vmul.f32 0.044715, %v2929_v44 }
 0x16b   : > { %v1621_v19 = vsel %vm1596_vm4, %v1618_v22, %v7589_v5  ;;  %v5310_v7 = vadd.f32 %v1379_v33, %v1197_v54  ;;  %v5312_v36 = vadd.f32 %v1381_v30, %v1198_v11  ;;  %v1754_v48 = vmul.f32 %v4786_v52, %v5225_v9 }
 0x16c   : > { %v1718_v47 = vadd.f32 %v1621_v19, %v1473_v24  ;;  %v1929_v57 = vrot.slane %v1825_v20, 1  ;;  %v1930_v22 = vrot.slane %v1826_v13, 1  ;;  %v5318_v5 = vmul.f32 %v4800_v1, %v5223_v27 }
 0x16d   : > { %v5322_v62 = vmul.f32 %v4800_v1, %v5225_v9  ;;  %v2170_v24 = vsel %vm1596_vm4, %v2168_v23, %v2169_v31  ;;  %v7590_v21 = vrot.slane %v5167_v37, 2  ;;  %v2378_v30 = vmul.f32 %v4837_v61, %v5223_v27 }
 0x16e   : > { %v2379_v20 = vmul.f32 %v4837_v61, %v5225_v9  ;;  %v3024_v54 = vmul.f32 0.7978846, %v2992_v32  ;;  %v1785_v19 = vadd.f32 %v1753_v15, %v1717_v25  ;;  %v2271_v44 = vadd.f32 %v2170_v24, %v2027_v8 }
 0x16f   : > { %v2172_v11 = vsel %vm1596_vm4, %v2169_v31, %v7590_v21  ;;  %v5333_v13 = vadd.f32 %v2961_v17, %v5235_v41  ;;  %v1786_v40 = vadd.f32 %v1754_v48, %v1718_v47  ;;  %v2622_v23 = vmul.f32 %v4840_v63, %v5223_v27  ;;  %v1146_v31 = vld [vmem:[#allocation2 + $0xa0] sm:$0x3] }
 0x170   : > { %v2272_v33 = vadd.f32 %v2172_v11, %v2028_v49  ;;  %v2623_v37 = vmul.f32 %v4840_v63, %v5225_v9  ;;  %v2307_v15 = vmul.f32 %v4845_v4, %v5223_v27  ;;  %v2308_v8 = vmul.f32 %v4845_v4, %v5225_v9 }
 0x171   : > { %7591 = vst [vmem:[#allocation30_spill] sm:$0xff] %v5333_v13  ;;  %v1931_v17 = vsel %vm1351_vm3, %v1929_v57, %v1930_v22  ;;  %v1933_v47 = vsel %vm1351_vm3, %v1930_v22, %v1932_v16  ;;  %v2480_v49 = vrot.slane %v2378_v30, 1  ;;  %v2481_v32 = vrot.slane %v2379_v20, 1 }
 0x172   : > { %4238 = vtanh.f32 %v3024_v54  ;;  %v2339_v25 = vadd.f32 %v2307_v15, %v2271_v44  ;;  %v2340_v48 = vadd.f32 %v2308_v8, %v2272_v33  ;;  %v5348_v24 = vmul.f32 %v4693_v26, %v1146_v31  ;;  %v5372_v15 = vld [vmem:[#allocation2 + $0x90] sm:$0xff] }
 0x173   : > { %v2724_v11 = vrot.slane %v2622_v23, 2  ;;  %v2725_v21 = vrot.slane %v2623_v37, 2  ;;  %v5351_v39 = vmul.f32 %v4713_v50, %v1146_v31  ;;  %v5354_v27 = vmul.f32 %v4766_v29, %v1146_v31 }
 0x174   : > { %v5357_v9 = vmul.f32 %v4800_v1, %v1146_v31  ;;  %v5360_v16 = vmul.f32 %v4837_v61, %v1146_v31  ;;  %v954_v57 = vadd.f32 1.0, %v5232_v42  ;;  %v889_v22 = vmul.f32 0.7978846, %v5172_v34 }
 0x175   : > { %v5364_v30 = vadd.f32 %v1931_v17, %v1785_v19  ;;  %v5366_v20 = vadd.f32 %v1933_v47, %v1786_v40  ;;  %v2482_v54 = vsel %vm1351_vm3, %v2480_v49, %v2481_v32  ;;  %v7592_v44 = vrot.slane %v5257_v55, 1  ;;  %v7600_v19 = vld [vmem:[#allocation14_spill] sm:$0xff] }
 0x176   : > { %v2583_v23 = vadd.f32 %v2482_v54, %v2339_v25  ;;  %v986_v8 = vmul.f32 0.5, %v954_v57  ;;  %4240 = vtanh.f32 %v889_v22  ;;  %v2726_v42 = vsel %vm1596_vm4, %v2724_v11, %v2725_v21 }
 0x177   : > { %v2484_v33 = vsel %vm1351_vm3, %v2481_v32, %v7592_v44  ;;  %v7593_v17 = vrot.slane %v5264_v2, 2  ;;  %v5383_v32 = vld [vmem:[#allocation2 + $0x98] sm:$0xff]  ;;  %v5391_v11 = vmul.f32 %v4727_v60, %v5372_v15  ;;  %v828_v57 = vmul.f32 0.044715, %v5061_v3  ;;  %v7595_v44 = vld [vmem:[#allocation6_spill] sm:$0xff] }
 0x178   : > { %v2584_v37 = vadd.f32 %v2484_v33, %v2340_v48  ;;  %v1018_v25 = vmul.f32 %v986_v8, %v4834_v59  ;;  %v5387_v48 = vmul.f32 %v4840_v63, %v1146_v31  ;;  %v795_v2 = vmul.f32 %v5095_v18, %v4951_v51  ;;  %v5400_v59 = vld [vmem:[%s7488_s2] ss:$0 sm:$0xff]  ;;  %v7597_v8 = vld [vmem:[#allocation11_spill] sm:$0xff] }
 0x179   : > { %v2728_v55 = vsel %vm1596_vm4, %v2725_v21, %v7593_v17  ;;  %v2827_v21 = vadd.f32 %v2726_v42, %v2583_v23  ;;  %v7594_v31 = vld [vmem:[#allocation5_spill] sm:$0xff]  ;;  %v5408_v33 = vadd.f32 %v5400_v59, %v7595_v44  ;;  %v1200_v3 = vmul.f32 %v4727_v60, %v5383_v32  ;;  %v7596_v23 = vld [vmem:[#allocation10_spill] sm:$0xff] }
 0x17a   : > { %v2828_v22 = vadd.f32 %v2728_v55, %v2584_v37  ;;  %1107 = vst.msk [vmem:[#allocation2 + $0xb1] sm:$0xff] %vm1037_vm1, %v1018_v25  ;;  %v5404_v54 = vadd.f32 %v5400_v59, %v7594_v31  ;;  %v860_v18 = vadd.f32 %v828_v57, %v4892_v0  ;;  %v5415_v37 = vadd.f32 %v5400_v59, %v7596_v23  ;;  %v7599_v44 = vld [vmem:[#allocation13_spill] sm:$0xff] }
 0x17b   : > { %v5419_v42 = vadd.f32 %v5400_v59, %v7597_v8  ;;  %v1273_v55 = vmul.f32 %v4693_v26, %v5372_v15  ;;  %v827_v25 = vmul.f32 0.044715, %v795_v2  ;;  %v5429_v57 = vadd.f32 %v5400_v59, %v7599_v44 }
 0x17c   : > { %v5421_v17 = vpop.eup %4238  ;;  %v766_v31 = vmul.f32 %v5404_v54, %v5404_v54  ;;  %v892_v47 = vmul.f32 0.7978846, %v860_v18  ;;  %v765_v8 = vmul.f32 %v5408_v33, %v5408_v33  ;;  %v5436_v40 = vadd.f32 %v5400_v59, %v7600_v19 }
 0x17d   : > { %7598 = vst [vmem:[#allocation5_spill] sm:$0xff] %v5421_v17  ;;  %v1274_v2 = vmul.f32 %v4693_v26, %v5383_v32  ;;  %v5442_v49 = vmul.f32 %v4713_v50, %v5372_v15  ;;  %v5446_v44 = vmul.f32 %v4713_v50, %v5383_v32  ;;  %v768_v18 = vmul.f32 %v5415_v37, %v5415_v37 }
 0x17e   : > { %v5451_v23 = vadd.f32 %v4930_v10, %v2827_v21  ;;  %v5454_v19 = vadd.f32 %v4930_v10, %v2828_v22  ;;  %4242 = vtanh.f32 %v892_v47  ;;  %v767_v34 = vmul.f32 %v5419_v42, %v5419_v42 }
 0x17f   : > { %v1382_v41 = vrot.slane %v1273_v55, 1  ;;  %v859_v12 = vadd.f32 %v827_v25, %v4951_v51  ;;  %v798_v17 = vmul.f32 %v766_v31, %v5404_v54  ;;  %v770_v13 = vmul.f32 %v5429_v57, %v5429_v57 }
 0x180   : > { %7601 = vst [vmem:[#allocation6_spill] sm:$0xff] %v5451_v23  ;;  %7602 = vst [vmem:[#allocation10_spill] sm:$0xff] %v5454_v19  ;;  %v4241_v58 = vpop.eup %4240  ;;  %v7603_v45 = vrot.slane %v5276_v6, 2  ;;  %v7604_v21 = vrot.slane %v5272_v46, 2  ;;  %v797_v47 = vmul.f32 %v765_v8, %v5408_v33  ;;  %v769_v60 = vmul.f32 %v5436_v40, %v5436_v40 }
 0x181   : > { %v953_v22 = vadd.f32 1.0, %v4241_v58  ;;  %v1383_v55 = vrot.slane %v1274_v2, 1  ;;  %v7605_v25 = vrot.slane %v5246_v28, 2  ;;  %v800_v35 = vmul.f32 %v768_v18, %v5415_v37 }
 0x182   : > { %v1624_v10 = vsel %vm1596_vm4, %v7604_v21, %v7603_v45  ;;  %v7606_v31 = vmov %v7603_v45  ;;  %v2898_v45 = vmul.f32 %v5451_v23, %v5451_v23  ;;  %v799_v8 = vmul.f32 %v767_v34, %v5419_v42 }
 0x183   : > { %v1626_v14 = vsel %vm1596_vm4, %v7606_v31, %v7605_v25  ;;  %v985_v58 = vmul.f32 0.5, %v953_v22  ;;  %v5483_v2 = vmul.f32 %v5454_v19, %v5454_v19  ;;  %v891_v28 = vmul.f32 0.7978846, %v859_v12 }
 0x184   : > { %v830_v6 = vmul.f32 0.044715, %v798_v17  ;;  %v802_v21 = vmul.f32 %v770_v13, %v5429_v57  ;;  %v1719_v25 = vadd.f32 %v1624_v10, %v5310_v7  ;;  %v829_v31 = vmul.f32 0.044715, %v797_v47 }
 0x185   : > { %7607 = vst [vmem:[#allocation11_spill] sm:$0xff] %v5483_v2  ;;  %v1017_v18 = vmul.f32 %v985_v58, %v4888_v38  ;;  %v801_v51 = vmul.f32 %v769_v60, %v5436_v40  ;;  %v1384_v46 = vsel %vm1351_vm3, %v1382_v41, %v1383_v55  ;;  %v7608_v22 = vrot.slane %v5348_v24, 1 }
 0x186   : > { %v1720_v19 = vadd.f32 %v1626_v14, %v5312_v36  ;;  %v832_v2 = vmul.f32 0.044715, %v800_v35  ;;  %v1755_v12 = vmul.f32 %v4786_v52, %v5372_v15  ;;  %v1756_v7 = vmul.f32 %v4786_v52, %v5383_v32 }
 0x187   : > { %v1386_v34 = vsel %vm1351_vm3, %v1383_v55, %v7608_v22  ;;  %v5500_v38 = vmul.f32 %v4766_v29, %v5372_v15  ;;  %1106 = vst.msk [vmem:[#allocation2 + $0xa9] sm:$0xff] %vm1037_vm1, %v1017_v18  ;;  %v831_v60 = vmul.f32 0.044715, %v799_v8  ;;  %v5504_v41 = vmul.f32 %v2898_v45, %v5451_v23  ;;  %v7648_v23 = vld [vmem:[#allocation22_spill] sm:$0xff] }
 0x188   : > { %4244 = vtanh.f32 %v891_v28  ;;  %v862_v14 = vadd.f32 %v830_v6, %v5404_v54  ;;  %v834_v35 = vmul.f32 0.044715, %v802_v21  ;;  %v4243_v36 = vpop.eup %4242  ;;  %v5508_v13 = vadd.f32 %v1384_v46, %v5391_v11 }
 0x189   : > { %7609 = vst [vmem:[#allocation13_spill] sm:$0xff] %v5504_v41  ;;  %v5510_v24 = vadd.f32 %v1386_v34, %v1200_v3  ;;  %v861_v17 = vadd.f32 %v829_v31, %v5408_v33  ;;  %v833_v10 = vmul.f32 0.044715, %v801_v51  ;;  %v1829_v47 = vmul.f32 %v4766_v29, %v5383_v32 }
 0x18a   : > { %v5517_v55 = vmul.f32 %v4800_v1, %v5372_v15  ;;  %v956_v45 = vadd.f32 1.0, %v4243_v36  ;;  %v864_v58 = vadd.f32 %v832_v2, %v5415_v37  ;;  %v1934_v8 = vrot.slane %v5500_v38, 1 }
 0x18b   : > { %v7610_v11 = vrot.slane %v5322_v62, 2  ;;  %v7611_v3 = vrot.slane %v5318_v5, 2  ;;  %v2381_v51 = vmul.f32 %v4837_v61, %v5372_v15  ;;  %v863_v28 = vadd.f32 %v831_v60, %v5419_v42 }
 0x18c   : > { %v2382_v6 = vmul.f32 %v4837_v61, %v5383_v32  ;;  %v988_v21 = vmul.f32 0.5, %v956_v45  ;;  %v894_v18 = vmul.f32 0.7978846, %v862_v14  ;;  %v866_v2 = vadd.f32 %v834_v35, %v5429_v57 }
 0x18d   : > { %v2175_v46 = vsel %vm1596_vm4, %v7611_v3, %v7610_v11  ;;  %v7612_v31 = vrot.slane %v5254_v53, 2  ;;  %v7613_v22 = vmov %v7610_v11  ;;  %v893_v38 = vmul.f32 0.7978846, %v861_v17 }
 0x18e   : > { %v2273_v34 = vadd.f32 %v2175_v46, %v5364_v30  ;;  %v865_v36 = vadd.f32 %v833_v10, %v5436_v40  ;;  %v2309_v11 = vmul.f32 %v4845_v4, %v5372_v15  ;;  %v1020_v14 = vmul.f32 %v988_v21, %v4892_v0 }
 0x18f   : > { %v2177_v5 = vsel %vm1596_vm4, %v7613_v22, %v7612_v31  ;;  %v896_v45 = vmul.f32 0.7978846, %v864_v58  ;;  %v2310_v53 = vmul.f32 %v4845_v4, %v5383_v32  ;;  %v2485_v35 = vrot.slane %v2381_v51, 1 }
 0x190   : > { %v2274_v60 = vadd.f32 %v2177_v5, %v5366_v20  ;;  %v2625_v62 = vmul.f32 %v4840_v63, %v5372_v15  ;;  %v895_v3 = vmul.f32 0.7978846, %v863_v28  ;;  %v2486_v30 = vrot.slane %v2382_v6, 1  ;;  %1109 = vst.msk [vmem:[#allocation2 + $0xc9] sm:$0xff] %vm1037_vm1, %v1020_v14 }
 0x191   : > { %v2626_v17 = vmul.f32 %v4840_v63, %v5383_v32  ;;  %4246 = vtanh.f32 %v894_v18  ;;  %v898_v20 = vmul.f32 0.7978846, %v866_v2  ;;  %v2073_v0 = vmul.f32 %v4800_v1, %v5383_v32 }
 0x192   : > { %v2341_v10 = vadd.f32 %v2309_v11, %v2273_v34  ;;  %4248 = vtanh.f32 %v893_v38  ;;  %v897_v58 = vmul.f32 0.7978846, %v865_v36  ;;  %v4245_v46 = vpop.eup %4244  ;;  %v1935_v51 = vrot.slane %v1829_v47, 1  ;;  %v1149_v36 = vld [vmem:[#allocation2 + $0xb8] sm:$0x3] }
 0x193   : > { %v2342_v21 = vadd.f32 %v2310_v53, %v2274_v60  ;;  %4250 = vtanh.f32 %v896_v45  ;;  %v5554_v15 = vadd.f32 %v5400_v59, %v5033_v56  ;;  %v1787_v28 = vadd.f32 %v1755_v12, %v1719_v25 }
 0x194   : > { %v1788_v6 = vadd.f32 %v1756_v7, %v1720_v19  ;;  %v2178_v31 = vrot.slane %v5517_v55, 2  ;;  %4252 = vtanh.f32 %v895_v3  ;;  %v2487_v18 = vsel %vm1351_vm3, %v2485_v35, %v2486_v30 }
 0x195   : > { %v2729_v2 = vrot.slane %v2625_v62, 2  ;;  %v2730_v32 = vrot.slane %v2626_v17, 2  ;;  %4254 = vtanh.f32 %v898_v20  ;;  %v7614_v22 = vrot.slane %v5360_v16, 1 }
 0x196   : > { %v2585_v5 = vadd.f32 %v2487_v18, %v2341_v10  ;;  %v955_v34 = vadd.f32 1.0, %v4245_v46  ;;  %4256 = vtanh.f32 %v897_v58  ;;  %v1936_v56 = vsel %vm1351_vm3, %v1934_v8, %v1935_v51 }
 0x197   : > { %v2489_v47 = vsel %vm1351_vm3, %v2486_v30, %v7614_v22  ;;  %v2179_v38 = vrot.slane %v2073_v0, 2  ;;  %v772_v19 = vmul.f32 %v5554_v15, %v5554_v15  ;;  %v7615_v12 = vrot.slane %v5354_v27, 1 }
 0x198   : > { %v2586_v25 = vadd.f32 %v2489_v47, %v2342_v21  ;;  %v2031_v55 = vadd.f32 %v1936_v56, %v1787_v28  ;;  %v7616_v16 = vrot.slane %v5446_v44, 2  ;;  %v7617_v60 = vrot.slane %v5442_v49, 2  ;;  %v5623_v47 = vld [vmem:[%s7490_s4] ss:$0 sm:$0xff]  ;;  %v7624_v56 = vld [vmem:[#allocation12_spill] sm:$0xff] }
 0x199   : > { %v1938_v7 = vsel %vm1351_vm3, %v1935_v51, %v7615_v12  ;;  %v5574_v8 = vadd.f32 %v5400_v59, %v5097_v43  ;;  %v2731_v45 = vsel %vm1596_vm4, %v2729_v2, %v2730_v32  ;;  %v7618_v53 = vrot.slane %v5351_v39, 2  ;;  %v7622_v2 = vld [vmem:[#allocation16_spill] sm:$0xff] }
 0x19a   : > { %v1629_v11 = vsel %vm1596_vm4, %v7617_v60, %v7616_v16  ;;  %v2032_v14 = vadd.f32 %v1938_v7, %v1788_v6  ;;  %v7619_v27 = vmov %v7616_v16  ;;  %v7620_v49 = vrot.slane %v5387_v48, 2 }
 0x19b   : > { %v1631_v35 = vsel %vm1596_vm4, %v7619_v27, %v7618_v53  ;;  %v5583_v62 = vadd.f32 %v1629_v11, %v5508_v13  ;;  %v2829_v30 = vadd.f32 %v2731_v45, %v2585_v5  ;;  %v987_v17 = vmul.f32 0.5, %v955_v34  ;;  %v4247_v20 = vpop.eup %4246  ;;  %v5628_v34 = vld [vmem:[#allocation2 + $0xa8] sm:$0xff] }
 0x19c   : > { %v2733_v3 = vsel %vm1596_vm4, %v2730_v32, %v7620_v49  ;;  %v5589_v43 = vadd.f32 %v1631_v35, %v5510_v24  ;;  %v5592_v39 = vmul.f32 %v4693_v26, %v1149_v36  ;;  %v5595_v44 = vmul.f32 %v4713_v50, %v1149_v36  ;;  %v4249_v10 = vpop.eup %4248 }
 0x19d   : > { %v2830_v0 = vadd.f32 %v2733_v3, %v2586_v25  ;;  %v804_v13 = vmul.f32 %v772_v19, %v5554_v15  ;;  %v5599_v48 = vmul.f32 %v4766_v29, %v1149_v36  ;;  %v5602_v58 = vmul.f32 %v4800_v1, %v1149_v36  ;;  %v4251_v51 = vpop.eup %4250 }
 0x19e   : > { %v5605_v24 = vmul.f32 %v4837_v61, %v1149_v36  ;;  %v771_v46 = vmul.f32 %v5574_v8, %v5574_v8  ;;  %v5610_v21 = vmul.f32 %v4840_v63, %v1149_v36  ;;  %v2180_v28 = vsel %vm1596_vm4, %v2178_v31, %v2179_v38  ;;  %v4253_v22 = vpop.eup %4252  ;;  %v5640_v36 = vld [vmem:[#allocation2 + $0xb0] sm:$0xff] }
 0x19f   : > { %v7621_v6 = vrot.slane %v5357_v9, 2  ;;  %v5618_v32 = vadd.f32 %v5400_v59, %v7622_v2  ;;  %v5626_v5 = vadd.f32 %v5623_v47, %v2829_v30  ;;  %v5630_v31 = vadd.f32 %v2180_v28, %v2031_v55  ;;  %v4255_v25 = vpop.eup %4254 }
 0x1a0   : > { %v5636_v19 = vadd.f32 %v5623_v47, %v2830_v0  ;;  %v1390_v12 = vrot.slane %v5592_v39, 1  ;;  %v836_v16 = vmul.f32 0.044715, %v804_v13  ;;  %v4257_v60 = vpop.eup %4256  ;;  %v1942_v11 = vrot.slane %v5599_v48, 1 }
 0x1a1   : > { %v2182_v18 = vsel %vm1596_vm4, %v2179_v38, %v7621_v6  ;;  %7623 = vst [vmem:[#allocation14_spill] sm:$0xff] %v5626_v5  ;;  %v1019_v38 = vmul.f32 %v987_v17, %v7624_v56  ;;  %v803_v45 = vmul.f32 %v771_v46, %v5574_v8  ;;  %v1276_v27 = vmul.f32 %v4693_v26, %v5628_v34 }
 0x1a2   : > { %v5632_v9 = vadd.f32 %v2182_v18, %v2032_v14  ;;  %7625 = vst [vmem:[#allocation16_spill] sm:$0xff] %v5636_v19  ;;  %v2493_v14 = vrot.slane %v5605_v24, 1  ;;  %v958_v35 = vadd.f32 1.0, %v4247_v20  ;;  %v774_v49 = vmul.f32 %v5618_v32, %v5618_v32  ;;  %v7650_v19 = vld [vmem:[#allocation25_spill] sm:$0xff] }
 0x1a3   : > { %1108 = vst.msk [vmem:[#allocation2 + $0xc1] sm:$0xff] %vm1037_vm1, %v1019_v38  ;;  %v1277_v3 = vmul.f32 %v4693_v26, %v5640_v36  ;;  %v957_v30 = vadd.f32 1.0, %v4249_v10  ;;  %v960_v17 = vadd.f32 1.0, %v4251_v51  ;;  %v959_v0 = vadd.f32 1.0, %v4253_v22 }
 0x1a4   : > { %v990_v39 = vmul.f32 0.5, %v958_v35  ;;  %v962_v13 = vadd.f32 1.0, %v4255_v25  ;;  %v961_v28 = vadd.f32 1.0, %v4257_v60  ;;  %v5655_v46 = vadd.f32 %v836_v16, %v5554_v15 }
 0x1a5   : > { %v989_v6 = vmul.f32 0.5, %v957_v30  ;;  %v992_v18 = vmul.f32 0.5, %v960_v17  ;;  %v991_v2 = vmul.f32 0.5, %v959_v0  ;;  %v5657_v56 = vmul.f32 0.044715, %v803_v45 }
 0x1a6   : > { %v1387_v20 = vrot.slane %v1276_v27, 1  ;;  %v1022_v38 = vmul.f32 %v990_v39, %v5404_v54  ;;  %v994_v55 = vmul.f32 0.5, %v962_v13  ;;  %v993_v7 = vmul.f32 0.5, %v961_v28 }
 0x1a7   : > { %v1388_v53 = vrot.slane %v1277_v3, 1  ;;  %v1021_v10 = vmul.f32 %v989_v6, %v5408_v33  ;;  %v1024_v51 = vmul.f32 %v992_v18, %v5415_v37  ;;  %v1023_v22 = vmul.f32 %v991_v2, %v5419_v42  ;;  %v7626_v42 = vld [vmem:[#allocation17_spill] sm:$0xff] }
 0x1a8   : > { %v1831_v25 = vmul.f32 %v4766_v29, %v5628_v34  ;;  %v1832_v16 = vmul.f32 %v4766_v29, %v5640_v36  ;;  %1111 = vst.msk [vmem:[#allocation2 + $0xe1] sm:$0xff] %vm1037_vm1, %v1022_v38  ;;  %v1026_v60 = vmul.f32 %v994_v55, %v5429_v57  ;;  %v1025_v54 = vmul.f32 %v993_v7, %v5436_v40  ;;  %v7627_v40 = vld [vmem:[#allocation4_spill] sm:$0xff] }
 0x1a9   : > { %v2384_v45 = vmul.f32 %v4837_v61, %v5628_v34  ;;  %v2385_v33 = vmul.f32 %v4837_v61, %v5640_v36  ;;  %1110 = vst.msk [vmem:[#allocation2 + $0xd9] sm:$0xff] %vm1037_vm1, %v1021_v10  ;;  %1113 = vst.msk [vmem:[#allocation2 + $0xf9] sm:$0xff] %vm1037_vm1, %v1024_v51  ;;  %v5678_v37 = vmul.f32 %v774_v49, %v5618_v32 }
 0x1aa   : > { %1112 = vst.msk [vmem:[#allocation2 + $0xf1] sm:$0xff] %vm1037_vm1, %v1023_v22  ;;  %v5682_v57 = vadd.f32 %v5400_v59, %v7626_v42  ;;  %v1201_v7 = vmul.f32 %v7627_v40, %v5628_v34  ;;  %v1202_v55 = vmul.f32 %v7627_v40, %v5640_v36  ;;  %v1521_v27 = vmul.f32 %v4713_v50, %v5628_v34 }
 0x1ab   : > { %v1522_v35 = vmul.f32 %v4713_v50, %v5640_v36  ;;  %1115 = vst.msk [vmem:[#allocation2 + $0x111] sm:$0xff] %vm1037_vm1, %v1026_v60  ;;  %1114 = vst.msk [vmem:[#allocation2 + $0x109] sm:$0xff] %vm1037_vm1, %v1025_v54  ;;  %v1389_v49 = vsel %vm1351_vm3, %v1387_v20, %v1388_v53  ;;  %v1391_v3 = vsel %vm1351_vm3, %v1388_v53, %v1390_v12  ;;  %v1939_v0 = vrot.slane %v1831_v25, 1  ;;  %v1152_v53 = vld [vmem:[#allocation2 + $0xd0] sm:$0x3] }
 0x1ac   : > { %v1757_v30 = vmul.f32 %v4786_v52, %v5628_v34  ;;  %v1758_v17 = vmul.f32 %v4786_v52, %v5640_v36  ;;  %v1940_v39 = vrot.slane %v1832_v16, 1  ;;  %v2311_v13 = vmul.f32 %v4845_v4, %v5628_v34 }
 0x1ad   : > { %v2312_v28 = vmul.f32 %v4845_v4, %v5640_v36  ;;  %v2490_v6 = vrot.slane %v2384_v45, 1  ;;  %v2491_v18 = vrot.slane %v2385_v33, 1  ;;  %v2628_v2 = vmul.f32 %v4840_v63, %v5628_v34 }
 0x1ae   : > { %v2629_v12 = vmul.f32 %v4840_v63, %v5640_v36  ;;  %v1632_v20 = vrot.slane %v1521_v27, 2  ;;  %v1633_v38 = vrot.slane %v1522_v35, 2  ;;  %v1789_v10 = vadd.f32 %v1757_v30, %v5583_v62  ;;  %v5733_v27 = vld [vmem:[#allocation2 + $0xc0] sm:$0xff]  ;;  %v5735_v35 = vld [vmem:[#allocation2 + $0xc8] sm:$0xff] }
 0x1af   : > { %v2343_v51 = vadd.f32 %v2311_v13, %v5630_v31  ;;  %v1478_v22 = vadd.f32 %v1389_v49, %v1201_v7  ;;  %v1479_v25 = vadd.f32 %v1391_v3, %v1202_v55  ;;  %v1790_v16 = vadd.f32 %v1758_v17, %v5589_v43 }
 0x1b0   : > { %v2344_v60 = vadd.f32 %v2312_v28, %v5632_v9  ;;  %v1941_v54 = vsel %vm1351_vm3, %v1939_v0, %v1940_v39  ;;  %v2075_v45 = vmul.f32 %v4800_v1, %v5628_v34  ;;  %v2076_v33 = vmul.f32 %v4800_v1, %v5640_v36 }
 0x1b1   : > { %v5718_v42 = vmul.f32 %v4693_v26, %v1152_v53  ;;  %v2492_v62 = vsel %vm1351_vm3, %v2490_v6, %v2491_v18  ;;  %v2734_v31 = vrot.slane %v2628_v2, 2  ;;  %v2735_v7 = vrot.slane %v2629_v12, 2 }
 0x1b2   : > { %v5722_v55 = vmul.f32 %v4713_v50, %v1152_v53  ;;  %v1943_v43 = vsel %vm1351_vm3, %v1940_v39, %v1942_v11  ;;  %v2494_v34 = vsel %vm1351_vm3, %v2491_v18, %v2493_v14  ;;  %v2587_v9 = vadd.f32 %v2492_v62, %v2343_v51 }
 0x1b3   : > { %v5731_v36 = vmul.f32 %v4766_v29, %v1152_v53  ;;  %v2033_v49 = vadd.f32 %v1941_v54, %v1789_v10  ;;  %v2034_v3 = vadd.f32 %v1943_v43, %v1790_v16  ;;  %v2588_v30 = vadd.f32 %v2494_v34, %v2344_v60 }
 0x1b4   : > { %v5738_v17 = vmul.f32 %v4800_v1, %v1152_v53  ;;  %v2183_v48 = vrot.slane %v2075_v45, 2  ;;  %v2184_v11 = vrot.slane %v2076_v33, 2  ;;  %v1395_v24 = vrot.slane %v5718_v42, 1 }
 0x1b5   : > { %v5742_v14 = vmul.f32 %v4837_v61, %v1152_v53  ;;  %v2736_v0 = vsel %vm1596_vm4, %v2734_v31, %v2735_v7  ;;  %v1640_v39 = vrot.slane %v5722_v55, 2  ;;  %v1279_v13 = vmul.f32 %v4693_v26, %v5733_v27 }
 0x1b6   : > { %v1280_v28 = vmul.f32 %v4693_v26, %v5735_v35  ;;  %v7628_v6 = vrot.slane %v5610_v21, 2  ;;  %v2831_v2 = vadd.f32 %v2736_v0, %v2587_v9  ;;  %v1947_v12 = vrot.slane %v5731_v36, 1 }
 0x1b7   : > { %v5755_v10 = vmul.f32 %v4840_v63, %v1152_v53  ;;  %v1634_v60 = vsel %vm1596_vm4, %v1632_v20, %v1633_v38  ;;  %v7630_v54 = vrot.slane %v5595_v44, 2  ;;  %v2498_v21 = vrot.slane %v5742_v14, 1 }
 0x1b8   : > { %v2738_v18 = vsel %vm1596_vm4, %v2735_v7, %v7628_v6  ;;  %v1723_v33 = vadd.f32 %v1634_v60, %v1478_v22  ;;  %v900_v42 = vmul.f32 0.7978846, %v5655_v46  ;;  %v867_v62 = vadd.f32 %v5657_v56, %v5574_v8 }
 0x1b9   : > { %v5757_v51 = vadd.f32 %v2738_v18, %v2588_v30  ;;  %v1636_v45 = vsel %vm1596_vm4, %v1633_v38, %v7630_v54  ;;  %v1392_v53 = vrot.slane %v1279_v13, 1  ;;  %v1393_v31 = vrot.slane %v1280_v28, 1 }
 0x1ba   : > { %v1834_v7 = vmul.f32 %v4766_v29, %v5733_v27  ;;  %v1835_v20 = vmul.f32 %v4766_v29, %v5735_v35  ;;  %v5773_v44 = vadd.f32 %v5623_v47, %v2831_v2  ;;  %v2742_v38 = vrot.slane %v5755_v10, 2 }
 0x1bb   : > { %7629 = vst [vmem:[#allocation12_spill] sm:$0xff] %v5757_v51  ;;  %v1724_v43 = vadd.f32 %v1636_v45, %v1479_v25  ;;  %v2185_v22 = vsel %vm1596_vm4, %v2183_v48, %v2184_v11  ;;  %v5779_v46 = vmul.f32 %v4713_v50, %v5733_v27  ;;  %v5783_v56 = vmul.f32 %v4713_v50, %v5735_v35 }
 0x1bc   : > { %7631 = vst [vmem:[#allocation17_spill] sm:$0xff] %v5773_v44  ;;  %v7632_v34 = vrot.slane %v5602_v58, 2  ;;  %v2277_v36 = vadd.f32 %v2185_v22, %v2033_v49  ;;  %4258 = vtanh.f32 %v900_v42  ;;  %v5788_v30 = vmul.f32 0.7978846, %v867_v62  ;;  %v1155_v62 = vld [vmem:[#allocation2 + $0xe8] sm:$0x3] }
 0x1bd   : > { %v5791_v25 = vmul.f32 0.044715, %v5678_v37  ;;  %v1203_v48 = vmul.f32 %v7627_v40, %v5733_v27  ;;  %v1394_v0 = vsel %vm1351_vm3, %v1392_v53, %v1393_v31  ;;  %v1944_v13 = vrot.slane %v1834_v7, 1 }
 0x1be   : > { %v2187_v9 = vsel %vm1596_vm4, %v2184_v11, %v7632_v34  ;;  %v1945_v28 = vrot.slane %v1835_v20, 1  ;;  %v1759_v58 = vmul.f32 %v4786_v52, %v5733_v27  ;;  %v1760_v49 = vmul.f32 %v4786_v52, %v5735_v35 }
 0x1bf   : > { %v2278_v47 = vadd.f32 %v2187_v9, %v2034_v3  ;;  %v2387_v3 = vmul.f32 %v4837_v61, %v5733_v27  ;;  %v2388_v37 = vmul.f32 %v4837_v61, %v5735_v35  ;;  %v1204_v11 = vmul.f32 %v7627_v40, %v5735_v35 }
 0x1c0   : > { %v1637_v6 = vrot.slane %v5779_v46, 2  ;;  %v1638_v18 = vrot.slane %v5783_v56, 2  ;;  %v5810_v2 = vmul.f32 %v5682_v57, %v5682_v57  ;;  %v1396_v60 = vsel %vm1351_vm3, %v1393_v31, %v1395_v24  ;;  %v5828_v31 = vld [vmem:[#allocation2 + $0xd8] sm:$0xff] }
 0x1c1   : > { %v1480_v54 = vadd.f32 %v1394_v0, %v1203_v48  ;;  %v1791_v45 = vadd.f32 %v1759_v58, %v1723_v33  ;;  %v1792_v42 = vadd.f32 %v1760_v49, %v1724_v43  ;;  %v1946_v53 = vsel %vm1351_vm3, %v1944_v13, %v1945_v28  ;;  %v5830_v43 = vld [vmem:[#allocation2 + $0xe0] sm:$0xff] }
 0x1c2   : > { %v5816_v7 = vmul.f32 %v4800_v1, %v5733_v27  ;;  %v5820_v20 = vmul.f32 %v4800_v1, %v5735_v35  ;;  %v2313_v22 = vmul.f32 %v4845_v4, %v5733_v27  ;;  %v2495_v46 = vrot.slane %v2387_v3, 1 }
 0x1c3   : > { %v2496_v56 = vrot.slane %v2388_v37, 1  ;;  %v2631_v24 = vmul.f32 %v4840_v63, %v5733_v27  ;;  %v2632_v33 = vmul.f32 %v4840_v63, %v5735_v35  ;;  %v1948_v34 = vsel %vm1351_vm3, %v1945_v28, %v1947_v12 }
 0x1c4   : > { %v2314_v9 = vmul.f32 %v4845_v4, %v5735_v35  ;;  %v2345_v48 = vadd.f32 %v2313_v22, %v2277_v36  ;;  %v1284_v0 = vmul.f32 %v4693_v26, %v1155_v62  ;;  %v1481_v13 = vadd.f32 %v1396_v60, %v1204_v11 }
 0x1c5   : > { %v2035_v58 = vadd.f32 %v1946_v53, %v1791_v45  ;;  %v2036_v49 = vadd.f32 %v1948_v34, %v1792_v42  ;;  %v5837_v27 = vmul.f32 %v4713_v50, %v1155_v62  ;;  %v5840_v37 = vmul.f32 %v4766_v29, %v1155_v62 }
 0x1c6   : > { %v2346_v3 = vadd.f32 %v2314_v9, %v2278_v47  ;;  %v1282_v16 = vmul.f32 %v4693_v26, %v5828_v31  ;;  %v1283_v12 = vmul.f32 %v4693_v26, %v5830_v43  ;;  %v5846_v35 = vpop.eup %4258  ;;  %v2497_v36 = vsel %vm1351_vm3, %v2495_v46, %v2496_v56 }
 0x1c7   : > { %v2739_v28 = vrot.slane %v2631_v24, 2  ;;  %v2740_v11 = vrot.slane %v2632_v33, 2  ;;  %v5850_v60 = vmul.f32 %v4800_v1, %v1155_v62  ;;  %v2188_v47 = vrot.slane %v5816_v7, 2 }
 0x1c8   : > { %v2189_v45 = vrot.slane %v5820_v20, 2  ;;  %v2589_v42 = vadd.f32 %v2497_v36, %v2345_v48  ;;  %v1400_v53 = vrot.slane %v1284_v0, 1  ;;  %v2499_v22 = vsel %vm1351_vm3, %v2496_v56, %v2498_v21 }
 0x1c9   : > { %v5859_v9 = vmul.f32 %v4837_v61, %v1155_v62  ;;  %v5862_v46 = vmul.f32 %v4840_v63, %v1155_v62  ;;  %v1952_v24 = vrot.slane %v5840_v37, 1  ;;  %v1397_v33 = vrot.slane %v1282_v16, 1 }
 0x1ca   : > { %v1398_v7 = vrot.slane %v1283_v12, 1  ;;  %v5867_v20 = vmul.f32 %v4713_v50, %v5828_v31  ;;  %v5869_v48 = vadd.f32 %v2499_v22, %v2346_v3  ;;  %v2741_v14 = vsel %vm1596_vm4, %v2739_v28, %v2740_v11 }
 0x1cb   : > { %7633 = vst [vmem:[#allocation4_spill] sm:$0xff] %v5859_v9  ;;  %7634 = vst [vmem:[#allocation31_spill] sm:$0xff] %v5862_v46  ;;  %v5875_v56 = vmul.f32 %v4713_v50, %v5830_v43  ;;  %v5880_v62 = vsel %vm1596_vm4, %v2740_v11, %v2742_v38  ;;  %v5882_v16 = vadd.f32 %v2741_v14, %v2589_v42  ;;  %v7639_v14 = vrot.slane %v5738_v17, 2 }
 0x1cc   : > { %7635 = vst [vmem:[#allocation32_spill] sm:$0xff] %v5869_v48  ;;  %7636 = vst [vmem:[#allocation33_spill] sm:$0xff] %v5880_v62  ;;  %v1205_v0 = vmul.f32 %v7627_v40, %v5828_v31  ;;  %v1206_v3 = vmul.f32 %v7627_v40, %v5830_v43  ;;  %v1639_v36 = vsel %vm1596_vm4, %v1637_v6, %v1638_v18  ;;  %4260 = vtanh.f32 %v5788_v30 }
 0x1cd   : > { %7637 = vst [vmem:[#allocation34_spill] sm:$0xff] %v5882_v16  ;;  %v1641_v10 = vsel %vm1596_vm4, %v1638_v18, %v1640_v39  ;;  %v1399_v38 = vsel %vm1351_vm3, %v1397_v33, %v1398_v7  ;;  %v1725_v11 = vadd.f32 %v1639_v36, %v1480_v54  ;;  %v1401_v22 = vsel %vm1351_vm3, %v1398_v7, %v1400_v53  ;;  %v7652_v16 = vld [vmem:[#allocation29_spill] sm:$0xff] }
 0x1ce   : > { %v1726_v42 = vadd.f32 %v1641_v10, %v1481_v13  ;;  %v1837_v37 = vmul.f32 %v4766_v29, %v5828_v31  ;;  %v1838_v6 = vmul.f32 %v4766_v29, %v5830_v43  ;;  %v1761_v55 = vmul.f32 %v4786_v52, %v5828_v31 }
 0x1cf   : > { %v1762_v39 = vmul.f32 %v4786_v52, %v5830_v43  ;;  %v5908_v18 = vmul.f32 %v4800_v1, %v5828_v31  ;;  %v5912_v54 = vmul.f32 %v4800_v1, %v5830_v43  ;;  %v5914_v13 = vadd.f32 %v1399_v38, %v1205_v0  ;;  %v1158_v38 = vld [vmem:[#allocation2 + $0x100] sm:$0x3] }
 0x1d0   : > { %v2190_v53 = vsel %vm1596_vm4, %v2188_v47, %v2189_v45  ;;  %v2390_v33 = vmul.f32 %v4837_v61, %v5828_v31  ;;  %v5921_v7 = vmul.f32 %v4837_v61, %v5830_v43  ;;  %v5923_v36 = vadd.f32 %v1401_v22, %v1206_v3 }
 0x1d1   : > { %v1793_v10 = vadd.f32 %v1761_v55, %v1725_v11  ;;  %v1794_v12 = vadd.f32 %v1762_v39, %v1726_v42  ;;  %v2279_v21 = vadd.f32 %v2190_v53, %v2035_v58  ;;  %v1949_v34 = vrot.slane %v1837_v37, 1 }
 0x1d2   : > { %7638 = vst [vmem:[#allocation35_spill] sm:$0xff] %v5921_v7  ;;  %v1950_v28 = vrot.slane %v1838_v6, 1  ;;  %v2192_v0 = vsel %vm1596_vm4, %v2189_v45, %v7639_v14  ;;  %v2315_v47 = vmul.f32 %v4845_v4, %v5828_v31  ;;  %v2316_v3 = vmul.f32 %v4845_v4, %v5830_v43  ;;  %v5952_v14 = vld [vmem:[#allocation2 + $0xf0] sm:$0xff] }
 0x1d3   : > { %v2280_v44 = vadd.f32 %v2192_v0, %v2036_v49  ;;  %v2500_v11 = vrot.slane %v2390_v33, 1  ;;  %v7515_v58 = vrot.slane %v5921_v7, 1  ;;  %v5937_v17 = vmul.f32 %v4840_v63, %v5828_v31  ;;  %v5971_v0 = vld [vmem:[#allocation2 + $0xf8] sm:$0xff] }
 0x1d4   : > { %v5941_v45 = vmul.f32 %v4840_v63, %v5830_v43  ;;  %v2347_v37 = vadd.f32 %v2315_v47, %v2279_v21  ;;  %v5944_v42 = vmul.f32 %v4693_v26, %v1158_v38  ;;  %v5947_v49 = vmul.f32 %v4713_v50, %v1158_v38 }
 0x1d5   : > { %7640 = vst [vmem:[#allocation36_spill] sm:$0xff] %v5937_v17  ;;  %v5950_v22 = vmul.f32 %v4766_v29, %v1158_v38  ;;  %v1951_v6 = vsel %vm1351_vm3, %v1949_v34, %v1950_v28  ;;  %v1953_v31 = vsel %vm1351_vm3, %v1950_v28, %v1952_v24  ;;  %v5957_v55 = vmul.f32 %v4800_v1, %v1158_v38 }
 0x1d6   : > { %7641 = vst [vmem:[#allocation37_spill] sm:$0xff] %v5941_v45  ;;  %v5960_v43 = vmul.f32 %v4837_v61, %v1158_v38  ;;  %v5962_v21 = vadd.f32 %v1951_v6, %v1793_v10  ;;  %v5964_v39 = vadd.f32 %v1953_v31, %v1794_v12  ;;  %v5966_v53 = vadd.f32 %v2316_v3, %v2280_v44 }
 0x1d7   : > { %v5969_v33 = vmul.f32 %v4840_v63, %v1158_v38  ;;  %v2502_v34 = vsel %vm1351_vm3, %v2500_v11, %v7515_v58  ;;  %v5980_v10 = vmul.f32 %v4693_v26, %v5952_v14  ;;  %v5991_v6 = vmul.f32 %v7627_v40, %v5952_v14  ;;  %v7647_v38 = vld [vmem:[#allocation20_spill] sm:$0xff] }
 0x1d8   : > { %7642 = vst [vmem:[#allocation38_spill] sm:$0xff] %v5960_v43  ;;  %7643 = vst [vmem:[#allocation39_spill] sm:$0xff] %v5964_v39  ;;  %v5982_v12 = vadd.f32 %v2502_v34, %v2347_v37  ;;  %v5995_v31 = vmul.f32 %v7627_v40, %v5971_v0  ;;  %v6000_v34 = vmul.f32 %v4693_v26, %v5971_v0  ;;  %v964_v28 = vadd.f32 1.0, %v5846_v35  ;;  %v7649_v35 = vld [vmem:[#allocation24_spill] sm:$0xff]  ;;  %v4261_v43 = vpop.eup %4260 }
 0x1d9   : > { %7644 = vst [vmem:[#allocation40_spill] sm:$0xff] %v5966_v53  ;;  %7645 = vst [vmem:[#allocation41_spill] sm:$0xff] %v5969_v33  ;;  %v6004_v24 = vmul.f32 %v4713_v50, %v5952_v14  ;;  %v1402_v11 = vrot.slane %v5980_v10, 1  ;;  %v870_v58 = vadd.f32 %v5791_v25, %v5618_v32  ;;  %v805_v37 = vmul.f32 %v5810_v2, %v5682_v57  ;;  %v7651_v2 = vld [vmem:[#allocation28_spill] sm:$0xff] }
 0x1da   : > { %7646 = vst [vmem:[#allocation42_spill] sm:$0xff] %v5982_v12  ;;  %v996_v3 = vmul.f32 0.5, %v964_v28  ;;  %v6015_v47 = vadd.f32 %v5400_v59, %v7647_v38  ;;  %v6019_v41 = vadd.f32 %v5400_v59, %v7648_v23  ;;  %v6023_v10 = vadd.f32 %v5400_v59, %v7649_v35 }
 0x1db   : > { %v902_v30 = vmul.f32 0.7978846, %v870_v58  ;;  %v837_v44 = vmul.f32 0.044715, %v805_v37  ;;  %v6027_v25 = vadd.f32 %v5400_v59, %v7650_v19  ;;  %v6031_v28 = vadd.f32 %v5400_v59, %v7651_v2 }
 0x1dc   : > { %v1028_v38 = vmul.f32 %v996_v3, %v5554_v15  ;;  %v776_v23 = vmul.f32 %v6015_v47, %v6015_v47  ;;  %v775_v5 = vmul.f32 %v6019_v41, %v6019_v41  ;;  %v778_v58 = vmul.f32 %v6023_v10, %v6023_v10 }
 0x1dd   : > { %4262 = vtanh.f32 %v902_v30  ;;  %v869_v37 = vadd.f32 %v837_v44, %v5682_v57  ;;  %v777_v19 = vmul.f32 %v6027_v25, %v6027_v25  ;;  %v780_v35 = vmul.f32 %v6031_v28, %v6031_v28  ;;  %v3251_v44 = vld [vmem:[%s7491_s5] sm:$0xff]  ;;  %v3252_v30 = vld [vmem:[%s7491_s5 + $0x8] sm:$0xff] }
 0x1de   : > { %1117 = vst.msk [vmem:[#allocation2 + $0x129] sm:$0xff] %vm1037_vm1, %v1028_v38  ;;  %v808_v15 = vmul.f32 %v776_v23, %v6015_v47  ;;  %v807_v3 = vmul.f32 %v775_v5, %v6019_v41  ;;  %v810_v2 = vmul.f32 %v778_v58, %v6023_v10  ;;  %v6051_v51 = vadd.f32 %v5400_v59, %v7652_v16  ;;  %v3253_v5 = vld [vmem:[%s7491_s5 + $0x10] sm:$0xff]  ;;  %v3254_v59 = vld [vmem:[%s7491_s5 + $0x18] sm:$0xff] }
 0x1df   : > { %v901_v12 = vmul.f32 0.7978846, %v869_v37  ;;  %v809_v38 = vmul.f32 %v777_v19, %v6027_v25  ;;  %v812_v23 = vmul.f32 %v780_v35, %v6031_v28  ;;  %v6069_v16 = vmul.f32 %v4713_v50, %v5971_v0 }
 0x1e0   : > { %v840_v58 = vmul.f32 0.044715, %v808_v15  ;;  %v839_v62 = vmul.f32 0.044715, %v807_v3  ;;  %v842_v48 = vmul.f32 0.044715, %v810_v2  ;;  %v4180_v33 = vpack.c.bf16 %v3252_v30, %v3251_v44 }
 0x1e1   : > { %v4380_v37 = vmov 0.0|0.0   ;;  %v1403_v19 = vrot.slane %v6000_v34, 1  ;;  %4264 = vtanh.f32 %v901_v12  ;;  %v841_v35 = vmul.f32 0.044715, %v809_v38 }
 0x1e2   : > { %4179 = vmatprep.subr.bf16.mxu0 %v4380_v37  ;;  %v872_v46 = vadd.f32 %v840_v58, %v6015_v47  ;;  %v871_v17 = vadd.f32 %v839_v62, %v6019_v41  ;;  %v844_v45 = vmul.f32 0.044715, %v812_v23  ;;  %v779_v53 = vmul.f32 %v6051_v51, %v6051_v51 }
 0x1e3   : > { %v7653_v15 = vrot.slane %v5875_v56, 2  ;;  %v7654_v3 = vrot.slane %v5867_v20, 2  ;;  %v874_v34 = vadd.f32 %v842_v48, %v6023_v10  ;;  %4181 = vmatpush3.bf16.msra.mxu0 %v4180_v33  ;;  %v4183_v12 = vpack.c.bf16 %v3254_v59, %v3253_v5 }
 0x1e4   : > { %v7655_v44 = vrot.slane %v5837_v27, 2  ;;  %v963_v23 = vadd.f32 1.0, %v4261_v43  ;;  %v904_v58 = vmul.f32 0.7978846, %v872_v46  ;;  %4182 = vmatprep.subr.bf16.mxu0 %v4380_v37  ;;  %v7657_v7 = vmov 0.0  }
 0x1e5   : > { %v1644_v2 = vsel %vm1596_vm4, %v7654_v3, %v7653_v15  ;;  %v7656_v30 = vmov %v7653_v15  ;;  %4115 = vmatprep.mubr.msk.f32.mxu0 %vm4381_vm5, %v7657_v7  ;;  %v1404_v20 = vsel %vm1351_vm3, %v1402_v11, %v1403_v19  ;;  %v873_v27 = vadd.f32 %v841_v35, %v6027_v25  ;;  %4120 = vmatprep.mubr.msk.f32.mxu1 %vm4381_vm5, %v7657_v7 }
 0x1e6   : > { %v1646_v62 = vsel %vm1596_vm4, %v7656_v30, %v7655_v44  ;;  %v1727_v38 = vadd.f32 %v1644_v2, %v5914_v13  ;;  %v7658_v56 = vrot.slane %v5944_v42, 1  ;;  %v903_v43 = vmul.f32 0.7978846, %v871_v17 }
 0x1e7   : > { %v876_v46 = vadd.f32 %v844_v45, %v6031_v28  ;;  %v811_v5 = vmul.f32 %v779_v53, %v6051_v51  ;;  %v4263_v59 = vpop.eup %4262  ;;  %v1728_v11 = vadd.f32 %v1646_v62, %v5923_v36  ;;  %v995_v37 = vmul.f32 0.5, %v963_v23  ;;  %4184 = vmatpush3.bf16.msra.mxu0 %v4183_v12 }
 0x1e8   : > { %v1406_v13 = vsel %vm1351_vm3, %v1403_v19, %v7658_v56  ;;  %4266 = vtanh.f32 %v904_v58  ;;  %v906_v15 = vmul.f32 0.7978846, %v874_v34  ;;  %v6101_v35 = vadd.f32 %v1404_v20, %v5991_v6  ;;  %v1161_v56 = vld [vmem:[#allocation2 + $0x118] sm:$0x3] }
 0x1e9   : > { %v1763_v7 = vmul.f32 %v4786_v52, %v5952_v14  ;;  %v1764_v17 = vmul.f32 %v4786_v52, %v5971_v0  ;;  %v6109_v45 = vmul.f32 %v4766_v29, %v5952_v14  ;;  %v6112_v42 = vadd.f32 %v1406_v13, %v5995_v31 }
 0x1ea   : > { %v1027_v36 = vmul.f32 %v995_v37, %v5574_v8  ;;  %v966_v53 = vadd.f32 1.0, %v4263_v59  ;;  %v905_v19 = vmul.f32 0.7978846, %v873_v27  ;;  %4268 = vtanh.f32 %v903_v43 }
 0x1eb   : > { %v6115_v3 = vadd.f32 %v1763_v7, %v1727_v38  ;;  %v908_v6 = vmul.f32 0.7978846, %v876_v46  ;;  %v843_v2 = vmul.f32 0.044715, %v811_v5  ;;  %v4265_v34 = vpop.eup %4264  ;;  %v6117_v12 = vadd.f32 %v1764_v17, %v1728_v11 }
 0x1ec   : > { %v6121_v44 = vmul.f32 %v4766_v29, %v5971_v0  ;;  %1116 = vst.msk [vmem:[#allocation2 + $0x121] sm:$0xff] %vm1037_vm1, %v1027_v36  ;;  %v998_v31 = vmul.f32 0.5, %v966_v53  ;;  %4270 = vtanh.f32 %v906_v15  ;;  %v6126_v8 = vmul.f32 %v4800_v1, %v5952_v14 }
 0x1ed   : > { %v7659_v30 = vrot.slane %v5912_v54, 2  ;;  %v7660_v62 = vrot.slane %v5908_v18, 2  ;;  %v965_v23 = vadd.f32 1.0, %v4265_v34  ;;  %v875_v58 = vadd.f32 %v843_v2, %v6051_v51 }
 0x1ee   : > { %v6136_v20 = vmul.f32 %v4800_v1, %v5971_v0  ;;  %v1030_v13 = vmul.f32 %v998_v31, %v5618_v32  ;;  %4272 = vtanh.f32 %v905_v19  ;;  %v6142_v43 = vmul.f32 %v4837_v61, %v5952_v14 }
 0x1ef   : > { %v2195_v38 = vsel %vm1596_vm4, %v7660_v62, %v7659_v30  ;;  %v997_v18 = vmul.f32 0.5, %v965_v23  ;;  %4274 = vtanh.f32 %v908_v6  ;;  %v907_v46 = vmul.f32 0.7978846, %v875_v58 }
 0x1f0   : > { %7661 = vst [vmem:[#allocation20_spill] sm:$0xff] %v6136_v20  ;;  %v2281_v27 = vadd.f32 %v2195_v38, %v5962_v21  ;;  %7662 = vst [vmem:[#allocation22_spill] sm:$0xff] %v6142_v43  ;;  %v2317_v59 = vmul.f32 %v4845_v4, %v5952_v14  ;;  %v6149_v11 = vmul.f32 %v4837_v61, %v5971_v0  ;;  %v6188_v38 = vld [vmem:[#allocation2 + $0x110] sm:$0xff] }
 0x1f1   : > { %v6153_v32 = vmul.f32 %v4840_v63, %v5952_v14  ;;  %1119 = vst.msk [vmem:[#allocation2 + $0x141] sm:$0xff] %vm1037_vm1, %v1030_v13  ;;  %v6158_v21 = vmul.f32 %v4840_v63, %v5971_v0  ;;  %v6161_v37 = vmul.f32 %v4693_v26, %v1161_v56  ;;  %v1029_v15 = vmul.f32 %v997_v18, %v5682_v57  ;;  %v6177_v57 = vld [vmem:[#allocation2 + $0x108] sm:$0xff] }
 0x1f2   : > { %7663 = vst [vmem:[#allocation24_spill] sm:$0xff] %v6149_v11  ;;  %4276 = vtanh.f32 %v907_v46  ;;  %v4267_v7 = vpop.eup %4266  ;;  %v6168_v14 = vmul.f32 %v4845_v4, %v5971_v0  ;;  %v6171_v53 = vmul.f32 %v4713_v50, %v1161_v56  ;;  %v6174_v6 = vadd.f32 %v2317_v59, %v2281_v27  ;;  %7669 = vst [vmem:[#allocation45_spill] sm:$0xff] %v6188_v38 }
 0x1f3   : > { %7664 = vst [vmem:[#allocation25_spill] sm:$0xff] %v6153_v32  ;;  %7665 = vst [vmem:[#allocation28_spill] sm:$0xff] %v6158_v21  ;;  %v968_v34 = vadd.f32 1.0, %v4267_v7  ;;  %v6183_v0 = vmul.f32 %v4766_v29, %v1161_v56  ;;  %v6186_v62 = vmul.f32 %v4800_v1, %v1161_v56  ;;  %v1410_v27 = vrot.slane %v6161_v37, 1 }
 0x1f4   : > { %7666 = vst [vmem:[#allocation29_spill] sm:$0xff] %v6168_v14  ;;  %7667 = vst [vmem:[#allocation43_spill] sm:$0xff] %v6174_v6  ;;  %v4269_v23 = vpop.eup %4268  ;;  %v6193_v13 = vmul.f32 %v4837_v61, %v1161_v56  ;;  %v1288_v7 = vmul.f32 %v4693_v26, %v6177_v57  ;;  %v1289_v2 = vmul.f32 %v4693_v26, %v6188_v38 }
 0x1f5   : > { %1118 = vst.msk [vmem:[#allocation2 + $0x139] sm:$0xff] %vm1037_vm1, %v1029_v15  ;;  %7668 = vst [vmem:[#allocation44_spill] sm:$0xff] %v6186_v62  ;;  %v1000_v18 = vmul.f32 0.5, %v968_v34  ;;  %v6197_v15 = vmul.f32 %v4840_v63, %v1161_v56  ;;  %v967_v30 = vadd.f32 1.0, %v4269_v23  ;;  %v6205_v37 = vmul.f32 %v4713_v50, %v6177_v57 }
 0x1f6   : > { %7670 = vst [vmem:[#allocation46_spill] sm:$0xff] %v6193_v13  ;;  %v4271_v46 = vpop.eup %4270  ;;  %v1209_v19 = vmul.f32 %v7627_v40, %v6177_v57  ;;  %v1210_v23 = vmul.f32 %v7627_v40, %v6188_v38  ;;  %v6217_v59 = vmul.f32 %v4713_v50, %v6188_v38  ;;  %v1407_v56 = vrot.slane %v1288_v7, 1 }
 0x1f7   : > { %7671 = vst [vmem:[#allocation47_spill] sm:$0xff] %v6197_v15  ;;  %v1032_v58 = vmul.f32 %v1000_v18, %v6015_v47  ;;  %v970_v34 = vadd.f32 1.0, %v4271_v46  ;;  %v999_v47 = vmul.f32 0.5, %v967_v30  ;;  %v1765_v36 = vmul.f32 %v4786_v52, %v6177_v57 }
 0x1f8   : > { %v4273_v31 = vpop.eup %4272  ;;  %v6225_v48 = vmul.f32 %v4766_v29, %v6177_v57  ;;  %v1408_v17 = vrot.slane %v1289_v2, 1  ;;  %v1652_v32 = vrot.slane %v6205_v37, 2  ;;  %v1766_v30 = vmul.f32 %v4786_v52, %v6188_v38 }
 0x1f9   : > { %v4275_v5 = vpop.eup %4274  ;;  %1121 = vst.msk [vmem:[#allocation2 + $0x159] sm:$0xff] %vm1037_vm1, %v1032_v58  ;;  %v1002_v18 = vmul.f32 0.5, %v970_v34  ;;  %v1031_v21 = vmul.f32 %v999_v47, %v6019_v41  ;;  %v969_v34 = vadd.f32 1.0, %v4273_v31  ;;  %v1653_v15 = vrot.slane %v6217_v59, 2 }
 0x1fa   : > { %v972_v7 = vadd.f32 1.0, %v4275_v5  ;;  %v1844_v6 = vmul.f32 %v4766_v29, %v6188_v38  ;;  %v6237_v2 = vmul.f32 %v4800_v1, %v6177_v57  ;;  %v6241_v41 = vmul.f32 %v4800_v1, %v6188_v38 }
 0x1fb   : > { %v1034_v58 = vmul.f32 %v1002_v18, %v6023_v10  ;;  %v1164_v10 = vld [vmem:[#allocation2 + $0x130] sm:$0x3]  ;;  %1120 = vst.msk [vmem:[#allocation2 + $0x151] sm:$0xff] %vm1037_vm1, %v1031_v21  ;;  %v1001_v5 = vmul.f32 0.5, %v969_v34  ;;  %v6248_v37 = vmul.f32 %v4845_v4, %v6177_v57  ;;  %v6252_v47 = vmul.f32 %v4837_v61, %v6177_v57 }
 0x1fc   : > { %v4277_v33 = vpop.eup %4276  ;;  %7672 = vst [vmem:[#allocation48_spill] sm:$0xff] %v6237_v2  ;;  %v1004_v31 = vmul.f32 0.5, %v972_v7  ;;  %v1409_v18 = vsel %vm1351_vm3, %v1407_v56, %v1408_v17  ;;  %v1411_v13 = vsel %vm1351_vm3, %v1408_v17, %v1410_v27  ;;  %v6257_v21 = vmul.f32 %v4693_v26, %v1164_v10 }
 0x1fd   : > { %v971_v46 = vadd.f32 1.0, %v4277_v33  ;;  %1123 = vst.msk [vmem:[#allocation2 + $0x171] sm:$0xff] %vm1037_vm1, %v1034_v58  ;;  %v1959_v33 = vrot.slane %v6225_v48, 1  ;;  %7673 = vst [vmem:[#allocation49_spill] sm:$0xff] %v6248_v37  ;;  %v1033_v48 = vmul.f32 %v1001_v5, %v6027_v25  ;;  %v6263_v34 = vmul.f32 %v4713_v50, %v1164_v10 }
 0x1fe   : > { %7674 = vst [vmem:[#allocation50_spill] sm:$0xff] %v6252_v47  ;;  %v1036_v58 = vmul.f32 %v1004_v31, %v6031_v28  ;;  %v6266_v7 = vmul.f32 %v4766_v29, %v1164_v10  ;;  %v6269_v43 = vmul.f32 %v4800_v1, %v1164_v10  ;;  %v7676_v17 = vrot.slane %v6069_v16, 2  ;;  %v6302_v16 = vld [vmem:[#allocation2 + $0x120] sm:$0xff] }
 0x1ff   : > { %v1003_v59 = vmul.f32 0.5, %v971_v46  ;;  %v7677_v27 = vrot.slane %v6004_v24, 2  ;;  %v6277_v25 = vmul.f32 %v4837_v61, %v1164_v10  ;;  %1122 = vst.msk [vmem:[#allocation2 + $0x169] sm:$0xff] %vm1037_vm1, %v1033_v48  ;;  %v7680_v28 = vrot.slane %v5947_v49, 2 }
 0x200   : > { %7675 = vst [vmem:[#allocation51_spill] sm:$0xff] %v6269_v43  ;;  %1125 = vst.msk [vmem:[#allocation2 + $0x189] sm:$0xff] %vm1037_vm1, %v1036_v58  ;;  %v7681_v5 = vmov %v7676_v17  ;;  %v6300_v49 = vmul.f32 %v4840_v63, %v6177_v57  ;;  %v1654_v57 = vsel %vm1596_vm4, %v1652_v32, %v1653_v15 }
 0x201   : > { %v1035_v46 = vmul.f32 %v1003_v59, %v6051_v51  ;;  %v1649_v56 = vsel %vm1596_vm4, %v7677_v27, %v7676_v17  ;;  %7678 = vst [vmem:[#allocation52_spill] sm:$0xff] %v6277_v25  ;;  %v6280_v51 = vmul.f32 %v4840_v63, %v1164_v10  ;;  %v1651_v24 = vsel %vm1596_vm4, %v7681_v5, %v7680_v28 }
 0x202   : > { %v1729_v31 = vadd.f32 %v1649_v56, %v6101_v35  ;;  %v1960_v59 = vrot.slane %v1844_v6, 1  ;;  %v6293_v17 = vmul.f32 %v4837_v61, %v6188_v38  ;;  %v1486_v10 = vadd.f32 %v1409_v18, %v1209_v19  ;;  %7683 = vst [vmem:[#allocation55_spill] sm:$0xff] %v6300_v49  ;;  %v1167_v18 = vld [vmem:[#allocation2 + $0x148] sm:$0x3] }
 0x203   : > { %7679 = vst [vmem:[#allocation53_spill] sm:$0xff] %v6280_v51  ;;  %1124 = vst.msk [vmem:[#allocation2 + $0x181] sm:$0xff] %vm1037_vm1, %v1035_v46  ;;  %v1730_v48 = vadd.f32 %v1651_v24, %v6112_v42  ;;  %v1487_v27 = vadd.f32 %v1411_v13, %v1210_v23  ;;  %v1415_v35 = vrot.slane %v6257_v21, 1  ;;  %v6308_v42 = vld [vmem:[#allocation2 + $0x128] sm:$0xff]  ;;  %v1291_v13 = vmul.f32 %v4693_v26, %v6302_v16  ;;  %v6315_v23 = vld [vmem:[#allocation2 + $0x138] sm:$0xff] }
 0x204   : > { %7682 = vst [vmem:[#allocation54_spill] sm:$0xff] %v6293_v17  ;;  %v1797_v5 = vadd.f32 %v1765_v36, %v1729_v31  ;;  %v6317_v21 = vld [vmem:[#allocation2 + $0x140] sm:$0xff]  ;;  %v7684_v24 = vrot.slane %v6171_v53, 2  ;;  %v6322_v19 = vadd.f32 %v1654_v57, %v1486_v10  ;;  %v1292_v28 = vmul.f32 %v4693_v26, %v6308_v42 }
 0x205   : > { %v1798_v58 = vadd.f32 %v1766_v30, %v1730_v48  ;;  %v7685_v36 = vrot.slane %v6121_v44, 1  ;;  %v7686_v31 = vrot.slane %v6109_v45, 1  ;;  %v7687_v6 = vrot.slane %v5950_v22, 1 }
 0x206   : > { %v1656_v46 = vsel %vm1596_vm4, %v1653_v15, %v7684_v24  ;;  %v1961_v30 = vsel %vm1351_vm3, %v1959_v33, %v1960_v59  ;;  %v7689_v10 = vrot.slane %v6183_v0, 1  ;;  %v6350_v45 = vmul.f32 %v4713_v50, %v6302_v16  ;;  %v6418_v25 = vld [vmem:[#allocation2 + $0x168] sm:$0xff]  ;;  %v6420_v47 = vld [vmem:[#allocation2 + $0x170] sm:$0xff] }
 0x207   : > { %v6326_v32 = vadd.f32 %v1656_v46, %v1487_v27  ;;  %v1956_v56 = vsel %vm1351_vm3, %v7686_v31, %v7685_v36  ;;  %v7688_v53 = vmov %v7685_v36  ;;  %v1294_v22 = vmul.f32 %v4693_v26, %v6315_v23 }
 0x208   : > { %v1958_v15 = vsel %vm1351_vm3, %v7688_v53, %v7687_v6  ;;  %v1963_v48 = vsel %vm1351_vm3, %v1960_v59, %v7689_v10  ;;  %v6343_v46 = vadd.f32 %v1956_v56, %v6115_v3  ;;  %v1295_v44 = vmul.f32 %v4693_v26, %v6317_v21 }
 0x209   : > { %v6346_v27 = vadd.f32 %v1958_v15, %v6117_v12  ;;  %v6356_v33 = vadd.f32 %v1961_v30, %v1797_v5  ;;  %v1412_v0 = vrot.slane %v1291_v13, 1  ;;  %v1296_v59 = vmul.f32 %v4693_v26, %v1167_v18 }
 0x20a   : > { %7690 = vst [vmem:[#allocation56_spill] sm:$0xff] %v6343_v46  ;;  %v6361_v3 = vmul.f32 %v4713_v50, %v6308_v42  ;;  %v6363_v12 = vadd.f32 %v1963_v48, %v1798_v58  ;;  %v6366_v6 = vmul.f32 %v4713_v50, %v1167_v18  ;;  %v6369_v56 = vmul.f32 %v4766_v29, %v1167_v18 }
 0x20b   : > { %7691 = vst [vmem:[#allocation57_spill] sm:$0xff] %v6346_v27  ;;  %7692 = vst [vmem:[#allocation58_spill] sm:$0xff] %v6356_v33  ;;  %v6372_v57 = vmul.f32 %v4800_v1, %v1167_v18  ;;  %v1413_v5 = vrot.slane %v1292_v28, 1  ;;  %v6375_v13 = vmul.f32 %v4837_v61, %v1167_v18  ;;  %v6378_v24 = vmul.f32 %v4840_v63, %v1167_v18  ;;  %v6416_v63 = vld [vmem:[#allocation2 + $0x178] sm:$0x3] }
 0x20c   : > { %7693 = vst [vmem:[#allocation59_spill] sm:$0xff] %v6363_v12  ;;  %v7697_v36 = vrot.slane %v5850_v60, 2  ;;  %v7698_v58 = vrot.slane %v5912_v54, 2  ;;  %v7700_v53 = vrot.slane %v6136_v20, 2  ;;  %v7701_v15 = vrot.slane %v6126_v8, 2  ;;  %7703 = vst [vmem:[#allocation65_spill] sm:$0xff] %v6416_v63 }
 0x20d   : > { %7694 = vst [vmem:[#allocation60_spill] sm:$0xff] %v6372_v57  ;;  %7695 = vst [vmem:[#allocation61_spill] sm:$0xff] %v6375_v13  ;;  %v6396_v28 = vmul.f32 %v4766_v29, %v6302_v16  ;;  %v1417_v18 = vrot.slane %v1294_v22, 1  ;;  %v1418_v10 = vrot.slane %v1295_v44, 1  ;;  %v1657_v60 = vrot.slane %v6350_v45, 2 }
 0x20e   : > { %7696 = vst [vmem:[#allocation62_spill] sm:$0xff] %v6378_v24  ;;  %v6385_v31 = vsel %vm1596_vm4, %v7698_v58, %v7697_v36  ;;  %v6392_v30 = vsel %vm1596_vm4, %v7701_v15, %v7700_v53  ;;  %v1420_v48 = vrot.slane %v1296_v59, 1  ;;  %v6399_v54 = vld [vmem:[#allocation2 + $0x160] sm:$0x3]  ;;  %v6401_v36 = vld [vmem:[#allocation2 + $0x150] sm:$0xff]  ;;  %v6403_v58 = vld [vmem:[#allocation2 + $0x158] sm:$0xff]  ;;  %v1211_v8 = vmul.f32 %v7627_v40, %v6302_v16 }
 0x20f   : > { %7699 = vst [vmem:[#allocation63_spill] sm:$0xff] %v6385_v31  ;;  %7702 = vst [vmem:[#allocation64_spill] sm:$0xff] %v6392_v30  ;;  %v1212_v53 = vmul.f32 %v7627_v40, %v6308_v42  ;;  %v1658_v15 = vrot.slane %v6361_v3, 2  ;;  %v1414_v59 = vsel %vm1351_vm3, %v1412_v0, %v1413_v5  ;;  %v1416_v3 = vsel %vm1351_vm3, %v1413_v5, %v1415_v35 }
 0x210   : > { %v6425_v22 = vmul.f32 %v4786_v52, %v6302_v16  ;;  %v1299_v45 = vmul.f32 %v4693_v26, %v6399_v54  ;;  %v1297_v0 = vmul.f32 %v4693_v26, %v6401_v36  ;;  %v1298_v49 = vmul.f32 %v4693_v26, %v6403_v58 }
 0x211   : > { %v1419_v51 = vsel %vm1351_vm3, %v1417_v18, %v1418_v10  ;;  %v1544_v44 = vmul.f32 %v4713_v50, %v6399_v54  ;;  %v1213_v35 = vmul.f32 %v7627_v40, %v6315_v23  ;;  %v1214_v5 = vmul.f32 %v7627_v40, %v6317_v21 }
 0x212   : > { %v1488_v24 = vadd.f32 %v1414_v59, %v1211_v8  ;;  %v6442_v13 = vmul.f32 %v4766_v29, %v6399_v54  ;;  %v1300_v17 = vmul.f32 %v4693_v26, %v6418_v25  ;;  %v1301_v18 = vmul.f32 %v4693_v26, %v6420_v47 }
 0x213   : > { %v1302_v11 = vmul.f32 %v4693_v26, %v6416_v63  ;;  %v1421_v9 = vsel %vm1351_vm3, %v1418_v10, %v1420_v48  ;;  %v1489_v61 = vadd.f32 %v1416_v3, %v1212_v53  ;;  %v1490_v37 = vadd.f32 %v1419_v51, %v1213_v35 }
 0x214   : > { %v1539_v8 = vmul.f32 %v4713_v50, %v6315_v23  ;;  %v1425_v59 = vrot.slane %v1299_v45, 1  ;;  %v1422_v14 = vrot.slane %v1297_v0, 1  ;;  %v1423_v4 = vrot.slane %v1298_v49, 1 }
 0x215   : > { %v1540_v38 = vmul.f32 %v4713_v50, %v6317_v21  ;;  %v1670_v12 = vrot.slane %v1544_v44, 2  ;;  %v1542_v33 = vmul.f32 %v4713_v50, %v6401_v36  ;;  %v1543_v26 = vmul.f32 %v4713_v50, %v6403_v58 }
 0x216   : > { %v1659_v10 = vsel %vm1596_vm4, %v1657_v60, %v1658_v15  ;;  %v1427_v48 = vrot.slane %v1300_v17, 1  ;;  %v1428_v53 = vrot.slane %v1301_v18, 1  ;;  %v1430_v3 = vrot.slane %v1302_v11, 1 }
 0x217   : > { %v1491_v45 = vadd.f32 %v1421_v9, %v1214_v5  ;;  %v1545_v49 = vmul.f32 %v4713_v50, %v6418_v25  ;;  %v1546_v44 = vmul.f32 %v4713_v50, %v6420_v47  ;;  %v1662_v0 = vrot.slane %v1539_v8, 2 }
 0x218   : > { %v1424_v35 = vsel %vm1351_vm3, %v1422_v14, %v1423_v4  ;;  %v1426_v27 = vsel %vm1351_vm3, %v1423_v4, %v1425_v59  ;;  %v1547_v60 = vmul.f32 %v4713_v50, %v6416_v63  ;;  %v1663_v30 = vrot.slane %v1540_v38, 2 }
 0x219   : > { %v1215_v17 = vmul.f32 %v7627_v40, %v6401_v36  ;;  %v1216_v9 = vmul.f32 %v7627_v40, %v6403_v58  ;;  %v1667_v11 = vrot.slane %v1542_v33, 2  ;;  %v1668_v5 = vrot.slane %v1543_v26, 2 }
 0x21a   : > { %v1217_v18 = vmul.f32 %v7627_v40, %v6418_v25  ;;  %v1218_v14 = vmul.f32 %v7627_v40, %v6420_v47  ;;  %v1429_v4 = vsel %vm1351_vm3, %v1427_v48, %v1428_v53  ;;  %v1431_v8 = vsel %vm1351_vm3, %v1428_v53, %v1430_v3 }
 0x21b   : > { %v1492_v50 = vadd.f32 %v1424_v35, %v1215_v17  ;;  %v1493_v38 = vadd.f32 %v1426_v27, %v1216_v9  ;;  %v1672_v59 = vrot.slane %v1545_v49, 2  ;;  %v1673_v51 = vrot.slane %v1546_v44, 2 }
 0x21c   : > { %v7704_v46 = vrot.slane %v6263_v34, 2  ;;  %v1664_v33 = vsel %vm1596_vm4, %v1662_v0, %v1663_v30  ;;  %v1675_v26 = vrot.slane %v1547_v60, 2  ;;  %v1733_v39 = vadd.f32 %v1659_v10, %v1488_v24  ;;  %v6488_v34 = vld [vmem:[#allocation2 + $0x180] sm:$0xff] }
 0x21d   : > { %v1494_v57 = vadd.f32 %v1429_v4, %v1217_v18  ;;  %v1495_v43 = vadd.f32 %v1431_v8, %v1218_v14  ;;  %v7705_v40 = vrot.slane %v6366_v6, 2  ;;  %v1669_v53 = vsel %vm1596_vm4, %v1667_v11, %v1668_v5  ;;  %7706 = vst [vmem:[#allocation66_spill] sm:$0xff] %v6488_v34 }
 0x21e   : > { %v1661_v31 = vsel %vm1596_vm4, %v1658_v15, %v7704_v46  ;;  %v1671_v27 = vsel %vm1596_vm4, %v1668_v5, %v1670_v12  ;;  %v1735_v3 = vadd.f32 %v1664_v33, %v1490_v37  ;;  %v6490_v46 = vld [vmem:[#allocation2 + $0x188] sm:$0xff]  ;;  %v1674_v15 = vsel %vm1596_vm4, %v1672_v59, %v1673_v51 }
 0x21f   : > { %v1666_v48 = vsel %vm1596_vm4, %v1663_v30, %v7705_v40  ;;  %v1734_v62 = vadd.f32 %v1661_v31, %v1489_v61  ;;  %7707 = vst [vmem:[#allocation67_spill] sm:$0xff] %v6490_v46  ;;  %v1737_v24 = vadd.f32 %v1669_v53, %v1492_v50  ;;  %v1738_v10 = vadd.f32 %v1671_v27, %v1493_v38 }
 0x220   : > { %v1736_v49 = vadd.f32 %v1666_v48, %v1491_v45  ;;  %v1768_v6 = vmul.f32 %v4786_v52, %v6308_v42  ;;  %v1676_v30 = vsel %vm1596_vm4, %v1673_v51, %v1675_v26  ;;  %v1769_v61 = vmul.f32 %v4786_v52, %v6315_v23 }
 0x221   : > { %v1770_v37 = vmul.f32 %v4786_v52, %v6317_v21  ;;  %v1771_v12 = vmul.f32 %v4786_v52, %v6401_v36  ;;  %v1739_v31 = vadd.f32 %v1674_v15, %v1494_v57  ;;  %v1740_v45 = vadd.f32 %v1676_v30, %v1495_v43  ;;  %v6514_v57 = vld [vmem:[#allocation2 + $0x190] sm:$0x3] }
 0x222   : > { %v1772_v44 = vmul.f32 %v4786_v52, %v6403_v58  ;;  %v1773_v0 = vmul.f32 %v4786_v52, %v6418_v25  ;;  %v1774_v51 = vmul.f32 %v4786_v52, %v6420_v47  ;;  %v1775_v35 = vmul.f32 %v4786_v52, %v6488_v34  ;;  %7708 = vst [vmem:[#allocation68_spill] sm:$0xff] %v6514_v57 }
 0x223   : > { %v1776_v60 = vmul.f32 %v4786_v52, %v6490_v46  ;;  %v1799_v17 = vadd.f32 %v6425_v22, %v6322_v19  ;;  %v1847_v43 = vmul.f32 %v4766_v29, %v6308_v42  ;;  %v1849_v9 = vmul.f32 %v4766_v29, %v6315_v23 }
 0x224   : > { %v1850_v11 = vmul.f32 %v4766_v29, %v6317_v21  ;;  %v1852_v5 = vmul.f32 %v4766_v29, %v6401_v36  ;;  %v1853_v52 = vmul.f32 %v4766_v29, %v6403_v58  ;;  %v1855_v19 = vmul.f32 %v4766_v29, %v6418_v25 }
 0x225   : > { %v1856_v22 = vmul.f32 %v4766_v29, %v6420_v47  ;;  %v1857_v18 = vmul.f32 %v4766_v29, %v6416_v63  ;;  %v1800_v14 = vadd.f32 %v1768_v6, %v6326_v32  ;;  %v1801_v4 = vadd.f32 %v1769_v61, %v1733_v39 }
 0x226   : > { %v1802_v8 = vadd.f32 %v1770_v37, %v1734_v62  ;;  %v1803_v50 = vadd.f32 %v1771_v12, %v1735_v3  ;;  %v1858_v38 = vmul.f32 %v4766_v29, %v6488_v34  ;;  %v1859_v59 = vmul.f32 %v4766_v29, %v6490_v46 }
 0x227   : > { %v1860_v33 = vmul.f32 %v4766_v29, %v6514_v57  ;;  %v1964_v26 = vrot.slane %v6396_v28, 1  ;;  %v1965_v40 = vrot.slane %v1847_v43, 1  ;;  %v1969_v48 = vrot.slane %v1849_v9, 1 }
 0x228   : > { %v1970_v53 = vrot.slane %v1850_v11, 1  ;;  %v1974_v27 = vrot.slane %v1852_v5, 1  ;;  %v1975_v15 = vrot.slane %v1853_v52, 1  ;;  %v1979_v32 = vrot.slane %v1855_v19, 1 }
 0x229   : > { %v1980_v39 = vrot.slane %v1856_v22, 1  ;;  %v1982_v62 = vrot.slane %v1857_v18, 1  ;;  %v1804_v3 = vadd.f32 %v1772_v44, %v1736_v49  ;;  %v1805_v6 = vadd.f32 %v1773_v0, %v1737_v24 }
 0x22a   : > { %v1806_v30 = vadd.f32 %v1774_v51, %v1738_v10  ;;  %v1807_v61 = vadd.f32 %v1775_v35, %v1739_v31  ;;  %v1808_v37 = vadd.f32 %v1776_v60, %v1740_v45  ;;  %v1984_v12 = vrot.slane %v1858_v38, 1 }
 0x22b   : > { %v1985_v2 = vrot.slane %v1859_v59, 1  ;;  %v1987_v20 = vrot.slane %v1860_v33, 1  ;;  %v1966_v29 = vsel %vm1351_vm3, %v1964_v26, %v1965_v40  ;;  %v7709_v28 = vrot.slane %v6266_v7, 1 }
 0x22c   : > { %v1971_v9 = vsel %vm1351_vm3, %v1969_v48, %v1970_v53  ;;  %v7710_v11 = vrot.slane %v6369_v56, 1  ;;  %v1976_v49 = vsel %vm1351_vm3, %v1974_v27, %v1975_v15  ;;  %v7711_v24 = vrot.slane %v6442_v13, 1 }
 0x22d   : > { %v1968_v43 = vsel %vm1351_vm3, %v1965_v40, %v7709_v28  ;;  %v1981_v31 = vsel %vm1351_vm3, %v1979_v32, %v1980_v39  ;;  %v1983_v45 = vsel %vm1351_vm3, %v1980_v39, %v1982_v62  ;;  %v2043_v44 = vadd.f32 %v1966_v29, %v1799_v17  ;;  %v7713_v28 = vld [vmem:[#allocation20_spill] sm:$0xff] }
 0x22e   : > { %v1973_v5 = vsel %vm1351_vm3, %v1970_v53, %v7710_v11  ;;  %v1978_v10 = vsel %vm1351_vm3, %v1975_v15, %v7711_v24  ;;  %v2044_v7 = vadd.f32 %v1968_v43, %v1800_v14  ;;  %v2045_v0 = vadd.f32 %v1971_v9, %v1801_v4 }
 0x22f   : > { %v2046_v51 = vadd.f32 %v1973_v5, %v1802_v8  ;;  %v1986_v35 = vsel %vm1351_vm3, %v1984_v12, %v1985_v2  ;;  %v1988_v56 = vsel %vm1351_vm3, %v1985_v2, %v1987_v20  ;;  %v2047_v60 = vadd.f32 %v1976_v49, %v1803_v50  ;;  %v7715_v5 = vld [vmem:[#allocation48_spill] sm:$0xff] }
 0x230   : > { %v2048_v52 = vadd.f32 %v1978_v10, %v1804_v3  ;;  %v2049_v19 = vadd.f32 %v1981_v31, %v1805_v6  ;;  %v2090_v13 = vmul.f32 %v4800_v1, %v6302_v16  ;;  %v2091_v22 = vmul.f32 %v4800_v1, %v6308_v42  ;;  %v7717_v10 = vld [vmem:[#allocation44_spill] sm:$0xff] }
 0x231   : > { %v2093_v18 = vmul.f32 %v4800_v1, %v6315_v23  ;;  %v2094_v17 = vmul.f32 %v4800_v1, %v6317_v21  ;;  %v2096_v14 = vmul.f32 %v4800_v1, %v6401_v36  ;;  %v2097_v20 = vmul.f32 %v4800_v1, %v6403_v58 }
 0x232   : > { %v2098_v2 = vmul.f32 %v4800_v1, %v6399_v54  ;;  %v2050_v4 = vadd.f32 %v1983_v45, %v1806_v30  ;;  %v2099_v8 = vmul.f32 %v4800_v1, %v6418_v25  ;;  %v2100_v50 = vmul.f32 %v4800_v1, %v6420_v47 }
 0x233   : > { %v2101_v38 = vmul.f32 %v4800_v1, %v6416_v63  ;;  %v2051_v59 = vadd.f32 %v1986_v35, %v1807_v61  ;;  %v2102_v33 = vmul.f32 %v4800_v1, %v6488_v34  ;;  %v2103_v26 = vmul.f32 %v4800_v1, %v6490_v46  ;;  %v7719_v35 = vld [vmem:[#allocation51_spill] sm:$0xff] }
 0x234   : > { %v2104_v40 = vmul.f32 %v4800_v1, %v6514_v57  ;;  %v2204_v48 = vrot.slane %v6241_v41, 2  ;;  %v2208_v53 = vrot.slane %v2090_v13, 2  ;;  %v2209_v27 = vrot.slane %v2091_v22, 2  ;;  %v7721_v22 = vld [vmem:[#allocation60_spill] sm:$0xff] }
 0x235   : > { %v2213_v15 = vrot.slane %v2093_v18, 2  ;;  %v2214_v32 = vrot.slane %v2094_v17, 2  ;;  %v2218_v39 = vrot.slane %v2096_v14, 2  ;;  %v2219_v62 = vrot.slane %v2097_v20, 2 }
 0x236   : > { %v2221_v3 = vrot.slane %v2098_v2, 2  ;;  %v2052_v6 = vadd.f32 %v1988_v56, %v1808_v37  ;;  %v2223_v30 = vrot.slane %v2099_v8, 2  ;;  %v2224_v61 = vrot.slane %v2100_v50, 2  ;;  %v7723_v50 = vld [vmem:[#allocation39_spill] sm:$0xff] }
 0x237   : > { %v2226_v12 = vrot.slane %v2101_v38, 2  ;;  %v7712_v29 = vrot.slane %v5957_v55, 2  ;;  %v7714_v43 = vrot.slane %v7713_v28, 2  ;;  %v2228_v1 = vrot.slane %v2102_v33, 2  ;;  %v7724_v38 = vld [vmem:[#allocation63_spill] sm:$0xff] }
 0x238   : > { %v2229_v11 = vrot.slane %v2103_v26, 2  ;;  %v2231_v41 = vrot.slane %v2104_v40, 2  ;;  %v7716_v49 = vrot.slane %v7715_v5, 2  ;;  %v7718_v31 = vrot.slane %v7717_v10, 2  ;;  %v7725_v26 = vld [vmem:[#allocation56_spill] sm:$0xff]  ;;  %v7729_v28 = vld [vmem:[#allocation59_spill] sm:$0xff] }
 0x239   : > { %v2202_v9 = vsel %vm1596_vm4, %v7714_v43, %v7712_v29  ;;  %v2210_v45 = vsel %vm1596_vm4, %v2208_v53, %v2209_v27  ;;  %v7720_v56 = vrot.slane %v7719_v35, 2  ;;  %v2215_v13 = vsel %vm1596_vm4, %v2213_v15, %v2214_v32  ;;  %v7726_v40 = vld [vmem:[#allocation64_spill] sm:$0xff]  ;;  %v7727_v15 = vld [vmem:[#allocation57_spill] sm:$0xff]  ;;  %v7728_v29 = vld [vmem:[#allocation58_spill] sm:$0xff] }
 0x23a   : > { %v2205_v24 = vsel %vm1596_vm4, %v7716_v49, %v2204_v48  ;;  %v2207_v37 = vsel %vm1596_vm4, %v2204_v48, %v7718_v31  ;;  %v7722_v18 = vrot.slane %v7721_v22, 2  ;;  %v2220_v14 = vsel %vm1596_vm4, %v2218_v39, %v2219_v62  ;;  %v6615_v10 = vld [vmem:[#allocation2 + $0x198] sm:$0xff]  ;;  %v6617_v31 = vld [vmem:[#allocation2 + $0x1a0] sm:$0xff] }
 0x23b   : > { %v2212_v55 = vsel %vm1596_vm4, %v2209_v27, %v7720_v56  ;;  %v2222_v20 = vsel %vm1596_vm4, %v2219_v62, %v2221_v3  ;;  %v2225_v2 = vsel %vm1596_vm4, %v2223_v30, %v2224_v61  ;;  %v2227_v8 = vsel %vm1596_vm4, %v2224_v61, %v2226_v12  ;;  %7730 = vst [vmem:[#allocation20_spill] sm:$0xff] %v6615_v10 }
 0x23c   : > { %v2217_v17 = vsel %vm1596_vm4, %v2214_v32, %v7722_v18  ;;  %v2282_v33 = vadd.f32 %v7724_v38, %v7723_v50  ;;  %v2283_v48 = vadd.f32 %v7726_v40, %v7725_v26  ;;  %v2230_v53 = vsel %vm1596_vm4, %v2228_v1, %v2229_v11  ;;  %7731 = vst [vmem:[#allocation48_spill] sm:$0xff] %v6617_v31 }
 0x23d   : > { %v2232_v27 = vsel %vm1596_vm4, %v2229_v11, %v2231_v41  ;;  %v2284_v32 = vadd.f32 %v2202_v9, %v7727_v15  ;;  %v2285_v39 = vadd.f32 %v2205_v24, %v7728_v29  ;;  %v2286_v62 = vadd.f32 %v2207_v37, %v7729_v28  ;;  %v7732_v41 = vld [vmem:[#allocation45_spill] sm:$0xff] }
 0x23e   : > { %v2287_v3 = vadd.f32 %v2210_v45, %v2043_v44  ;;  %v2288_v30 = vadd.f32 %v2212_v55, %v2044_v7  ;;  %v2289_v43 = vadd.f32 %v2215_v13, %v2045_v0  ;;  %v2290_v61 = vadd.f32 %v2217_v17, %v2046_v51  ;;  %v7733_v9 = vld [vmem:[#allocation9_spill] sm:$0xff] }
 0x23f   : > { %v2291_v12 = vadd.f32 %v2220_v14, %v2047_v60  ;;  %v2292_v5 = vadd.f32 %v2222_v20, %v2048_v52  ;;  %v2293_v49 = vadd.f32 %v2225_v2, %v2049_v19  ;;  %v2294_v1 = vadd.f32 %v2227_v8, %v2050_v4  ;;  %v7734_v45 = vld [vmem:[#allocation29_spill] sm:$0xff] }
 0x240   : > { %v2295_v35 = vadd.f32 %v2230_v53, %v2051_v59  ;;  %v2296_v11 = vadd.f32 %v2232_v27, %v2052_v6  ;;  %v2320_v56 = vmul.f32 %v7733_v9, %v7732_v41  ;;  %v2321_v24 = vmul.f32 %v7733_v9, %v6302_v16  ;;  %v7735_v13 = vld [vmem:[#allocation49_spill] sm:$0xff]  ;;  %v7736_v27 = vld [vmem:[#allocation7_spill] sm:$0xff] }
 0x241   : > { %v2322_v44 = vmul.f32 %v7733_v9, %v6308_v42  ;;  %v2323_v7 = vmul.f32 %v7733_v9, %v6315_v23  ;;  %v2324_v0 = vmul.f32 %v7733_v9, %v6317_v21  ;;  %v2325_v51 = vmul.f32 %v7733_v9, %v6401_v36 }
 0x242   : > { %v2326_v60 = vmul.f32 %v7733_v9, %v6403_v58  ;;  %v2327_v52 = vmul.f32 %v7733_v9, %v6418_v25  ;;  %v2328_v19 = vmul.f32 %v7733_v9, %v6420_v47  ;;  %v2329_v4 = vmul.f32 %v7733_v9, %v6488_v34 }
 0x243   : > { %v2330_v59 = vmul.f32 %v7733_v9, %v6490_v46  ;;  %v2331_v6 = vmul.f32 %v7733_v9, %v6615_v10  ;;  %v2332_v37 = vmul.f32 %v7733_v9, %v6617_v31  ;;  %v6646_v55 = vadd.f32 %v7734_v45, %v2282_v33 }
 0x244   : > { %v6649_v22 = vadd.f32 %v7735_v13, %v2283_v48  ;;  %v6651_v18 = vadd.f32 %v2320_v56, %v2284_v32  ;;  %v6653_v17 = vadd.f32 %v2321_v24, %v2285_v39  ;;  %v6655_v14 = vadd.f32 %v2322_v44, %v2286_v62  ;;  %v6679_v32 = vld [vmem:[#allocation2 + $0x1a8] sm:$0x3]  ;;  %v7738_v56 = vld [vmem:[#allocation4_spill] sm:$0xff]  ;;  %v7740_v44 = vld [vmem:[#allocation35_spill] sm:$0xff] }
 0x245   : > { %v6657_v20 = vadd.f32 %v2323_v7, %v2287_v3  ;;  %v6659_v2 = vadd.f32 %v2324_v0, %v2288_v30  ;;  %v6661_v8 = vadd.f32 %v2325_v51, %v2289_v43  ;;  %v6663_v50 = vadd.f32 %v2326_v60, %v2290_v61  ;;  %7737 = vst [vmem:[#allocation44_spill] sm:$0xff] %v6679_v32  ;;  %v7742_v51 = vld [vmem:[#allocation24_spill] sm:$0xff]  ;;  %v7749_v13 = vld [vmem:[#allocation54_spill] sm:$0xff] }
 0x246   : > { %v6665_v38 = vadd.f32 %v2327_v52, %v2291_v12  ;;  %v6667_v33 = vadd.f32 %v2328_v19, %v2292_v5  ;;  %v6669_v26 = vadd.f32 %v2329_v4, %v2293_v49  ;;  %v6671_v40 = vadd.f32 %v2330_v59, %v2294_v1  ;;  %v7744_v52 = vld [vmem:[#allocation22_spill] sm:$0xff] }
 0x247   : > { %v6673_v48 = vadd.f32 %v2331_v6, %v2295_v35  ;;  %v6675_v53 = vadd.f32 %v2332_v37, %v2296_v11  ;;  %v2399_v15 = vmul.f32 %v7736_v27, %v6302_v16  ;;  %v2400_v29 = vmul.f32 %v7736_v27, %v6308_v42  ;;  %v7746_v59 = vld [vmem:[#allocation38_spill] sm:$0xff] }
 0x248   : > { %v2402_v39 = vmul.f32 %v7736_v27, %v6315_v23  ;;  %v2403_v28 = vmul.f32 %v7736_v27, %v6317_v21  ;;  %v2405_v62 = vmul.f32 %v7736_v27, %v6401_v36  ;;  %v2406_v3 = vmul.f32 %v7736_v27, %v6403_v58 }
 0x249   : > { %v2407_v30 = vmul.f32 %v7736_v27, %v6399_v54  ;;  %v2408_v43 = vmul.f32 %v7736_v27, %v6418_v25  ;;  %v2409_v61 = vmul.f32 %v7736_v27, %v6420_v47  ;;  %v2410_v12 = vmul.f32 %v7736_v27, %v6416_v63 }
 0x24a   : > { %v2411_v5 = vmul.f32 %v7736_v27, %v6488_v34  ;;  %v2412_v49 = vmul.f32 %v7736_v27, %v6490_v46  ;;  %v2413_v1 = vmul.f32 %v7736_v27, %v6514_v57  ;;  %v2414_v35 = vmul.f32 %v7736_v27, %v6615_v10 }
 0x24b   : > { %v2415_v11 = vmul.f32 %v7736_v27, %v6617_v31  ;;  %v2416_v9 = vmul.f32 %v7736_v27, %v6679_v32  ;;  %v7739_v24 = vrot.slane %v7738_v56, 1  ;;  %v7741_v7 = vrot.slane %v7740_v44, 1 }
 0x24c   : > { %v7743_v60 = vrot.slane %v7742_v51, 1  ;;  %v7745_v19 = vrot.slane %v7744_v52, 1  ;;  %v7747_v6 = vrot.slane %v7746_v59, 1  ;;  %v2511_v27 = vrot.slane %v7749_v13, 1  ;;  %v7750_v59 = vld [vmem:[#allocation50_spill] sm:$0xff] }
 0x24d   : > { %v2504_v0 = vsel %vm1351_vm3, %v7741_v7, %v7739_v24  ;;  %v2515_v32 = vrot.slane %v2399_v15, 1  ;;  %v2516_v56 = vrot.slane %v2400_v29, 1  ;;  %v2520_v31 = vrot.slane %v2402_v39, 1  ;;  %v7752_v15 = vld [vmem:[#allocation46_spill] sm:$0xff] }
 0x24e   : > { %v2507_v4 = vsel %vm1351_vm3, %v7745_v19, %v7743_v60  ;;  %v7748_v37 = vmov %v7743_v60  ;;  %v2521_v44 = vrot.slane %v2403_v28, 1  ;;  %v2525_v10 = vrot.slane %v2405_v62, 1  ;;  %v7754_v62 = vld [vmem:[#allocation52_spill] sm:$0xff] }
 0x24f   : > { %v2509_v45 = vsel %vm1351_vm3, %v7748_v37, %v7747_v6  ;;  %v2526_v24 = vrot.slane %v2406_v3, 1  ;;  %v2528_v7 = vrot.slane %v2407_v30, 1  ;;  %v2530_v57 = vrot.slane %v2408_v43, 1 }
 0x250   : > { %v2531_v46 = vrot.slane %v2409_v61, 1  ;;  %v2533_v52 = vrot.slane %v2410_v12, 1  ;;  %v2535_v34 = vrot.slane %v2411_v5, 1  ;;  %v2536_v60 = vrot.slane %v2412_v49, 1  ;;  %v7756_v61 = vld [vmem:[#allocation61_spill] sm:$0xff] }
 0x251   : > { %v2538_v19 = vrot.slane %v2413_v1, 1  ;;  %v7751_v63 = vrot.slane %v7750_v59, 1  ;;  %v2540_v6 = vrot.slane %v2414_v35, 1  ;;  %v2541_v37 = vrot.slane %v2415_v11, 1 }
 0x252   : > { %v2543_v13 = vrot.slane %v2416_v9, 1  ;;  %v7753_v29 = vrot.slane %v7752_v15, 1  ;;  %v2517_v28 = vsel %vm1351_vm3, %v2515_v32, %v2516_v56  ;;  %v7755_v3 = vrot.slane %v7754_v62, 1  ;;  %v7758_v9 = vld [vmem:[#allocation40_spill] sm:$0xff]  ;;  %v7772_v62 = vld [vmem:[#allocation31_spill] sm:$0xff] }
 0x253   : > { %v2512_v51 = vsel %vm1351_vm3, %v7751_v63, %v2511_v27  ;;  %v2522_v43 = vsel %vm1351_vm3, %v2520_v31, %v2521_v44  ;;  %v7757_v12 = vrot.slane %v7756_v61, 1  ;;  %v2527_v63 = vsel %vm1351_vm3, %v2525_v10, %v2526_v24  ;;  %v7775_v61 = vld [vmem:[#allocation28_spill] sm:$0xff] }
 0x254   : > { %v2514_v39 = vsel %vm1351_vm3, %v2511_v27, %v7753_v29  ;;  %v2519_v30 = vsel %vm1351_vm3, %v2516_v56, %v7755_v3  ;;  %v2529_v49 = vsel %vm1351_vm3, %v2526_v24, %v2528_v7  ;;  %v2532_v1 = vsel %vm1351_vm3, %v2530_v57, %v2531_v46  ;;  %v7761_v7 = vld [vmem:[#allocation65_spill] sm:$0xff]  ;;  %v7770_v29 = vld [vmem:[#allocation36_spill] sm:$0xff] }
 0x255   : > { %v2524_v5 = vsel %vm1351_vm3, %v2521_v44, %v7757_v12  ;;  %v2534_v35 = vsel %vm1351_vm3, %v2531_v46, %v2533_v52  ;;  %v2537_v32 = vsel %vm1351_vm3, %v2535_v34, %v2536_v60  ;;  %v2539_v11 = vsel %vm1351_vm3, %v2536_v60, %v2538_v19  ;;  %v7759_v44 = vld [vmem:[#allocation43_spill] sm:$0xff]  ;;  %v7762_v52 = vld [vmem:[#allocation66_spill] sm:$0xff]  ;;  %v7764_v19 = vld [vmem:[#allocation68_spill] sm:$0xff] }
 0x256   : > { %v6748_v27 = vadd.f32 %v2504_v0, %v7758_v9  ;;  %v2542_v31 = vsel %vm1351_vm3, %v2540_v6, %v2541_v37  ;;  %v2544_v56 = vsel %vm1351_vm3, %v2541_v37, %v2543_v13  ;;  %v6753_v59 = vadd.f32 %v2507_v4, %v7759_v44  ;;  %v7763_v60 = vld [vmem:[#allocation67_spill] sm:$0xff]  ;;  %v7766_v6 = vld [vmem:[#allocation48_spill] sm:$0xff]  ;;  %v7768_v13 = vld [vmem:[#allocation37_spill] sm:$0xff] }
 0x257   : > { %v6756_v10 = vadd.f32 %v2509_v45, %v6646_v55  ;;  %v6759_v57 = vadd.f32 %v2512_v51, %v6649_v22  ;;  %v6762_v34 = vadd.f32 %v2514_v39, %v6651_v18  ;;  %v6765_v46 = vadd.f32 %v2517_v28, %v6653_v17  ;;  %v7765_v51 = vld [vmem:[#allocation20_spill] sm:$0xff] }
 0x258   : > { %v6768_v0 = vadd.f32 %v2519_v30, %v6655_v14  ;;  %v6771_v24 = vadd.f32 %v2522_v43, %v6657_v20  ;;  %v6774_v4 = vadd.f32 %v2524_v5, %v6659_v2  ;;  %v6777_v55 = vadd.f32 %v2527_v63, %v6661_v8  ;;  %v7767_v37 = vld [vmem:[#allocation44_spill] sm:$0xff]  ;;  %v7777_v5 = vld [vmem:[#allocation25_spill] sm:$0xff] }
 0x259   : > { %v6780_v22 = vadd.f32 %v2529_v49, %v6663_v50  ;;  %v6783_v18 = vadd.f32 %v2532_v1, %v6665_v38  ;;  %v6786_v17 = vadd.f32 %v2534_v35, %v6667_v33  ;;  %v6789_v14 = vadd.f32 %v2537_v32, %v6669_v26  ;;  %v7760_v50 = vld [vmem:[#allocation8_spill] sm:$0xff]  ;;  %v7779_v1 = vld [vmem:[#allocation55_spill] sm:$0xff] }
 0x25a   : > { %v6792_v20 = vadd.f32 %v2539_v11, %v6671_v40  ;;  %v6795_v2 = vadd.f32 %v2542_v31, %v6673_v48  ;;  %v6798_v8 = vadd.f32 %v2544_v56, %v6675_v53  ;;  %v2641_v45 = vmul.f32 %v7760_v50, %v7732_v41 }
 0x25b   : > { %v2643_v38 = vmul.f32 %v7760_v50, %v6302_v16  ;;  %v2644_v33 = vmul.f32 %v7760_v50, %v6308_v42  ;;  %v2646_v26 = vmul.f32 %v7760_v50, %v6315_v23  ;;  %v2647_v40 = vmul.f32 %v7760_v50, %v6317_v21 }
 0x25c   : > { %v2649_v48 = vmul.f32 %v7760_v50, %v6401_v36  ;;  %v2650_v53 = vmul.f32 %v7760_v50, %v6403_v58  ;;  %v2651_v41 = vmul.f32 %v7760_v50, %v6399_v54  ;;  %v2652_v16 = vmul.f32 %v7760_v50, %v6418_v25 }
 0x25d   : > { %v2653_v42 = vmul.f32 %v7760_v50, %v6420_v47  ;;  %v2654_v23 = vmul.f32 %v7760_v50, %v7761_v7  ;;  %v2655_v21 = vmul.f32 %v7760_v50, %v7762_v52  ;;  %v2656_v36 = vmul.f32 %v7760_v50, %v7763_v60 }
 0x25e   : > { %v2657_v58 = vmul.f32 %v7760_v50, %v7764_v19  ;;  %v2658_v54 = vmul.f32 %v7760_v50, %v7765_v51  ;;  %v2659_v25 = vmul.f32 %v7760_v50, %v7766_v6  ;;  %v2660_v47 = vmul.f32 %v7760_v50, %v7767_v37  ;;  %v7780_v37 = vld [vmem:[#allocation41_spill] sm:$0xff] }
 0x25f   : > { %v7769_v15 = vrot.slane %v7768_v13, 2  ;;  %v7771_v39 = vrot.slane %v7770_v29, 2  ;;  %v7773_v3 = vrot.slane %v7772_v62, 2  ;;  %v7776_v12 = vrot.slane %v7775_v61, 2 }
 0x260   : > { %v7778_v63 = vrot.slane %v7777_v5, 2  ;;  %v2754_v35 = vrot.slane %v7779_v1, 2  ;;  %v2755_v32 = vrot.slane %v2641_v45, 2  ;;  %v2759_v11 = vrot.slane %v2643_v38, 2  ;;  %v7789_v5 = vld [vmem:[#allocation32_spill] sm:$0xff] }
 0x261   : > { %v2746_v28 = vsel %vm1596_vm4, %v7771_v39, %v7769_v15  ;;  %v7774_v30 = vmov %v7769_v15  ;;  %v2760_v9 = vrot.slane %v2644_v33, 2  ;;  %v2764_v31 = vrot.slane %v2646_v26, 2  ;;  %v7783_v26 = vld [vmem:[#allocation47_spill] sm:$0xff] }
 0x262   : > { %v2748_v43 = vsel %vm1596_vm4, %v7774_v30, %v7773_v3  ;;  %v2751_v49 = vsel %vm1596_vm4, %v7778_v63, %v7776_v12  ;;  %v2765_v56 = vrot.slane %v2647_v40, 2  ;;  %v2769_v44 = vrot.slane %v2649_v48, 2  ;;  %v7790_v63 = vld [vmem:[#allocation33_spill] sm:$0xff] }
 0x263   : > { %v2770_v50 = vrot.slane %v2650_v53, 2  ;;  %v2772_v7 = vrot.slane %v2651_v41, 2  ;;  %v2774_v52 = vrot.slane %v2652_v16, 2  ;;  %v2775_v60 = vrot.slane %v2653_v42, 2  ;;  %v7785_v16 = vld [vmem:[#allocation53_spill] sm:$0xff] }
 0x264   : > { %v2777_v19 = vrot.slane %v2654_v23, 2  ;;  %v2779_v51 = vrot.slane %v2655_v21, 2  ;;  %v2780_v6 = vrot.slane %v2656_v36, 2  ;;  %v7781_v13 = vrot.slane %v7780_v37, 2  ;;  %v7787_v36 = vld [vmem:[#allocation62_spill] sm:$0xff] }
 0x265   : > { %v7782_v15 = vmov %v7776_v12  ;;  %v2782_v39 = vrot.slane %v2657_v58, 2  ;;  %v2784_v45 = vrot.slane %v2658_v54, 2  ;;  %v2785_v38 = vrot.slane %v2659_v25, 2 }
 0x266   : > { %v2753_v29 = vsel %vm1596_vm4, %v7782_v15, %v7781_v13  ;;  %v2756_v33 = vsel %vm1596_vm4, %v2754_v35, %v2755_v32  ;;  %v7784_v40 = vrot.slane %v7783_v26, 2  ;;  %v2761_v53 = vsel %vm1596_vm4, %v2759_v11, %v2760_v9  ;;  %v7791_v35 = vld [vmem:[#allocation42_spill] sm:$0xff] }
 0x267   : > { %v2787_v41 = vrot.slane %v2660_v47, 2  ;;  %v7786_v42 = vrot.slane %v7785_v16, 2  ;;  %v2766_v21 = vsel %vm1596_vm4, %v2764_v31, %v2765_v56  ;;  %v7788_v62 = vrot.slane %v7787_v36, 2 }
 0x268   : > { %v2758_v48 = vsel %vm1596_vm4, %v2755_v32, %v7784_v40  ;;  %v2771_v54 = vsel %vm1596_vm4, %v2769_v44, %v2770_v50  ;;  %v2773_v25 = vsel %vm1596_vm4, %v2770_v50, %v2772_v7  ;;  %v2776_v3 = vsel %vm1596_vm4, %v2774_v52, %v2775_v60 }
 0x269   : > { %v2763_v23 = vsel %vm1596_vm4, %v2760_v9, %v7786_v42  ;;  %v2768_v58 = vsel %vm1596_vm4, %v2765_v56, %v7788_v62  ;;  %v2778_v30 = vsel %vm1596_vm4, %v2775_v60, %v2777_v19  ;;  %v2781_v47 = vsel %vm1596_vm4, %v2779_v51, %v2780_v6  ;;  %v7797_v42 = vld [vmem:[#allocation17_spill] sm:$0xff] }
 0x26a   : > { %v2783_v61 = vsel %vm1596_vm4, %v2780_v6, %v2782_v39  ;;  %v2786_v12 = vsel %vm1596_vm4, %v2784_v45, %v2785_v38  ;;  %v2834_v1 = vadd.f32 %v7790_v63, %v7789_v5  ;;  %v2835_v32 = vadd.f32 %v2746_v28, %v7791_v35 }
 0x26b   : > { %v2788_v11 = vsel %vm1596_vm4, %v2785_v38, %v2787_v41  ;;  %v2836_v9 = vadd.f32 %v2748_v43, %v6748_v27  ;;  %v2837_v31 = vadd.f32 %v2751_v49, %v6753_v59  ;;  %v2838_v56 = vadd.f32 %v2753_v29, %v6756_v10  ;;  %v7796_v41 = vld [vmem:[#allocation16_spill] sm:$0xff] }
 0x26c   : > { %v2839_v44 = vadd.f32 %v2756_v33, %v6759_v57  ;;  %v2840_v50 = vadd.f32 %v2758_v48, %v6762_v34  ;;  %v2841_v7 = vadd.f32 %v2761_v53, %v6765_v46  ;;  %v2842_v52 = vadd.f32 %v2763_v23, %v6768_v0  ;;  %v7795_v48 = vld [vmem:[#allocation14_spill] sm:$0xff] }
 0x26d   : > { %v2843_v60 = vadd.f32 %v2766_v21, %v6771_v24  ;;  %v2844_v28 = vadd.f32 %v2768_v58, %v6774_v4  ;;  %v2845_v19 = vadd.f32 %v2771_v54, %v6777_v55  ;;  %v2846_v27 = vadd.f32 %v2773_v25, %v6780_v22  ;;  %v4338_v24 = vld [vmem:[%s7490_s4] ss:$0 sm:$0xff]  ;;  %v7792_v4 = vld [vmem:[#allocation12_spill] sm:$0xff]  ;;  %v7793_v22 = vld [vmem:[#allocation34_spill] sm:$0xff] }
 0x26e   : > { %v2847_v59 = vadd.f32 %v2776_v3, %v6783_v18  ;;  %v2848_v10 = vadd.f32 %v2778_v30, %v6786_v17  ;;  %v2849_v57 = vadd.f32 %v2781_v47, %v6789_v14  ;;  %v2850_v34 = vadd.f32 %v2783_v61, %v6792_v20  ;;  %v7798_v25 = vld [vmem:[#allocation10_spill] sm:$0xff]  ;;  %v7799_v3 = vld [vmem:[#allocation11_spill] sm:$0xff] }
 0x26f   : > { %v2851_v46 = vadd.f32 %v2786_v12, %v6795_v2  ;;  %v2852_v0 = vadd.f32 %v2788_v11, %v6798_v8  ;;  %v6899_v55 = vadd.f32 %v4338_v24, %v7792_v4  ;;  %v6902_v43 = vadd.f32 %v4338_v24, %v7793_v22 }
 0x270   : > { %v6904_v18 = vadd.f32 %v4338_v24, %v2834_v1  ;;  %v6906_v17 = vadd.f32 %v4338_v24, %v2835_v32  ;;  %v6908_v14 = vadd.f32 %v4338_v24, %v2836_v9  ;;  %v6910_v20 = vadd.f32 %v4338_v24, %v2837_v31  ;;  %v7800_v32 = vld [vmem:[#allocation13_spill] sm:$0xff] }
 0x271   : > { %v6912_v2 = vadd.f32 %v4338_v24, %v2838_v56  ;;  %v6914_v8 = vadd.f32 %v4338_v24, %v2839_v44  ;;  %v6916_v49 = vadd.f32 %v4338_v24, %v2840_v50  ;;  %v6918_v51 = vadd.f32 %v4338_v24, %v2841_v7 }
 0x272   : > { %v6920_v6 = vadd.f32 %v4338_v24, %v2842_v52  ;;  %v6922_v37 = vadd.f32 %v4338_v24, %v2843_v60  ;;  %v6924_v13 = vadd.f32 %v4338_v24, %v2844_v28  ;;  %v6926_v15 = vadd.f32 %v4338_v24, %v2845_v19 }
 0x273   : > { %7794 = vst [vmem:[#allocation51_spill] sm:$0xff] %v6912_v2  ;;  %v6928_v29 = vadd.f32 %v4338_v24, %v2846_v27  ;;  %v6930_v39 = vadd.f32 %v4338_v24, %v2847_v59  ;;  %v6932_v45 = vadd.f32 %v4338_v24, %v2848_v10  ;;  %v6934_v38 = vadd.f32 %v4338_v24, %v2849_v57 }
 0x274   : > { %v6936_v33 = vadd.f32 %v4338_v24, %v2850_v34  ;;  %v6938_v26 = vadd.f32 %v4338_v24, %v2851_v46  ;;  %v6940_v40 = vadd.f32 %v4338_v24, %v2852_v0  ;;  %v2900_v53 = vmul.f32 %v7795_v48, %v7795_v48  ;;  %v7801_v46 = vld [vmem:[#allocation6_spill] sm:$0xff] }
 0x275   : > { %v2901_v16 = vmul.f32 %v7796_v41, %v7796_v41  ;;  %v2902_v23 = vmul.f32 %v7797_v42, %v7797_v42  ;;  %v2903_v21 = vmul.f32 %v6899_v55, %v6899_v55  ;;  %v2904_v36 = vmul.f32 %v6902_v43, %v6902_v43 }
 0x276   : > { %v2905_v62 = vmul.f32 %v6904_v18, %v6904_v18  ;;  %v2906_v58 = vmul.f32 %v6906_v17, %v6906_v17  ;;  %v2907_v54 = vmul.f32 %v6908_v14, %v6908_v14  ;;  %v2931_v30 = vmul.f32 %v7799_v3, %v7798_v25 }
 0x277   : > { %v2908_v47 = vmul.f32 %v6910_v20, %v6910_v20  ;;  %v2909_v61 = vmul.f32 %v6912_v2, %v6912_v2  ;;  %v2910_v12 = vmul.f32 %v6914_v8, %v6914_v8  ;;  %v2911_v5 = vmul.f32 %v6916_v49, %v6916_v49 }
 0x278   : > { %v2912_v63 = vmul.f32 %v6918_v51, %v6918_v51  ;;  %v2913_v1 = vmul.f32 %v6920_v6, %v6920_v6  ;;  %v2932_v35 = vmul.f32 %v2900_v53, %v7795_v48  ;;  %v2962_v11 = vmul.f32 0.044715, %v7800_v32 }
 0x279   : > { %v2914_v9 = vmul.f32 %v6922_v37, %v6922_v37  ;;  %v2915_v31 = vmul.f32 %v6924_v13, %v6924_v13  ;;  %v2916_v56 = vmul.f32 %v6926_v15, %v6926_v15  ;;  %v2917_v44 = vmul.f32 %v6928_v29, %v6928_v29 }
 0x27a   : > { %v2918_v50 = vmul.f32 %v6930_v39, %v6930_v39  ;;  %v2919_v7 = vmul.f32 %v6932_v45, %v6932_v45  ;;  %v2933_v52 = vmul.f32 %v2901_v16, %v7796_v41  ;;  %v2963_v60 = vmul.f32 0.044715, %v2931_v30  ;;  %v7802_v30 = vld [vmem:[#allocation30_spill] sm:$0xff] }
 0x27b   : > { %v2920_v28 = vmul.f32 %v6934_v38, %v6934_v38  ;;  %v2921_v19 = vmul.f32 %v6936_v33, %v6936_v33  ;;  %v2922_v27 = vmul.f32 %v6938_v26, %v6938_v26  ;;  %v2934_v59 = vmul.f32 %v2902_v23, %v7797_v42 }
 0x27c   : > { %v2923_v10 = vmul.f32 %v6940_v40, %v6940_v40  ;;  %v2935_v57 = vmul.f32 %v2903_v21, %v6899_v55  ;;  %v2964_v34 = vmul.f32 0.044715, %v2932_v35  ;;  %v2994_v0 = vadd.f32 %v2962_v11, %v7801_v46 }
 0x27d   : > { %v2936_v24 = vmul.f32 %v2904_v36, %v6902_v43  ;;  %v2937_v4 = vmul.f32 %v2905_v62, %v6904_v18  ;;  %v2938_v22 = vmul.f32 %v2906_v58, %v6906_v17  ;;  %v2939_v53 = vmul.f32 %v2907_v54, %v6908_v14 }
 0x27e   : > { %v2940_v16 = vmul.f32 %v2908_v47, %v6910_v20  ;;  %v2965_v3 = vmul.f32 0.044715, %v2933_v52  ;;  %v2995_v23 = vadd.f32 %v2963_v60, %v7798_v25  ;;  %v3025_v32 = vmul.f32 0.7978846, %v7802_v30 }
 0x27f   : > { %v2941_v21 = vmul.f32 %v2909_v61, %v6912_v2  ;;  %v2942_v35 = vmul.f32 %v2910_v12, %v6914_v8  ;;  %v2943_v11 = vmul.f32 %v2911_v5, %v6916_v49  ;;  %v2966_v36 = vmul.f32 0.044715, %v2934_v59 }
 0x280   : > { %v2944_v62 = vmul.f32 %v2912_v63, %v6918_v51  ;;  %v2967_v46 = vmul.f32 0.044715, %v2935_v57  ;;  %v2996_v58 = vadd.f32 %v2964_v34, %v7795_v48  ;;  %v3026_v54 = vmul.f32 0.7978846, %v2994_v0 }
 0x281   : > { %v2945_v47 = vmul.f32 %v2913_v1, %v6920_v6  ;;  %v2946_v52 = vmul.f32 %v2914_v9, %v6922_v37  ;;  %v2947_v60 = vmul.f32 %v2915_v31, %v6924_v13  ;;  %v2948_v30 = vmul.f32 %v2916_v56, %v6926_v15 }
 0x282   : > { %v2968_v61 = vmul.f32 0.044715, %v2936_v24  ;;  %v2997_v12 = vadd.f32 %v2965_v3, %v7796_v41  ;;  %v3027_v25 = vmul.f32 0.7978846, %v2995_v23  ;;  %4278 = vtanh.f32 %v3025_v32 }
 0x283   : > { %v2949_v5 = vmul.f32 %v2917_v44, %v6928_v29  ;;  %v2950_v63 = vmul.f32 %v2918_v50, %v6930_v39  ;;  %v2951_v59 = vmul.f32 %v2919_v7, %v6932_v45  ;;  %v2998_v57 = vadd.f32 %v2966_v36, %v7797_v42 }
 0x284   : > { %v2969_v1 = vmul.f32 0.044715, %v2937_v4  ;;  %v2999_v9 = vadd.f32 %v2967_v46, %v6899_v55  ;;  %v3028_v34 = vmul.f32 0.7978846, %v2996_v58  ;;  %4280 = vtanh.f32 %v3026_v54 }
 0x285   : > { %v2952_v31 = vmul.f32 %v2920_v28, %v6934_v38  ;;  %v2953_v56 = vmul.f32 %v2921_v19, %v6936_v33  ;;  %v2970_v0 = vmul.f32 0.044715, %v2938_v22  ;;  %v2971_v24 = vmul.f32 0.044715, %v2939_v53  ;;  %v7803_v53 = vld [vmem:[#allocation26_spill] sm:$0xff] }
 0x286   : > { %v2972_v3 = vmul.f32 0.044715, %v2940_v16  ;;  %v3000_v44 = vadd.f32 %v2968_v61, %v6902_v43  ;;  %v3029_v23 = vmul.f32 0.7978846, %v2997_v12  ;;  %4282 = vtanh.f32 %v3027_v25 }
 0x287   : > { %v2954_v50 = vmul.f32 %v2922_v27, %v6938_v26  ;;  %v2973_v7 = vmul.f32 0.044715, %v2941_v21  ;;  %v2974_v32 = vmul.f32 0.044715, %v2942_v35  ;;  %v3030_v4 = vmul.f32 0.7978846, %v2998_v57 }
 0x288   : > { %v2975_v36 = vmul.f32 0.044715, %v2943_v11  ;;  %v3001_v46 = vadd.f32 %v2969_v1, %v6904_v18  ;;  %v3031_v58 = vmul.f32 0.7978846, %v2999_v9  ;;  %4284 = vtanh.f32 %v3028_v34  ;;  %v7805_v1 = vld [vmem:[#allocation18_spill] sm:$0xff]  ;;  %v7806_v34 = vld [vmem:[#allocation19_spill] sm:$0xff] }
 0x289   : > { %v2955_v28 = vmul.f32 %v2923_v10, %v6940_v40  ;;  %v2976_v19 = vmul.f32 0.044715, %v2944_v62  ;;  %v2977_v22 = vmul.f32 0.044715, %v2945_v47  ;;  %v3087_v16 = vadd.f32 1.0, %v7803_v53  ;;  %v7804_v47 = vld [vmem:[#allocation5_spill] sm:$0xff] }
 0x28a   : > { %v2978_v54 = vmul.f32 0.044715, %v2946_v52  ;;  %v3002_v61 = vadd.f32 %v2970_v0, %v6906_v17  ;;  %v3032_v25 = vmul.f32 0.7978846, %v3000_v44  ;;  %4286 = vtanh.f32 %v3029_v23 }
 0x28b   : > { %v2979_v27 = vmul.f32 0.044715, %v2947_v60  ;;  %v7028_v21 = vmul.f32 0.044715, %v2948_v30  ;;  %v7030_v35 = vmul.f32 0.044715, %v2949_v5  ;;  %4288 = vtanh.f32 %v3030_v4 }
 0x28c   : > { %v4279_v11 = vpop.eup %4278  ;;  %v7032_v12 = vmul.f32 0.044715, %v2950_v63  ;;  %v3003_v10 = vadd.f32 %v2971_v24, %v6908_v14  ;;  %v3033_v62 = vmul.f32 0.7978846, %v3001_v46  ;;  %4290 = vtanh.f32 %v3031_v58  ;;  %v7807_v4 = vld [vmem:[#allocation27_spill] sm:$0xff] }
 0x28d   : > { %v3088_v57 = vadd.f32 1.0, %v7804_v47  ;;  %v3119_v52 = vmul.f32 0.5, %v3087_v16  ;;  %v3180_v9 = vsel %vm1037_vm1, %v7805_v1, 0.0  ;;  %v3181_v60 = vsel %vm1037_vm1, %v7806_v34, 0.0 }
 0x28e   : > { %v4281_v30 = vpop.eup %4280  ;;  %v7040_v5 = vmul.f32 0.044715, %v2951_v59  ;;  %v3004_v0 = vadd.f32 %v2972_v3, %v6910_v20  ;;  %v3034_v63 = vmul.f32 0.7978846, %v3002_v61  ;;  %4292 = vtanh.f32 %v3032_v25  ;;  %v7808_v61 = vld [vmem:[#allocation15_spill] sm:$0xff] }
 0x28f   : > { %v7043_v44 = vmul.f32 0.044715, %v2952_v31  ;;  %v7045_v24 = vmul.f32 0.044715, %v2953_v56  ;;  %v3089_v23 = vadd.f32 1.0, %v4279_v11  ;;  %v3183_v46 = vsel %vm1037_vm1, %v7807_v4, 0.0 }
 0x290   : > { %v4283_v58 = vpop.eup %4282  ;;  %v3005_v53 = vadd.f32 %v2973_v7, %v6912_v2  ;;  %v3006_v16 = vadd.f32 %v2974_v32, %v6914_v8  ;;  %v3035_v47 = vmul.f32 0.7978846, %v3003_v10  ;;  %v3182_v59 = vadd.f32 %v3181_v60, %v3180_v9 }
 0x291   : > { %4294 = vtanh.f32 %v3033_v62  ;;  %v3090_v34 = vadd.f32 1.0, %v4281_v30  ;;  %v3120_v3 = vmul.f32 0.5, %v3088_v57  ;;  %v7052_v25 = vmul.f32 %v3119_v52, %v7808_v61 }
 0x292   : > { %v4285_v31 = vpop.eup %4284  ;;  %v7054_v56 = vmul.f32 0.044715, %v2954_v50  ;;  %v3036_v11 = vmul.f32 0.7978846, %v3004_v0  ;;  %4296 = vtanh.f32 %v3034_v63  ;;  %v3184_v1 = vadd.f32 %v3183_v46, %v3182_v59  ;;  %v7809_v50 = vld [vmem:[#allocation21_spill] sm:$0xff] }
 0x293   : > { %v7056_v4 = vmul.f32 0.044715, %v2955_v28  ;;  %v3007_v7 = vadd.f32 %v2975_v36, %v6916_v49  ;;  %v3091_v2 = vadd.f32 1.0, %v4283_v58  ;;  %v3121_v32 = vmul.f32 0.5, %v3089_v23 }
 0x294   : > { %v4287_v10 = vpop.eup %4286  ;;  %v3008_v62 = vadd.f32 %v2976_v19, %v6918_v51  ;;  %v3037_v9 = vmul.f32 0.7978846, %v3005_v53  ;;  %v3038_v57 = vmul.f32 0.7978846, %v3006_v16  ;;  %4298 = vtanh.f32 %v3035_v47  ;;  %v7810_v53 = vld [vmem:[#allocation23_spill] sm:$0xff] }
 0x295   : > { %v4289_v52 = vpop.eup %4288  ;;  %v3092_v60 = vadd.f32 1.0, %v4285_v31  ;;  %v3122_v30 = vmul.f32 0.5, %v3090_v34  ;;  %v7061_v61 = vmul.f32 %v3120_v3, %v7809_v50  ;;  %v3185_v28 = vsel %vm1037_vm1, %v7052_v25, 0.0  ;;  %v7811_v50 = vld [vmem:[#allocation6_spill] sm:$0xff] }
 0x296   : > { %v4291_v0 = vpop.eup %4290  ;;  %v3009_v36 = vadd.f32 %v2977_v22, %v6920_v6  ;;  %v3010_v63 = vadd.f32 %v2978_v54, %v6922_v37  ;;  %4300 = vtanh.f32 %v3036_v11  ;;  %v3186_v23 = vadd.f32 %v3185_v28, %v3184_v1 }
 0x297   : > { %v3011_v19 = vadd.f32 %v2979_v27, %v6924_v13  ;;  %v3093_v46 = vadd.f32 1.0, %v4287_v10  ;;  %v3123_v58 = vmul.f32 0.5, %v3091_v2  ;;  %v7069_v16 = vmul.f32 %v3121_v32, %v7810_v53 }
 0x298   : > { %v4293_v34 = vpop.eup %4292  ;;  %v3039_v47 = vmul.f32 0.7978846, %v3007_v7  ;;  %v3040_v59 = vmul.f32 0.7978846, %v3008_v62  ;;  %4302 = vtanh.f32 %v3037_v9  ;;  %v3094_v3 = vadd.f32 1.0, %v4289_v52  ;;  %v7812_v62 = vld [vmem:[#allocation10_spill] sm:$0xff] }
 0x299   : > { %4304 = vtanh.f32 %v3038_v57  ;;  %v3124_v31 = vmul.f32 0.5, %v3092_v60  ;;  %v7072_v22 = vmul.f32 %v3122_v30, %v7811_v50  ;;  %v3187_v54 = vsel %vm1037_vm1, %v7061_v61, 0.0 }
 0x29a   : > { %v3012_v27 = vadd.f32 %v7028_v21, %v6926_v15  ;;  %v3013_v2 = vadd.f32 %v7030_v35, %v6928_v29  ;;  %v3095_v1 = vadd.f32 1.0, %v4291_v0  ;;  %v3188_v11 = vadd.f32 %v3187_v54, %v3186_v23 }
 0x29b   : > { %v4295_v7 = vpop.eup %4294  ;;  %v3096_v32 = vadd.f32 1.0, %v4293_v34  ;;  %v3125_v10 = vmul.f32 0.5, %v3093_v46  ;;  %v7081_v9 = vmul.f32 %v3123_v58, %v7812_v62  ;;  %v3189_v57 = vsel %vm1037_vm1, %v7069_v16, 0.0 }
 0x29c   : > { %v4297_v52 = vpop.eup %4296  ;;  %v3041_v60 = vmul.f32 0.7978846, %v3009_v36  ;;  %4306 = vtanh.f32 %v3039_v47  ;;  %v3126_v30 = vmul.f32 0.5, %v3094_v3  ;;  %v3190_v28 = vadd.f32 %v3189_v57, %v3188_v11 }
 0x29d   : > { %v3042_v21 = vmul.f32 0.7978846, %v3010_v63  ;;  %4308 = vtanh.f32 %v3040_v59  ;;  %v7086_v35 = vmul.f32 %v3124_v31, %v7795_v48  ;;  %v3191_v0 = vsel %vm1037_vm1, %v7072_v22, 0.0 }
 0x29e   : > { %v4299_v23 = vpop.eup %4298  ;;  %v3014_v46 = vadd.f32 %v7032_v12, %v6930_v39  ;;  %v3097_v58 = vadd.f32 1.0, %v4295_v7  ;;  %v3127_v53 = vmul.f32 0.5, %v3095_v1  ;;  %v3192_v34 = vadd.f32 %v3191_v0, %v3190_v28 }
 0x29f   : > { %v3098_v50 = vadd.f32 1.0, %v4297_v52  ;;  %v3128_v36 = vmul.f32 0.5, %v3096_v32  ;;  %v7093_v47 = vmul.f32 %v3125_v10, %v7796_v41  ;;  %v3193_v63 = vsel %vm1037_vm1, %v7081_v9, 0.0 }
 0x2a0   : > { %v4301_v48 = vpop.eup %4300  ;;  %v3043_v59 = vmul.f32 0.7978846, %v3011_v19  ;;  %4310 = vtanh.f32 %v3041_v60  ;;  %v7098_v3 = vmul.f32 %v3126_v30, %v7797_v42  ;;  %v3194_v31 = vadd.f32 %v3193_v63, %v3192_v34 }
 0x2a1   : > { %v3015_v12 = vadd.f32 %v7040_v5, %v6932_v45  ;;  %v3044_v54 = vmul.f32 0.7978846, %v3012_v27  ;;  %4312 = vtanh.f32 %v3042_v21  ;;  %v3195_v1 = vsel %vm1037_vm1, %v7086_v35, 0.0 }
 0x2a2   : > { %v4303_v41 = vpop.eup %4302  ;;  %v3099_v11 = vadd.f32 1.0, %v4299_v23  ;;  %v3129_v7 = vmul.f32 0.5, %v3097_v58  ;;  %v7105_v32 = vmul.f32 %v3127_v53, %v6899_v55  ;;  %v3196_v19 = vadd.f32 %v3195_v1, %v3194_v31 }
 0x2a3   : > { %v4305_v10 = vpop.eup %4304  ;;  %v3100_v62 = vadd.f32 1.0, %v4301_v48  ;;  %v3130_v42 = vmul.f32 0.5, %v3098_v50  ;;  %v7108_v57 = vmul.f32 %v3128_v36, %v6902_v43  ;;  %v3197_v5 = vsel %vm1037_vm1, %v7093_v47, 0.0 }
 0x2a4   : > { %v3045_v27 = vmul.f32 0.7978846, %v3013_v2  ;;  %4314 = vtanh.f32 %v3043_v59  ;;  %v3198_v52 = vadd.f32 %v3197_v5, %v3196_v19  ;;  %v3199_v60 = vsel %vm1037_vm1, %v7098_v3, 0.0 }
 0x2a5   : > { %v3016_v55 = vadd.f32 %v7043_v44, %v6934_v38  ;;  %v3046_v30 = vmul.f32 0.7978846, %v3014_v46  ;;  %4316 = vtanh.f32 %v3044_v54  ;;  %v3101_v28 = vadd.f32 1.0, %v4303_v41 }
 0x2a6   : > { %v4307_v21 = vpop.eup %4306  ;;  %v3102_v0 = vadd.f32 1.0, %v4305_v10  ;;  %v3131_v23 = vmul.f32 0.5, %v3099_v11  ;;  %v7117_v43 = vmul.f32 %v3129_v7, %v6904_v18  ;;  %v3200_v58 = vadd.f32 %v3199_v60, %v3198_v52 }
 0x2a7   : > { %v4309_v53 = vpop.eup %4308  ;;  %v3132_v2 = vmul.f32 0.5, %v3100_v62  ;;  %v7120_v34 = vmul.f32 %v3130_v42, %v6906_v17  ;;  %v3201_v50 = vsel %vm1037_vm1, %v7105_v32, 0.0  ;;  %v3203_v44 = vsel %vm1037_vm1, %v7108_v57, 0.0 }
 0x2a8   : > { %v3017_v46 = vadd.f32 %v7045_v24, %v6936_v33  ;;  %v3047_v36 = vmul.f32 0.7978846, %v3015_v12  ;;  %4318 = vtanh.f32 %v3045_v27  ;;  %v3202_v63 = vadd.f32 %v3201_v50, %v3200_v58 }
 0x2a9   : > { %v3018_v18 = vadd.f32 %v7054_v56, %v6938_v26  ;;  %v3048_v48 = vmul.f32 0.7978846, %v3016_v55  ;;  %4320 = vtanh.f32 %v3046_v30  ;;  %v3103_v59 = vadd.f32 1.0, %v4307_v21 }
 0x2aa   : > { %v4311_v17 = vpop.eup %4310  ;;  %v3104_v31 = vadd.f32 1.0, %v4309_v53  ;;  %v3133_v54 = vmul.f32 0.5, %v3101_v28  ;;  %v7131_v1 = vmul.f32 %v3131_v23, %v6908_v14  ;;  %v3204_v41 = vadd.f32 %v3203_v44, %v3202_v63 }
 0x2ab   : > { %v4313_v11 = vpop.eup %4312  ;;  %v3134_v7 = vmul.f32 0.5, %v3102_v0  ;;  %v7134_v24 = vmul.f32 %v3132_v2, %v6910_v20  ;;  %v3205_v12 = vsel %vm1037_vm1, %v7117_v43, 0.0  ;;  %v3207_v56 = vsel %vm1037_vm1, %v7120_v34, 0.0  ;;  %v7813_v20 = vld [vmem:[#allocation51_spill] sm:$0xff] }
 0x2ac   : > { %v3049_v19 = vmul.f32 0.7978846, %v3017_v46  ;;  %4322 = vtanh.f32 %v3047_v36  ;;  %v3206_v10 = vadd.f32 %v3205_v12, %v3204_v41  ;;  %v3019_v62 = vadd.f32 %v7056_v4, %v6940_v40 }
 0x2ad   : > { %v3050_v14 = vmul.f32 0.7978846, %v3018_v18  ;;  %4324 = vtanh.f32 %v3048_v48  ;;  %v3105_v42 = vadd.f32 1.0, %v4311_v17  ;;  %v3106_v27 = vadd.f32 1.0, %v4313_v11 }
 0x2ae   : > { %v4315_v5 = vpop.eup %4314  ;;  %v3135_v52 = vmul.f32 0.5, %v3103_v59  ;;  %v7143_v60 = vmul.f32 %v3133_v54, %v7813_v20  ;;  %v3208_v55 = vadd.f32 %v3207_v56, %v3206_v10  ;;  %v3136_v28 = vmul.f32 0.5, %v3104_v31 }
 0x2af   : > { %v4317_v30 = vpop.eup %4316  ;;  %v7146_v21 = vmul.f32 %v3134_v7, %v6914_v8  ;;  %v3209_v0 = vsel %vm1037_vm1, %v7131_v1, 0.0  ;;  %v3211_v4 = vsel %vm1037_vm1, %v7134_v24, 0.0  ;;  %4326 = vtanh.f32 %v3049_v19 }
 0x2b0   : > { %v3210_v23 = vadd.f32 %v3209_v0, %v3208_v55  ;;  %v3051_v58 = vmul.f32 0.7978846, %v3019_v62  ;;  %4328 = vtanh.f32 %v3050_v14  ;;  %v3107_v53 = vadd.f32 1.0, %v4315_v5 }
 0x2b1   : > { %v3108_v50 = vadd.f32 1.0, %v4317_v30  ;;  %v3137_v44 = vmul.f32 0.5, %v3105_v42  ;;  %v7153_v46 = vmul.f32 %v3135_v52, %v6916_v49  ;;  %v3138_v63 = vmul.f32 0.5, %v3106_v27 }
 0x2b2   : > { %v4319_v2 = vpop.eup %4318  ;;  %v3212_v36 = vadd.f32 %v3211_v4, %v3210_v23  ;;  %v7156_v18 = vmul.f32 %v3136_v28, %v6918_v51  ;;  %v3213_v48 = vsel %vm1037_vm1, %v7143_v60, 0.0  ;;  %v3215_v59 = vsel %vm1037_vm1, %v7146_v21, 0.0 }
 0x2b3   : > { %v4321_v8 = vpop.eup %4320  ;;  %4330 = vtanh.f32 %v3051_v58  ;;  %v3109_v31 = vadd.f32 1.0, %v4319_v2  ;;  %v3139_v11 = vmul.f32 0.5, %v3107_v53  ;;  %v7163_v49 = vmul.f32 %v3137_v44, %v6920_v6 }
 0x2b4   : > { %v3214_v17 = vadd.f32 %v3213_v48, %v3212_v36  ;;  %v3110_v41 = vadd.f32 1.0, %v4321_v8  ;;  %v3140_v56 = vmul.f32 0.5, %v3108_v50  ;;  %v7166_v51 = vmul.f32 %v3138_v63, %v6922_v37 }
 0x2b5   : > { %v3217_v19 = vsel %vm1037_vm1, %v7153_v46, 0.0  ;;  %v3219_v10 = vsel %vm1037_vm1, %v7156_v18, 0.0  ;;  %v3141_v27 = vmul.f32 0.5, %v3109_v31  ;;  %v7173_v6 = vmul.f32 %v3139_v11, %v6924_v13 }
 0x2b6   : > { %v4323_v54 = vpop.eup %4322  ;;  %v3216_v7 = vadd.f32 %v3215_v59, %v3214_v17  ;;  %v3142_v55 = vmul.f32 0.5, %v3110_v41  ;;  %v7176_v37 = vmul.f32 %v3140_v56, %v6926_v15  ;;  %v3221_v30 = vsel %vm1037_vm1, %v7163_v49, 0.0 }
 0x2b7   : > { %v4325_v12 = vpop.eup %4324  ;;  %v3111_v14 = vadd.f32 1.0, %v4323_v54  ;;  %v3223_v28 = vsel %vm1037_vm1, %v7166_v51, 0.0  ;;  %v7183_v53 = vmul.f32 %v3141_v27, %v6928_v29  ;;  %v3225_v15 = vsel %vm1037_vm1, %v7173_v6, 0.0 }
 0x2b8   : > { %v3218_v62 = vadd.f32 %v3217_v19, %v3216_v7  ;;  %v3112_v5 = vadd.f32 1.0, %v4325_v12  ;;  %v7186_v44 = vmul.f32 %v3142_v55, %v6930_v39  ;;  %v3227_v36 = vsel %vm1037_vm1, %v7176_v37, 0.0 }
 0x2b9   : > { %v4327_v42 = vpop.eup %4326  ;;  %v3143_v58 = vmul.f32 0.5, %v3111_v14  ;;  %v3229_v39 = vsel %vm1037_vm1, %v7183_v53, 0.0 }
 0x2ba   : > { %v3220_v52 = vadd.f32 %v3219_v10, %v3218_v62  ;;  %v4329_v20 = vpop.eup %4328  ;;  %v3113_v4 = vadd.f32 1.0, %v4327_v42  ;;  %v3144_v50 = vmul.f32 0.5, %v3112_v5  ;;  %v3231_v54 = vsel %vm1037_vm1, %v7186_v44, 0.0 }
 0x2bb   : > { %v3114_v23 = vadd.f32 1.0, %v4329_v20  ;;  %v7193_v59 = vmul.f32 %v3143_v58, %v6932_v45 }
 0x2bc   : > { %v3222_v0 = vadd.f32 %v3221_v30, %v3220_v52  ;;  %v3145_v48 = vmul.f32 0.5, %v3113_v4  ;;  %v7196_v31 = vmul.f32 %v3144_v50, %v6934_v38  ;;  %v3330_v4 = vld [vmem:[%s7493_s7] sm:$0xff] }
 0x2bd   : > { %v4331_v2 = vpop.eup %4330  ;;  %v3146_v17 = vmul.f32 0.5, %v3114_v23  ;;  %v3233_v56 = vsel %vm1037_vm1, %v7193_v59, 0.0  ;;  %4119 = vmatpush3.msra.mxu1 %v3330_v4  ;;  %v3255_v23 = vld [vmem:[%s7492_s6] sm:$0x1] }
 0x2be   : > { %v3224_v13 = vadd.f32 %v3223_v28, %v3222_v0  ;;  %v3115_v63 = vadd.f32 1.0, %v4331_v2  ;;  %v7203_v12 = vmul.f32 %v3145_v48, %v6936_v33  ;;  %v3235_v38 = vsel %vm1037_vm1, %v7196_v31, 0.0  ;;  %v3450_v48 = vld [vmem:[%s7495_s9 + $0x18] sm:$0xff]  ;;  %v4340_v4 = vld [vmem:[%s4461_s24] sm:$0xff] }
 0x2bf   : > { %v7206_v45 = vmul.f32 %v3146_v17, %v6938_v26  ;;  %v3331_v17 = vld [vmem:[%s7494_s8] sm:$0x1] }
 0x2c0   : > { %v3226_v8 = vadd.f32 %v3225_v15, %v3224_v13  ;;  %v3147_v11 = vmul.f32 0.5, %v3115_v63  ;;  %v3237_v14 = vsel %vm1037_vm1, %v7203_v12, 0.0  ;;  %v3447_v15 = vld [vmem:[%s7495_s9] sm:$0xff]  ;;  %v3449_v63 = vld [vmem:[%s7495_s9 + $0x10] sm:$0xff] }
 0x2c1   : > { %v3239_v33 = vsel %vm1037_vm1, %v7206_v45, 0.0 }
 0x2c2   : > { %v3228_v29 = vadd.f32 %v3227_v36, %v3226_v8  ;;  %v7213_v62 = vmul.f32 %v3147_v11, %v6940_v40  ;;  %v3448_v36 = vld [vmem:[%s7495_s9 + $0x8] sm:$0xff] }
 0x2c3   : > { %v4185_v8 = vpack.c.bf16 %v3448_v36, %v3447_v15  ;;  %v4341_v15 = vld [vmem:[%s4461_s24 + $0x18] sm:$0xff] }
 0x2c4   : > { %v3230_v41 = vadd.f32 %v3229_v39, %v3228_v29  ;;  %v3241_v5 = vsel %vm1037_vm1, %v7213_v62, 0.0  ;;  %v4189_v29 = vpack.c.bf16 %v3450_v48, %v3449_v63 }
 0x2c5   : > { %4186 = vmatprep.subr.bf16.mxu1 %v4185_v8 }
 0x2c6   : > { %v3232_v7 = vadd.f32 %v3231_v54, %v3230_v41 }
 0x2c8   : > { %v3234_v19 = vadd.f32 %v3233_v56, %v3232_v7 }
 0x2ca   : > { %v3236_v10 = vadd.f32 %v3235_v38, %v3234_v19  ;;  %v7814_v19 = vld [vmem:[#allocation3_spill] sm:$0xff] }
 0x2cc   : > { %v3238_v42 = vadd.f32 %v3237_v14, %v3236_v10  ;;  %v7815_v14 = vld [vmem:[#allocation18_spill] sm:$0xff] }
 0x2ce   : > { %v3240_v26 = vadd.f32 %v3239_v33, %v3238_v42  ;;  %v7816_v42 = vld [vmem:[#allocation19_spill] sm:$0xff] }
 0x2d0   : > { %v3242_v27 = vadd.f32 %v3241_v5, %v3240_v26  ;;  %v7817_v5 = vld [vmem:[#allocation27_spill] sm:$0xff] }
 0x2d2   : > { %v3243_v52 = vrot.slane %v3242_v27, 4 }
 0x2d4   : > { %v3244_v20 = vadd.f32 %v3243_v52, %v3242_v27 }
 0x2d6   : > { %v3245_v55 = vrot.slane %v3244_v20, 2 }
 0x2d8   : > { %v3246_v30 = vadd.f32 %v3245_v55, %v3244_v20 }
 0x2da   : > { %v3247_v28 = vrot.slane %v3246_v30, 1 }
 0x2dc   : > { %v3248_v0 = vadd.f32 %v3247_v28, %v3246_v30 }
 0x2de   : > { %v3250_v40 = vmul.f32 0.00390625, %v3248_v0  ;;  %v4339_v0 = vld [vmem:[%s4461_s24 + $0x8] sm:$0xff] }
 0x2e0   : > { %4116 = vmatmul.mubr.msk.f32.vlgmr.msra.gmra.mrb[32].mxu0 %vm1037_vm1, %v3250_v40 }
 0x3b3   : > { %v3325_v58 = vpop.f32.mrb[32].mxu0 }
 0x3b4   : > { %v3326_v13 = vadd.f32 %v3325_v58, %v3255_v23  ;;  %v4117_v2 = vpop.f32.mrb[33].mxu0 }
 0x3b6   : > { %v3329_v50 = vmax.f32 %v3326_v13, 0.0 }
 0x3b8   : > { %4121 = vmatmul.mubr.msk.f32.vlgmr.msra.gmra.mrb[0].mxu1 %vm427_vm0, %v3329_v50 }
 0x3b9   : > { %4188 = vmatpush3.bf16.msra.mxu1 %v4185_v8  ;;  %v4342_v8 = vld [vmem:[%s4461_s24 + $0x10] sm:$0xff] }
 0x3ba   : > { %4190 = vmatprep.subr.bf16.mxu1 %v4189_v29 }
 0x3bd   : > { %4192 = vmatpush3.bf16.msra.mxu1 %v4189_v29 }
 0x48b   : > { %v3401_v39 = vpop.f32.mrb[0].mxu1 }
 0x48c   : > { %v3402_v54 = vadd.f32 %v3401_v39, %v3331_v17  ;;  %v4122_v41 = vpop.f32.mrb[1].mxu1 }
 0x48e   : > { %v3943_v11 = vmul.f32 -1.442695, %v3402_v54  ;;  %v4343_v54 = vld [vmem:[%s4461_s24 + $0x28] sm:$0xff] }
 0x490   : > { %4332 = vpow2.f32 %v3943_v11  ;;  %v4344_v11 = vld [vmem:[%s4461_s24 + $0x20] sm:$0xff] }
 0x49a   : > { %v4333_v7 = vpop.eup %4332 }
 0x49b   : > { %v3408_v56 = vadd.f32 1.0, %v4333_v7 }
 0x49d   : > { %4334 = vrcp.f32 %v3408_v56 }
 0x4a7   : > { %v4335_v38 = vpop.eup %4334 }
 0x4a8   : > { %v7245_v10 = vrot.slane %v4335_v38, %v7814_v19 }
 0x4aa   : > { %v3415_v33 = vmul.f32 %v7245_v10, %v7815_v14  ;;  %v3416_v26 = vmul.f32 %v7245_v10, %v7816_v42  ;;  %v3417_v27 = vmul.f32 %v7245_v10, %v7817_v5  ;;  %v3418_v52 = vmul.f32 %v7245_v10, %v7052_v25  ;;  %v4345_v14 = vld [vmem:[%s4461_s24 + $0x38] sm:$0xff]  ;;  %v4346_v42 = vld [vmem:[%s4461_s24 + $0x30] sm:$0xff] }
 0x4ab   : > { %v3419_v20 = vmul.f32 %v7245_v10, %v7061_v61  ;;  %v3420_v55 = vmul.f32 %v7245_v10, %v7069_v16  ;;  %v3421_v30 = vmul.f32 %v7245_v10, %v7072_v22  ;;  %v3422_v25 = vmul.f32 %v7245_v10, %v7081_v9 }
 0x4ac   : > { %4131 = vmatprep.mubr.msk.f32.mxu1 %vm1037_vm1, %v3415_v33  ;;  %v3423_v61 = vmul.f32 %v7245_v10, %v7086_v35  ;;  %v3424_v16 = vmul.f32 %v7245_v10, %v7093_v47  ;;  %v3425_v22 = vmul.f32 %v7245_v10, %v7098_v3  ;;  %v3426_v9 = vmul.f32 %v7245_v10, %v7105_v32 }
 0x4ad   : > { %4132 = vmatmul.mubr.msk.f32.vlgmr.msra.gmra.mrb[2].mxu1 %vm1037_vm1, %v3416_v26  ;;  %v3427_v35 = vmul.f32 %v7245_v10, %v7108_v57  ;;  %v3428_v47 = vmul.f32 %v7245_v10, %v7117_v43  ;;  %v3429_v3 = vmul.f32 %v7245_v10, %v7120_v34  ;;  %v3430_v32 = vmul.f32 %v7245_v10, %v7131_v1 }
 0x4ae   : > { %4134 = vmatprep.mubr.msk.f32.mxu1 %vm1037_vm1, %v3417_v27  ;;  %v3431_v57 = vmul.f32 %v7245_v10, %v7134_v24  ;;  %v3432_v43 = vmul.f32 %v7245_v10, %v7143_v60  ;;  %v3433_v34 = vmul.f32 %v7245_v10, %v7146_v21  ;;  %v3434_v1 = vmul.f32 %v7245_v10, %v7153_v46 }
 0x4af   : > { %v3435_v24 = vmul.f32 %v7245_v10, %v7156_v18  ;;  %v3436_v60 = vmul.f32 %v7245_v10, %v7163_v49  ;;  %v3437_v21 = vmul.f32 %v7245_v10, %v7166_v51  ;;  %v3438_v46 = vmul.f32 %v7245_v10, %v7173_v6 }
 0x4b0   : > { %v3439_v18 = vmul.f32 %v7245_v10, %v7176_v37  ;;  %v3440_v49 = vmul.f32 %v7245_v10, %v7183_v53  ;;  %v3441_v51 = vmul.f32 %v7245_v10, %v7186_v44  ;;  %v3442_v6 = vmul.f32 %v7245_v10, %v7193_v59 }
 0x4b1   : > { %4135 = vmatmul.mubr.msk.f32.gmra.mrb[4].mxu1 %vm1037_vm1, %v3418_v52  ;;  %v3443_v37 = vmul.f32 %v7245_v10, %v7196_v31  ;;  %v3444_v53 = vmul.f32 %v7245_v10, %v7203_v12  ;;  %v3445_v44 = vmul.f32 %v7245_v10, %v7206_v45  ;;  %v3446_v59 = vmul.f32 %v7245_v10, %v7213_v62  ;;  %v7346_v31 = vld [vmem:[%s7496_s10] ss:$0 sm:$0xff] }
 0x4b2   : > { %4137 = vmatprep.mubr.msk.f32.mxu1 %vm1037_vm1, %v3419_v20 }
 0x4b5   : > { %4138 = vmatmul.mubr.msk.f32.gmra.mrb[6].mxu1 %vm1037_vm1, %v3420_v55  ;;  %v4347_v55 = vld [vmem:[%s4461_s24 + $0x48] sm:$0xff] }
 0x4b6   : > { %4140 = vmatprep.mubr.msk.f32.mxu1 %vm1037_vm1, %v3421_v30 }
 0x4b9   : > { %4141 = vmatmul.mubr.msk.f32.gmra.mrb[8].mxu1 %vm1037_vm1, %v3422_v25  ;;  %v4348_v25 = vld [vmem:[%s4461_s24 + $0x40] sm:$0xff] }
 0x4ba   : > { %4143 = vmatprep.mubr.msk.f32.mxu1 %vm1037_vm1, %v3423_v61 }
 0x4bd   : > { %4144 = vmatmul.mubr.msk.f32.gmra.mrb[10].mxu1 %vm1037_vm1, %v3424_v16 }
 0x4be   : > { %4146 = vmatprep.mubr.msk.f32.mxu1 %vm1037_vm1, %v3425_v22 }
 0x4c1   : > { %4147 = vmatmul.mubr.msk.f32.gmra.mrb[12].mxu1 %vm1037_vm1, %v3426_v9 }
 0x4c2   : > { %4149 = vmatprep.mubr.msk.f32.mxu1 %vm1037_vm1, %v3427_v35 }
 0x4c5   : > { %4150 = vmatmul.mubr.msk.f32.gmra.mrb[14].mxu1 %vm1037_vm1, %v3428_v47  ;;  %v4349_v47 = vld [vmem:[%s4461_s24 + $0x58] sm:$0xff] }
 0x4c6   : > { %4152 = vmatprep.mubr.msk.f32.mxu1 %vm1037_vm1, %v3429_v3 }
 0x4c9   : > { %4153 = vmatmul.mubr.msk.f32.gmra.mrb[16].mxu1 %vm1037_vm1, %v3430_v32  ;;  %v4350_v32 = vld [vmem:[%s4461_s24 + $0x50] sm:$0xff] }
 0x4ca   : > { %4155 = vmatprep.mubr.msk.f32.mxu1 %vm1037_vm1, %v3431_v57 }
 0x4cd   : > { %4156 = vmatmul.mubr.msk.f32.gmra.mrb[18].mxu1 %vm1037_vm1, %v3432_v43 }
 0x4ce   : > { %4158 = vmatprep.mubr.msk.f32.mxu1 %vm1037_vm1, %v3433_v34 }
 0x4d1   : > { %4159 = vmatmul.mubr.msk.f32.gmra.mrb[20].mxu1 %vm1037_vm1, %v3434_v1 }
 0x4d2   : > { %4161 = vmatprep.mubr.msk.f32.mxu1 %vm1037_vm1, %v3435_v24 }
 0x4d5   : > { %4162 = vmatmul.mubr.msk.f32.gmra.mrb[22].mxu1 %vm1037_vm1, %v3436_v60  ;;  %v4351_v60 = vld [vmem:[%s4461_s24 + $0x68] sm:$0xff] }
 0x4d6   : > { %4164 = vmatprep.mubr.msk.f32.mxu1 %vm1037_vm1, %v3437_v21 }
 0x4d9   : > { %4165 = vmatmul.mubr.msk.f32.gmra.mrb[24].mxu1 %vm1037_vm1, %v3438_v46  ;;  %v4352_v46 = vld [vmem:[%s4461_s24 + $0x60] sm:$0xff] }
 0x4da   : > { %4167 = vmatprep.mubr.msk.f32.mxu1 %vm1037_vm1, %v3439_v18 }
 0x4dd   : > { %4168 = vmatmul.mubr.msk.f32.gmra.mrb[26].mxu1 %vm1037_vm1, %v3440_v49 }
 0x4de   : > { %4170 = vmatprep.mubr.msk.f32.mxu1 %vm1037_vm1, %v3441_v51 }
 0x4e1   : > { %4171 = vmatmul.mubr.msk.f32.gmra.mrb[28].mxu1 %vm1037_vm1, %v3442_v6 }
 0x4e2   : > { %4173 = vmatprep.mubr.msk.f32.mxu1 %vm1037_vm1, %v3443_v37 }
 0x4e5   : > { %4174 = vmatmul.mubr.msk.f32.gmra.mrb[30].mxu1 %vm1037_vm1, %v3444_v53  ;;  %v4353_v53 = vld [vmem:[%s4461_s24 + $0x78] sm:$0xff] }
 0x4e6   : > { %4176 = vmatprep.mubr.msk.f32.mxu1 %vm1037_vm1, %v3445_v44 }
 0x4e9   : > { %4177 = vmatmul.mubr.msk.f32.gmra.mrb[32].mxu1 %vm1037_vm1, %v3446_v59  ;;  %v4354_v59 = vld [vmem:[%s4461_s24 + $0x70] sm:$0xff] }
 0x580   : > { %v4133_v28 = vpop.f32.mrb[2].mxu1 }
 0x581   : > { %v3626_v12 = vadd.f32 %v4133_v28, %v7346_v31  ;;  %v3620_v45 = vpop.f32.mrb[3].mxu1 }
 0x582   : > { %v3621_v62 = vadd.f32 %v7346_v31, %v3620_v45 }
 0x583   : > { %v3780_v40 = vadd.f32 %v4339_v0, %v3626_v12 }
 0x584   : > { %v3779_v23 = vadd.f32 %v4340_v4, %v3621_v62  ;;  %v4136_v58 = vpop.f32.mrb[4].mxu1 }
 0x585   : > { %3812 = vst.msk [vmem:[%s7354_s20 + $0x8] sm:$0xff] %vm427_vm0, %v3780_v40  ;;  %v3636_v13 = vadd.f32 %v4136_v58, %v7346_v31  ;;  %v3630_v2 = vpop.f32.mrb[5].mxu1  ;;  %v4355_v40 = vld [vmem:[%s4461_s24 + $0x88] sm:$0xff] }
 0x586   : > { %3811 = vst.msk [vmem:[%s7354_s20] sm:$0xff] %vm427_vm0, %v3779_v23  ;;  %v3631_v50 = vadd.f32 %v7346_v31, %v3630_v2  ;;  %v4356_v23 = vld [vmem:[%s4461_s24 + $0x80] sm:$0xff] }
 0x587   : > { %v3782_v36 = vadd.f32 %v4341_v15, %v3636_v13 }
 0x588   : > { %v3781_v63 = vadd.f32 %v4342_v8, %v3631_v50  ;;  %v4139_v48 = vpop.f32.mrb[6].mxu1 }
 0x589   : > { %3814 = vst.msk [vmem:[%s7354_s20 + $0x18] sm:$0xff] %vm427_vm0, %v3782_v36  ;;  %v3646_v29 = vadd.f32 %v4139_v48, %v7346_v31  ;;  %v3640_v17 = vpop.f32.mrb[7].mxu1  ;;  %v4357_v36 = vld [vmem:[%s4461_s24 + $0x98] sm:$0xff] }
 0x58a   : > { %3813 = vst.msk [vmem:[%s7354_s20 + $0x10] sm:$0xff] %vm427_vm0, %v3781_v63  ;;  %v3641_v39 = vadd.f32 %v7346_v31, %v3640_v17  ;;  %v4358_v63 = vld [vmem:[%s4461_s24 + $0x90] sm:$0xff] }
 0x58b   : > { %v3784_v41 = vadd.f32 %v4343_v54, %v3646_v29 }
 0x58c   : > { %v3783_v7 = vadd.f32 %v4344_v11, %v3641_v39  ;;  %v4142_v56 = vpop.f32.mrb[8].mxu1 }
 0x58d   : > { %3816 = vst.msk [vmem:[%s7354_s20 + $0x28] sm:$0xff] %vm427_vm0, %v3784_v41  ;;  %v3656_v38 = vadd.f32 %v4142_v56, %v7346_v31  ;;  %v3650_v19 = vpop.f32.mrb[9].mxu1  ;;  %v4359_v41 = vld [vmem:[%s4461_s24 + $0xa8] sm:$0xff] }
 0x58e   : > { %3815 = vst.msk [vmem:[%s7354_s20 + $0x20] sm:$0xff] %vm427_vm0, %v3783_v7  ;;  %v3651_v10 = vadd.f32 %v7346_v31, %v3650_v19  ;;  %v4360_v7 = vld [vmem:[%s4461_s24 + $0xa0] sm:$0xff] }
 0x58f   : > { %v3786_v33 = vadd.f32 %v4345_v14, %v3656_v38 }
 0x590   : > { %v3785_v26 = vadd.f32 %v4346_v42, %v3651_v10  ;;  %v4145_v5 = vpop.f32.mrb[10].mxu1 }
 0x591   : > { %3818 = vst.msk [vmem:[%s7354_s20 + $0x38] sm:$0xff] %vm427_vm0, %v3786_v33  ;;  %v3666_v27 = vadd.f32 %v4145_v5, %v7346_v31  ;;  %v3660_v52 = vpop.f32.mrb[11].mxu1  ;;  %v4361_v33 = vld [vmem:[%s4461_s24 + $0xb8] sm:$0xff] }
 0x592   : > { %3817 = vst.msk [vmem:[%s7354_s20 + $0x30] sm:$0xff] %vm427_vm0, %v3785_v26  ;;  %v3661_v20 = vadd.f32 %v7346_v31, %v3660_v52  ;;  %v4362_v26 = vld [vmem:[%s4461_s24 + $0xb0] sm:$0xff] }
 0x593   : > { %v3788_v30 = vadd.f32 %v4347_v55, %v3666_v27 }
 0x594   : > { %v3787_v61 = vadd.f32 %v4348_v25, %v3661_v20  ;;  %v4148_v16 = vpop.f32.mrb[12].mxu1 }
 0x595   : > { %3820 = vst.msk [vmem:[%s7354_s20 + $0x48] sm:$0xff] %vm427_vm0, %v3788_v30  ;;  %v3676_v22 = vadd.f32 %v4148_v16, %v7346_v31  ;;  %v3670_v9 = vpop.f32.mrb[13].mxu1  ;;  %v4363_v30 = vld [vmem:[%s4461_s24 + $0xc8] sm:$0xff] }
 0x596   : > { %3819 = vst.msk [vmem:[%s7354_s20 + $0x40] sm:$0xff] %vm427_vm0, %v3787_v61  ;;  %v3671_v35 = vadd.f32 %v7346_v31, %v3670_v9  ;;  %v4364_v61 = vld [vmem:[%s4461_s24 + $0xc0] sm:$0xff] }
 0x597   : > { %v3790_v3 = vadd.f32 %v4349_v47, %v3676_v22 }
 0x598   : > { %v3789_v57 = vadd.f32 %v4350_v32, %v3671_v35  ;;  %v4151_v43 = vpop.f32.mrb[14].mxu1 }
 0x599   : > { %3822 = vst.msk [vmem:[%s7354_s20 + $0x58] sm:$0xff] %vm427_vm0, %v3790_v3  ;;  %v3686_v34 = vadd.f32 %v4151_v43, %v7346_v31  ;;  %v3680_v1 = vpop.f32.mrb[15].mxu1  ;;  %v4365_v3 = vld [vmem:[%s4461_s24 + $0xd8] sm:$0xff] }
 0x59a   : > { %3821 = vst.msk [vmem:[%s7354_s20 + $0x50] sm:$0xff] %vm427_vm0, %v3789_v57  ;;  %v3681_v24 = vadd.f32 %v7346_v31, %v3680_v1  ;;  %v4366_v57 = vld [vmem:[%s4461_s24 + $0xd0] sm:$0xff] }
 0x59b   : > { %v3792_v21 = vadd.f32 %v4351_v60, %v3686_v34 }
 0x59c   : > { %v3791_v18 = vadd.f32 %v4352_v46, %v3681_v24  ;;  %v4154_v49 = vpop.f32.mrb[16].mxu1 }
 0x59d   : > { %3824 = vst.msk [vmem:[%s7354_s20 + $0x68] sm:$0xff] %vm427_vm0, %v3792_v21  ;;  %v3696_v51 = vadd.f32 %v4154_v49, %v7346_v31  ;;  %v3690_v6 = vpop.f32.mrb[17].mxu1  ;;  %v4367_v21 = vld [vmem:[%s4461_s24 + $0xe8] sm:$0xff] }
 0x59e   : > { %3823 = vst.msk [vmem:[%s7354_s20 + $0x60] sm:$0xff] %vm427_vm0, %v3791_v18  ;;  %v3691_v37 = vadd.f32 %v7346_v31, %v3690_v6  ;;  %v4368_v18 = vld [vmem:[%s4461_s24 + $0xe0] sm:$0xff] }
 0x59f   : > { %v3794_v44 = vadd.f32 %v4353_v53, %v3696_v51 }
 0x5a0   : > { %v3793_v28 = vadd.f32 %v4354_v59, %v3691_v37  ;;  %v4157_v12 = vpop.f32.mrb[18].mxu1 }
 0x5a1   : > { %3826 = vst.msk [vmem:[%s7354_s20 + $0x78] sm:$0xff] %vm427_vm0, %v3794_v44  ;;  %v3706_v45 = vadd.f32 %v4157_v12, %v7346_v31  ;;  %v3700_v62 = vpop.f32.mrb[19].mxu1  ;;  %v4369_v44 = vld [vmem:[%s4461_s24 + $0xf8] sm:$0xff] }
 0x5a2   : > { %3825 = vst.msk [vmem:[%s7354_s20 + $0x70] sm:$0xff] %vm427_vm0, %v3793_v28  ;;  %v3701_v0 = vadd.f32 %v7346_v31, %v3700_v62  ;;  %v4370_v28 = vld [vmem:[%s4461_s24 + $0xf0] sm:$0xff] }
 0x5a3   : > { %v3796_v4 = vadd.f32 %v4355_v40, %v3706_v45 }
 0x5a4   : > { %v3795_v58 = vadd.f32 %v4356_v23, %v3701_v0  ;;  %v4160_v13 = vpop.f32.mrb[20].mxu1 }
 0x5a5   : > { %3828 = vst.msk [vmem:[%s7354_s20 + $0x88] sm:$0xff] %vm427_vm0, %v3796_v4  ;;  %v3716_v2 = vadd.f32 %v4160_v13, %v7346_v31  ;;  %v3710_v50 = vpop.f32.mrb[21].mxu1 }
 0x5a6   : > { %3827 = vst.msk [vmem:[%s7354_s20 + $0x80] sm:$0xff] %vm427_vm0, %v3795_v58  ;;  %v3711_v15 = vadd.f32 %v7346_v31, %v3710_v50 }
 0x5a7   : > { %v3798_v8 = vadd.f32 %v4357_v36, %v3716_v2 }
 0x5a8   : > { %v3797_v48 = vadd.f32 %v4358_v63, %v3711_v15  ;;  %v4163_v29 = vpop.f32.mrb[22].mxu1 }
 0x5a9   : > { %3830 = vst.msk [vmem:[%s7354_s20 + $0x98] sm:$0xff] %vm427_vm0, %v3798_v8  ;;  %v3726_v17 = vadd.f32 %v4163_v29, %v7346_v31  ;;  %v3720_v39 = vpop.f32.mrb[23].mxu1 }
 0x5aa   : > { %3829 = vst.msk [vmem:[%s7354_s20 + $0x90] sm:$0xff] %vm427_vm0, %v3797_v48  ;;  %v3721_v54 = vadd.f32 %v7346_v31, %v3720_v39 }
 0x5ab   : > { %v3800_v11 = vadd.f32 %v4359_v41, %v3726_v17 }
 0x5ac   : > { %v3799_v56 = vadd.f32 %v4360_v7, %v3721_v54  ;;  %v4166_v38 = vpop.f32.mrb[24].mxu1 }
 0x5ad   : > { %3832 = vst.msk [vmem:[%s7354_s20 + $0xa8] sm:$0xff] %vm427_vm0, %v3800_v11  ;;  %v3736_v19 = vadd.f32 %v4166_v38, %v7346_v31  ;;  %v3730_v10 = vpop.f32.mrb[25].mxu1 }
 0x5ae   : > { %3831 = vst.msk [vmem:[%s7354_s20 + $0xa0] sm:$0xff] %vm427_vm0, %v3799_v56  ;;  %v3731_v14 = vadd.f32 %v7346_v31, %v3730_v10 }
 0x5af   : > { %v3802_v42 = vadd.f32 %v4361_v33, %v3736_v19 }
 0x5b0   : > { %v3801_v5 = vadd.f32 %v4362_v26, %v3731_v14  ;;  %v4169_v27 = vpop.f32.mrb[26].mxu1 }
 0x5b1   : > { %3834 = vst.msk [vmem:[%s7354_s20 + $0xb8] sm:$0xff] %vm427_vm0, %v3802_v42  ;;  %v3746_v52 = vadd.f32 %v4169_v27, %v7346_v31  ;;  %v3740_v20 = vpop.f32.mrb[27].mxu1 }
 0x5b2   : > { %3833 = vst.msk [vmem:[%s7354_s20 + $0xb0] sm:$0xff] %vm427_vm0, %v3801_v5  ;;  %v3741_v55 = vadd.f32 %v7346_v31, %v3740_v20 }
 0x5b3   : > { %v3804_v25 = vadd.f32 %v4363_v30, %v3746_v52 }
 0x5b4   : > { %v3803_v16 = vadd.f32 %v4364_v61, %v3741_v55  ;;  %v4172_v22 = vpop.f32.mrb[28].mxu1 }
 0x5b5   : > { %3836 = vst.msk [vmem:[%s7354_s20 + $0xc8] sm:$0xff] %vm427_vm0, %v3804_v25  ;;  %v3756_v9 = vadd.f32 %v4172_v22, %v7346_v31  ;;  %v3750_v35 = vpop.f32.mrb[29].mxu1 }
 0x5b6   : > { %3835 = vst.msk [vmem:[%s7354_s20 + $0xc0] sm:$0xff] %vm427_vm0, %v3803_v16  ;;  %v3751_v47 = vadd.f32 %v7346_v31, %v3750_v35 }
 0x5b7   : > { %v3806_v32 = vadd.f32 %v4365_v3, %v3756_v9 }
 0x5b8   : > { %v3805_v43 = vadd.f32 %v4366_v57, %v3751_v47  ;;  %v4175_v34 = vpop.f32.mrb[30].mxu1 }
 0x5b9   : > { %3838 = vst.msk [vmem:[%s7354_s20 + $0xd8] sm:$0xff] %vm427_vm0, %v3806_v32  ;;  %v3766_v1 = vadd.f32 %v4175_v34, %v7346_v31  ;;  %v3760_v24 = vpop.f32.mrb[31].mxu1 }
 0x5ba   : > { %3837 = vst.msk [vmem:[%s7354_s20 + $0xd0] sm:$0xff] %vm427_vm0, %v3805_v43  ;;  %v3761_v60 = vadd.f32 %v7346_v31, %v3760_v24 }
 0x5bb   : > { %v3808_v46 = vadd.f32 %v4367_v21, %v3766_v1 }
 0x5bc   : > { %v3807_v49 = vadd.f32 %v4368_v18, %v3761_v60  ;;  %v4178_v51 = vpop.f32.mrb[32].mxu1 }
 0x5bd   : > { %3840 = vst.msk [vmem:[%s7354_s20 + $0xe8] sm:$0xff] %vm427_vm0, %v3808_v46  ;;  %v3776_v6 = vadd.f32 %v4178_v51, %v7346_v31  ;;  %v3770_v37 = vpop.f32.mrb[33].mxu1 }
 0x5be   : > { %3839 = vst.msk [vmem:[%s7354_s20 + $0xe0] sm:$0xff] %vm427_vm0, %v3807_v49  ;;  %v3771_v53 = vadd.f32 %v7346_v31, %v3770_v37 }
 0x5bf   : > { %v3810_v59 = vadd.f32 %v4369_v44, %v3776_v6 }
 0x5c0   : > { %v3809_v12 = vadd.f32 %v4370_v28, %v3771_v53 }
 0x5c1   : > { %3842 = vst.msk [vmem:[%s7354_s20 + $0xf8] sm:$0xff] %vm427_vm0, %v3810_v59 }
 0x5c2   : > { %3841 = vst.msk [vmem:[%s7354_s20 + $0xf0] sm:$0xff] %vm427_vm0, %v3809_v12 }
 0x5c3 PF: > { %s21_s17 = sadd.s32 1, %s4377_s17  }
 0x5c4   : > { %p18_p4 = scmp.ge.s32.totalorder %s21_s17, 4  }
 0x5c6   :  { %20 = sbr.rel (!%p18_p4) target bundleno = 1 (0x1), region = 95 }

// kernel: adaptive_maxvit_block.4
= control target key start
LH: loop header
LB: loop body
LE: loop exit
PB: predicated region body
PF: predicated region fallthrough
CT: control target
= control target key end

     0   :  { %s12443_s25 = smov 0   ;;  %s15651_s0 = inlined_call_operand.vmem [shape: f32[32,16,8], index: 0, kind: input, shape index: {}]   ;;  %s15652_s1 = inlined_call_operand.vmem [shape: f32[1,8], index: 1, kind: input, shape index: {}]   ;;  %s15653_s2 = inlined_call_operand.vmem [shape: f32[1,8], index: 2, kind: input, shape index: {}]   ;;  %s15654_s3 = inlined_call_operand.vmem [shape: f32[8,24], index: 3, kind: input, shape index: {}]   ;;  %s15655_s4 = inlined_call_operand.vmem [shape: f32[1,24], index: 4, kind: input, shape index: {}]   ;;  %s15656_s5 = inlined_call_operand.vmem [shape: f32[8,8], index: 5, kind: input, shape index: {}]   ;;  %s15657_s6 = inlined_call_operand.vmem [shape: f32[1,8], index: 6, kind: input, shape index: {}]   ;;  %s15658_s7 = inlined_call_operand.vmem [shape: f32[1,8], index: 7, kind: input, shape index: {}]   ;;  %s15659_s8 = inlined_call_operand.vmem [shape: f32[1,8], index: 8, kind: input, shape index: {}]   ;;  %s15660_s9 = inlined_call_operand.vmem [shape: f32[8,32], index: 9, kind: input, shape index: {}]   ;;  %s15661_s10 = inlined_call_operand.vmem [shape: f32[1,32], index: 10, kind: input, shape index: {}]   ;;  %s15662_s11 = inlined_call_operand.vmem [shape: f32[32,8], index: 11, kind: input, shape index: {}]   ;;  %s15663_s12 = inlined_call_operand.vmem [shape: f32[1,8], index: 12, kind: input, shape index: {}]   ;;  %s15664_s13 = inlined_call_operand.vmem [shape: f32[32,16,8], index: 13, kind: output, shape index: {}]  }
   0x1 LB: > { %s9827_s26 = sadd.s32 4294967295, %s12365_s25   ;;  %p9831_p0 = scmp.ge.s32.totalorder %s12365_s25, 1  ;;  %s12365_s25 = sphi %s12443_s25, %s23_s25  }
   0x2   : > { %p389_p1 = scmp.lt.s32.totalorder %s12365_s25, 3 }
   0x4   : > { %p390_p2 = pnand %p9831_p0, %p389_p1 }
   0x6   : > { %393 = sbr.rel (%p390_p2) target bundleno = 3364 (0xd24), region = 72 }
   0xd   : > { %s9832_s27 = sshll.u32 %s9827_s26, 4  ;;  %vm481_vm0 = vcmask 64512   ;;  %vm1344_vm1 = vcmask 31744   ;;  %s12367_s23 = smov 120   ;;  %vm2795_vm3 = vcmask 130048   ;;  %vm9383_vm4 = vcmask 261120  }
   0xe   : > { %p436_p3 = scmp.lt.s32.totalorder %s9832_s27, 31  ;;  %vm13131_vm2 = vmpackc.low %vm1344_vm1, %vm1344_vm1  ;;  %s12368_s24 = smov 112  }
   0xf   : > { %s12369_s26 = smov 116   ;;  %s12370_s29 = smov 124  }
  0x10   : > { %s15939_s27 = smov (!%p436_p3, %s9832_s27), 31  ;;  %s12371_s30 = smov 108  }
  0x11   : > { %s10168_s28 = sshll.u32 %s15939_s27, 4  ;;  %s12372_s17 = smov 4  }
  0x12   : > { %s12459_s14 = scalar_lea.vmem %s15651_s0, %s10168_s28 }
  0x13   : > { %v12462_v0 = vld [vmem:[%s12459_s14 + $0x10] sm:$0xff]  ;;  %v12465_v1 = vld [vmem:[%s12459_s14] sm:$0xff]  ;;  %v12468_v2 = vld [vmem:[%s12459_s14 + $0x18] sm:$0xff] }
  0x14   : > { %v488_v3 = vsel %vm481_vm0, %v12462_v0, 0.0  ;;  %v482_v4 = vsel %vm481_vm0, %v12465_v1, 0.0  ;;  %v12475_v5 = vld [vmem:[%s12459_s14 + $0x8] sm:$0xff]  ;;  %v491_v6 = vsel %vm481_vm0, %v12468_v2, 0.0  ;;  %v12485_v9 = vld [vmem:[%s12459_s14 + $0x20] sm:$0xff]  ;;  %v12492_v12 = vld [vmem:[%s12459_s14 + $0x38] sm:$0xff] }
  0x15   : > { %489 = vadd.xlane.f32.xlu1 %v488_v3  ;;  %483 = vadd.xlane.f32.xlu0 %v482_v4  ;;  %v485_v7 = vsel %vm481_vm0, %v12475_v5, 0.0  ;;  %v12482_v8 = vld [vmem:[%s12459_s14 + $0x28] sm:$0xff]  ;;  %v494_v11 = vsel %vm481_vm0, %v12485_v9, 0.0  ;;  %v12495_v13 = vld [vmem:[%s12459_s14 + $0x30] sm:$0xff]  ;;  %v503_v14 = vsel %vm481_vm0, %v12492_v12, 0.0  ;;  %v12505_v17 = vld [vmem:[%s12459_s14 + $0x40] sm:$0xff] }
  0x16   : > { %v497_v10 = vsel %vm481_vm0, %v12482_v8, 0.0  ;;  %v500_v15 = vsel %vm481_vm0, %v12495_v13, 0.0  ;;  %v12502_v16 = vld [vmem:[%s12459_s14 + $0x48] sm:$0xff]  ;;  %v506_v19 = vsel %vm481_vm0, %v12505_v17, 0.0  ;;  %v12512_v20 = vld [vmem:[%s12459_s14 + $0x58] sm:$0xff]  ;;  %v12515_v21 = vld [vmem:[%s12459_s14 + $0x50] sm:$0xff] }
  0x17   : > { %v509_v18 = vsel %vm481_vm0, %v12502_v16, 0.0  ;;  %v515_v22 = vsel %vm481_vm0, %v12512_v20, 0.0  ;;  %v512_v23 = vsel %vm481_vm0, %v12515_v21, 0.0  ;;  %v12522_v24 = vld [vmem:[%s12459_s14 + $0x68] sm:$0xff]  ;;  %v12525_v25 = vld [vmem:[%s12459_s14 + $0x60] sm:$0xff]  ;;  %v12532_v28 = vld [vmem:[%s12459_s14 + $0x78] sm:$0xff] }
  0x18   : > { %v521_v26 = vsel %vm481_vm0, %v12522_v24, 0.0  ;;  %v518_v27 = vsel %vm481_vm0, %v12525_v25, 0.0  ;;  %v12535_v29 = vld [vmem:[%s12459_s14 + $0x70] sm:$0xff]  ;;  %v527_v30 = vsel %vm481_vm0, %v12532_v28, 0.0  ;;  %v12542_v32 = vld [vmem:[%s12459_s14 + $0x88] sm:$0xff]  ;;  %v12545_v33 = vld [vmem:[%s12459_s14 + $0x80] sm:$0xff] }
  0x19   : > { %492 = vadd.xlane.f32.xlu1 %v491_v6  ;;  %486 = vadd.xlane.f32.xlu0 %v485_v7  ;;  %v524_v31 = vsel %vm481_vm0, %v12535_v29, 0.0  ;;  %v533_v34 = vsel %vm481_vm0, %v12542_v32, 0.0  ;;  %v530_v35 = vsel %vm481_vm0, %v12545_v33, 0.0  ;;  %v12552_v36 = vld [vmem:[%s12459_s14 + $0x98] sm:$0xff]  ;;  %v12555_v37 = vld [vmem:[%s12459_s14 + $0x90] sm:$0xff]  ;;  %v12562_v40 = vld [vmem:[%s12459_s14 + $0xa8] sm:$0xff] }
  0x1a   : > { %v539_v38 = vsel %vm481_vm0, %v12552_v36, 0.0  ;;  %v536_v39 = vsel %vm481_vm0, %v12555_v37, 0.0  ;;  %v12565_v41 = vld [vmem:[%s12459_s14 + $0xa0] sm:$0xff]  ;;  %v545_v42 = vsel %vm481_vm0, %v12562_v40, 0.0  ;;  %v12572_v44 = vld [vmem:[%s12459_s14 + $0xb8] sm:$0xff]  ;;  %v12575_v45 = vld [vmem:[%s12459_s14 + $0xb0] sm:$0xff] }
  0x1b   : > { %v542_v43 = vsel %vm481_vm0, %v12565_v41, 0.0  ;;  %v551_v46 = vsel %vm481_vm0, %v12572_v44, 0.0  ;;  %v548_v47 = vsel %vm481_vm0, %v12575_v45, 0.0  ;;  %v12582_v48 = vld [vmem:[%s12459_s14 + $0xc8] sm:$0xff]  ;;  %v12585_v49 = vld [vmem:[%s12459_s14 + $0xc0] sm:$0xff]  ;;  %v12592_v52 = vld [vmem:[%s12459_s14 + $0xd0] sm:$0xff] }
  0x1c   : > { %v557_v50 = vsel %vm481_vm0, %v12582_v48, 0.0  ;;  %v554_v51 = vsel %vm481_vm0, %v12585_v49, 0.0  ;;  %v560_v53 = vsel %vm481_vm0, %v12592_v52, 0.0  ;;  %v12597_v54 = vld [vmem:[%s12459_s14 + $0xd8] sm:$0xff]  ;;  %v12602_v56 = vld [vmem:[%s12459_s14 + $0xe8] sm:$0xff] }
  0x1d   : > { %498 = vadd.xlane.f32.xlu1 %v497_v10  ;;  %495 = vadd.xlane.f32.xlu0 %v494_v11  ;;  %v563_v55 = vsel %vm481_vm0, %v12597_v54, 0.0  ;;  %v569_v57 = vsel %vm481_vm0, %v12602_v56, 0.0 }
  0x21   : > { %504 = vadd.xlane.f32.xlu1 %v503_v14  ;;  %501 = vadd.xlane.f32.xlu0 %v500_v15 }
  0x25   : > { %510 = vadd.xlane.f32.xlu1 %v509_v18  ;;  %507 = vadd.xlane.f32.xlu0 %v506_v19 }
  0x29   : > { %516 = vadd.xlane.f32.xlu1 %v515_v22  ;;  %513 = vadd.xlane.f32.xlu0 %v512_v23 }
  0x2d   : > { %522 = vadd.xlane.f32.xlu1 %v521_v26  ;;  %519 = vadd.xlane.f32.xlu0 %v518_v27  ;;  %v12629_v26 = vld [vmem:[%s12459_s14 + $0xe0] sm:$0xff] }
  0x31   : > { %528 = vadd.xlane.f32.xlu1 %v527_v30  ;;  %525 = vadd.xlane.f32.xlu0 %v524_v31 }
  0x35   : > { %534 = vadd.xlane.f32.xlu1 %v533_v34  ;;  %531 = vadd.xlane.f32.xlu0 %v530_v35 }
  0x39   : > { %540 = vadd.xlane.f32.xlu1 %v539_v38  ;;  %537 = vadd.xlane.f32.xlu0 %v536_v39  ;;  %v566_v39 = vsel %vm481_vm0, %v12629_v26, 0.0 }
  0x3d   : > { %546 = vadd.xlane.f32.xlu1 %v545_v42  ;;  %543 = vadd.xlane.f32.xlu0 %v542_v43 }
  0x41   : > { %552 = vadd.xlane.f32.xlu1 %v551_v46  ;;  %549 = vadd.xlane.f32.xlu0 %v548_v47 }
  0x45   : > { %558 = vadd.xlane.f32.xlu1 %v557_v50  ;;  %555 = vadd.xlane.f32.xlu0 %v554_v51 }
  0x49   : > { %561 = vadd.xlane.f32.xlu1 %v560_v53 }
  0x4d   : > { %564 = vadd.xlane.f32.xlu1 %v563_v55 }
  0x51   : > { %570 = vadd.xlane.f32.xlu1 %v569_v57 }
  0xa2   : > { %v490_v58 = vpop.xlane.xlu1 %489  ;;  %v484_v59 = vpop.xlane.xlu0 %483 }
  0xa3   : > { %v579_v60 = vmul.f32 0.125, %v484_v59  ;;  %v581_v3 = vmul.f32 0.125, %v490_v58  ;;  %v12655_v59 = vld [vmem:[%s12459_s14 + $0xf0] sm:$0xff] }
  0xa5   : > { %v12607_v61 = vsub.f32 %v12465_v1, %v579_v60  ;;  %v12619_v18 = vsub.f32 %v12462_v0, %v581_v3 }
  0xa6   : > { %v493_v62 = vpop.xlane.xlu1 %492  ;;  %v487_v63 = vpop.xlane.xlu0 %486 }
  0xa7   : > { %v582_v4 = vmul.f32 0.125, %v493_v62  ;;  %v580_v6 = vmul.f32 0.125, %v487_v63  ;;  %v643_v7 = vmul.f32 %v12607_v61, %v12607_v61  ;;  %v645_v42 = vmul.f32 %v12619_v18, %v12619_v18 }
  0xa9   : > { %v12612_v10 = vsub.f32 %v12468_v2, %v582_v4  ;;  %v12615_v11 = vsub.f32 %v12475_v5, %v580_v6  ;;  %v675_v14 = vsel %vm481_vm0, %v643_v7, 0.0  ;;  %v12626_v2 = vld [vmem:[%s12459_s14 + $0xf8] sm:$0xff]  ;;  %v681_v57 = vsel %vm481_vm0, %v645_v42, 0.0 }
  0xaa   : > { %v499_v1 = vpop.xlane.xlu1 %498  ;;  %676 = vadd.xlane.f32.xlu0 %v675_v14  ;;  %v496_v15 = vpop.xlane.xlu0 %495  ;;  %v575_v31 = vsel %vm481_vm0, %v12626_v2, 0.0  ;;  %v572_v7 = vsel %vm481_vm0, %v12655_v59, 0.0 }
  0xab   : > { %v584_v19 = vmul.f32 0.125, %v499_v1  ;;  %v646_v22 = vmul.f32 %v12612_v10, %v12612_v10  ;;  %v644_v23 = vmul.f32 %v12615_v11, %v12615_v11  ;;  %v583_v34 = vmul.f32 0.125, %v496_v15 }
  0xad   : > { %v12632_v5 = vsub.f32 %v12482_v8, %v584_v19  ;;  %v684_v27 = vsel %vm481_vm0, %v646_v22, 0.0  ;;  %v678_v30 = vsel %vm481_vm0, %v644_v23, 0.0  ;;  %v12648_v47 = vsub.f32 %v12485_v9, %v583_v34 }
  0xae   : > { %685 = vadd.xlane.f32.xlu1 %v684_v27  ;;  %v505_v0 = vpop.xlane.xlu1 %504  ;;  %679 = vadd.xlane.f32.xlu0 %v678_v30  ;;  %v502_v35 = vpop.xlane.xlu0 %501 }
  0xaf   : > { %v586_v38 = vmul.f32 0.125, %v505_v0  ;;  %v648_v8 = vmul.f32 %v12632_v5, %v12632_v5  ;;  %v585_v50 = vmul.f32 0.125, %v502_v35  ;;  %v647_v62 = vmul.f32 %v12648_v47, %v12648_v47 }
  0xb1   : > { %v12645_v43 = vsub.f32 %v12492_v12, %v586_v38  ;;  %v690_v55 = vsel %vm481_vm0, %v648_v8, 0.0  ;;  %v12661_v9 = vsub.f32 %v12495_v13, %v585_v50  ;;  %v687_v1 = vsel %vm481_vm0, %v647_v62, 0.0 }
  0xb2   : > { %576 = vadd.xlane.f32.xlu1 %v575_v31  ;;  %v511_v46 = vpop.xlane.xlu1 %510  ;;  %567 = vadd.xlane.f32.xlu0 %v566_v39  ;;  %v508_v51 = vpop.xlane.xlu0 %507 }
  0xb3   : > { %v588_v53 = vmul.f32 0.125, %v511_v46  ;;  %v650_v58 = vmul.f32 %v12645_v43, %v12645_v43  ;;  %v587_v63 = vmul.f32 0.125, %v508_v51  ;;  %v649_v19 = vmul.f32 %v12661_v9, %v12661_v9 }
  0xb5   : > { %v12658_v12 = vsub.f32 %v12502_v16, %v588_v53  ;;  %v696_v6 = vsel %vm481_vm0, %v650_v58, 0.0  ;;  %v12675_v15 = vsub.f32 %v12505_v17, %v587_v63  ;;  %v693_v17 = vsel %vm481_vm0, %v649_v19, 0.0 }
  0xb6   : > { %691 = vadd.xlane.f32.xlu1 %v690_v55  ;;  %v517_v60 = vpop.xlane.xlu1 %516  ;;  %682 = vadd.xlane.f32.xlu0 %v681_v57  ;;  %v514_v3 = vpop.xlane.xlu0 %513 }
  0xb7   : > { %v590_v4 = vmul.f32 0.125, %v517_v60  ;;  %v652_v16 = vmul.f32 %v12658_v12, %v12658_v12  ;;  %v651_v34 = vmul.f32 %v12675_v15, %v12675_v15 }
  0xb9   : > { %v12671_v14 = vsub.f32 %v12512_v20, %v590_v4  ;;  %v702_v27 = vsel %vm481_vm0, %v652_v16, 0.0  ;;  %v589_v20 = vmul.f32 0.125, %v514_v3  ;;  %v699_v51 = vsel %vm481_vm0, %v651_v34, 0.0 }
  0xba   : > { %697 = vadd.xlane.f32.xlu1 %v696_v6  ;;  %v523_v13 = vpop.xlane.xlu1 %522  ;;  %573 = vadd.xlane.f32.xlu0 %v572_v7  ;;  %v520_v22 = vpop.xlane.xlu0 %519 }
  0xbb   : > { %v592_v23 = vmul.f32 0.125, %v523_v13  ;;  %v654_v30 = vmul.f32 %v12671_v14, %v12671_v14  ;;  %v591_v35 = vmul.f32 0.125, %v520_v22  ;;  %v12690_v42 = vsub.f32 %v12515_v21, %v589_v20 }
  0xbd   : > { %v12683_v0 = vsub.f32 %v12522_v24, %v592_v23  ;;  %v708_v8 = vsel %vm481_vm0, %v654_v30, 0.0  ;;  %v12699_v53 = vsub.f32 %v12525_v25, %v591_v35 }
  0xbe   : > { %703 = vadd.xlane.f32.xlu1 %v702_v27  ;;  %v529_v31 = vpop.xlane.xlu1 %528  ;;  %688 = vadd.xlane.f32.xlu0 %v687_v1  ;;  %v526_v38 = vpop.xlane.xlu0 %525 }
  0xbf   : > { %v594_v39 = vmul.f32 0.125, %v529_v31  ;;  %v656_v24 = vmul.f32 %v12683_v0, %v12683_v0  ;;  %v593_v55 = vmul.f32 0.125, %v526_v38  ;;  %v655_v3 = vmul.f32 %v12699_v53, %v12699_v53 }
  0xc1   : > { %v12695_v46 = vsub.f32 %v12532_v28, %v594_v39  ;;  %v714_v21 = vsel %vm481_vm0, %v656_v24, 0.0  ;;  %v653_v28 = vmul.f32 %v12690_v42, %v12690_v42  ;;  %v12710_v25 = vsub.f32 %v12535_v29, %v593_v55 }
  0xc2   : > { %709 = vadd.xlane.f32.xlu1 %v708_v8  ;;  %v535_v50 = vpop.xlane.xlu1 %534  ;;  %694 = vadd.xlane.f32.xlu0 %v693_v17  ;;  %v532_v57 = vpop.xlane.xlu0 %531  ;;  %v711_v29 = vsel %vm481_vm0, %v655_v3, 0.0 }
  0xc3   : > { %v596_v58 = vmul.f32 0.125, %v535_v50  ;;  %v658_v60 = vmul.f32 %v12695_v46, %v12695_v46  ;;  %v595_v4 = vmul.f32 0.125, %v532_v57  ;;  %v705_v13 = vsel %vm481_vm0, %v653_v28, 0.0 }
  0xc4   : > { %v657_v23 = vmul.f32 %v12710_v25, %v12710_v25 }
  0xc5   : > { %v12707_v62 = vsub.f32 %v12542_v32, %v596_v58  ;;  %v720_v16 = vsel %vm481_vm0, %v658_v60, 0.0  ;;  %v12723_v22 = vsub.f32 %v12545_v33, %v595_v4 }
  0xc6   : > { %715 = vadd.xlane.f32.xlu1 %v714_v21  ;;  %v541_v63 = vpop.xlane.xlu1 %540  ;;  %700 = vadd.xlane.f32.xlu0 %v699_v51  ;;  %v538_v6 = vpop.xlane.xlu0 %537  ;;  %v717_v33 = vsel %vm481_vm0, %v657_v23, 0.0  ;;  %v977_v51 = vld [vmem:[%s15654_s3] sm:$0xff] }
  0xc7   : > { %v598_v7 = vmul.f32 0.125, %v541_v63  ;;  %v660_v32 = vmul.f32 %v12707_v62, %v12707_v62  ;;  %v659_v35 = vmul.f32 %v12723_v22, %v12723_v22  ;;  %10561 = vmatprep.subr.mxu0 %v977_v51 }
  0xc8   : > { %10562 = vmatpush3.msra.mxu0 %v977_v51 }
  0xc9   : > { %v12719_v1 = vsub.f32 %v12552_v36, %v598_v7  ;;  %v726_v20 = vsel %vm481_vm0, %v660_v32, 0.0  ;;  %v597_v36 = vmul.f32 0.125, %v538_v6  ;;  %v723_v58 = vsel %vm481_vm0, %v659_v35, 0.0 }
  0xca   : > { %721 = vadd.xlane.f32.xlu1 %v720_v16  ;;  %v547_v19 = vpop.xlane.xlu1 %546  ;;  %706 = vadd.xlane.f32.xlu0 %v705_v13  ;;  %v544_v27 = vpop.xlane.xlu0 %543 }
  0xcb   : > { %v600_v30 = vmul.f32 0.125, %v547_v19  ;;  %v662_v31 = vmul.f32 %v12719_v1, %v12719_v1  ;;  %v599_v38 = vmul.f32 0.125, %v544_v27  ;;  %v12738_v50 = vsub.f32 %v12555_v37, %v597_v36 }
  0xcd   : > { %v12731_v17 = vsub.f32 %v12562_v40, %v600_v30  ;;  %v732_v24 = vsel %vm481_vm0, %v662_v31, 0.0  ;;  %v12750_v37 = vsub.f32 %v12565_v41, %v599_v38 }
  0xce   : > { %727 = vadd.xlane.f32.xlu1 %v726_v20  ;;  %v553_v34 = vpop.xlane.xlu1 %552  ;;  %712 = vadd.xlane.f32.xlu0 %v711_v29  ;;  %v550_v39 = vpop.xlane.xlu0 %549 }
  0xcf   : > { %v602_v8 = vmul.f32 0.125, %v553_v34  ;;  %v664_v40 = vmul.f32 %v12731_v17, %v12731_v17  ;;  %v601_v21 = vmul.f32 0.125, %v550_v39  ;;  %v663_v7 = vmul.f32 %v12750_v37, %v12750_v37 }
  0xd1   : > { %v12746_v55 = vsub.f32 %v12572_v44, %v602_v8  ;;  %v738_v28 = vsel %vm481_vm0, %v664_v40, 0.0  ;;  %v661_v44 = vmul.f32 %v12738_v50, %v12738_v50  ;;  %v12761_v41 = vsub.f32 %v12575_v45, %v601_v21 }
  0xd2   : > { %733 = vadd.xlane.f32.xlu1 %v732_v24  ;;  %v559_v57 = vpop.xlane.xlu1 %558  ;;  %718 = vadd.xlane.f32.xlu0 %v717_v33  ;;  %v556_v3 = vpop.xlane.xlu0 %555  ;;  %v735_v29 = vsel %vm481_vm0, %v663_v7, 0.0 }
  0xd3   : > { %v604_v60 = vmul.f32 0.125, %v559_v57  ;;  %v666_v63 = vmul.f32 %v12746_v55, %v12746_v55  ;;  %v729_v13 = vsel %vm481_vm0, %v661_v44, 0.0  ;;  %v603_v19 = vmul.f32 0.125, %v556_v3 }
  0xd4   : > { %v665_v45 = vmul.f32 %v12761_v41, %v12761_v41 }
  0xd5   : > { %v12758_v4 = vsub.f32 %v12582_v48, %v604_v60  ;;  %v744_v16 = vsel %vm481_vm0, %v666_v63, 0.0  ;;  %v12774_v20 = vsub.f32 %v12585_v49, %v603_v19 }
  0xd6   : > { %739 = vadd.xlane.f32.xlu1 %v738_v28  ;;  %v562_v6 = vpop.xlane.xlu1 %561  ;;  %724 = vadd.xlane.f32.xlu0 %v723_v58  ;;  %v741_v34 = vsel %vm481_vm0, %v665_v45, 0.0 }
  0xd7   : > { %v668_v32 = vmul.f32 %v12758_v4, %v12758_v4  ;;  %v605_v23 = vmul.f32 0.125, %v562_v6  ;;  %v667_v39 = vmul.f32 %v12774_v20, %v12774_v20 }
  0xd9   : > { %v750_v30 = vsel %vm481_vm0, %v668_v32, 0.0  ;;  %v12781_v33 = vsub.f32 %v12592_v52, %v605_v23  ;;  %v747_v52 = vsel %vm481_vm0, %v667_v39, 0.0 }
  0xda   : > { %745 = vadd.xlane.f32.xlu1 %v744_v16  ;;  %v565_v48 = vpop.xlane.xlu1 %564  ;;  %730 = vadd.xlane.f32.xlu0 %v729_v13 }
  0xdb   : > { %v606_v27 = vmul.f32 0.125, %v565_v48  ;;  %v669_v24 = vmul.f32 %v12781_v33, %v12781_v33 }
  0xdd   : > { %v12777_v31 = vsub.f32 %v12597_v54, %v606_v27  ;;  %v753_v51 = vsel %vm481_vm0, %v669_v24, 0.0 }
  0xde   : > { %751 = vadd.xlane.f32.xlu1 %v750_v30  ;;  %v571_v36 = vpop.xlane.xlu1 %570  ;;  %736 = vadd.xlane.f32.xlu0 %v735_v29 }
  0xdf   : > { %v608_v35 = vmul.f32 0.125, %v571_v36  ;;  %v670_v38 = vmul.f32 %v12777_v31, %v12777_v31 }
  0xe1   : > { %v12788_v49 = vsub.f32 %v12602_v56, %v608_v35  ;;  %v756_v54 = vsel %vm481_vm0, %v670_v38, 0.0 }
  0xe2   : > { %757 = vadd.xlane.f32.xlu1 %v756_v54  ;;  %742 = vadd.xlane.f32.xlu0 %v741_v34 }
  0xe3   : > { %v672_v8 = vmul.f32 %v12788_v49, %v12788_v49 }
  0xe5   : > { %v762_v40 = vsel %vm481_vm0, %v672_v8, 0.0 }
  0xe6   : > { %763 = vadd.xlane.f32.xlu1 %v762_v40  ;;  %748 = vadd.xlane.f32.xlu0 %v747_v52  ;;  %v12819_v40 = vld [vmem:[%s15653_s2] ss:$0 sm:$0xff] }
  0xea   : > { %754 = vadd.xlane.f32.xlu0 %v753_v51 }
 0x137   : > { %v677_v56 = vpop.xlane.xlu0 %676 }
 0x138   : > { %v771_v57 = vmul.f32 0.125, %v677_v56 }
 0x13a   : > { %v803_v58 = vadd.f32 1e-05, %v771_v57 }
 0x13b   : > { %v686_v21 = vpop.xlane.xlu1 %685  ;;  %v680_v60 = vpop.xlane.xlu0 %679 }
 0x13c   : > { %11879 = vrsqrt.f32 %v803_v58  ;;  %v774_v28 = vmul.f32 0.125, %v686_v21  ;;  %v772_v63 = vmul.f32 0.125, %v680_v60 }
 0x13e   : > { %v804_v44 = vadd.f32 1e-05, %v772_v63  ;;  %v806_v3 = vadd.f32 1e-05, %v774_v28 }
 0x13f   : > { %v577_v6 = vpop.xlane.xlu1 %576  ;;  %v568_v7 = vpop.xlane.xlu0 %567 }
 0x140   : > { %v610_v16 = vmul.f32 0.125, %v577_v6  ;;  %v607_v13 = vmul.f32 0.125, %v568_v7  ;;  %11881 = vrsqrt.f32 %v804_v44 }
 0x141   : > { %11883 = vrsqrt.f32 %v806_v3 }
 0x142   : > { %v12799_v32 = vsub.f32 %v12626_v2, %v610_v16  ;;  %v12802_v19 = vsub.f32 %v12629_v26, %v607_v13  ;;  %v12813_v26 = vld [vmem:[%s15652_s1] ss:$0 sm:$0xff] }
 0x143   : > { %v692_v48 = vpop.xlane.xlu1 %691  ;;  %v683_v29 = vpop.xlane.xlu0 %682 }
 0x144   : > { %v776_v45 = vmul.f32 0.125, %v692_v48  ;;  %v773_v23 = vmul.f32 0.125, %v683_v29  ;;  %v674_v27 = vmul.f32 %v12799_v32, %v12799_v32  ;;  %v671_v30 = vmul.f32 %v12802_v19, %v12802_v19 }
 0x146   : > { %v11880_v36 = vpop.eup %11879  ;;  %v805_v34 = vadd.f32 1e-05, %v773_v23  ;;  %v768_v35 = vsel %vm481_vm0, %v674_v27, 0.0  ;;  %v759_v2 = vsel %vm481_vm0, %v671_v30, 0.0  ;;  %v808_v38 = vadd.f32 1e-05, %v776_v45 }
 0x147   : > { %769 = vadd.xlane.f32.xlu1 %v768_v35  ;;  %v698_v39 = vpop.xlane.xlu1 %697  ;;  %760 = vadd.xlane.f32.xlu0 %v759_v2  ;;  %v574_v54 = vpop.xlane.xlu0 %573  ;;  %v867_v8 = vmul.f32 %v11880_v36, %v12607_v61 }
 0x148   : > { %v778_v52 = vmul.f32 0.125, %v698_v39  ;;  %v609_v24 = vmul.f32 0.125, %v574_v54  ;;  %11885 = vrsqrt.f32 %v805_v34 }
 0x149   : > { %v906_v51 = vmul.f32 %v12813_v26, %v867_v8  ;;  %11887 = vrsqrt.f32 %v808_v38 }
 0x14a   : > { %v12823_v56 = vsub.f32 %v12655_v59, %v609_v24  ;;  %v11882_v57 = vpop.eup %11881  ;;  %v810_v61 = vadd.f32 1e-05, %v778_v52 }
 0x14b   : > { %v704_v58 = vpop.xlane.xlu1 %703  ;;  %v689_v21 = vpop.xlane.xlu0 %688  ;;  %v945_v60 = vadd.f32 %v12819_v40, %v906_v51  ;;  %v868_v6 = vmul.f32 %v11882_v57, %v12615_v11 }
 0x14c   : > { %v780_v28 = vmul.f32 0.125, %v704_v58  ;;  %v775_v63 = vmul.f32 0.125, %v689_v21  ;;  %v673_v44 = vmul.f32 %v12823_v56, %v12823_v56  ;;  %v11884_v3 = vpop.eup %11883  ;;  %11889 = vrsqrt.f32 %v810_v61 }
 0x14d   : > { %10563 = vmatprep.mubr.msk.f32.mxu0 %vm481_vm0, %v945_v60  ;;  %v907_v48 = vmul.f32 %v12813_v26, %v868_v6  ;;  %v870_v30 = vmul.f32 %v11884_v3, %v12612_v10 }
 0x14e   : > { %v807_v7 = vadd.f32 1e-05, %v775_v63  ;;  %v765_v59 = vsel %vm481_vm0, %v673_v44, 0.0  ;;  %v812_v29 = vadd.f32 1e-05, %v780_v28 }
 0x14f   : > { %v710_v16 = vpop.xlane.xlu1 %709  ;;  %766 = vadd.xlane.f32.xlu0 %v765_v59  ;;  %v695_v13 = vpop.xlane.xlu0 %694  ;;  %v946_v27 = vadd.f32 %v12819_v40, %v907_v48  ;;  %v909_v52 = vmul.f32 %v12813_v26, %v870_v30 }
 0x150   : > { %v782_v45 = vmul.f32 0.125, %v710_v16  ;;  %v777_v23 = vmul.f32 0.125, %v695_v13  ;;  %11891 = vrsqrt.f32 %v807_v7 }
 0x151   : > { %10564 = vmatmul.mubr.msk.f32.vlgmr.msra.gmra.mrb[0].mxu0 %vm481_vm0, %v946_v27  ;;  %11893 = vrsqrt.f32 %v812_v29  ;;  %v948_v28 = vadd.f32 %v12819_v40, %v909_v52 }
 0x152   : > { %v809_v36 = vadd.f32 1e-05, %v777_v23  ;;  %v11886_v34 = vpop.eup %11885  ;;  %v814_v11 = vadd.f32 1e-05, %v782_v45 }
 0x153   : > { %v716_v35 = vpop.xlane.xlu1 %715  ;;  %v701_v2 = vpop.xlane.xlu0 %700  ;;  %v869_v54 = vmul.f32 %v11886_v34, %v12619_v18 }
 0x154   : > { %v784_v38 = vmul.f32 0.125, %v716_v35  ;;  %v779_v39 = vmul.f32 0.125, %v701_v2  ;;  %v11888_v8 = vpop.eup %11887  ;;  %11895 = vrsqrt.f32 %v809_v36 }
 0x155   : > { %v908_v51 = vmul.f32 %v12813_v26, %v869_v54  ;;  %11897 = vrsqrt.f32 %v814_v11  ;;  %v872_v18 = vmul.f32 %v11888_v8, %v12632_v5 }
 0x156   : > { %v811_v24 = vadd.f32 1e-05, %v779_v39  ;;  %v816_v58 = vadd.f32 1e-05, %v784_v38  ;;  %v11890_v63 = vpop.eup %11889 }
 0x157   : > { %v722_v10 = vpop.xlane.xlu1 %721  ;;  %v707_v57 = vpop.xlane.xlu0 %706  ;;  %v947_v61 = vadd.f32 %v12819_v40, %v908_v51  ;;  %v911_v29 = vmul.f32 %v12813_v26, %v872_v18  ;;  %v874_v27 = vmul.f32 %v11890_v63, %v12645_v43 }
 0x158   : > { %v786_v21 = vmul.f32 0.125, %v722_v10  ;;  %v781_v60 = vmul.f32 0.125, %v707_v57  ;;  %11899 = vrsqrt.f32 %v811_v24 }
 0x159   : > { %10566 = vmatprep.mubr.msk.f32.mxu0 %vm481_vm0, %v947_v61  ;;  %11901 = vrsqrt.f32 %v816_v58  ;;  %v913_v43 = vmul.f32 %v12813_v26, %v874_v27 }
 0x15a   : > { %v813_v44 = vadd.f32 1e-05, %v781_v60  ;;  %v11892_v3 = vpop.eup %11891  ;;  %v818_v6 = vadd.f32 1e-05, %v786_v21  ;;  %10567 = vmatmul.mubr.msk.f32.gmra.mrb[2].mxu0 %vm481_vm0, %v948_v28 }
 0x15b   : > { %v728_v7 = vpop.xlane.xlu1 %727  ;;  %v713_v59 = vpop.xlane.xlu0 %712  ;;  %v871_v48 = vmul.f32 %v11892_v3, %v12648_v47  ;;  %v950_v47 = vadd.f32 %v12819_v40, %v911_v29  ;;  %v952_v63 = vadd.f32 %v12819_v40, %v913_v43 }
 0x15c   : > { %v788_v16 = vmul.f32 0.125, %v728_v7  ;;  %v783_v13 = vmul.f32 0.125, %v713_v59  ;;  %11903 = vrsqrt.f32 %v813_v44  ;;  %v11894_v45 = vpop.eup %11893 }
 0x15d   : > { %v910_v23 = vmul.f32 %v12813_v26, %v871_v48  ;;  %11905 = vrsqrt.f32 %v818_v6  ;;  %v876_v52 = vmul.f32 %v11894_v45, %v12658_v12 }
 0x15e   : > { %v815_v5 = vadd.f32 1e-05, %v783_v13  ;;  %v11896_v30 = vpop.eup %11895  ;;  %v820_v11 = vadd.f32 1e-05, %v788_v16 }
 0x15f   : > { %v734_v36 = vpop.xlane.xlu1 %733  ;;  %v719_v34 = vpop.xlane.xlu0 %718  ;;  %v949_v38 = vadd.f32 %v12819_v40, %v910_v23  ;;  %v873_v54 = vmul.f32 %v11896_v30, %v12661_v9  ;;  %v915_v3 = vmul.f32 %v12813_v26, %v876_v52 }
 0x160   : > { %v790_v35 = vmul.f32 0.125, %v734_v36  ;;  %v785_v2 = vmul.f32 0.125, %v719_v34  ;;  %v11898_v39 = vpop.eup %11897  ;;  %11907 = vrsqrt.f32 %v815_v5 }
 0x161   : > { %10569 = vmatprep.mubr.msk.f32.mxu0 %vm481_vm0, %v949_v38  ;;  %v912_v58 = vmul.f32 %v12813_v26, %v873_v54  ;;  %11909 = vrsqrt.f32 %v820_v11  ;;  %v878_v28 = vmul.f32 %v11898_v39, %v12671_v14  ;;  %v954_v23 = vadd.f32 %v12819_v40, %v915_v3 }
 0x162   : > { %v817_v8 = vadd.f32 1e-05, %v785_v2  ;;  %v11900_v24 = vpop.eup %11899  ;;  %v822_v51 = vadd.f32 1e-05, %v790_v35  ;;  %10570 = vmatmul.mubr.msk.f32.gmra.mrb[4].mxu0 %vm481_vm0, %v950_v47 }
 0x163   : > { %v740_v10 = vpop.xlane.xlu1 %739  ;;  %v725_v57 = vpop.xlane.xlu0 %724  ;;  %v875_v9 = vmul.f32 %v11900_v24, %v12675_v15  ;;  %v951_v61 = vadd.f32 %v12819_v40, %v912_v58  ;;  %v917_v45 = vmul.f32 %v12813_v26, %v878_v28 }
 0x164   : > { %v792_v21 = vmul.f32 0.125, %v740_v10  ;;  %v787_v60 = vmul.f32 0.125, %v725_v57  ;;  %11911 = vrsqrt.f32 %v817_v8  ;;  %v11902_v18 = vpop.eup %11901 }
 0x165   : > { %v914_v44 = vmul.f32 %v12813_v26, %v875_v9  ;;  %11913 = vrsqrt.f32 %v822_v51  ;;  %10572 = vmatprep.mubr.msk.f32.mxu0 %vm481_vm0, %v951_v61  ;;  %v880_v27 = vmul.f32 %v11902_v18, %v12683_v0  ;;  %v956_v47 = vadd.f32 %v12819_v40, %v917_v45 }
 0x166   : > { %v819_v12 = vadd.f32 1e-05, %v787_v60  ;;  %v11904_v6 = vpop.eup %11903  ;;  %v824_v15 = vadd.f32 1e-05, %v792_v21  ;;  %10573 = vmatmul.mubr.msk.f32.gmra.mrb[6].mxu0 %vm481_vm0, %v952_v63 }
 0x167   : > { %v746_v7 = vpop.xlane.xlu1 %745  ;;  %v731_v59 = vpop.xlane.xlu0 %730  ;;  %v953_v14 = vadd.f32 %v12819_v40, %v914_v44  ;;  %v877_v29 = vmul.f32 %v11904_v6, %v12690_v42  ;;  %v919_v43 = vmul.f32 %v12813_v26, %v880_v27 }
 0x168   : > { %v794_v16 = vmul.f32 0.125, %v746_v7  ;;  %v789_v13 = vmul.f32 0.125, %v731_v59  ;;  %v11906_v48 = vpop.eup %11905  ;;  %11915 = vrsqrt.f32 %v819_v12 }
 0x169   : > { %10575 = vmatprep.mubr.msk.f32.mxu0 %vm481_vm0, %v953_v14  ;;  %v916_v35 = vmul.f32 %v12813_v26, %v877_v29  ;;  %11917 = vrsqrt.f32 %v824_v15  ;;  %v882_v52 = vmul.f32 %v11906_v48, %v12695_v46  ;;  %v958_v28 = vadd.f32 %v12819_v40, %v919_v43 }
 0x16a   : > { %v821_v5 = vadd.f32 1e-05, %v789_v13  ;;  %v11908_v30 = vpop.eup %11907  ;;  %v826_v36 = vadd.f32 1e-05, %v794_v16  ;;  %10576 = vmatmul.mubr.msk.f32.gmra.mrb[8].mxu0 %vm481_vm0, %v954_v23 }
 0x16b   : > { %v752_v34 = vpop.xlane.xlu1 %751  ;;  %v737_v11 = vpop.xlane.xlu0 %736  ;;  %v879_v38 = vmul.f32 %v11908_v30, %v12699_v53  ;;  %v955_v39 = vadd.f32 %v12819_v40, %v916_v35  ;;  %v921_v18 = vmul.f32 %v12813_v26, %v882_v52 }
 0x16c   : > { %v796_v2 = vmul.f32 0.125, %v752_v34  ;;  %v791_v42 = vmul.f32 0.125, %v737_v11  ;;  %11919 = vrsqrt.f32 %v821_v5  ;;  %v11910_v54 = vpop.eup %11909 }
 0x16d   : > { %v918_v8 = vmul.f32 %v12813_v26, %v879_v38  ;;  %11921 = vrsqrt.f32 %v826_v36  ;;  %10578 = vmatprep.mubr.msk.f32.mxu0 %vm481_vm0, %v955_v39  ;;  %v884_v61 = vmul.f32 %v11910_v54, %v12707_v62  ;;  %v960_v16 = vadd.f32 %v12819_v40, %v921_v18 }
 0x16e   : > { %v823_v0 = vadd.f32 1e-05, %v791_v42  ;;  %v11912_v24 = vpop.eup %11911  ;;  %v828_v53 = vadd.f32 1e-05, %v796_v2  ;;  %10579 = vmatmul.mubr.msk.f32.gmra.mrb[10].mxu0 %vm481_vm0, %v956_v47 }
 0x16f   : > { %v758_v51 = vpop.xlane.xlu1 %757  ;;  %v743_v10 = vpop.xlane.xlu0 %742  ;;  %v957_v21 = vadd.f32 %v12819_v40, %v918_v8  ;;  %v881_v9 = vmul.f32 %v11912_v24, %v12710_v25  ;;  %v923_v7 = vmul.f32 %v12813_v26, %v884_v61 }
 0x170   : > { %v798_v57 = vmul.f32 0.125, %v758_v51  ;;  %v793_v58 = vmul.f32 0.125, %v743_v10  ;;  %v11914_v60 = vpop.eup %11913  ;;  %11923 = vrsqrt.f32 %v823_v0 }
 0x171   : > { %10581 = vmatprep.mubr.msk.f32.mxu0 %vm481_vm0, %v957_v21  ;;  %v920_v44 = vmul.f32 %v12813_v26, %v881_v9  ;;  %11925 = vrsqrt.f32 %v828_v53  ;;  %v886_v14 = vmul.f32 %v11914_v60, %v12719_v1  ;;  %v962_v27 = vadd.f32 %v12819_v40, %v923_v7 }
 0x172   : > { %v825_v46 = vadd.f32 1e-05, %v793_v58  ;;  %v11916_v12 = vpop.eup %11915  ;;  %v830_v3 = vadd.f32 1e-05, %v798_v57  ;;  %10582 = vmatmul.mubr.msk.f32.gmra.mrb[12].mxu0 %vm481_vm0, %v958_v28 }
 0x173   : > { %v749_v63 = vpop.xlane.xlu0 %748  ;;  %v883_v25 = vmul.f32 %v11916_v12, %v12723_v22  ;;  %v959_v62 = vadd.f32 %v12819_v40, %v920_v44  ;;  %v11918_v59 = vpop.eup %11917  ;;  %v925_v36 = vmul.f32 %v12813_v26, %v886_v14 }
 0x174   : > { %v795_v6 = vmul.f32 0.125, %v749_v63  ;;  %11927 = vrsqrt.f32 %v825_v46  ;;  %v888_v34 = vmul.f32 %v11918_v59, %v12731_v17 }
 0x175   : > { %v922_v13 = vmul.f32 %v12813_v26, %v883_v25  ;;  %10584 = vmatprep.mubr.msk.f32.mxu0 %vm481_vm0, %v959_v62  ;;  %11929 = vrsqrt.f32 %v830_v3  ;;  %v964_v42 = vadd.f32 %v12819_v40, %v925_v36 }
 0x176   : > { %v827_v15 = vadd.f32 1e-05, %v795_v6  ;;  %v11920_v48 = vpop.eup %11919  ;;  %10585 = vmatmul.mubr.msk.f32.gmra.mrb[14].mxu0 %vm481_vm0, %v960_v16  ;;  %v927_v39 = vmul.f32 %v12813_v26, %v888_v34 }
 0x177   : > { %v755_v29 = vpop.xlane.xlu0 %754  ;;  %v961_v45 = vadd.f32 %v12819_v40, %v922_v13  ;;  %v885_v5 = vmul.f32 %v11920_v48, %v12738_v50  ;;  %v11922_v23 = vpop.eup %11921 }
 0x178   : > { %v797_v22 = vmul.f32 0.125, %v755_v29  ;;  %11931 = vrsqrt.f32 %v827_v15  ;;  %v890_v47 = vmul.f32 %v11922_v23, %v12746_v55 }
 0x179   : > { %10587 = vmatprep.mubr.msk.f32.mxu0 %vm481_vm0, %v961_v45  ;;  %v924_v1 = vmul.f32 %v12813_v26, %v885_v5 }
 0x17a   : > { %v829_v30 = vadd.f32 1e-05, %v797_v22  ;;  %v11924_v11 = vpop.eup %11923  ;;  %10588 = vmatmul.mubr.msk.f32.gmra.mrb[16].mxu0 %vm481_vm0, %v962_v27  ;;  %v929_v52 = vmul.f32 %v12813_v26, %v890_v47 }
 0x17b   : > { %v963_v35 = vadd.f32 %v12819_v40, %v924_v1  ;;  %v887_v50 = vmul.f32 %v11924_v11, %v12750_v37  ;;  %v11926_v2 = vpop.eup %11925  ;;  %v966_v37 = vadd.f32 %v12819_v40, %v927_v39 }
 0x17c   : > { %11933 = vrsqrt.f32 %v829_v30  ;;  %v892_v24 = vmul.f32 %v11926_v2, %v12758_v4 }
 0x17d   : > { %10590 = vmatprep.mubr.msk.f32.mxu0 %vm481_vm0, %v963_v35  ;;  %v926_v38 = vmul.f32 %v12813_v26, %v887_v50 }
 0x17e   : > { %v11928_v17 = vpop.eup %11927  ;;  %10591 = vmatmul.mubr.msk.f32.gmra.mrb[18].mxu0 %vm481_vm0, %v964_v42  ;;  %v931_v58 = vmul.f32 %v12813_v26, %v892_v24 }
 0x17f   : > { %v965_v54 = vadd.f32 %v12819_v40, %v926_v38  ;;  %v889_v0 = vmul.f32 %v11928_v17, %v12761_v41  ;;  %v11930_v8 = vpop.eup %11929  ;;  %v968_v41 = vadd.f32 %v12819_v40, %v929_v52 }
 0x180   : > { %v894_v21 = vmul.f32 %v11930_v8, %v12777_v31 }
 0x181   : > { %10593 = vmatprep.mubr.msk.f32.mxu0 %vm481_vm0, %v965_v54  ;;  %v928_v43 = vmul.f32 %v12813_v26, %v889_v0 }
 0x182   : > { %v11932_v51 = vpop.eup %11931  ;;  %10594 = vmatmul.mubr.msk.f32.gmra.mrb[20].mxu0 %vm481_vm0, %v966_v37  ;;  %v933_v61 = vmul.f32 %v12813_v26, %v894_v21 }
 0x183   : > { %v967_v55 = vadd.f32 %v12819_v40, %v928_v43  ;;  %v891_v10 = vmul.f32 %v11932_v51, %v12774_v20  ;;  %v970_v20 = vadd.f32 %v12819_v40, %v931_v58 }
 0x184   : > { %v972_v31 = vadd.f32 %v12819_v40, %v933_v61 }
 0x185   : > { %10596 = vmatprep.mubr.msk.f32.mxu0 %vm481_vm0, %v967_v55  ;;  %v930_v57 = vmul.f32 %v12813_v26, %v891_v10 }
 0x186   : > { %v11934_v53 = vpop.eup %11933  ;;  %10597 = vmatmul.mubr.msk.f32.gmra.mrb[22].mxu0 %vm481_vm0, %v968_v41 }
 0x187   : > { %v893_v4 = vmul.f32 %v11934_v53, %v12781_v33  ;;  %v969_v60 = vadd.f32 %v12819_v40, %v930_v57  ;;  %v764_v33 = vpop.xlane.xlu1 %763 }
 0x188   : > { %v800_v28 = vmul.f32 0.125, %v764_v33 }
 0x189   : > { %v932_v9 = vmul.f32 %v12813_v26, %v893_v4  ;;  %10599 = vmatprep.mubr.msk.f32.mxu0 %vm481_vm0, %v969_v60 }
 0x18a   : > { %10600 = vmatmul.mubr.msk.f32.gmra.mrb[24].mxu0 %vm481_vm0, %v970_v20  ;;  %v832_v18 = vadd.f32 1e-05, %v800_v28 }
 0x18b   : > { %v971_v46 = vadd.f32 %v12819_v40, %v932_v9 }
 0x18c   : > { %11935 = vrsqrt.f32 %v832_v18 }
 0x18d   : > { %10602 = vmatprep.mubr.msk.f32.mxu0 %vm481_vm0, %v971_v46 }
 0x18e   : > { %10603 = vmatmul.mubr.msk.f32.gmra.mrb[26].mxu0 %vm481_vm0, %v972_v31 }
 0x196   : > { %v11936_v59 = vpop.eup %11935 }
 0x197   : > { %v896_v16 = vmul.f32 %v11936_v59, %v12788_v49 }
 0x199   : > { %v935_v29 = vmul.f32 %v12813_v26, %v896_v16 }
 0x19b   : > { %v974_v23 = vadd.f32 %v12819_v40, %v935_v29 }
 0x1d4   : > { %v770_v12 = vpop.xlane.xlu1 %769  ;;  %v761_v63 = vpop.xlane.xlu0 %760 }
 0x1d5   : > { %v802_v44 = vmul.f32 0.125, %v770_v12  ;;  %v799_v3 = vmul.f32 0.125, %v761_v63 }
 0x1d7   : > { %v831_v6 = vadd.f32 1e-05, %v799_v3  ;;  %v834_v25 = vadd.f32 1e-05, %v802_v44 }
 0x1d9   : > { %11937 = vrsqrt.f32 %v831_v6 }
 0x1da   : > { %11939 = vrsqrt.f32 %v834_v25 }
 0x1dc   : > { %v767_v62 = vpop.xlane.xlu0 %766 }
 0x1dd   : > { %v801_v7 = vmul.f32 0.125, %v767_v62 }
 0x1df   : > { %v833_v15 = vadd.f32 1e-05, %v801_v7 }
 0x1e1   : > { %11941 = vrsqrt.f32 %v833_v15 }
 0x1e3   : > { %v11938_v13 = vpop.eup %11937 }
 0x1e4   : > { %v895_v14 = vmul.f32 %v11938_v13, %v12802_v19  ;;  %v11940_v48 = vpop.eup %11939 }
 0x1e5   : > { %v898_v5 = vmul.f32 %v11940_v48, %v12799_v32  ;;  %v12957_v32 = vld [vmem:[%s15655_s4] ss:$0 sm:$0xff] }
 0x1e6   : > { %v934_v22 = vmul.f32 %v12813_v26, %v895_v14 }
 0x1e7   : > { %v937_v19 = vmul.f32 %v12813_v26, %v898_v5 }
 0x1e8   : > { %v973_v45 = vadd.f32 %v12819_v40, %v934_v22 }
 0x1e9   : > { %v976_v36 = vadd.f32 %v12819_v40, %v937_v19 }
 0x1ea   : > { %10605 = vmatprep.mubr.msk.f32.mxu0 %vm481_vm0, %v973_v45 }
 0x1eb   : > { %v11942_v27 = vpop.eup %11941  ;;  %10606 = vmatmul.mubr.msk.f32.gmra.mrb[28].mxu0 %vm481_vm0, %v974_v23 }
 0x1ec   : > { %v897_v49 = vmul.f32 %v11942_v27, %v12823_v56 }
 0x1ee   : > { %v936_v30 = vmul.f32 %v12813_v26, %v897_v49 }
 0x1f0   : > { %v975_v1 = vadd.f32 %v12819_v40, %v936_v30 }
 0x1f2   : > { %10608 = vmatprep.mubr.msk.f32.mxu0 %vm481_vm0, %v975_v1 }
 0x1f3   : > { %10609 = vmatmul.mubr.msk.f32.gmra.mrb[30].mxu0 %vm481_vm0, %v976_v36 }
 0x224   : > { %v10565_v34 = vpop.f32.mrb[0].mxu0 }
 0x225   : > { %v12960_v56 = vadd.f32 %v10565_v34, %v12957_v32  ;;  %v1147_v11 = vpop.f32.mrb[1].mxu0 }
 0x226   : > { %v1148_v26 = vadd.f32 %v12957_v32, %v1147_v11 }
 0x228   : > { %v12963_v35 = vmul.f32 0.5, %v1148_v26  ;;  %v12966_v40 = vpack.i.bf16 %v12960_v56, %v1148_v26 }
 0x22a   : > { %15738 = vst [vmem:[#allocation2_spill] sm:$0xff] %v12966_v40  ;;  %10615 = vmatprep.mubr.msk.f32.mxu1 %vm1344_vm1, %v12963_v35  ;;  %11560 = vrot.lane.b32.xlu0 %v12966_v40, %s12367_s23 }
 0x22d   : > { %v10568_v50 = vpop.f32.mrb[2].mxu0 }
 0x22e   : > { %v12973_v2 = vadd.f32 %v10568_v50, %v12957_v32  ;;  %v1157_v42 = vpop.f32.mrb[3].mxu0 }
 0x22f   : > { %v12976_v38 = vadd.f32 %v12957_v32, %v1157_v42 }
 0x231   : > { %v12980_v39 = vpack.i.bf16 %v12973_v2, %v12976_v38 }
 0x233   : > { %15739 = vst [vmem:[#allocation3_spill] sm:$0xff] %v12980_v39  ;;  %11565 = vrot.lane.b32.xlu1 %v12980_v39, %s12367_s23 }
 0x235   : > { %v10571_v47 = vpop.f32.mrb[4].mxu0 }
 0x236   : > { %v12985_v17 = vadd.f32 %v10571_v47, %v12957_v32  ;;  %v1167_v54 = vpop.f32.mrb[5].mxu0 }
 0x237   : > { %v12988_v0 = vadd.f32 %v12957_v32, %v1167_v54 }
 0x239   : > { %v12992_v8 = vpack.i.bf16 %v12985_v17, %v12988_v0  ;;  %v10574_v37 = vpop.f32.mrb[6].mxu0 }
 0x23a   : > { %v12995_v43 = vadd.f32 %v10574_v37, %v12957_v32  ;;  %v1177_v52 = vpop.f32.mrb[7].mxu0 }
 0x23b   : > { %15740 = vst [vmem:[#allocation4_spill] sm:$0xff] %v12992_v8  ;;  %11570 = vrot.lane.b32.xlu1 %v12992_v8, %s12367_s23  ;;  %v13000_v24 = vadd.f32 %v12957_v32, %v1177_v52 }
 0x23d   : > { %v10577_v51 = vpop.f32.mrb[8].mxu0  ;;  %v13004_v55 = vpack.i.bf16 %v12995_v43, %v13000_v24 }
 0x23e   : > { %v13007_v10 = vadd.f32 %v10577_v51, %v12957_v32  ;;  %v1187_v53 = vpop.f32.mrb[9].mxu0 }
 0x23f   : > { %15741 = vst [vmem:[#allocation5_spill] sm:$0xff] %v13004_v55  ;;  %v13010_v41 = vadd.f32 %v12957_v32, %v1187_v53  ;;  %11575 = vrot.lane.b32.xlu1 %v13004_v55, %s12367_s23 }
 0x241   : > { %v10580_v57 = vpop.f32.mrb[10].mxu0  ;;  %v13016_v58 = vpack.i.bf16 %v13007_v10, %v13010_v41 }
 0x242   : > { %v13019_v21 = vadd.f32 %v10580_v57, %v12957_v32  ;;  %v1197_v4 = vpop.f32.mrb[11].mxu0 }
 0x243   : > { %15742 = vst [vmem:[#allocation6_spill] sm:$0xff] %v13016_v58  ;;  %v13022_v60 = vadd.f32 %v12957_v32, %v1197_v4  ;;  %11580 = vrot.lane.b32.xlu0 %v13016_v58, %s12367_s23  ;;  %v15749_v4 = vmov 0 }
 0x244   : > { %v15750_v4 = vsel %vm13131_vm2, 4294967295, %v15749_v4 }
 0x245   : > { %v10583_v9 = vpop.f32.mrb[12].mxu0  ;;  %v13028_v20 = vpack.i.bf16 %v13019_v21, %v13022_v60  ;;  %15751 = vst [vmem:[#allocation13_spill] sm:$0xff] %v15750_v4 }
 0x246   : > { %v13031_v61 = vadd.f32 %v10583_v9, %v12957_v32  ;;  %v1207_v46 = vpop.f32.mrb[13].mxu0 }
 0x247   : > { %15743 = vst [vmem:[#allocation7_spill] sm:$0xff] %v13028_v20  ;;  %v13034_v31 = vadd.f32 %v12957_v32, %v1207_v46  ;;  %11585 = vrot.lane.b32.xlu1 %v13028_v20, %s12367_s23 }
 0x249   : > { %v10586_v33 = vpop.f32.mrb[14].mxu0  ;;  %v13040_v28 = vpack.i.bf16 %v13031_v61, %v13034_v31 }
 0x24a   : > { %v13043_v18 = vadd.f32 %v10586_v33, %v12957_v32  ;;  %v1217_v12 = vpop.f32.mrb[15].mxu0 }
 0x24b   : > { %v13046_v63 = vadd.f32 %v12957_v32, %v1217_v12  ;;  %11590 = vrot.lane.b32.xlu0 %v13040_v28, %s12367_s23 }
 0x24d   : > { %v10589_v44 = vpop.f32.mrb[16].mxu0  ;;  %v13052_v3 = vpack.i.bf16 %v13043_v18, %v13046_v63 }
 0x24e   : > { %v13055_v6 = vadd.f32 %v10589_v44, %v12957_v32  ;;  %v1227_v25 = vpop.f32.mrb[17].mxu0 }
 0x24f   : > { %15744 = vst [vmem:[#allocation8_spill] sm:$0xff] %v13052_v3  ;;  %v1228_v62 = vadd.f32 %v12957_v32, %v1227_v25  ;;  %11595 = vrot.lane.b32.xlu1 %v13052_v3, %s12367_s23  ;;  %v13140_v25 = vmul.f32 0.5, %v12960_v56 }
 0x251   : > { %v10592_v7 = vpop.f32.mrb[18].mxu0  ;;  %v13061_v59 = vpack.i.bf16 %v13055_v6, %v1228_v62  ;;  %v13063_v15 = vmul.f32 0.5, %v1228_v62  ;;  %v13143_v62 = vmul.f32 0.5, %v12976_v38  ;;  %v13157_v38 = vmul.f32 0.5, %v12988_v0 }
 0x252   : > { %v13066_v16 = vadd.f32 %v10592_v7, %v12957_v32  ;;  %v1237_v13 = vpop.f32.mrb[19].mxu0 }
 0x253   : > { %15745 = vst [vmem:[#allocation9_spill] sm:$0xff] %v13063_v15  ;;  %v13069_v14 = vadd.f32 %v12957_v32, %v1237_v13  ;;  %11600 = vrot.lane.b32.xlu0 %v13061_v59, %s12367_s23  ;;  %10671 = vmatprep.mubr.msk.f32.mxu0 %vm1344_vm1, %v13063_v15 }
 0x255   : > { %v10595_v48 = vpop.f32.mrb[20].mxu0  ;;  %v13077_v29 = vpack.i.bf16 %v13066_v16, %v13069_v14 }
 0x256   : > { %v13080_v22 = vadd.f32 %v10595_v48, %v12957_v32  ;;  %v1247_v45 = vpop.f32.mrb[21].mxu0 }
 0x257   : > { %15746 = vst [vmem:[#allocation10_spill] sm:$0xff] %v13077_v29  ;;  %v13083_v5 = vadd.f32 %v12957_v32, %v1247_v45  ;;  %11605 = vrot.lane.b32.xlu1 %v13077_v29, %s12367_s23  ;;  %v13154_v45 = vmul.f32 0.5, %v12973_v2 }
 0x259   : > { %v10598_v23 = vpop.f32.mrb[22].mxu0  ;;  %v13089_v27 = vpack.i.bf16 %v13080_v22, %v13083_v5 }
 0x25a   : > { %v13092_v49 = vadd.f32 %v10598_v23, %v12957_v32  ;;  %v1257_v19 = vpop.f32.mrb[23].mxu0 }
 0x25b   : > { %v13095_v30 = vadd.f32 %v12957_v32, %v1257_v19  ;;  %11610 = vrot.lane.b32.xlu0 %v13089_v27, %s12367_s23 }
 0x25d   : > { %v10601_v1 = vpop.f32.mrb[24].mxu0  ;;  %v13101_v36 = vpack.i.bf16 %v13092_v49, %v13095_v30 }
 0x25e   : > { %v13104_v34 = vadd.f32 %v10601_v1, %v12957_v32  ;;  %v1267_v11 = vpop.f32.mrb[25].mxu0 }
 0x25f   : > { %15747 = vst [vmem:[#allocation11_spill] sm:$0xff] %v13101_v36  ;;  %v13107_v26 = vadd.f32 %v12957_v32, %v1267_v11  ;;  %11615 = vrot.lane.b32.xlu1 %v13101_v36, %s12367_s23 }
 0x261   : > { %v10604_v50 = vpop.f32.mrb[26].mxu0  ;;  %v13113_v42 = vpack.i.bf16 %v13104_v34, %v13107_v26 }
 0x262   : > { %v13116_v47 = vadd.f32 %v10604_v50, %v12957_v32  ;;  %v1277_v54 = vpop.f32.mrb[27].mxu0 }
 0x263   : > { %v13119_v37 = vadd.f32 %v12957_v32, %v1277_v54  ;;  %11620 = vrot.lane.b32.xlu0 %v13113_v42, %s12367_s23  ;;  %v13170_v54 = vmul.f32 0.5, %v12985_v17 }
 0x265   : > { %v13125_v52 = vpack.i.bf16 %v13116_v47, %v13119_v37 }
 0x267   : > { %15748 = vst [vmem:[#allocation12_spill] sm:$0xff] %v13125_v52  ;;  %11625 = vrot.lane.b32.xlu1 %v13125_v52, %s12367_s23 }
 0x29c   : > { %v11561_v51 = vpop.permute.xlu0 %11560 }
 0x29d   : > { %v11563_v53 = vunpack.i.h.bf16 %v11561_v51  ;;  %v11562_v57 = vunpack.i.l.bf16 %v11561_v51  ;;  %v13173_v51 = vmul.f32 0.5, %v13000_v24 }
 0x29f   : > { %v11215_v9 = vpack.c.bf16 %v11563_v53, %v11562_v57 }
 0x2a1   : > { %11217 = vmatprep.subr.msk.bf16.mxu1 %vm13131_vm2, %v11215_v9 }
 0x2a2   : > { %11220 = vmatpush3.bf16.xpose.msk.msra.mxu1 %vm13131_vm2, %v11215_v9 }
 0x2a5   : > { %v11566_v46 = vpop.permute.xlu1 %11565 }
 0x2a6   : > { %v11568_v33 = vunpack.i.h.bf16 %v11566_v46  ;;  %v11567_v12 = vunpack.i.l.bf16 %v11566_v46 }
 0x2a8   : > { %v11221_v44 = vpack.c.bf16 %v11568_v33, %v11567_v12 }
 0x2a9   : > { %10616 = vmatmul.mubr.msk.f32.vlgmr.msra.gmra.mrb[0].mxu1 %vm1344_vm1, %v13140_v25 }
 0x2aa   : > { %11223 = vmatprep.subr.msk.bf16.mxu1 %vm13131_vm2, %v11221_v44  ;;  %10622 = vmatprep.mubr.msk.f32.mxu1 %vm1344_vm1, %v13143_v62 }
 0x2ab   : > { %11226 = vmatpush3.bf16.xpose.msk.msra.mxu1 %vm13131_vm2, %v11221_v44  ;;  %v13190_v44 = vmul.f32 0.5, %v12995_v43 }
 0x2ad   : > { %v11571_v7 = vpop.permute.xlu1 %11570 }
 0x2ae   : > { %v11573_v13 = vunpack.i.h.bf16 %v11571_v7  ;;  %v11572_v48 = vunpack.i.l.bf16 %v11571_v7  ;;  %v13193_v7 = vmul.f32 0.5, %v13010_v41 }
 0x2b0   : > { %v11227_v56 = vpack.c.bf16 %v11573_v13, %v11572_v48 }
 0x2b1   : > { %v11576_v23 = vpop.permute.xlu1 %11575 }
 0x2b2   : > { %10623 = vmatmul.mubr.msk.f32.vlgmr.msra.gmra.mrb[2].mxu1 %vm1344_vm1, %v13154_v45  ;;  %11229 = vmatprep.subr.msk.bf16.mxu1 %vm13131_vm2, %v11227_v56  ;;  %v11578_v19 = vunpack.i.h.bf16 %v11576_v23  ;;  %v11577_v1 = vunpack.i.l.bf16 %v11576_v23 }
 0x2b3   : > { %11232 = vmatpush3.bf16.xpose.msk.msra.mxu1 %vm13131_vm2, %v11227_v56  ;;  %10629 = vmatprep.mubr.msk.f32.mxu1 %vm1344_vm1, %v13157_v38 }
 0x2b4   : > { %v11233_v2 = vpack.c.bf16 %v11578_v19, %v11577_v1 }
 0x2b5   : > { %v11581_v11 = vpop.permute.xlu0 %11580 }
 0x2b6   : > { %v11583_v50 = vunpack.i.h.bf16 %v11581_v11  ;;  %v11582_v0 = vunpack.i.l.bf16 %v11581_v11  ;;  %11235 = vmatprep.subr.msk.bf16.mxu1 %vm13131_vm2, %v11233_v2 }
 0x2b8   : > { %v11239_v53 = vpack.c.bf16 %v11583_v50, %v11582_v0 }
 0x2b9   : > { %v11586_v57 = vpop.permute.xlu1 %11585 }
 0x2ba   : > { %10630 = vmatmul.mubr.msk.f32.vlgmr.msra.gmra.mrb[4].mxu1 %vm1344_vm1, %v13170_v54  ;;  %v11588_v9 = vunpack.i.h.bf16 %v11586_v57  ;;  %v11587_v17 = vunpack.i.l.bf16 %v11586_v57 }
 0x2bb   : > { %11238 = vmatpush3.bf16.xpose.msk.msra.mxu1 %vm13131_vm2, %v11233_v2  ;;  %10636 = vmatprep.mubr.msk.f32.mxu1 %vm1344_vm1, %v13173_v51 }
 0x2bc   : > { %11241 = vmatprep.subr.msk.bf16.mxu1 %vm13131_vm2, %v11239_v53  ;;  %v11245_v13 = vpack.c.bf16 %v11588_v9, %v11587_v17 }
 0x2bd   : > { %v11591_v48 = vpop.permute.xlu0 %11590 }
 0x2be   : > { %v10607_v46 = vpop.f32.mrb[28].mxu0  ;;  %v11593_v50 = vunpack.i.h.bf16 %v11591_v48  ;;  %v11592_v0 = vunpack.i.l.bf16 %v11591_v48  ;;  %v13247_v48 = vmul.f32 0.5, %v13055_v6 }
 0x2bf   : > { %v13184_v24 = vadd.f32 %v10607_v46, %v12957_v32  ;;  %v1287_v33 = vpop.f32.mrb[29].mxu0 }
 0x2c0   : > { %v13187_v12 = vadd.f32 %v12957_v32, %v1287_v33  ;;  %v11251_v17 = vpack.c.bf16 %v11593_v50, %v11592_v0 }
 0x2c2   : > { %10637 = vmatmul.mubr.msk.f32.vlgmr.msra.gmra.mrb[6].mxu1 %vm1344_vm1, %v13190_v44  ;;  %v13199_v56 = vpack.i.bf16 %v13184_v24, %v13187_v12 }
 0x2c3   : > { %11244 = vmatpush3.bf16.xpose.msk.msra.mxu1 %vm13131_vm2, %v11239_v53  ;;  %10643 = vmatprep.mubr.msk.f32.mxu1 %vm1344_vm1, %v13193_v7  ;;  %v13218_v53 = vmul.f32 0.5, %v13007_v10  ;;  %v11596_v10 = vpop.permute.xlu1 %11595 }
 0x2c4   : > { %15752 = vst [vmem:[#allocation14_spill] sm:$0xff] %v13199_v56  ;;  %11630 = vrot.lane.b32.xlu0 %v13199_v56, %s12367_s23  ;;  %11247 = vmatprep.subr.msk.bf16.mxu1 %vm13131_vm2, %v11245_v13 }
 0x2c5   : > { %v11601_v41 = vpop.permute.xlu0 %11600 }
 0x2c6   : > { %v10610_v43 = vpop.f32.mrb[30].mxu0  ;;  %v11603_v1 = vunpack.i.h.bf16 %v11601_v41  ;;  %v11602_v2 = vunpack.i.l.bf16 %v11601_v41  ;;  %v11597_v41 = vunpack.i.l.bf16 %v11596_v10 }
 0x2c7   : > { %v13210_v23 = vadd.f32 %v10610_v43, %v12957_v32  ;;  %v1297_v19 = vpop.f32.mrb[31].mxu0  ;;  %v11598_v43 = vunpack.i.h.bf16 %v11596_v10  ;;  %v13280_v10 = vmul.f32 0.5, %v13031_v61  ;;  %v13301_v61 = vmul.f32 0.5, %v13107_v26 }
 0x2c8   : > { %v13213_v11 = vadd.f32 %v12957_v32, %v1297_v19  ;;  %11640 = vrot.lane.b32.xlu0 %v12966_v40, %s12368_s24  ;;  %v11263_v57 = vpack.c.bf16 %v11603_v1, %v11602_v2  ;;  %v13227_v32 = vmul.f32 0.5, %v13022_v60  ;;  %v13256_v1 = vmul.f32 0.5, %v13034_v31 }
 0x2c9   : > { %v11257_v6 = vpack.c.bf16 %v11598_v43, %v11597_v41  ;;  %v11606_v31 = vpop.permute.xlu1 %11605  ;;  %15758 = vst [vmem:[#allocation20_spill] sm:$0xff] %v13301_v61  ;;  %v13316_v43 = vmul.f32 0.5, %v13043_v18  ;;  %v13321_v41 = vmul.f32 0.5, %v13104_v34 }
 0x2ca   : > { %v13222_v9 = vpack.i.bf16 %v13210_v23, %v13213_v11  ;;  %10644 = vmatmul.mubr.msk.f32.vlgmr.msra.gmra.mrb[8].mxu1 %vm1344_vm1, %v13218_v53  ;;  %11265 = vmatprep.subr.msk.bf16.mxu0 %vm13131_vm2, %v11263_v57  ;;  %15755 = vst [vmem:[#allocation17_spill] sm:$0xff] %v13256_v1  ;;  %v11608_v0 = vunpack.i.h.bf16 %v11606_v31 }
 0x2cb   : > { %11250 = vmatpush3.bf16.xpose.msk.msra.mxu1 %vm13131_vm2, %v11245_v13  ;;  %10650 = vmatprep.mubr.msk.f32.mxu1 %vm1344_vm1, %v13227_v32  ;;  %v13244_v13 = vmul.f32 0.5, %v13019_v21  ;;  %v13263_v21 = vmul.f32 0.5, %v13083_v5  ;;  %15759 = vst [vmem:[#allocation21_spill] sm:$0xff] %v13316_v43  ;;  %15760 = vst [vmem:[#allocation22_spill] sm:$0xff] %v13321_v41 }
 0x2cc   : > { %15753 = vst [vmem:[#allocation15_spill] sm:$0xff] %v13222_v9  ;;  %11268 = vmatpush3.bf16.xpose.msk.msra.mxu0 %vm13131_vm2, %v11263_v57  ;;  %11650 = vrot.lane.b32.xlu0 %v12992_v8, %s12368_s24  ;;  %v11607_v57 = vunpack.i.l.bf16 %v11606_v31 }
 0x2cd   : > { %11635 = vrot.lane.b32.xlu1 %v13222_v9, %s12367_s23  ;;  %11253 = vmatprep.subr.msk.bf16.mxu1 %vm13131_vm2, %v11251_v17  ;;  %v11611_v60 = vpop.permute.xlu0 %11610  ;;  %15754 = vst [vmem:[#allocation16_spill] sm:$0xff] %v13244_v13  ;;  %15756 = vst [vmem:[#allocation18_spill] sm:$0xff] %v13263_v21 }
 0x2ce   : > { %v11613_v46 = vunpack.i.h.bf16 %v11611_v60  ;;  %v11612_v33 = vunpack.i.l.bf16 %v11611_v60  ;;  %v13287_v60 = vmul.f32 0.5, %v13080_v22  ;;  %v11269_v22 = vpack.c.bf16 %v11608_v0, %v11607_v57 }
 0x2d0   : > { %v11275_v19 = vpack.c.bf16 %v11613_v46, %v11612_v33  ;;  %11660 = vrot.lane.b32.xlu0 %v13016_v58, %s12368_s24  ;;  %15757 = vst [vmem:[#allocation19_spill] sm:$0xff] %v13287_v60  ;;  %v13294_v46 = vmul.f32 0.5, %v13046_v63 }
 0x2d1   : > { %11645 = vrot.lane.b32.xlu1 %v12980_v39, %s12368_s24  ;;  %v11616_v33 = vpop.permute.xlu1 %11615 }
 0x2d2   : > { %10651 = vmatmul.mubr.msk.f32.vlgmr.msra.gmra.mrb[10].mxu1 %vm1344_vm1, %v13244_v13  ;;  %11277 = vmatprep.subr.msk.bf16.mxu0 %vm13131_vm2, %v11275_v19  ;;  %v11618_v63 = vunpack.i.h.bf16 %v11616_v33  ;;  %v11617_v26 = vunpack.i.l.bf16 %v11616_v33 }
 0x2d3   : > { %10672 = vmatmul.mubr.msk.f32.vlgmr.msra.gmra.mrb[32].mxu0 %vm1344_vm1, %v13247_v48  ;;  %11256 = vmatpush3.bf16.xpose.msk.msra.mxu1 %vm13131_vm2, %v11251_v17 }
 0x2d4   : > { %10657 = vmatprep.mubr.msk.f32.mxu1 %vm1344_vm1, %v13256_v1  ;;  %11280 = vmatpush3.bf16.xpose.msk.msra.mxu0 %vm13131_vm2, %v11275_v19  ;;  %v13328_v19 = vmul.f32 0.5, %v13069_v14  ;;  %v11281_v18 = vpack.c.bf16 %v11618_v63, %v11617_v26 }
 0x2d5   : > { %10685 = vmatprep.mubr.msk.f32.mxu0 %vm1344_vm1, %v13263_v21  ;;  %11675 = vrot.lane.b32.xlu0 %v13052_v3, %s12368_s24  ;;  %v11621_v5 = vpop.permute.xlu0 %11620 }
 0x2d6   : > { %11655 = vrot.lane.b32.xlu1 %v13004_v55, %s12368_s24  ;;  %11259 = vmatprep.subr.msk.bf16.mxu1 %vm13131_vm2, %v11257_v6  ;;  %v11623_v2 = vunpack.i.h.bf16 %v11621_v5  ;;  %v11622_v50 = vunpack.i.l.bf16 %v11621_v5 }
 0x2d8   : > { %v11287_v17 = vpack.c.bf16 %v11623_v2, %v11622_v50 }
 0x2d9   : > { %11710 = vrot.lane.b32.xlu0 %v13199_v56, %s12368_s24  ;;  %v11626_v31 = vpop.permute.xlu1 %11625 }
 0x2da   : > { %11665 = vrot.lane.b32.xlu1 %v13028_v20, %s12368_s24  ;;  %10658 = vmatmul.mubr.msk.f32.vlgmr.msra.gmra.mrb[12].mxu1 %vm1344_vm1, %v13280_v10  ;;  %v11628_v14 = vunpack.i.h.bf16 %v11626_v31  ;;  %v11627_v34 = vunpack.i.l.bf16 %v11626_v31 }
 0x2db   : > { %11289 = vmatprep.subr.msk.bf16.mxu0 %vm13131_vm2, %v11287_v17  ;;  %10686 = vmatmul.mubr.msk.f32.vlgmr.msra.gmra.mrb[34].mxu0 %vm1344_vm1, %v13287_v60 }
 0x2dc   : > { %11262 = vmatpush3.bf16.xpose.msk.msra.mxu1 %vm13131_vm2, %v11257_v6  ;;  %10664 = vmatprep.mubr.msk.f32.mxu1 %vm1344_vm1, %v13294_v46  ;;  %v13331_v6 = vmul.f32 0.5, %v13187_v12  ;;  %v13353_v12 = vmul.f32 0.5, %v13095_v30  ;;  %v11293_v5 = vpack.c.bf16 %v11628_v14, %v11627_v34  ;;  %v13371_v30 = vmul.f32 0.5, %v13119_v37 }
 0x2dd   : > { %11292 = vmatpush3.bf16.xpose.msk.msra.mxu0 %vm13131_vm2, %v11287_v17  ;;  %10699 = vmatprep.mubr.msk.f32.mxu0 %vm1344_vm1, %v13301_v61  ;;  %v13387_v37 = vmul.f32 0.5, %v13213_v11 }
 0x2de   : > { %11730 = vrot.lane.b32.xlu0 %v13004_v55, %s12369_s26  ;;  %11670 = vrot.lane.b32.xlu1 %v13040_v28, %s12368_s24  ;;  %15761 = vst [vmem:[#allocation23_spill] sm:$0xff] %v13331_v6  ;;  %15763 = vst [vmem:[#allocation25_spill] sm:$0xff] %v13353_v12 }
 0x2df   : > { %11271 = vmatprep.subr.msk.bf16.mxu1 %vm13131_vm2, %v11269_v22  ;;  %15765 = vst [vmem:[#allocation27_spill] sm:$0xff] %v13371_v30  ;;  %15767 = vst [vmem:[#allocation29_spill] sm:$0xff] %v13387_v37 }
 0x2e2   : > { %4633 = vrot.lane.b32.xlu0 %v13154_v45, %s12370_s29  ;;  %11680 = vrot.lane.b32.xlu1 %v13061_v59, %s12368_s24  ;;  %v13348_v45 = vmul.f32 0.5, %v13066_v16  ;;  %v13368_v16 = vmul.f32 0.5, %v13092_v49  ;;  %v13384_v49 = vmul.f32 0.5, %v13116_v47 }
 0x2e3   : > { %10665 = vmatmul.mubr.msk.f32.vlgmr.msra.gmra.mrb[14].mxu1 %vm1344_vm1, %v13316_v43 }
 0x2e4   : > { %10700 = vmatmul.mubr.msk.f32.vlgmr.msra.gmra.mrb[36].mxu0 %vm1344_vm1, %v13321_v41  ;;  %11274 = vmatpush3.bf16.xpose.msk.msra.mxu1 %vm13131_vm2, %v11269_v22  ;;  %15762 = vst [vmem:[#allocation24_spill] sm:$0xff] %v13348_v45  ;;  %15764 = vst [vmem:[#allocation26_spill] sm:$0xff] %v13368_v16  ;;  %v13418_v22 = vmul.f32 0.5, %v13184_v24 }
 0x2e5   : > { %10678 = vmatprep.mubr.msk.f32.mxu1 %vm1344_vm1, %v13328_v19  ;;  %10713 = vmatprep.mubr.msk.f32.mxu0 %vm1344_vm1, %v13331_v6  ;;  %15766 = vst [vmem:[#allocation28_spill] sm:$0xff] %v13384_v49 }
 0x2e6   : > { %4722 = vrot.lane.b32.xlu0 %v13157_v38, %s12370_s29  ;;  %11283 = vmatprep.subr.msk.bf16.mxu1 %vm13131_vm2, %v11281_v18  ;;  %15768 = vst [vmem:[#allocation30_spill] sm:$0xff] %v13418_v22 }
 0x2e7   : > { %11685 = vrot.lane.b32.xlu1 %v13077_v29, %s12368_s24 }
 0x2ea   : > { %11740 = vrot.lane.b32.xlu0 %v13028_v20, %s12369_s26 }
 0x2eb   : > { %11690 = vrot.lane.b32.xlu1 %v13089_v27, %s12368_s24  ;;  %10679 = vmatmul.mubr.msk.f32.vlgmr.msra.gmra.mrb[16].mxu1 %vm1344_vm1, %v13348_v45 }
 0x2ec   : > { %11286 = vmatpush3.bf16.xpose.msk.msra.mxu1 %vm13131_vm2, %v11281_v18  ;;  %10692 = vmatprep.mubr.msk.f32.mxu1 %vm1344_vm1, %v13353_v12 }
 0x2ed   : > { %11295 = vmatprep.subr.msk.bf16.mxu1 %vm13131_vm2, %v11293_v5 }
 0x2ef   : > { %11695 = vrot.lane.b32.xlu1 %v13101_v36, %s12368_s24 }
 0x2f3   : > { %11700 = vrot.lane.b32.xlu1 %v13113_v42, %s12368_s24  ;;  %10693 = vmatmul.mubr.msk.f32.vlgmr.msra.gmra.mrb[18].mxu1 %vm1344_vm1, %v13368_v16 }
 0x2f4   : > { %11298 = vmatpush3.bf16.xpose.msk.msra.mxu1 %vm13131_vm2, %v11293_v5  ;;  %10706 = vmatprep.mubr.msk.f32.mxu1 %vm1344_vm1, %v13371_v30 }
 0x2f7   : > { %11705 = vrot.lane.b32.xlu1 %v13125_v52, %s12368_s24 }
 0x2fb   : > { %11715 = vrot.lane.b32.xlu1 %v12966_v40, %s12369_s26  ;;  %10707 = vmatmul.mubr.msk.f32.vlgmr.msra.gmra.mrb[20].mxu1 %vm1344_vm1, %v13384_v49 }
 0x2fc   : > { %10720 = vmatprep.mubr.msk.f32.mxu1 %vm1344_vm1, %v13387_v37 }
 0x2ff   : > { %11720 = vrot.lane.b32.xlu1 %v12980_v39, %s12369_s26 }
 0x303   : > { %11725 = vrot.lane.b32.xlu1 %v12992_v8, %s12369_s26 }
 0x307   : > { %4540 = vrot.lane.b32.xlu1 %v12963_v35, %s12370_s29 }
 0x30b   : > { %4542 = vrot.lane.b32.xlu1 %v13140_v25, %s12370_s29 }
 0x30f   : > { %4631 = vrot.lane.b32.xlu1 %v13143_v62, %s12370_s29 }
 0x313   : > { %11735 = vrot.lane.b32.xlu1 %v13016_v58, %s12369_s26 }
 0x317   : > { %4724 = vrot.lane.b32.xlu1 %v13170_v54, %s12370_s29 }
 0x31b   : > { %11745 = vrot.lane.b32.xlu1 %v13222_v9, %s12368_s24 }
 0x336   : > { %v11631_v47 = vpop.permute.xlu0 %11630 }
 0x337   : > { %v11633_v38 = vunpack.i.h.bf16 %v11631_v47  ;;  %v11632_v11 = vunpack.i.l.bf16 %v11631_v47 }
 0x339   : > { %v11299_v2 = vpack.c.bf16 %v11633_v38, %v11632_v11  ;;  %v13432_v38 = vmul.f32 0.5, %v13210_v23 }
 0x33a   : > { %v11641_v35 = vpop.permute.xlu0 %11640 }
 0x33b   : > { %v11643_v50 = vunpack.i.h.bf16 %v11641_v35  ;;  %v11642_v0 = vunpack.i.l.bf16 %v11641_v35  ;;  %11301 = vmatprep.subr.msk.bf16.mxu0 %vm13131_vm2, %v11299_v2  ;;  %15771 = vst [vmem:[#allocation33_spill] sm:$0xff] %v13432_v38 }
 0x33c   : > { %11304 = vmatpush3.bf16.xpose.msk.msra.mxu0 %vm13131_vm2, %v11299_v2 }
 0x33d   : > { %v11311_v25 = vpack.c.bf16 %v11643_v50, %v11642_v0 }
 0x33e   : > { %v13415_v57 = vpop.permute.xlu0 %11650 }
 0x33f   : > { %v11636_v62 = vpop.permute.xlu1 %11635  ;;  %11312 = vmatprep.subr.bf16.mxu0 %v11311_v25 }
 0x340   : > { %v11638_v54 = vunpack.i.h.bf16 %v11636_v62  ;;  %v11637_v17 = vunpack.i.l.bf16 %v11636_v62 }
 0x342   : > { %v11305_v33 = vpack.c.bf16 %v11638_v54, %v11637_v17  ;;  %v11661_v26 = vpop.permute.xlu0 %11660 }
 0x343   : > { %v11646_v63 = vpop.permute.xlu1 %11645  ;;  %10714 = vmatmul.mubr.msk.f32.vlgmr.msra.gmra.mrb[38].mxu0 %vm1344_vm1, %v13418_v22  ;;  %v11663_v14 = vunpack.i.h.bf16 %v11661_v26  ;;  %v11662_v34 = vunpack.i.l.bf16 %v11661_v26 }
 0x344   : > { %v11648_v18 = vunpack.i.h.bf16 %v11646_v63  ;;  %v11647_v31 = vunpack.i.l.bf16 %v11646_v63  ;;  %11307 = vmatprep.subr.msk.bf16.mxu1 %vm13131_vm2, %v11305_v33  ;;  %11314 = vmatpush3.bf16.msra.mxu0 %v11311_v25 }
 0x345   : > { %11310 = vmatpush3.bf16.xpose.msk.msra.mxu1 %vm13131_vm2, %v11305_v33  ;;  %v11327_v24 = vpack.c.bf16 %v11663_v14, %v11662_v34 }
 0x346   : > { %v13426_v5 = vpack.c.bf16 %v11648_v18, %v11647_v31 }
 0x347   : > { %11328 = vmatprep.subr.bf16.mxu1 %v11327_v24 }
 0x348   : > { %15769 = vst [vmem:[#allocation31_spill] sm:$0xff] %v13426_v5  ;;  %v13428_v47 = vpop.permute.xlu1 %11655  ;;  %11316 = vmatprep.subr.bf16.mxu0 %v13426_v5 }
 0x349   : > { %15770 = vst [vmem:[#allocation32_spill] sm:$0xff] %v13428_v47 }
 0x34c   : > { %v13434_v11 = vpop.permute.xlu1 %11665  ;;  %10721 = vmatmul.mubr.msk.f32.vlgmr.msra.gmra.mrb[22].mxu1 %vm1344_vm1, %v13432_v38 }
 0x34d   : > { %15772 = vst [vmem:[#allocation34_spill] sm:$0xff] %v13434_v11  ;;  %11330 = vmatpush3.bf16.msra.mxu1 %v11327_v24 }
 0x350   : > { %v11671_v2 = vpop.permute.xlu1 %11670 }
 0x351   : > { %v11673_v35 = vunpack.i.h.bf16 %v11671_v2  ;;  %v11672_v50 = vunpack.i.l.bf16 %v11671_v2 }
 0x353   : > { %v13438_v0 = vpack.c.bf16 %v11673_v35, %v11672_v50 }
 0x354   : > { %v13541_v4 = vpop.permute.xlu1 %11680 }
 0x355   : > { %15773 = vst [vmem:[#allocation35_spill] sm:$0xff] %v13438_v0  ;;  %11336 = vmatprep.subr.bf16.mxu1 %v13438_v0 }
 0x359   : > { %v13543_v43 = vpop.permute.xlu1 %11685 }
 0x35a   : > { %15774 = vst [vmem:[#allocation36_spill] sm:$0xff] %v13543_v43 }
 0x37c   : > { %v13441_v25 = vpop.f32.mrb[0].mxu1 }
 0x37d   : > { %v13443_v62 = vpop.f32.mrb[1].mxu1  ;;  %v2799_v23 = vsel %vm2795_vm3, %v13441_v25, -inf }
 0x37e   : > { %2800 = vmax.xlane.f32.xlu1 %v2799_v23  ;;  %v2796_v54 = vsel %vm2795_vm3, %v13443_v62, -inf }
 0x37f   : > { %2797 = vmax.xlane.f32.xlu0 %v2796_v54 }
 0x385   : > { %v13449_v17 = vpop.f32.mrb[2].mxu1 }
 0x386   : > { %v13451_v33 = vpop.f32.mrb[3].mxu1  ;;  %v2805_v63 = vsel %vm2795_vm3, %v13449_v17, -inf }
 0x387   : > { %2806 = vmax.xlane.f32.xlu0 %v2805_v63  ;;  %v2802_v26 = vsel %vm2795_vm3, %v13451_v33, -inf }
 0x38b   : > { %2803 = vmax.xlane.f32.xlu0 %v2802_v26 }
 0x38d   : > { %v13457_v18 = vpop.f32.mrb[4].mxu1 }
 0x38e   : > { %v13459_v31 = vpop.f32.mrb[5].mxu1  ;;  %v2811_v14 = vsel %vm2795_vm3, %v13457_v18, -inf }
 0x38f   : > { %2812 = vmax.xlane.f32.xlu1 %v2811_v14  ;;  %v2808_v34 = vsel %vm2795_vm3, %v13459_v31, -inf }
 0x390   : > { %2809 = vmax.xlane.f32.xlu0 %v2808_v34 }
 0x395   : > { %v13465_v24 = vpop.f32.mrb[6].mxu1 }
 0x396   : > { %v13467_v2 = vpop.f32.mrb[7].mxu1  ;;  %v2817_v35 = vsel %vm2795_vm3, %v13465_v24, -inf }
 0x397   : > { %2818 = vmax.xlane.f32.xlu0 %v2817_v35  ;;  %v2814_v50 = vsel %vm2795_vm3, %v13467_v2, -inf }
 0x39b   : > { %2815 = vmax.xlane.f32.xlu0 %v2814_v50 }
 0x39d   : > { %v13473_v23 = vpop.f32.mrb[8].mxu1 }
 0x39e   : > { %v13475_v54 = vpop.f32.mrb[9].mxu1  ;;  %v2823_v63 = vsel %vm2795_vm3, %v13473_v23, -inf }
 0x39f   : > { %2824 = vmax.xlane.f32.xlu1 %v2823_v63  ;;  %v2820_v63 = vsel %vm2795_vm3, %v13475_v54, -inf }
 0x3a5   : > { %v13479_v26 = vpop.f32.mrb[10].mxu1 }
 0x3a6   : > { %v13481_v14 = vpop.f32.mrb[32].mxu0  ;;  %v13483_v34 = vpop.f32.mrb[11].mxu1  ;;  %v2829_v35 = vsel %vm2795_vm3, %v13479_v26, -inf }
 0x3a7   : > { %v13487_v58 = vpop.f32.mrb[33].mxu0  ;;  %v2847_v50 = vsel %vm2795_vm3, %v13481_v14, -inf  ;;  %2830 = vmax.xlane.f32.xlu0 %v2829_v35  ;;  %v2826_v8 = vsel %vm2795_vm3, %v13483_v34, -inf }
 0x3a8   : > { %2848 = vmax.xlane.f32.xlu1 %v2847_v50  ;;  %v2844_v49 = vsel %vm2795_vm3, %v13487_v58, -inf }
 0x3ab   : > { %2827 = vmax.xlane.f32.xlu0 %v2826_v8 }
 0x3ac   : > { %2821 = vmax.xlane.f32.xlu1 %v2820_v63 }
 0x3ad   : > { %v13495_v40 = vpop.f32.mrb[12].mxu1 }
 0x3ae   : > { %v13497_v38 = vpop.f32.mrb[34].mxu0  ;;  %v13499_v22 = vpop.f32.mrb[13].mxu1 }
 0x3af   : > { %v13503_v9 = vpop.f32.mrb[35].mxu0  ;;  %v2859_v35 = vsel %vm2795_vm3, %v13497_v38, -inf }
 0x3b0   : > { %2845 = vmax.xlane.f32.xlu1 %v2844_v49  ;;  %v2856_v61 = vsel %vm2795_vm3, %v13503_v9, -inf  ;;  %v2835_v49 = vsel %vm2795_vm3, %v13495_v40, -inf }
 0x3b4   : > { %2860 = vmax.xlane.f32.xlu1 %v2859_v35 }
 0x3b6   : > { %v13507_v50 = vpop.f32.mrb[14].mxu1 }
 0x3b7   : > { %v13509_v8 = vpop.f32.mrb[36].mxu0  ;;  %v13511_v63 = vpop.f32.mrb[15].mxu1  ;;  %v2841_v16 = vsel %vm2795_vm3, %v13507_v50, -inf }
 0x3b8   : > { %v13517_v52 = vpop.f32.mrb[37].mxu0  ;;  %2857 = vmax.xlane.f32.xlu1 %v2856_v61  ;;  %2842 = vmax.xlane.f32.xlu0 %v2841_v16  ;;  %v2838_v35 = vsel %vm2795_vm3, %v13511_v63, -inf  ;;  %v2871_v36 = vsel %vm2795_vm3, %v13509_v8, -inf  ;;  %v2832_v61 = vsel %vm2795_vm3, %v13499_v22, -inf }
 0x3bc   : > { %2836 = vmax.xlane.f32.xlu1 %v2835_v49  ;;  %2839 = vmax.xlane.f32.xlu0 %v2838_v35  ;;  %v2868_v49 = vsel %vm2795_vm3, %v13517_v52, -inf }
 0x3be   : > { %v13523_v21 = vpop.f32.mrb[16].mxu1 }
 0x3bf   : > { %v13525_v45 = vpop.f32.mrb[17].mxu1 }
 0x3c0   : > { %2872 = vmax.xlane.f32.xlu1 %v2871_v36  ;;  %v13545_v36 = vpop.permute.xlu1 %11690 }
 0x3c1   : > { %15775 = vst [vmem:[#allocation37_spill] sm:$0xff] %v13545_v36 }
 0x3c4   : > { %2833 = vmax.xlane.f32.xlu1 %v2832_v61  ;;  %v13547_v55 = vpop.permute.xlu1 %11695 }
 0x3c5   : > { %15776 = vst [vmem:[#allocation38_spill] sm:$0xff] %v13547_v55 }
 0x3c6   : > { %v13531_v16 = vpop.f32.mrb[18].mxu1 }
 0x3c7   : > { %v13533_v15 = vpop.f32.mrb[19].mxu1 }
 0x3c8   : > { %2869 = vmax.xlane.f32.xlu1 %v2868_v49  ;;  %v13549_v61 = vpop.permute.xlu1 %11700  ;;  %v2862_v3 = vsel %vm2795_vm3, %v13533_v15, -inf }
 0x3c9   : > { %15777 = vst [vmem:[#allocation39_spill] sm:$0xff] %v13549_v61 }
 0x3cc   : > { %v13551_v29 = vpop.permute.xlu1 %11705 }
 0x3cd   : > { %15778 = vst [vmem:[#allocation40_spill] sm:$0xff] %v13551_v29 }
 0x3ce   : > { %v13537_v35 = vpop.f32.mrb[20].mxu1 }
 0x3cf   : > { %v13539_v20 = vpop.f32.mrb[21].mxu1 }
 0x3d0   : > { %v13553_v39 = vpop.permute.xlu1 %11715  ;;  %v2874_v41 = vsel %vm2795_vm3, %v13539_v20, -inf }
 0x3d1   : > { %15779 = vst [vmem:[#allocation41_spill] sm:$0xff] %v13553_v39 }
 0x3d4   : > { %v13555_v1 = vpop.permute.xlu1 %11720 }
 0x3d5   : > { %15780 = vst [vmem:[#allocation42_spill] sm:$0xff] %v13555_v1  ;;  %v13573_v1 = vpop.permute.xlu0 %11675 }
 0x3d6   : > { %15785 = vst [vmem:[#allocation47_spill] sm:$0xff] %v13573_v1 }
 0x3d8   : > { %v13557_v49 = vpop.permute.xlu1 %11725 }
 0x3d9   : > { %15781 = vst [vmem:[#allocation43_spill] sm:$0xff] %v13557_v49  ;;  %v13589_v61 = vpop.permute.xlu0 %11710 }
 0x3da   : > { %15787 = vst [vmem:[#allocation49_spill] sm:$0xff] %v13589_v61 }
 0x3dc   : > { %v13559_v37 = vpop.permute.xlu1 %4540 }
 0x3dd   : > { %15782 = vst [vmem:[#allocation44_spill] sm:$0xff] %v13559_v37  ;;  %v2877_v37 = vsel %vm2795_vm3, %v13537_v35, -inf }
 0x3e0   : > { %v13561_v13 = vpop.permute.xlu1 %4542 }
 0x3e1   : > { %15783 = vst [vmem:[#allocation45_spill] sm:$0xff] %v13561_v13  ;;  %v2853_v13 = vsel %vm2795_vm3, %v13523_v21, -inf }
 0x3e4   : > { %v13565_v43 = vpop.permute.xlu1 %4631 }
 0x3e5   : > { %15784 = vst [vmem:[#allocation46_spill] sm:$0xff] %v13565_v43 }
 0x3e8   : > { %v13579_v43 = vpop.permute.xlu1 %11735 }
 0x3e9   : > { %15786 = vst [vmem:[#allocation48_spill] sm:$0xff] %v13579_v43  ;;  %v2865_v43 = vsel %vm2795_vm3, %v13531_v16, -inf }
 0x416   : > { %v13563_v6 = vpop.f32.mrb[38].mxu0 }
 0x417   : > { %v13567_v36 = vpop.f32.mrb[39].mxu0  ;;  %v2883_v55 = vsel %vm2795_vm3, %v13563_v6, -inf }
 0x418   : > { %2884 = vmax.xlane.f32.xlu1 %v2883_v55  ;;  %v2880_v29 = vsel %vm2795_vm3, %v13567_v36, -inf }
 0x419   : > { %2881 = vmax.xlane.f32.xlu0 %v2880_v29  ;;  %v2850_v29 = vsel %vm2795_vm3, %v13525_v45, -inf }
 0x41c   : > { %2878 = vmax.xlane.f32.xlu1 %v2877_v37  ;;  %v13591_v37 = vpop.permute.xlu1 %4724 }
 0x41d   : > { %2854 = vmax.xlane.f32.xlu0 %v2853_v13  ;;  %15788 = vst [vmem:[#allocation50_spill] sm:$0xff] %v13591_v37  ;;  %v13595_v13 = vpop.permute.xlu0 %11730 }
 0x41e   : > { %15789 = vst [vmem:[#allocation51_spill] sm:$0xff] %v13595_v13 }
 0x41f   : > { %v13581_v49 = vpop.f32.mrb[22].mxu1 }
 0x420   : > { %v13583_v39 = vpop.f32.mrb[23].mxu1  ;;  %v2889_v55 = vsel %vm2795_vm3, %v13581_v49, -inf  ;;  %v13599_v30 = vpop.permute.xlu1 %11745 }
 0x421   : > { %2890 = vmax.xlane.f32.xlu1 %v2889_v55  ;;  %2851 = vmax.xlane.f32.xlu0 %v2850_v29  ;;  %15790 = vst [vmem:[#allocation52_spill] sm:$0xff] %v13599_v30  ;;  %v13603_v61 = vpop.permute.xlu0 %4633 }
 0x422   : > { %15791 = vst [vmem:[#allocation53_spill] sm:$0xff] %v13603_v61 }
 0x424   : > { %v2801_v55 = vpop.xlane.xlu1 %2800 }
 0x425   : > { %2866 = vmax.xlane.f32.xlu0 %v2865_v43  ;;  %v13607_v43 = vpop.permute.xlu0 %4722 }
 0x426   : > { %15792 = vst [vmem:[#allocation54_spill] sm:$0xff] %v13607_v43 }
 0x428   : > { %v2813_v29 = vpop.xlane.xlu1 %2812 }
 0x429   : > { %2863 = vmax.xlane.f32.xlu0 %v2862_v3  ;;  %v13609_v37 = vpop.permute.xlu0 %11740  ;;  %v2893_v3 = vsub.f32 %v13441_v25, %v2801_v55  ;;  %v2897_v43 = vsub.f32 %v13457_v18, %v2813_v29 }
 0x42a   : > { %15793 = vst [vmem:[#allocation55_spill] sm:$0xff] %v13609_v37 }
 0x42b   : > { %v2926_v61 = vmul.f32 1.442695, %v2893_v3  ;;  %v2934_v37 = vmul.f32 1.442695, %v2897_v43 }
 0x42c   : > { %v2825_v13 = vpop.xlane.xlu1 %2824 }
 0x42d   : > { %2875 = vmax.xlane.f32.xlu0 %v2874_v41  ;;  %v2798_v56 = vpop.xlane.xlu0 %2797  ;;  %11943 = vpow2.f32 %v2926_v61  ;;  %v2901_v60 = vsub.f32 %v13473_v23, %v2825_v13 }
 0x42e   : > { %v2892_v25 = vsub.f32 %v13443_v62, %v2798_v56 }
 0x42f   : > { %v2942_v47 = vmul.f32 1.442695, %v2901_v60 }
 0x431   : > { %v2807_v12 = vpop.xlane.xlu0 %2806 }
 0x432   : > { %4813 = vrot.lane.b32.xlu1 %v13173_v51, %s12370_s29  ;;  %v2895_v41 = vsub.f32 %v13449_v17, %v2807_v12  ;;  %v2924_v17 = vmul.f32 1.442695, %v2892_v25 }
 0x434   : > { %v2930_v51 = vmul.f32 1.442695, %v2895_v41 }
 0x435   : > { %v2849_v1 = vpop.xlane.xlu1 %2848  ;;  %v2804_v11 = vpop.xlane.xlu0 %2803 }
 0x436   : > { %11945 = vpow2.f32 %v2930_v51  ;;  %v2894_v61 = vsub.f32 %v13451_v33, %v2804_v11 }
 0x437   : > { %11947 = vpow2.f32 %v2934_v37  ;;  %v13619_v12 = vpop.eup %11943 }
 0x438   : > { %11949 = vpow2.f32 %v2942_v47  ;;  %v2991_v23 = vsel %vm2795_vm3, %v13619_v12, 0.0  ;;  %v2928_v60 = vmul.f32 1.442695, %v2894_v61 }
 0x439   : > { %v2822_v30 = vpop.xlane.xlu1 %2821  ;;  %v2810_v55 = vpop.xlane.xlu0 %2809  ;;  %11951 = vpow2.f32 %v2924_v17 }
 0x43a   : > { %v2900_v43 = vsub.f32 %v13475_v54, %v2822_v30 }
 0x43d   : > { %v2846_v0 = vpop.xlane.xlu1 %2845  ;;  %v2819_v18 = vpop.xlane.xlu0 %2818 }
 0x43e   : > { %v2908_v11 = vsub.f32 %v13487_v58, %v2846_v0  ;;  %v2899_v37 = vsub.f32 %v13465_v24, %v2819_v18 }
 0x440   : > { %v13625_v56 = vpop.eup %11945  ;;  %v2956_v13 = vmul.f32 1.442695, %v2908_v11  ;;  %v2938_v25 = vmul.f32 1.442695, %v2899_v37 }
 0x441   : > { %v2861_v5 = vpop.xlane.xlu1 %2860  ;;  %v2997_v47 = vsel %vm2795_vm3, %v13625_v56, 0.0  ;;  %v13631_v33 = vpop.eup %11947 }
 0x442   : > { %v2816_v30 = vpop.xlane.xlu0 %2815  ;;  %v3003_v51 = vsel %vm2795_vm3, %v13631_v33, 0.0  ;;  %v13637_v58 = vpop.eup %11949 }
 0x443   : > { %4815 = vrot.lane.b32.xlu0 %v13190_v44, %s12370_s29  ;;  %v2909_v44 = vsub.f32 %v13481_v14, %v2849_v1  ;;  %v2896_v1 = vsub.f32 %v13459_v31, %v2810_v55  ;;  %v2940_v14 = vmul.f32 1.442695, %v2900_v43  ;;  %v2913_v31 = vsub.f32 %v13497_v38, %v2861_v5  ;;  %v13641_v17 = vpop.eup %11951 }
 0x444   : > { %v2898_v55 = vsub.f32 %v13467_v2, %v2816_v30  ;;  %v3015_v5 = vsel %vm2795_vm3, %v13637_v58, 0.0  ;;  %v2886_v38 = vsel %vm2795_vm3, %v13583_v39, -inf }
 0x445   : > { %v2858_v3 = vpop.xlane.xlu1 %2857  ;;  %v2958_v29 = vmul.f32 1.442695, %v2909_v44  ;;  %v2932_v54 = vmul.f32 1.442695, %v2896_v1  ;;  %v2966_v44 = vmul.f32 1.442695, %v2913_v31 }
 0x446   : > { %v2831_v0 = vpop.xlane.xlu0 %2830  ;;  %v2912_v24 = vsub.f32 %v13503_v9, %v2858_v3  ;;  %v2936_v18 = vmul.f32 1.442695, %v2898_v55  ;;  %v2988_v1 = vsel %vm2795_vm3, %v13641_v17, 0.0 }
 0x447   : > { %11953 = vpow2.f32 %v2958_v29  ;;  %v2903_v2 = vsub.f32 %v13479_v26, %v2831_v0 }
 0x448   : > { %11955 = vpow2.f32 %v2928_v60  ;;  %v2964_v9 = vmul.f32 1.442695, %v2912_v24 }
 0x449   : > { %v2837_v62 = vpop.xlane.xlu1 %2836  ;;  %11957 = vpow2.f32 %v2940_v14  ;;  %v2946_v26 = vmul.f32 1.442695, %v2903_v2 }
 0x44a   : > { %11959 = vpow2.f32 %v2932_v54  ;;  %v2828_v43 = vpop.xlane.xlu0 %2827  ;;  %v2905_v3 = vsub.f32 %v13495_v40, %v2837_v62 }
 0x44b   : > { %11961 = vpow2.f32 %v2956_v13  ;;  %v2902_v11 = vsub.f32 %v13483_v34, %v2828_v43 }
 0x44c   : > { %11963 = vpow2.f32 %v2938_v25 }
 0x44d   : > { %v2873_v41 = vpop.xlane.xlu1 %2872  ;;  %11965 = vpow2.f32 %v2966_v44  ;;  %v2944_v31 = vmul.f32 1.442695, %v2902_v11 }
 0x44e   : > { %11967 = vpow2.f32 %v2936_v18  ;;  %v2843_v34 = vpop.xlane.xlu0 %2842 }
 0x44f   : > { %11969 = vpow2.f32 %v2964_v9 }
 0x450   : > { %11971 = vpow2.f32 %v2946_v26 }
 0x451   : > { %v13647_v61 = vpop.eup %11953  ;;  %v2834_v29 = vpop.xlane.xlu1 %2833 }
 0x452   : > { %v3039_v60 = vsel %vm2795_vm3, %v13647_v61, 0.0  ;;  %v2904_v40 = vsub.f32 %v13499_v22, %v2834_v29 }
 0x454   : > { %v2948_v22 = vmul.f32 1.442695, %v2904_v40 }
 0x455   : > { %v2870_v30 = vpop.xlane.xlu1 %2869 }
 0x456   : > { %2992 = vadd.xlane.f32.xlu1 %v2991_v23  ;;  %v13651_v23 = vpop.eup %11955  ;;  %v2916_v0 = vsub.f32 %v13517_v52, %v2870_v30  ;;  %v2840_v52 = vpop.xlane.xlu0 %2839 }
 0x457   : > { %v13657_v14 = vpop.eup %11957  ;;  %v2994_v37 = vsel %vm2795_vm3, %v13651_v23, 0.0  ;;  %v2906_v9 = vsub.f32 %v13511_v63, %v2840_v52 }
 0x458   : > { %v13661_v62 = vpop.eup %11959  ;;  %v3012_v54 = vsel %vm2795_vm3, %v13657_v14, 0.0 }
 0x459   : > { %v13667_v13 = vpop.eup %11961  ;;  %v3000_v44 = vsel %vm2795_vm3, %v13661_v62, 0.0  ;;  %v2952_v26 = vmul.f32 1.442695, %v2906_v9 }
 0x45a   : > { %2998 = vadd.xlane.f32.xlu1 %v2997_v47  ;;  %v2950_v47 = vmul.f32 1.442695, %v2905_v3  ;;  %v13671_v25 = vpop.eup %11963  ;;  %v3036_v55 = vsel %vm2795_vm3, %v13667_v13, 0.0 }
 0x45b   : > { %v13677_v24 = vpop.eup %11965  ;;  %v3009_v2 = vsel %vm2795_vm3, %v13671_v25, 0.0 }
 0x45c   : > { %11973 = vpow2.f32 %v2950_v47  ;;  %v3051_v18 = vsel %vm2795_vm3, %v13677_v24, 0.0 }
 0x45d   : > { %11975 = vpow2.f32 %v2944_v31 }
 0x45e   : > { %3004 = vadd.xlane.f32.xlu1 %v3003_v51  ;;  %v2917_v51 = vsub.f32 %v13509_v8, %v2873_v41  ;;  %v2907_v8 = vsub.f32 %v13507_v50, %v2843_v34  ;;  %11977 = vpow2.f32 %v2948_v22  ;;  %v2972_v41 = vmul.f32 1.442695, %v2916_v0 }
 0x460   : > { %v2954_v43 = vmul.f32 1.442695, %v2907_v8 }
 0x462   : > { %3016 = vadd.xlane.f32.xlu1 %v3015_v5  ;;  %2887 = vmax.xlane.f32.xlu0 %v2886_v38  ;;  %v2974_v5 = vmul.f32 1.442695, %v2917_v51  ;;  %v13680_v38 = vpop.eup %11967 }
 0x463   : > { %v13686_v29 = vpop.eup %11969 }
 0x464   : > { %11979 = vpow2.f32 %v2974_v5  ;;  %v13689_v50 = vpop.eup %11971  ;;  %v3048_v3 = vsel %vm2795_vm3, %v13686_v29, 0.0 }
 0x465   : > { %11981 = vpow2.f32 %v2972_v41  ;;  %v3021_v47 = vsel %vm2795_vm3, %v13689_v50, 0.0 }
 0x466   : > { %3040 = vadd.xlane.f32.xlu1 %v3039_v60  ;;  %2989 = vadd.xlane.f32.xlu0 %v2988_v1  ;;  %v3006_v60 = vsel %vm2795_vm3, %v13680_v38, 0.0  ;;  %v13695_v1 = vpop.eup %11973  ;;  %11983 = vpow2.f32 %v2954_v43 }
 0x467   : > { %v13697_v11 = vpop.eup %11975  ;;  %v3027_v63 = vsel %vm2795_vm3, %v13695_v1, 0.0  ;;  %11985 = vpow2.f32 %v2952_v26 }
 0x468   : > { %v13703_v40 = vpop.eup %11977 }
 0x46a   : > { %3013 = vadd.xlane.f32.xlu1 %v3012_v54  ;;  %2995 = vadd.xlane.f32.xlu0 %v2994_v37  ;;  %v3024_v54 = vsel %vm2795_vm3, %v13703_v40, 0.0  ;;  %v3018_v37 = vsel %vm2795_vm3, %v13697_v11, 0.0 }
 0x46e   : > { %3037 = vadd.xlane.f32.xlu1 %v3036_v55  ;;  %3001 = vadd.xlane.f32.xlu0 %v3000_v44  ;;  %v13705_v30 = vpop.eup %11979 }
 0x46f   : > { %v13711_v31 = vpop.eup %11981  ;;  %v3063_v51 = vsel %vm2795_vm3, %v13705_v30, 0.0 }
 0x470   : > { %v3060_v34 = vsel %vm2795_vm3, %v13711_v31, 0.0  ;;  %v13717_v22 = vpop.eup %11983 }
 0x471   : > { %v3033_v0 = vsel %vm2795_vm3, %v13717_v22, 0.0  ;;  %v13721_v55 = vpop.eup %11985 }
 0x472   : > { %3052 = vadd.xlane.f32.xlu1 %v3051_v18  ;;  %3010 = vadd.xlane.f32.xlu0 %v3009_v2  ;;  %v3030_v44 = vsel %vm2795_vm3, %v13721_v55, 0.0 }
 0x476   : > { %3049 = vadd.xlane.f32.xlu1 %v3048_v3  ;;  %3007 = vadd.xlane.f32.xlu0 %v3006_v60 }
 0x47a   : > { %3028 = vadd.xlane.f32.xlu1 %v3027_v63  ;;  %3022 = vadd.xlane.f32.xlu0 %v3021_v47 }
 0x47e   : > { %3025 = vadd.xlane.f32.xlu1 %v3024_v54  ;;  %3019 = vadd.xlane.f32.xlu0 %v3018_v37 }
 0x482   : > { %3061 = vadd.xlane.f32.xlu1 %v3060_v34  ;;  %3064 = vadd.xlane.f32.xlu0 %v3063_v51 }
 0x486   : > { %3034 = vadd.xlane.f32.xlu0 %v3033_v0 }
 0x48a   : > { %3031 = vadd.xlane.f32.xlu0 %v3030_v44 }
 0x4a5   : > { %v2885_v5 = vpop.xlane.xlu1 %2884 }
 0x4a6   : > { %v2921_v8 = vsub.f32 %v13563_v6, %v2885_v5  ;;  %v2882_v41 = vpop.xlane.xlu0 %2881 }
 0x4a7   : > { %v2920_v52 = vsub.f32 %v13567_v36, %v2882_v41 }
 0x4a8   : > { %v2982_v18 = vmul.f32 1.442695, %v2921_v8 }
 0x4a9   : > { %v2980_v2 = vmul.f32 1.442695, %v2920_v52  ;;  %v2879_v9 = vpop.xlane.xlu1 %2878 }
 0x4aa   : > { %11987 = vpow2.f32 %v2982_v18  ;;  %v2855_v43 = vpop.xlane.xlu0 %2854  ;;  %v2919_v26 = vsub.f32 %v13537_v35, %v2879_v9 }
 0x4ab   : > { %11989 = vpow2.f32 %v2980_v2  ;;  %v2911_v3 = vsub.f32 %v13523_v21, %v2855_v43 }
 0x4ac   : > { %v2978_v6 = vmul.f32 1.442695, %v2919_v26 }
 0x4ad   : > { %v2962_v60 = vmul.f32 1.442695, %v2911_v3 }
 0x4ae   : > { %v2852_v63 = vpop.xlane.xlu0 %2851 }
 0x4af   : > { %11991 = vpow2.f32 %v2962_v60  ;;  %v2910_v47 = vsub.f32 %v13525_v45, %v2852_v63 }
 0x4b1   : > { %v2960_v54 = vmul.f32 1.442695, %v2910_v47 }
 0x4b2   : > { %v2867_v37 = vpop.xlane.xlu0 %2866 }
 0x4b3   : > { %v2915_v36 = vsub.f32 %v13531_v16, %v2867_v37  ;;  %11993 = vpow2.f32 %v2960_v54  ;;  %v2891_v54 = vpop.xlane.xlu1 %2890 }
 0x4b4   : > { %v13731_v34 = vpop.eup %11987  ;;  %11995 = vpow2.f32 %v2978_v6 }
 0x4b5   : > { %v13733_v51 = vpop.eup %11989  ;;  %v2970_v0 = vmul.f32 1.442695, %v2915_v36  ;;  %v3075_v21 = vsel %vm2795_vm3, %v13731_v34, 0.0  ;;  %v2923_v36 = vsub.f32 %v13581_v49, %v2891_v54 }
 0x4b6   : > { %v2864_v35 = vpop.xlane.xlu0 %2863  ;;  %3076 = vadd.xlane.f32.xlu1 %v3075_v21  ;;  %v3072_v45 = vsel %vm2795_vm3, %v13733_v51, 0.0 }
 0x4b7   : > { %11997 = vpow2.f32 %v2970_v0  ;;  %v2914_v44 = vsub.f32 %v13533_v15, %v2864_v35  ;;  %3073 = vadd.xlane.f32.xlu0 %v3072_v45  ;;  %v13769_v6 = vpop.permute.xlu1 %4813  ;;  %v2986_v21 = vmul.f32 1.442695, %v2923_v36 }
 0x4b9   : > { %v13740_v16 = vpop.eup %11991  ;;  %v2968_v5 = vmul.f32 1.442695, %v2914_v44 }
 0x4ba   : > { %v2876_v8 = vpop.xlane.xlu0 %2875  ;;  %v3045_v41 = vsel %vm2795_vm3, %v13740_v16, 0.0 }
 0x4bb   : > { %11999 = vpow2.f32 %v2968_v5  ;;  %v2918_v52 = vsub.f32 %v13539_v20, %v2876_v8  ;;  %3046 = vadd.xlane.f32.xlu1 %v3045_v41 }
 0x4bd   : > { %v2976_v18 = vmul.f32 1.442695, %v2918_v52  ;;  %v13745_v2 = vpop.eup %11993 }
 0x4be   : > { %v3042_v43 = vsel %vm2795_vm3, %v13745_v2, 0.0  ;;  %v13749_v15 = vpop.eup %11995  ;;  %v13778_v35 = vpop.permute.xlu0 %4815 }
 0x4bf   : > { %12001 = vpow2.f32 %v2976_v18  ;;  %3043 = vadd.xlane.f32.xlu1 %v3042_v43  ;;  %v3069_v60 = vsel %vm2795_vm3, %v13749_v15, 0.0 }
 0x4c0   : > { %12003 = vpow2.f32 %v2986_v21 }
 0x4c1   : > { %v13751_v9 = vpop.eup %11997 }
 0x4c2   : > { %v3057_v3 = vsel %vm2795_vm3, %v13751_v9, 0.0 }
 0x4c3   : > { %3058 = vadd.xlane.f32.xlu0 %v3057_v3  ;;  %3070 = vadd.xlane.f32.xlu1 %v3069_v60  ;;  %v11653_v60 = vunpack.i.h.bf16 %v13415_v57 }
 0x4c5   : > { %v13757_v20 = vpop.eup %11999 }
 0x4c6   : > { %v3054_v26 = vsel %vm2795_vm3, %v13757_v20, 0.0 }
 0x4c7   : > { %3055 = vadd.xlane.f32.xlu0 %v3054_v26 }
 0x4c9   : > { %v13761_v63 = vpop.eup %12001 }
 0x4ca   : > { %v3066_v47 = vsel %vm2795_vm3, %v13761_v63, 0.0  ;;  %v13789_v41 = vpop.eup %12003 }
 0x4cb   : > { %3067 = vadd.xlane.f32.xlu1 %v3066_v47  ;;  %v3081_v52 = vsel %vm2795_vm3, %v13789_v41, 0.0 }
 0x4dc   : > { %11750 = vrot.lane.b32.xlu1 %v13040_v28, %s12369_s26 }
 0x4dd   : > { %4904 = vrot.lane.b32.xlu0 %v13193_v7, %s12370_s29 }
 0x4e0   : > { %4906 = vrot.lane.b32.xlu1 %v13218_v53, %s12370_s29 }
 0x4e3   : > { %v2993_v37 = vpop.xlane.xlu1 %2992 }
 0x4e4   : > { %4995 = vrot.lane.b32.xlu1 %v13227_v32, %s12370_s29  ;;  %12005 = vrcp.f32 %v2993_v37 }
 0x4e7   : > { %v2999_v0 = vpop.xlane.xlu1 %2998 }
 0x4e8   : > { %11760 = vrot.lane.b32.xlu1 %v13061_v59, %s12369_s26 }
 0x4eb   : > { %v3005_v45 = vpop.xlane.xlu1 %3004 }
 0x4ec   : > { %5088 = vrot.lane.b32.xlu1 %v13280_v10, %s12370_s29 }
 0x4ee   : > { %v12006_v18 = vpop.eup %12005 }
 0x4ef   : > { %v3017_v7 = vpop.xlane.xlu1 %3016  ;;  %v2888_v53 = vpop.xlane.xlu0 %2887  ;;  %v3117_v21 = vmul.f32 %v12006_v18, %v13619_v12  ;;  %v15795_v12 = vld [vmem:[#allocation19_spill] sm:$0xff] }
 0x4f0   : > { %v2922_v44 = vsub.f32 %v13583_v39, %v2888_v53  ;;  %5177 = vrot.lane.b32.xlu1 %v13294_v46, %s12370_s29 }
 0x4f2   : > { %v2984_v32 = vmul.f32 1.442695, %v2922_v44 }
 0x4f3   : > { %v13785_v49 = vpop.xlane.xlu1 %3040  ;;  %v2990_v5 = vpop.xlane.xlu0 %2989 }
 0x4f4   : > { %12007 = vpow2.f32 %v2984_v32  ;;  %11770 = vrot.lane.b32.xlu1 %v13089_v27, %s12369_s26 }
 0x4f5   : > { %12009 = vrcp.f32 %v2999_v0 }
 0x4f6   : > { %12011 = vrcp.f32 %v2990_v5 }
 0x4f7   : > { %12013 = vrcp.f32 %v3017_v7  ;;  %v3014_v10 = vpop.xlane.xlu1 %3013  ;;  %v2996_v8 = vpop.xlane.xlu0 %2995  ;;  %v11682_v7 = vunpack.i.l.bf16 %v13541_v4 }
 0x4f8   : > { %12015 = vrcp.f32 %v3014_v10  ;;  %5270 = vrot.lane.b32.xlu1 %v13247_v48, %s12370_s29  ;;  %v11652_v48 = vunpack.i.l.bf16 %v13415_v57  ;;  %v11683_v57 = vunpack.i.h.bf16 %v13541_v4  ;;  %v15794_v10 = vld [vmem:[#allocation32_spill] sm:$0xff]  ;;  %v15796_v4 = vld [vmem:[#allocation31_spill] sm:$0xff] }
 0x4f9   : > { %12017 = vrcp.f32 %v2996_v8  ;;  %v11658_v8 = vunpack.i.h.bf16 %v15794_v10 }
 0x4fa   : > { %12019 = vrcp.f32 %v3005_v45  ;;  %v11319_v44 = vpack.c.bf16 %v11653_v60, %v11652_v48  ;;  %v13825_v48 = vpack.c.bf16 %v11683_v57, %v11682_v7 }
 0x4fb   : > { %v3038_v39 = vpop.xlane.xlu1 %3037  ;;  %v3002_v46 = vpop.xlane.xlu0 %3001 }
 0x4fc   : > { %5359 = vrot.lane.b32.xlu1 %v13328_v19, %s12370_s29  ;;  %3082 = vadd.xlane.f32.xlu0 %v3081_v52  ;;  %12021 = vrcp.f32 %v3002_v46  ;;  %v11657_v46 = vunpack.i.l.bf16 %v15794_v10 }
 0x4fe   : > { %v13797_v43 = vpop.eup %12007 }
 0x4ff   : > { %v12010_v3 = vpop.eup %12009  ;;  %v13801_v26 = vpop.xlane.xlu1 %3052  ;;  %v3078_v54 = vsel %vm2795_vm3, %v13797_v43, 0.0 }
 0x500   : > { %v3011_v47 = vpop.xlane.xlu0 %3010  ;;  %v12012_v37 = vpop.eup %12011  ;;  %11780 = vrot.lane.b32.xlu1 %v13113_v42, %s12369_s26  ;;  %3079 = vadd.xlane.f32.xlu0 %v3078_v54  ;;  %v3119_v18 = vmul.f32 %v12010_v3, %v13625_v56  ;;  %v15797_v54 = vld [vmem:[#allocation34_spill] sm:$0xff]  ;;  %v15799_v56 = vld [vmem:[#allocation25_spill] sm:$0xff] }
 0x501   : > { %v12014_v19 = vpop.eup %12013  ;;  %v3116_v36 = vmul.f32 %v12012_v37, %v13641_v17  ;;  %12023 = vrcp.f32 %v3011_v47  ;;  %v11668_v37 = vunpack.i.h.bf16 %v15797_v54 }
 0x502   : > { %v12016_v0 = vpop.eup %12015  ;;  %v3125_v52 = vmul.f32 %v12014_v19, %v13637_v58  ;;  %v11323_v58 = vpack.c.bf16 %v11658_v8, %v11657_v46 }
 0x503   : > { %v12018_v45 = vpop.eup %12017  ;;  %10727 = vmatprep.mubr.msk.f32.mxu0 %vm2795_vm3, %v3116_v36  ;;  %v3050_v53 = vpop.xlane.xlu1 %3049  ;;  %v3124_v5 = vmul.f32 %v12016_v0, %v13657_v14  ;;  %v11667_v36 = vunpack.i.l.bf16 %v15797_v54  ;;  %v15798_v0 = vld [vmem:[#allocation35_spill] sm:$0xff] }
 0x504   : > { %v3008_v32 = vpop.xlane.xlu0 %3007  ;;  %10728 = vmatmul.mubr.msk.f32.vlgmr.msra.gmra.mrb[40].mxu0 %vm2795_vm3, %v3117_v21  ;;  %5452 = vrot.lane.b32.xlu1 %v15795_v12, %s12370_s29  ;;  %v3118_v17 = vmul.f32 %v12018_v45, %v13651_v23  ;;  %v12020_v14 = vpop.eup %12019  ;;  %v15802_v12 = vld [vmem:[#allocation22_spill] sm:$0xff] }
 0x505   : > { %11318 = vmatpush3.bf16.msra.mxu0 %v15796_v4  ;;  %12025 = vrcp.f32 %v3008_v32  ;;  %10755 = vmatprep.mubr.msk.f32.mxu1 %vm2795_vm3, %v3124_v5  ;;  %v3121_v3 = vmul.f32 %v12020_v14, %v13631_v33  ;;  %v11331_v57 = vpack.c.bf16 %v11668_v37, %v11667_v36  ;;  %v15806_v36 = vld [vmem:[#allocation36_spill] sm:$0xff] }
 0x506   : > { %11320 = vmatprep.subr.bf16.mxu0 %v11319_v44  ;;  %10734 = vmatprep.mubr.msk.f32.mxu0 %vm2795_vm3, %v3118_v17  ;;  %v12022_v60 = vpop.eup %12021  ;;  %12027 = vrcp.f32 %v3038_v39  ;;  %v15800_v39 = vld [vmem:[#allocation14_spill] sm:$0xff] }
 0x507   : > { %10756 = vmatmul.mubr.msk.f32.vlgmr.msra.gmra.mrb[24].mxu1 %vm2795_vm3, %v3125_v52  ;;  %v3029_v47 = vpop.xlane.xlu1 %3028  ;;  %v3120_v19 = vmul.f32 %v12022_v60, %v13661_v62 }
 0x508   : > { %v3023_v23 = vpop.xlane.xlu0 %3022  ;;  %11338 = vmatpush3.bf16.msra.mxu1 %v15798_v0  ;;  %10735 = vmatmul.mubr.msk.f32.vlgmr.msra.gmra.mrb[42].mxu0 %vm2795_vm3, %v3119_v18  ;;  %12029 = vrcp.f32 %v3029_v47  ;;  %v15805_v18 = vld [vmem:[#allocation37_spill] sm:$0xff]  ;;  %v11688_v0 = vunpack.i.h.bf16 %v15806_v36 }
 0x509   : > { %11344 = vmatprep.subr.bf16.mxu1 %v13825_v48  ;;  %11322 = vmatpush3.bf16.msra.mxu0 %v11319_v44  ;;  %v15801_v44 = vld [vmem:[#allocation47_spill] sm:$0xff]  ;;  %v11693_v60 = vunpack.i.h.bf16 %v15805_v18  ;;  %v11692_v47 = vunpack.i.l.bf16 %v15805_v18 }
 0x50a   : > { %11324 = vmatprep.subr.bf16.mxu0 %v11323_v58  ;;  %5541 = vrot.lane.b32.xlu1 %v15799_v56, %s12370_s29  ;;  %v11678_v33 = vunpack.i.h.bf16 %v15801_v44  ;;  %v11677_v32 = vunpack.i.l.bf16 %v15801_v44 }
 0x50b   : > { %10741 = vmatprep.mubr.msk.f32.mxu0 %vm2795_vm3, %v3120_v19  ;;  %v3026_v21 = vpop.xlane.xlu1 %3025  ;;  %v12024_v62 = vpop.eup %12023 }
 0x50c   : > { %v3020_v45 = vpop.xlane.xlu0 %3019  ;;  %12031 = vrcp.f32 %v3026_v21  ;;  %10742 = vmatmul.mubr.msk.f32.vlgmr.msra.gmra.mrb[44].mxu0 %vm2795_vm3, %v3121_v3  ;;  %v3123_v8 = vmul.f32 %v12024_v62, %v13671_v25  ;;  %v11339_v17 = vpack.c.bf16 %v11678_v33, %v11677_v32  ;;  %v15803_v25 = vld [vmem:[#allocation27_spill] sm:$0xff]  ;;  %v11351_v62 = vpack.c.bf16 %v11693_v60, %v11692_v47  ;;  %v15810_v32 = vld [vmem:[#allocation29_spill] sm:$0xff]  ;;  %v15815_v47 = vld [vmem:[#allocation38_spill] sm:$0xff] }
 0x50d   : > { %11326 = vmatpush3.bf16.msra.mxu0 %v11323_v58  ;;  %12033 = vrcp.f32 %v3020_v45  ;;  %v11687_v58 = vunpack.i.l.bf16 %v15806_v36  ;;  %v15807_v3 = vld [vmem:[#allocation23_spill] sm:$0xff] }
 0x50e   : > { %12035 = vrcp.f32 %v3023_v23  ;;  %11332 = vmatprep.subr.bf16.mxu0 %v11331_v57  ;;  %11790 = vrot.lane.b32.xlu1 %v15800_v39, %s12369_s26  ;;  %v15808_v45 = vld [vmem:[#allocation39_spill] sm:$0xff] }
 0x50f   : > { %v12026_v7 = vpop.eup %12025  ;;  %12037 = vrcp.f32 %v13785_v49  ;;  %v3062_v46 = vpop.xlane.xlu1 %3061 }
 0x510   : > { %v3065_v5 = vpop.xlane.xlu0 %3064  ;;  %v3122_v10 = vmul.f32 %v12026_v7, %v13680_v38  ;;  %12039 = vrcp.f32 %v3050_v53  ;;  %v12028_v52 = vpop.eup %12027  ;;  %v15804_v53 = vld [vmem:[#allocation8_spill] sm:$0xff] }
 0x511   : > { %12041 = vrcp.f32 %v13801_v26  ;;  %v15809_v7 = vld [vmem:[#allocation16_spill] sm:$0xff] }
 0x512   : > { %5634 = vrot.lane.b32.xlu1 %v15802_v12, %s12370_s29  ;;  %10748 = vmatprep.mubr.msk.f32.mxu0 %vm2795_vm3, %v3122_v10  ;;  %v12030_v49 = vpop.eup %12029  ;;  %12043 = vrcp.f32 %v3062_v46 }
 0x513   : > { %10749 = vmatmul.mubr.msk.f32.vlgmr.msra.gmra.mrb[46].mxu0 %vm2795_vm3, %v3123_v8  ;;  %12045 = vrcp.f32 %v3065_v5  ;;  %v3129_v19 = vmul.f32 %v12030_v49, %v13695_v1  ;;  %v15811_v8 = vld [vmem:[#allocation49_spill] sm:$0xff] }
 0x514   : > { %v3035_v4 = vpop.xlane.xlu0 %3034  ;;  %11334 = vmatpush3.bf16.msra.mxu0 %v11331_v57  ;;  %v11703_v57 = vunpack.i.h.bf16 %v15808_v45 }
 0x515   : > { %11340 = vmatprep.subr.bf16.mxu0 %v11339_v17  ;;  %12047 = vrcp.f32 %v3035_v4 }
 0x516   : > { %v12032_v38 = vpop.eup %12031  ;;  %5723 = vrot.lane.b32.xlu1 %v15803_v25, %s12370_s29  ;;  %11755 = vrot.lane.b32.xlu0 %v15804_v53, %s12369_s26 }
 0x517   : > { %v12034_v14 = vpop.eup %12033  ;;  %v3128_v26 = vmul.f32 %v12032_v38, %v13703_v40  ;;  %v3132_v40 = vmul.f32 %v12028_v52, %v13667_v13  ;;  %v11347_v13 = vpack.c.bf16 %v11688_v0, %v11687_v58  ;;  %v15813_v52 = vld [vmem:[#allocation3_spill] sm:$0xff]  ;;  %v15814_v38 = vld [vmem:[#allocation41_spill] sm:$0xff] }
 0x518   : > { %v3032_v23 = vpop.xlane.xlu0 %3031  ;;  %v12036_v54 = vpop.eup %12035  ;;  %v3126_v37 = vmul.f32 %v12034_v14, %v13697_v11  ;;  %v11702_v11 = vunpack.i.l.bf16 %v15808_v45  ;;  %v11718_v25 = vunpack.i.h.bf16 %v15814_v38  ;;  %v11717_v14 = vunpack.i.l.bf16 %v15814_v38  ;;  %v15818_v0 = vld [vmem:[#allocation21_spill] sm:$0xff] }
 0x519   : > { %12049 = vrcp.f32 %v3032_v23  ;;  %10769 = vmatprep.mubr.msk.f32.mxu1 %vm2795_vm3, %v3128_v26  ;;  %v12038_v56 = vpop.eup %12037  ;;  %v3127_v1 = vmul.f32 %v12036_v54, %v13689_v50  ;;  %v11713_v50 = vunpack.i.h.bf16 %v15811_v8  ;;  %v11698_v23 = vunpack.i.h.bf16 %v15815_v47  ;;  %v15816_v26 = vld [vmem:[#allocation10_spill] sm:$0xff] }
 0x51a   : > { %5814 = vrot.lane.b32.xlu1 %v15807_v3, %s12370_s29  ;;  %10762 = vmatprep.mubr.msk.f32.mxu0 %vm2795_vm3, %v3126_v37  ;;  %v12040_v21 = vpop.eup %12039  ;;  %v3133_v44 = vmul.f32 %v12038_v56, %v13647_v61  ;;  %v11359_v46 = vpack.c.bf16 %v11703_v57, %v11702_v11  ;;  %v15817_v37 = vld [vmem:[#allocation5_spill] sm:$0xff]  ;;  %v15823_v56 = vld [vmem:[#allocation24_spill] sm:$0xff]  ;;  %v15824_v3 = vld [vmem:[#allocation18_spill] sm:$0xff] }
 0x51b   : > { %10770 = vmatmul.mubr.msk.f32.vlgmr.msra.gmra.mrb[26].mxu1 %vm2795_vm3, %v3129_v19  ;;  %4997 = vrot.lane.b32.xlu0 %v15809_v7, %s12370_s29  ;;  %v12042_v33 = vpop.eup %12041  ;;  %v3136_v5 = vmul.f32 %v12040_v21, %v13686_v29  ;;  %v15822_v19 = vld [vmem:[#allocation11_spill] sm:$0xff]  ;;  %v15826_v21 = vld [vmem:[#allocation26_spill] sm:$0xff]  ;;  %v15827_v57 = vld [vmem:[#allocation20_spill] sm:$0xff] }
 0x51c   : > { %11346 = vmatpush3.bf16.msra.mxu1 %v13825_v48  ;;  %10783 = vmatprep.mubr.msk.f32.mxu1 %vm2795_vm3, %v3132_v40  ;;  %v12044_v10 = vpop.eup %12043  ;;  %v11712_v48 = vunpack.i.l.bf16 %v15811_v8  ;;  %v3137_v29 = vmul.f32 %v12042_v33, %v13677_v24  ;;  %v11697_v24 = vunpack.i.l.bf16 %v15815_v47  ;;  %v15825_v40 = vld [vmem:[#allocation12_spill] sm:$0xff]  ;;  %v15830_v33 = vld [vmem:[#allocation43_spill] sm:$0xff] }
 0x51d   : > { %11352 = vmatprep.subr.bf16.mxu1 %v11351_v62  ;;  %10763 = vmatmul.mubr.msk.f32.vlgmr.msra.gmra.mrb[48].mxu0 %vm2795_vm3, %v3127_v1  ;;  %v12046_v12 = vpop.eup %12045  ;;  %v3140_v49 = vmul.f32 %v12044_v10, %v13711_v31  ;;  %v15829_v7 = vld [vmem:[#allocation28_spill] sm:$0xff] }
 0x51e   : > { %11342 = vmatpush3.bf16.msra.mxu0 %v11339_v17  ;;  %5905 = vrot.lane.b32.xlu1 %v15810_v32, %s12370_s29  ;;  %v15812_v17 = vld [vmem:[#allocation17_spill] sm:$0xff]  ;;  %v11367_v18 = vpack.c.bf16 %v11713_v50, %v11712_v48  ;;  %v3141_v31 = vmul.f32 %v12046_v12, %v13705_v30  ;;  %v11355_v36 = vpack.c.bf16 %v11698_v23, %v11697_v24  ;;  %v15820_v30 = vld [vmem:[#allocation7_spill] sm:$0xff]  ;;  %v11728_v32 = vunpack.i.h.bf16 %v15830_v33  ;;  %v15831_v50 = vld [vmem:[#allocation30_spill] sm:$0xff] }
 0x51f   : > { %11348 = vmatprep.subr.bf16.mxu0 %v11347_v13  ;;  %10784 = vmatmul.mubr.msk.f32.vlgmr.msra.gmra.mrb[28].mxu1 %vm2795_vm3, %v3133_v44  ;;  %v12048_v61 = vpop.eup %12047  ;;  %v15837_v24 = vld [vmem:[#allocation45_spill] sm:$0xff] }
 0x520   : > { %11354 = vmatpush3.bf16.msra.mxu1 %v11351_v62  ;;  %10797 = vmatprep.mubr.msk.f32.mxu1 %vm2795_vm3, %v3136_v5  ;;  %v3131_v54 = vmul.f32 %v12048_v61, %v13717_v22  ;;  %v15821_v22 = vld [vmem:[#allocation9_spill] sm:$0xff]  ;;  %v15828_v62 = vld [vmem:[#allocation15_spill] sm:$0xff]  ;;  %v11727_v5 = vunpack.i.l.bf16 %v15830_v33  ;;  %v15832_v61 = vld [vmem:[#allocation44_spill] sm:$0xff] }
 0x521   : > { %11360 = vmatprep.subr.bf16.mxu1 %v11359_v46  ;;  %5086 = vrot.lane.b32.xlu0 %v15812_v17, %s12370_s29 }
 0x522   : > { %11805 = vrot.lane.b32.xlu1 %v15813_v52, %s12371_s30 }
 0x523   : > { %v12050_v4 = vpop.eup %12049  ;;  %10798 = vmatmul.mubr.msk.f32.vlgmr.msra.gmra.mrb[30].mxu1 %vm2795_vm3, %v3137_v29 }
 0x524   : > { %v3130_v60 = vmul.f32 %v12050_v4, %v13721_v55  ;;  %11362 = vmatpush3.bf16.msra.mxu1 %v11359_v46  ;;  %10811 = vmatprep.mubr.msk.f32.mxu1 %vm2795_vm3, %v3140_v49  ;;  %v11375_v55 = vpack.c.bf16 %v11718_v25, %v11717_v14  ;;  %v11387_v46 = vpack.c.bf16 %v11728_v32, %v11727_v5  ;;  %v15834_v4 = vld [vmem:[#allocation40_spill] sm:$0xff] }
 0x525   : > { %11368 = vmatprep.subr.bf16.mxu1 %v11367_v18  ;;  %11765 = vrot.lane.b32.xlu0 %v15816_v26, %s12369_s26  ;;  %v11708_v52 = vunpack.i.h.bf16 %v15834_v4  ;;  %v11707_v49 = vunpack.i.l.bf16 %v15834_v4  ;;  %v15835_v25 = vld [vmem:[#allocation48_spill] sm:$0xff] }
 0x526   : > { %11815 = vrot.lane.b32.xlu1 %v15817_v37, %s12371_s30  ;;  %10776 = vmatprep.mubr.msk.f32.mxu0 %vm2795_vm3, %v3130_v60  ;;  %v11738_v14 = vunpack.i.h.bf16 %v15835_v25  ;;  %v15836_v60 = vld [vmem:[#allocation2_spill] sm:$0xff]  ;;  %v15838_v37 = vld [vmem:[#allocation4_spill] sm:$0xff] }
 0x527   : > { %10812 = vmatmul.mubr.msk.f32.vlgmr.msra.gmra.mrb[32].mxu1 %vm2795_vm3, %v3141_v31  ;;  %10777 = vmatmul.mubr.msk.f32.vlgmr.msra.gmra.mrb[50].mxu0 %vm2795_vm3, %v3131_v54  ;;  %v11363_v31 = vpack.c.bf16 %v11708_v52, %v11707_v49 }
 0x528   : > { %11370 = vmatpush3.bf16.msra.mxu1 %v11367_v18  ;;  %11350 = vmatpush3.bf16.msra.mxu0 %v11347_v13  ;;  %v11737_v18 = vunpack.i.l.bf16 %v15835_v25  ;;  %v15844_v25 = vld [vmem:[#allocation51_spill] sm:$0xff] }
 0x529   : > { %5179 = vrot.lane.b32.xlu0 %v15818_v0, %s12370_s29  ;;  %11377 = vmatprep.subr.msk.bf16.mxu1 %vm13131_vm2, %v11375_v55  ;;  %v15840_v0 = vld [vmem:[#allocation52_spill] sm:$0xff] }
 0x52a   : > { %11356 = vmatprep.subr.bf16.mxu0 %v11355_v36  ;;  %11825 = vrot.lane.b32.xlu1 %v15820_v30, %s12371_s30  ;;  %v11399_v54 = vpack.c.bf16 %v11738_v14, %v11737_v18  ;;  %v11748_v30 = vunpack.i.h.bf16 %v15840_v0  ;;  %v11733_v14 = vunpack.i.h.bf16 %v15844_v25  ;;  %v11732_v18 = vunpack.i.l.bf16 %v15844_v25 }
 0x52d   : > { %5268 = vrot.lane.b32.xlu0 %v15821_v22, %s12370_s29  ;;  %v11747_v22 = vunpack.i.l.bf16 %v15840_v0 }
 0x52e   : > { %11835 = vrot.lane.b32.xlu1 %v15804_v53, %s12371_s30 }
 0x52f   : > { %v11371_v32 = vpack.c.bf16 %v11748_v30, %v11747_v22 }
 0x531   : > { %11775 = vrot.lane.b32.xlu0 %v15822_v19, %s12369_s26 }
 0x532   : > { %11845 = vrot.lane.b32.xlu1 %v15816_v26, %s12371_s30 }
 0x535   : > { %5361 = vrot.lane.b32.xlu0 %v15823_v56, %s12370_s29 }
 0x539   : > { %5450 = vrot.lane.b32.xlu0 %v15824_v3, %s12370_s29 }
 0x53d   : > { %11785 = vrot.lane.b32.xlu0 %v15825_v40, %s12369_s26 }
 0x541   : > { %5543 = vrot.lane.b32.xlu0 %v15826_v21, %s12370_s29 }
 0x543   : > { %v3077_v45 = vpop.xlane.xlu1 %3076 }
 0x544   : > { %12051 = vrcp.f32 %v3077_v45  ;;  %v3074_v53 = vpop.xlane.xlu0 %3073 }
 0x545   : > { %5632 = vrot.lane.b32.xlu0 %v15827_v57, %s12370_s29  ;;  %12053 = vrcp.f32 %v3074_v53 }
 0x548   : > { %v3047_v11 = vpop.xlane.xlu1 %3046 }
 0x549   : > { %11795 = vrot.lane.b32.xlu0 %v15828_v62, %s12369_s26  ;;  %12055 = vrcp.f32 %v3047_v11  ;;  %s15519_s26 = scalar_lea.vmem %s15664_s13, %s10168_s28 }
 0x54c   : > { %v3044_v1 = vpop.xlane.xlu1 %3043 }
 0x54d   : > { %5725 = vrot.lane.b32.xlu0 %v15829_v7, %s12370_s29  ;;  %12057 = vrcp.f32 %v3044_v1  ;;  %v15842_v7 = vld [vmem:[#allocation42_spill] sm:$0xff] }
 0x54e   : > { %v12052_v13 = vpop.eup %12051  ;;  %v11723_v1 = vunpack.i.h.bf16 %v15842_v7 }
 0x54f   : > { %v12054_v44 = vpop.eup %12053  ;;  %v3145_v48 = vmul.f32 %v12052_v13, %v13731_v34  ;;  %v15843_v13 = vld [vmem:[#allocation50_spill] sm:$0xff] }
 0x550   : > { %v3059_v10 = vpop.xlane.xlu0 %3058  ;;  %v3144_v8 = vmul.f32 %v12054_v44, %v13733_v51  ;;  %v3071_v12 = vpop.xlane.xlu1 %3070  ;;  %v15833_v51 = vld [vmem:[#allocation33_spill] sm:$0xff]  ;;  %v11722_v44 = vunpack.i.l.bf16 %v15842_v7 }
 0x551   : > { %5816 = vrot.lane.b32.xlu0 %v15831_v50, %s12370_s29  ;;  %12059 = vrcp.f32 %v3059_v10 }
 0x552   : > { %10825 = vmatprep.mubr.msk.f32.mxu1 %vm2795_vm3, %v3144_v8  ;;  %v11381_v8 = vpack.c.bf16 %v11723_v1, %v11722_v44 }
 0x553   : > { %10826 = vmatmul.mubr.msk.f32.vlgmr.msra.gmra.mrb[34].mxu1 %vm2795_vm3, %v3145_v48  ;;  %v12056_v34 = vpop.eup %12055 }
 0x554   : > { %11380 = vmatpush3.bf16.xpose.msk.msra.mxu1 %vm13131_vm2, %v11375_v55  ;;  %10839 = vmatprep.mubr.msk.f32.mxu1 %vm1344_vm1, %v15832_v61  ;;  %v3056_v17 = vpop.xlane.xlu0 %3055  ;;  %v3135_v23 = vmul.f32 %v12056_v34, %v13740_v16  ;;  %v15839_v55 = vld [vmem:[#allocation54_spill] sm:$0xff] }
 0x555   : > { %5907 = vrot.lane.b32.xlu0 %v15833_v51, %s12370_s29  ;;  %11389 = vmatprep.subr.msk.bf16.mxu1 %vm13131_vm2, %v11387_v46  ;;  %12061 = vrcp.f32 %v3056_v17 }
 0x556   : > { %12063 = vrcp.f32 %v3071_v12 }
 0x557   : > { %v12058_v29 = vpop.eup %12057 }
 0x558   : > { %v3068_v38 = vpop.xlane.xlu1 %3067  ;;  %v3134_v47 = vmul.f32 %v12058_v29, %v13745_v2  ;;  %v4905_v33 = vpop.permute.xlu0 %4904 }
 0x559   : > { %11800 = vrot.lane.b32.xlu0 %v15836_v60, %s12371_s30  ;;  %12065 = vrcp.f32 %v3068_v38 }
 0x55a   : > { %10790 = vmatprep.mubr.msk.f32.mxu0 %vm2795_vm3, %v3134_v47 }
 0x55b   : > { %10840 = vmatmul.mubr.msk.f32.vlgmr.msra.gmra.mrb[36].mxu1 %vm1344_vm1, %v15837_v24  ;;  %10791 = vmatmul.mubr.msk.f32.vlgmr.msra.gmra.mrb[52].mxu0 %vm2795_vm3, %v3135_v23  ;;  %v12060_v2 = vpop.eup %12059 }
 0x55c   : > { %11392 = vmatpush3.bf16.xpose.msk.msra.mxu1 %vm13131_vm2, %v11387_v46  ;;  %v11751_v26 = vpop.permute.xlu1 %11750  ;;  %11358 = vmatpush3.bf16.msra.mxu0 %v11355_v36  ;;  %v15841_v36 = vld [vmem:[#allocation6_spill] sm:$0xff]  ;;  %v3139_v53 = vmul.f32 %v12060_v2, %v13751_v9 }
 0x55d   : > { %11810 = vrot.lane.b32.xlu0 %v15838_v37, %s12371_s30  ;;  %10853 = vmatprep.mubr.msk.f32.mxu1 %vm1344_vm1, %v15839_v55  ;;  %v11753_v56 = vunpack.i.h.bf16 %v11751_v26  ;;  %v11752_v3 = vunpack.i.l.bf16 %v11751_v26 }
 0x55e   : > { %11364 = vmatprep.subr.bf16.mxu0 %v11363_v31  ;;  %11401 = vmatprep.subr.msk.bf16.mxu1 %vm13131_vm2, %v11399_v54 }
 0x55f   : > { %v12062_v16 = vpop.eup %12061 }
 0x560   : > { %v4907_v21 = vpop.permute.xlu1 %4906  ;;  %v3138_v45 = vmul.f32 %v12062_v16, %v13757_v20  ;;  %v12064_v57 = vpop.eup %12063  ;;  %v11411_v20 = vpack.c.bf16 %v11753_v56, %v11752_v3  ;;  %v15847_v56 = vld [vmem:[#allocation53_spill] sm:$0xff] }
 0x561   : > { %11820 = vrot.lane.b32.xlu0 %v15841_v36, %s12371_s30  ;;  %v3143_v10 = vmul.f32 %v12064_v57, %v13749_v15 }
 0x562   : > { %10804 = vmatprep.mubr.msk.f32.mxu0 %vm2795_vm3, %v3138_v45 }
 0x563   : > { %v12066_v11 = vpop.eup %12065  ;;  %10854 = vmatmul.mubr.msk.f32.vlgmr.msra.gmra.mrb[38].mxu1 %vm1344_vm1, %v15843_v13  ;;  %10805 = vmatmul.mubr.msk.f32.vlgmr.msra.gmra.mrb[54].mxu0 %vm2795_vm3, %v3139_v53 }
 0x564   : > { %11366 = vmatpush3.bf16.msra.mxu0 %v11363_v31  ;;  %11404 = vmatpush3.bf16.xpose.msk.msra.mxu1 %vm13131_vm2, %v11399_v54  ;;  %v13983_v9 = vpop.permute.xlu1 %4995  ;;  %v3142_v5 = vmul.f32 %v12066_v11, %v13761_v63  ;;  %v11393_v31 = vpack.c.bf16 %v11733_v14, %v11732_v18  ;;  %v15846_v54 = vld [vmem:[#allocation55_spill] sm:$0xff] }
 0x565   : > { %11830 = vrot.lane.b32.xlu0 %v13040_v28, %s12371_s30  ;;  %10867 = vmatprep.mubr.msk.f32.mxu1 %vm1344_vm1, %v4905_v33  ;;  %v11743_v37 = vunpack.i.h.bf16 %v15846_v54  ;;  %v11742_v2 = vunpack.i.l.bf16 %v15846_v54 }
 0x566   : > { %11372 = vmatprep.subr.bf16.mxu0 %v11371_v32  ;;  %11413 = vmatprep.subr.msk.bf16.mxu1 %vm13131_vm2, %v11411_v20 }
 0x567   : > { %10818 = vmatprep.mubr.msk.f32.mxu0 %vm2795_vm3, %v3142_v5  ;;  %v11405_v22 = vpack.c.bf16 %v11743_v37, %v11742_v2 }
 0x568   : > { %10819 = vmatmul.mubr.msk.f32.vlgmr.msra.gmra.mrb[56].mxu0 %vm2795_vm3, %v3143_v10  ;;  %v11761_v50 = vpop.permute.xlu1 %11760 }
 0x569   : > { %11840 = vrot.lane.b32.xlu0 %v13061_v59, %s12371_s30  ;;  %11374 = vmatpush3.bf16.msra.mxu0 %v11371_v32  ;;  %v11763_v63 = vunpack.i.h.bf16 %v11761_v50  ;;  %v11762_v28 = vunpack.i.l.bf16 %v11761_v50 }
 0x56a   : > { %11383 = vmatprep.subr.msk.bf16.mxu0 %vm13131_vm2, %v11381_v8 }
 0x56b   : > { %v11423_v48 = vpack.c.bf16 %v11763_v63, %v11762_v28  ;;  %10868 = vmatmul.mubr.msk.f32.vlgmr.msra.gmra.mrb[40].mxu1 %vm1344_vm1, %v4907_v21 }
 0x56c   : > { %11416 = vmatpush3.bf16.xpose.msk.msra.mxu1 %vm13131_vm2, %v11411_v20  ;;  %v5089_v15 = vpop.permute.xlu1 %5088 }
 0x56d   : > { %11425 = vmatprep.subr.msk.bf16.mxu1 %vm13131_vm2, %v11423_v48 }
 0x570   : > { %v14003_v46 = vpop.permute.xlu1 %5177 }
 0x574   : > { %v11771_v12 = vpop.permute.xlu1 %11770 }
 0x575   : > { %v11773_v52 = vunpack.i.h.bf16 %v11771_v12  ;;  %v11772_v49 = vunpack.i.l.bf16 %v11771_v12 }
 0x577   : > { %v11435_v24 = vpack.c.bf16 %v11773_v52, %v11772_v49 }
 0x578   : > { %v5271_v17 = vpop.permute.xlu1 %5270 }
 0x57c   : > { %v14005_v34 = vpop.permute.xlu1 %5359 }
 0x580   : > { %v11781_v26 = vpop.permute.xlu1 %11780 }
 0x581   : > { %v11783_v0 = vunpack.i.h.bf16 %v11781_v26  ;;  %v11782_v30 = vunpack.i.l.bf16 %v11781_v26 }
 0x583   : > { %v11447_v21 = vpack.c.bf16 %v11783_v0, %v11782_v30 }
 0x584   : > { %v5453_v55 = vpop.permute.xlu1 %5452 }
 0x588   : > { %v5542_v45 = vpop.permute.xlu1 %5541 }
 0x589   : > { %v3083_v59 = vpop.xlane.xlu0 %3082 }
 0x58a   : > { %12067 = vrcp.f32 %v3083_v59 }
 0x58c   : > { %v11791_v11 = vpop.permute.xlu1 %11790 }
 0x58d   : > { %v3080_v61 = vpop.xlane.xlu0 %3079  ;;  %v11793_v1 = vunpack.i.h.bf16 %v11791_v11  ;;  %v11792_v13 = vunpack.i.l.bf16 %v11791_v11 }
 0x58e   : > { %12069 = vrcp.f32 %v3080_v61 }
 0x590   : > { %v5635_v32 = vpop.permute.xlu1 %5634 }
 0x591   : > { %v11756_v51 = vpop.permute.xlu0 %11755 }
 0x592   : > { %v11758_v36 = vunpack.i.h.bf16 %v11756_v51  ;;  %v11757_v53 = vunpack.i.l.bf16 %v11756_v51 }
 0x594   : > { %v12068_v4 = vpop.eup %12067  ;;  %v5724_v50 = vpop.permute.xlu1 %5723 }
 0x595   : > { %v4998_v29 = vpop.permute.xlu0 %4997  ;;  %v3147_v23 = vmul.f32 %v12068_v4, %v13789_v41  ;;  %v15845_v41 = vld [vmem:[#allocation46_spill] sm:$0xff] }
 0x598   : > { %v12070_v38 = vpop.eup %12069 }
 0x599   : > { %v5087_v60 = vpop.permute.xlu0 %5086  ;;  %v3146_v47 = vmul.f32 %v12070_v38, %v13797_v43 }
 0x59a   : > { %10881 = vmatprep.mubr.msk.f32.mxu1 %vm1344_vm1, %v5087_v60 }
 0x59b   : > { %10832 = vmatprep.mubr.msk.f32.mxu0 %vm2795_vm3, %v3146_v47  ;;  %10882 = vmatmul.mubr.msk.f32.vlgmr.msra.gmra.mrb[42].mxu1 %vm1344_vm1, %v5089_v15  ;;  %v5815_v15 = vpop.permute.xlu1 %5814 }
 0x59c   : > { %11428 = vmatpush3.bf16.xpose.msk.msra.mxu1 %vm13131_vm2, %v11423_v48  ;;  %10833 = vmatmul.mubr.msk.f32.vlgmr.msra.gmra.mrb[58].mxu0 %vm2795_vm3, %v3147_v23 }
 0x59d   : > { %11386 = vmatpush3.bf16.xpose.msk.msra.mxu0 %vm13131_vm2, %v11381_v8  ;;  %11437 = vmatprep.subr.msk.bf16.mxu1 %vm13131_vm2, %v11435_v24  ;;  %v11766_v43 = vpop.permute.xlu0 %11765 }
 0x59e   : > { %10846 = vmatprep.mubr.msk.f32.mxu0 %vm1344_vm1, %v15845_v41  ;;  %11395 = vmatprep.subr.msk.bf16.mxu0 %vm13131_vm2, %v11393_v31  ;;  %v11768_v44 = vunpack.i.h.bf16 %v11766_v43  ;;  %v11767_v33 = vunpack.i.l.bf16 %v11766_v43 }
 0x59f   : > { %v5906_v51 = vpop.permute.xlu1 %5905 }
 0x5a0   : > { %v11429_v5 = vpack.c.bf16 %v11768_v44, %v11767_v33 }
 0x5a1   : > { %v5180_v16 = vpop.permute.xlu0 %5179 }
 0x5a3   : > { %v11806_v49 = vpop.permute.xlu1 %11805 }
 0x5a4   : > { %10847 = vmatmul.mubr.msk.f32.vlgmr.msra.gmra.mrb[60].mxu0 %vm1344_vm1, %v15847_v56  ;;  %v11808_v25 = vunpack.i.h.bf16 %v11806_v49  ;;  %v11807_v14 = vunpack.i.l.bf16 %v11806_v49 }
 0x5a5   : > { %11398 = vmatpush3.bf16.xpose.msk.msra.mxu0 %vm13131_vm2, %v11393_v31  ;;  %10860 = vmatprep.mubr.msk.f32.mxu0 %vm1344_vm1, %v13769_v6  ;;  %v5269_v3 = vpop.permute.xlu0 %5268  ;;  %v11417_v6 = vpack.c.bf16 %v11758_v36, %v11757_v53 }
 0x5a6   : > { %11407 = vmatprep.subr.msk.bf16.mxu0 %vm13131_vm2, %v11405_v22  ;;  %10895 = vmatprep.mubr.msk.f32.mxu1 %vm1344_vm1, %v5269_v3  ;;  %v11475_v23 = vpack.c.bf16 %v11808_v25, %v11807_v14 }
 0x5a7   : > { %10896 = vmatmul.mubr.msk.f32.vlgmr.msra.gmra.mrb[44].mxu1 %vm1344_vm1, %v5271_v17  ;;  %v11816_v26 = vpop.permute.xlu1 %11815 }
 0x5a8   : > { %11440 = vmatpush3.bf16.xpose.msk.msra.mxu1 %vm13131_vm2, %v11435_v24  ;;  %v11818_v37 = vunpack.i.h.bf16 %v11816_v26  ;;  %v11817_v2 = vunpack.i.l.bf16 %v11816_v26 }
 0x5a9   : > { %11449 = vmatprep.subr.msk.bf16.mxu1 %vm13131_vm2, %v11447_v21  ;;  %v11776_v57 = vpop.permute.xlu0 %11775 }
 0x5aa   : > { %v11778_v10 = vunpack.i.h.bf16 %v11776_v57  ;;  %v11777_v8 = vunpack.i.l.bf16 %v11776_v57  ;;  %v14107_v56 = vpack.c.bf16 %v11818_v37, %v11817_v2 }
 0x5ac   : > { %10861 = vmatmul.mubr.msk.f32.vlgmr.msra.gmra.mrb[62].mxu0 %vm1344_vm1, %v13778_v35  ;;  %v11459_v35 = vpack.c.bf16 %v11793_v1, %v11792_v13  ;;  %v11441_v28 = vpack.c.bf16 %v11778_v10, %v11777_v8 }
 0x5ad   : > { %11410 = vmatpush3.bf16.xpose.msk.msra.mxu0 %vm13131_vm2, %v11405_v22  ;;  %10874 = vmatprep.mubr.msk.f32.mxu0 %vm1344_vm1, %v13983_v9  ;;  %v5362_v7 = vpop.permute.xlu0 %5361 }
 0x5ae   : > { %11419 = vmatprep.subr.msk.bf16.mxu0 %vm13131_vm2, %v11417_v6 }
 0x5b1   : > { %v5451_v20 = vpop.permute.xlu0 %5450 }
 0x5b2   : > { %10909 = vmatprep.mubr.msk.f32.mxu1 %vm1344_vm1, %v5451_v20 }
 0x5b3   : > { %10910 = vmatmul.mubr.msk.f32.vlgmr.msra.gmra.mrb[46].mxu1 %vm1344_vm1, %v5453_v55 }
 0x5b4   : > { %10875 = vmatmul.mubr.msk.f32.vlgmr.msra.gmra.mrb[64].mxu0 %vm1344_vm1, %v4998_v29  ;;  %11452 = vmatpush3.bf16.xpose.msk.msra.mxu1 %vm13131_vm2, %v11447_v21 }
 0x5b5   : > { %11422 = vmatpush3.bf16.xpose.msk.msra.mxu0 %vm13131_vm2, %v11417_v6  ;;  %10888 = vmatprep.mubr.msk.f32.mxu0 %vm1344_vm1, %v14003_v46  ;;  %v11786_v9 = vpop.permute.xlu0 %11785 }
 0x5b6   : > { %11461 = vmatprep.subr.msk.bf16.mxu1 %vm13131_vm2, %v11459_v35  ;;  %11431 = vmatprep.subr.msk.bf16.mxu0 %vm13131_vm2, %v11429_v5  ;;  %v11788_v46 = vunpack.i.h.bf16 %v11786_v9  ;;  %v11787_v12 = vunpack.i.l.bf16 %v11786_v9 }
 0x5b8   : > { %v11453_v61 = vpack.c.bf16 %v11788_v46, %v11787_v12 }
 0x5b9   : > { %v5544_v63 = vpop.permute.xlu0 %5543 }
 0x5bc   : > { %10889 = vmatmul.mubr.msk.f32.vlgmr.msra.gmra.mrb[66].mxu0 %vm1344_vm1, %v5180_v16 }
 0x5bd   : > { %11434 = vmatpush3.bf16.xpose.msk.msra.mxu0 %vm13131_vm2, %v11429_v5  ;;  %10902 = vmatprep.mubr.msk.f32.mxu0 %vm1344_vm1, %v14005_v34  ;;  %v5633_v48 = vpop.permute.xlu0 %5632 }
 0x5be   : > { %11443 = vmatprep.subr.msk.bf16.mxu0 %vm13131_vm2, %v11441_v28  ;;  %10923 = vmatprep.mubr.msk.f32.mxu1 %vm1344_vm1, %v5633_v48 }
 0x5bf   : > { %10924 = vmatmul.mubr.msk.f32.vlgmr.msra.gmra.mrb[48].mxu1 %vm1344_vm1, %v5635_v32 }
 0x5c0   : > { %11464 = vmatpush3.bf16.xpose.msk.msra.mxu1 %vm13131_vm2, %v11459_v35  ;;  %10937 = vmatprep.mubr.msk.f32.mxu1 %vm1344_vm1, %v5815_v15 }
 0x5c1   : > { %v11796_v59 = vpop.permute.xlu0 %11795 }
 0x5c2   : > { %v11798_v34 = vunpack.i.h.bf16 %v11796_v59  ;;  %v11797_v29 = vunpack.i.l.bf16 %v11796_v59 }
 0x5c4   : > { %10903 = vmatmul.mubr.msk.f32.vlgmr.msra.gmra.mrb[68].mxu0 %vm1344_vm1, %v5362_v7  ;;  %v11465_v52 = vpack.c.bf16 %v11798_v34, %v11797_v29 }
 0x5c5   : > { %11446 = vmatpush3.bf16.xpose.msk.msra.mxu0 %vm13131_vm2, %v11441_v28  ;;  %10916 = vmatprep.mubr.msk.f32.mxu0 %vm1344_vm1, %v5542_v45  ;;  %v5726_v17 = vpop.permute.xlu0 %5725 }
 0x5c6   : > { %11455 = vmatprep.subr.msk.bf16.mxu0 %vm13131_vm2, %v11453_v61 }
 0x5c9   : > { %v5817_v4 = vpop.permute.xlu0 %5816 }
 0x5ca   : > { %10938 = vmatmul.mubr.msk.f32.vlgmr.msra.gmra.mrb[50].mxu1 %vm1344_vm1, %v5817_v4 }
 0x5cc   : > { %10917 = vmatmul.mubr.msk.f32.vlgmr.msra.gmra.mrb[70].mxu0 %vm1344_vm1, %v5544_v63 }
 0x5cd   : > { %11458 = vmatpush3.bf16.xpose.msk.msra.mxu0 %vm13131_vm2, %v11453_v61  ;;  %10930 = vmatprep.mubr.msk.f32.mxu0 %vm1344_vm1, %v5724_v50  ;;  %v5908_v38 = vpop.permute.xlu0 %5907 }
 0x5ce   : > { %11467 = vmatprep.subr.msk.bf16.mxu0 %vm13131_vm2, %v11465_v52 }
 0x5d1   : > { %v11801_v18 = vpop.permute.xlu0 %11800 }
 0x5d2   : > { %v11803_v60 = vunpack.i.h.bf16 %v11801_v18  ;;  %v11802_v47 = vunpack.i.l.bf16 %v11801_v18 }
 0x5d4   : > { %10931 = vmatmul.mubr.msk.f32.vlgmr.msra.gmra.mrb[72].mxu0 %vm1344_vm1, %v5726_v17  ;;  %v11471_v24 = vpack.c.bf16 %v11803_v60, %v11802_v47 }
 0x5d5   : > { %11470 = vmatpush3.bf16.xpose.msk.msra.mxu0 %vm13131_vm2, %v11465_v52  ;;  %10944 = vmatprep.mubr.msk.f32.mxu0 %vm1344_vm1, %v5906_v51  ;;  %v11811_v31 = vpop.permute.xlu0 %11810 }
 0x5d6   : > { %v11813_v43 = vunpack.i.h.bf16 %v11811_v31  ;;  %v11812_v41 = vunpack.i.l.bf16 %v11811_v31  ;;  %11476 = vmatprep.subr.bf16.mxu0 %v11475_v23  ;;  %11472 = vmatprep.subr.bf16.mxu1 %v11471_v24 }
 0x5d7   : > { %v14091_v54 = vpop.f32.mrb[40].mxu0  ;;  %11474 = vmatpush3.bf16.msra.mxu1 %v11471_v24 }
 0x5d8   : > { %v14093_v55 = vpop.f32.mrb[41].mxu0  ;;  %v14095_v16 = vpack.c.bf16 %v11813_v43, %v11812_v41 }
 0x5da   : > { %v14097_v0 = vpop.f32.mrb[24].mxu1  ;;  %11480 = vmatprep.subr.bf16.mxu1 %v14095_v16 }
 0x5db   : > { %15848 = vst [vmem:[#allocation32_spill] sm:$0xff] %v14097_v0  ;;  %v14100_v58 = vpop.f32.mrb[42].mxu0  ;;  %v14102_v30 = vpop.f32.mrb[25].mxu1 }
 0x5dc   : > { %15849 = vst [vmem:[#allocation19_spill] sm:$0xff] %v14102_v30  ;;  %v14104_v22 = vpop.f32.mrb[43].mxu0  ;;  %10945 = vmatmul.mubr.msk.f32.vlgmr.msra.gmra.mrb[74].mxu0 %vm1344_vm1, %v5908_v38 }
 0x5dd   : > { %11478 = vmatpush3.bf16.msra.mxu0 %v11475_v23 }
 0x5de   : > { %11484 = vmatprep.subr.bf16.mxu0 %v14107_v56 }
 0x5df   : > { %v14110_v3 = vpop.f32.mrb[44].mxu0 }
 0x5e0   : > { %15850 = vst [vmem:[#allocation31_spill] sm:$0xff] %v14110_v3  ;;  %v14112_v21 = vpop.f32.mrb[45].mxu0 }
 0x5e6   : > { %v14114_v45 = vpop.f32.mrb[46].mxu0 }
 0x5e7   : > { %15851 = vst [vmem:[#allocation34_spill] sm:$0xff] %v14114_v45  ;;  %v14116_v36 = vpop.f32.mrb[47].mxu0 }
 0x5e8   : > { %15852 = vst [vmem:[#allocation35_spill] sm:$0xff] %v14116_v36 }
 0x5ee   : > { %v14118_v53 = vpop.f32.mrb[26].mxu1 }
 0x5ef   : > { %15853 = vst [vmem:[#allocation25_spill] sm:$0xff] %v14118_v53  ;;  %v14120_v57 = vpop.f32.mrb[27].mxu1 }
 0x5f0   : > { %15854 = vst [vmem:[#allocation14_spill] sm:$0xff] %v14120_v57  ;;  %v14122_v6 = vpop.f32.mrb[48].mxu0 }
 0x5f1   : > { %15855 = vst [vmem:[#allocation47_spill] sm:$0xff] %v14122_v6  ;;  %v14124_v11 = vpop.f32.mrb[49].mxu0 }
 0x5f2   : > { %15856 = vst [vmem:[#allocation22_spill] sm:$0xff] %v14124_v11  ;;  %v14126_v7 = vpop.f32.mrb[28].mxu1 }
 0x5f3   : > { %15857 = vst [vmem:[#allocation27_spill] sm:$0xff] %v14126_v7  ;;  %v14128_v1 = vpop.f32.mrb[29].mxu1 }
 0x5f4   : > { %15858 = vst [vmem:[#allocation8_spill] sm:$0xff] %v14128_v1 }
 0x5f6   : > { %v14130_v13 = vpop.f32.mrb[30].mxu1 }
 0x5f7   : > { %15859 = vst [vmem:[#allocation37_spill] sm:$0xff] %v14130_v13  ;;  %v14132_v44 = vpop.f32.mrb[31].mxu1 }
 0x5f8   : > { %15860 = vst [vmem:[#allocation36_spill] sm:$0xff] %v14132_v44 }
 0x5fa   : > { %v14134_v33 = vpop.f32.mrb[32].mxu1  ;;  %v14136_v20 = vpop.f32.mrb[50].mxu0 }
 0x5fb   : > { %15861 = vst [vmem:[#allocation23_spill] sm:$0xff] %v14134_v33  ;;  %15862 = vst [vmem:[#allocation39_spill] sm:$0xff] %v14136_v20  ;;  %v14138_v32 = vpop.f32.mrb[33].mxu1  ;;  %v14140_v35 = vpop.f32.mrb[51].mxu0 }
 0x5fc   : > { %15863 = vst [vmem:[#allocation16_spill] sm:$0xff] %v14138_v32  ;;  %15864 = vst [vmem:[#allocation29_spill] sm:$0xff] %v14140_v35 }
 0x626   : > { %v14142_v5 = vpop.f32.mrb[34].mxu1 }
 0x627   : > { %15865 = vst [vmem:[#allocation49_spill] sm:$0xff] %v14142_v5  ;;  %v14144_v9 = vpop.f32.mrb[35].mxu1 }
 0x628   : > { %15866 = vst [vmem:[#allocation17_spill] sm:$0xff] %v14144_v9 }
 0x62e   : > { %v14146_v10 = vpop.f32.mrb[36].mxu1  ;;  %v14148_v8 = vpop.f32.mrb[52].mxu0 }
 0x62f   : > { %15867 = vst [vmem:[#allocation3_spill] sm:$0xff] %v14148_v8  ;;  %v14150_v50 = vpop.f32.mrb[37].mxu1  ;;  %v5999_v63 = vsel %vm2795_vm3, %v14146_v10, -inf  ;;  %v14154_v28 = vpop.f32.mrb[53].mxu0 }
 0x630   : > { %15868 = vst [vmem:[#allocation41_spill] sm:$0xff] %v14154_v28  ;;  %6000 = vmax.xlane.f32.xlu0 %v5999_v63  ;;  %v5996_v48 = vsel %vm2795_vm3, %v14150_v50, -inf  ;;  %v14290_v8 = vpop.permute.xlu1 %11825 }
 0x631   : > { %5997 = vmax.xlane.f32.xlu1 %v5996_v48 }
 0x634   : > { %v14296_v7 = vpop.permute.xlu1 %11835 }
 0x636   : > { %v14158_v15 = vpop.f32.mrb[38].mxu1  ;;  %v14160_v46 = vpop.f32.mrb[54].mxu0 }
 0x637   : > { %15869 = vst [vmem:[#allocation38_spill] sm:$0xff] %v14160_v46  ;;  %v14162_v12 = vpop.f32.mrb[39].mxu1  ;;  %v6011_v59 = vsel %vm2795_vm3, %v14158_v15, -inf  ;;  %v14166_v61 = vpop.f32.mrb[55].mxu0 }
 0x638   : > { %15870 = vst [vmem:[#allocation10_spill] sm:$0xff] %v14166_v61  ;;  %6012 = vmax.xlane.f32.xlu1 %v6011_v59  ;;  %v6008_v17 = vsel %vm2795_vm3, %v14162_v12, -inf  ;;  %v14300_v1 = vpop.permute.xlu1 %11845 }
 0x639   : > { %6009 = vmax.xlane.f32.xlu0 %v6008_v17 }
 0x63b   : > { %v14170_v51 = vpop.f32.mrb[56].mxu0 }
 0x63c   : > { %15871 = vst [vmem:[#allocation5_spill] sm:$0xff] %v14170_v51  ;;  %v14172_v34 = vpop.f32.mrb[57].mxu0 }
 0x63d   : > { %15872 = vst [vmem:[#allocation21_spill] sm:$0xff] %v14172_v34 }
 0x63e   : > { %v14174_v29 = vpop.f32.mrb[40].mxu1 }
 0x63f   : > { %v14176_v4 = vpop.f32.mrb[41].mxu1  ;;  %v6023_v52 = vsel %vm2795_vm3, %v14174_v29, -inf }
 0x640   : > { %6024 = vmax.xlane.f32.xlu1 %v6023_v52  ;;  %v6020_v49 = vsel %vm2795_vm3, %v14176_v4, -inf }
 0x641   : > { %6021 = vmax.xlane.f32.xlu0 %v6020_v49 }
 0x66e   : > { %v14182_v38 = vpop.f32.mrb[42].mxu1 }
 0x66f   : > { %v14184_v25 = vpop.f32.mrb[58].mxu0  ;;  %v14186_v14 = vpop.f32.mrb[43].mxu1  ;;  %v6035_v43 = vsel %vm2795_vm3, %v14182_v38, -inf }
 0x670   : > { %15873 = vst [vmem:[#allocation13_spill] sm:$0xff] %v14184_v25  ;;  %v14188_v18 = vpop.f32.mrb[59].mxu0  ;;  %v6032_v41 = vsel %vm2795_vm3, %v14186_v14, -inf }
 0x671   : > { %15874 = vst [vmem:[#allocation7_spill] sm:$0xff] %v14188_v18 }
 0x677   : > { %v14190_v60 = vpop.f32.mrb[60].mxu0 }
 0x678   : > { %v14192_v47 = vpop.f32.mrb[61].mxu0  ;;  %v6005_v23 = vsel %vm2795_vm3, %v14190_v60, -inf }
 0x679   : > { %6006 = vmax.xlane.f32.xlu1 %v6005_v23  ;;  %v6002_v24 = vsel %vm2795_vm3, %v14192_v47, -inf }
 0x67a   : > { %6003 = vmax.xlane.f32.xlu0 %v6002_v24  ;;  %v14198_v26 = vpop.f32.mrb[44].mxu1 }
 0x67b   : > { %v14200_v31 = vpop.f32.mrb[45].mxu1  ;;  %v6047_v59 = vsel %vm2795_vm3, %v14198_v26, -inf }
 0x67c   : > { %v6044_v17 = vsel %vm2795_vm3, %v14200_v31, -inf }
 0x67d   : > { %6036 = vmax.xlane.f32.xlu1 %v6035_v43 }
 0x67e   : > { %6033 = vmax.xlane.f32.xlu0 %v6032_v41 }
 0x67f   : > { %v14206_v37 = vpop.f32.mrb[62].mxu0 }
 0x680   : > { %v14208_v2 = vpop.f32.mrb[63].mxu0  ;;  %v6017_v63 = vsel %vm2795_vm3, %v14206_v37, -inf }
 0x681   : > { %6018 = vmax.xlane.f32.xlu1 %v6017_v63  ;;  %v6014_v48 = vsel %vm2795_vm3, %v14208_v2, -inf }
 0x682   : > { %6015 = vmax.xlane.f32.xlu0 %v6014_v48 }
 0x685   : > { %6048 = vmax.xlane.f32.xlu1 %v6047_v59 }
 0x686   : > { %6045 = vmax.xlane.f32.xlu0 %v6044_v17  ;;  %v14218_v52 = vpop.f32.mrb[46].mxu1 }
 0x687   : > { %v14220_v49 = vpop.f32.mrb[64].mxu0  ;;  %v14222_v23 = vpop.f32.mrb[47].mxu1  ;;  %v6059_v63 = vsel %vm2795_vm3, %v14218_v52, -inf }
 0x688   : > { %v14224_v24 = vpop.f32.mrb[65].mxu0  ;;  %v6029_v43 = vsel %vm2795_vm3, %v14220_v49, -inf  ;;  %v6056_v48 = vsel %vm2795_vm3, %v14222_v23, -inf }
 0x689   : > { %6030 = vmax.xlane.f32.xlu1 %v6029_v43  ;;  %v6026_v41 = vsel %vm2795_vm3, %v14224_v24, -inf }
 0x68a   : > { %6027 = vmax.xlane.f32.xlu0 %v6026_v41 }
 0x68d   : > { %6060 = vmax.xlane.f32.xlu1 %v6059_v63 }
 0x68e   : > { %6057 = vmax.xlane.f32.xlu0 %v6056_v48 }
 0x68f   : > { %v14234_v59 = vpop.f32.mrb[66].mxu0 }
 0x690   : > { %v14236_v17 = vpop.f32.mrb[67].mxu0  ;;  %v6041_v25 = vsel %vm2795_vm3, %v14234_v59, -inf }
 0x691   : > { %6042 = vmax.xlane.f32.xlu1 %v6041_v25  ;;  %v6038_v43 = vsel %vm2795_vm3, %v14236_v17, -inf }
 0x692   : > { %6039 = vmax.xlane.f32.xlu0 %v6038_v43  ;;  %v14242_v41 = vpop.f32.mrb[48].mxu1 }
 0x693   : > { %v14244_v18 = vpop.f32.mrb[49].mxu1  ;;  %v6071_v63 = vsel %vm2795_vm3, %v14242_v41, -inf }
 0x694   : > { %v6068_v48 = vsel %vm2795_vm3, %v14244_v18, -inf }
 0x695   : > { %6072 = vmax.xlane.f32.xlu1 %v6071_v63 }
 0x696   : > { %6069 = vmax.xlane.f32.xlu0 %v6068_v48 }
 0x697   : > { %v14250_v5 = vpop.f32.mrb[68].mxu0 }
 0x698   : > { %v14252_v9 = vpop.f32.mrb[69].mxu0  ;;  %v6053_v25 = vsel %vm2795_vm3, %v14250_v5, -inf }
 0x699   : > { %6054 = vmax.xlane.f32.xlu1 %v6053_v25  ;;  %v6050_v43 = vsel %vm2795_vm3, %v14252_v9, -inf }
 0x69a   : > { %6051 = vmax.xlane.f32.xlu0 %v6050_v43 }
 0x69d   : > { %v14258_v51 = vpop.f32.mrb[50].mxu1 }
 0x69e   : > { %v14260_v34 = vpop.f32.mrb[51].mxu1  ;;  %v6083_v63 = vsel %vm2795_vm3, %v14258_v51, -inf }
 0x69f   : > { %v14264_v48 = vpop.f32.mrb[70].mxu0  ;;  %6084 = vmax.xlane.f32.xlu1 %v6083_v63  ;;  %v6080_v33 = vsel %vm2795_vm3, %v14260_v34, -inf }
 0x6a0   : > { %v14268_v32 = vpop.f32.mrb[71].mxu0  ;;  %6081 = vmax.xlane.f32.xlu0 %v6080_v33  ;;  %v6065_v25 = vsel %vm2795_vm3, %v14264_v48, -inf  ;;  %v14282_v33 = vpop.permute.xlu0 %11820 }
 0x6a1   : > { %v6062_v43 = vsel %vm2795_vm3, %v14268_v32, -inf }
 0x6a3   : > { %6066 = vmax.xlane.f32.xlu1 %v6065_v25 }
 0x6a4   : > { %6063 = vmax.xlane.f32.xlu0 %v6062_v43 }
 0x6a7   : > { %v14274_v46 = vpop.f32.mrb[72].mxu0 }
 0x6a8   : > { %v14276_v61 = vpop.f32.mrb[73].mxu0  ;;  %v6077_v63 = vsel %vm2795_vm3, %v14274_v46, -inf }
 0x6a9   : > { %6078 = vmax.xlane.f32.xlu1 %v6077_v63  ;;  %v6074_v13 = vsel %vm2795_vm3, %v14276_v61, -inf  ;;  %v14294_v63 = vpop.permute.xlu0 %11830 }
 0x6aa   : > { %6075 = vmax.xlane.f32.xlu0 %v6074_v13 }
 0x6ad   : > { %v14298_v13 = vpop.permute.xlu0 %11840 }
 0x6af   : > { %v14284_v44 = vpop.f32.mrb[74].mxu0 }
 0x6b0   : > { %v14286_v25 = vpop.f32.mrb[75].mxu0  ;;  %v6089_v43 = vsel %vm2795_vm3, %v14284_v44, -inf }
 0x6b1   : > { %6090 = vmax.xlane.f32.xlu1 %v6089_v43  ;;  %v6086_v28 = vsel %vm2795_vm3, %v14286_v25, -inf }
 0x6b2   : > { %6087 = vmax.xlane.f32.xlu0 %v6086_v28 }
 0x6bd   : > { %v6001_v20 = vpop.xlane.xlu0 %6000 }
 0x6be   : > { %v6093_v35 = vsub.f32 %v14146_v10, %v6001_v20  ;;  %v5998_v57 = vpop.xlane.xlu1 %5997 }
 0x6c0   : > { %v6126_v53 = vmul.f32 1.442695, %v6093_v35 }
 0x6c2   : > { %12071 = vpow2.f32 %v6126_v53  ;;  %v6092_v53 = vsub.f32 %v14150_v50, %v5998_v57 }
 0x6c4   : > { %v6124_v10 = vmul.f32 1.442695, %v6092_v53 }
 0x6c5   : > { %v6013_v6 = vpop.xlane.xlu1 %6012 }
 0x6c6   : > { %v6097_v43 = vsub.f32 %v14158_v15, %v6013_v6  ;;  %v6010_v35 = vpop.xlane.xlu0 %6009 }
 0x6c8   : > { %v6134_v11 = vmul.f32 1.442695, %v6097_v43  ;;  %11850 = vrot.lane.b32.xlu0 %v13089_v27, %s12371_s30  ;;  %v6096_v27 = vsub.f32 %v14162_v12, %v6010_v35 }
 0x6ca   : > { %12073 = vpow2.f32 %v6134_v11  ;;  %v6132_v43 = vmul.f32 1.442695, %v6096_v27 }
 0x6cc   : > { %v14306_v28 = vpop.eup %12071 }
 0x6cd   : > { %v6025_v0 = vpop.xlane.xlu1 %6024  ;;  %v6191_v30 = vsel %vm2795_vm3, %v14306_v28, 0.0 }
 0x6ce   : > { %v6101_v45 = vsub.f32 %v14174_v29, %v6025_v0  ;;  %6192 = vadd.xlane.f32.xlu1 %v6191_v30  ;;  %v6022_v15 = vpop.xlane.xlu0 %6021 }
 0x6cf   : > { %v6100_v0 = vsub.f32 %v14176_v4, %v6022_v15 }
 0x6d0   : > { %v6142_v20 = vmul.f32 1.442695, %v6101_v45 }
 0x6d1   : > { %v6140_v45 = vmul.f32 1.442695, %v6100_v0 }
 0x6d2   : > { %12075 = vpow2.f32 %v6142_v20 }
 0x6d3   : > { %12077 = vpow2.f32 %v6124_v10 }
 0x6d4   : > { %v14312_v6 = vpop.eup %12073  ;;  %12079 = vpow2.f32 %v6132_v43 }
 0x6d5   : > { %v6203_v11 = vsel %vm2795_vm3, %v14312_v6, 0.0  ;;  %12081 = vpow2.f32 %v6140_v45 }
 0x6d6   : > { %6204 = vadd.xlane.f32.xlu1 %v6203_v11 }
 0x6dc   : > { %v14318_v30 = vpop.eup %12075 }
 0x6dd   : > { %v6215_v57 = vsel %vm2795_vm3, %v14318_v30, 0.0  ;;  %v14322_v50 = vpop.eup %12077 }
 0x6de   : > { %6216 = vadd.xlane.f32.xlu1 %v6215_v57  ;;  %v6188_v12 = vsel %vm2795_vm3, %v14322_v50, 0.0  ;;  %v14326_v29 = vpop.eup %12079 }
 0x6df   : > { %v6200_v4 = vsel %vm2795_vm3, %v14326_v29, 0.0  ;;  %v14330_v20 = vpop.eup %12081 }
 0x6e0   : > { %v6212_v53 = vsel %vm2795_vm3, %v14330_v20, 0.0 }
 0x6e7   : > { %6189 = vadd.xlane.f32.xlu0 %v6188_v12 }
 0x6eb   : > { %6201 = vadd.xlane.f32.xlu0 %v6200_v4 }
 0x6ef   : > { %6213 = vadd.xlane.f32.xlu0 %v6212_v53 }
 0x706   : > { %v6007_v35 = vpop.xlane.xlu1 %6006 }
 0x707   : > { %v6095_v10 = vsub.f32 %v14190_v60, %v6007_v35  ;;  %v6004_v27 = vpop.xlane.xlu0 %6003 }
 0x708   : > { %v6094_v11 = vsub.f32 %v14192_v47, %v6004_v27 }
 0x709   : > { %v6130_v15 = vmul.f32 1.442695, %v6095_v10 }
 0x70a   : > { %v6128_v43 = vmul.f32 1.442695, %v6094_v11  ;;  %v6037_v0 = vpop.xlane.xlu1 %6036 }
 0x70b   : > { %12083 = vpow2.f32 %v6130_v15  ;;  %v6105_v45 = vsub.f32 %v14182_v38, %v6037_v0  ;;  %v6034_v57 = vpop.xlane.xlu0 %6033 }
 0x70c   : > { %12085 = vpow2.f32 %v6128_v43  ;;  %v6104_v12 = vsub.f32 %v14186_v14, %v6034_v57 }
 0x70d   : > { %v6150_v4 = vmul.f32 1.442695, %v6105_v45 }
 0x70e   : > { %v6148_v36 = vmul.f32 1.442695, %v6104_v12  ;;  %v6019_v3 = vpop.xlane.xlu1 %6018 }
 0x70f   : > { %12087 = vpow2.f32 %v6150_v4  ;;  %v6099_v53 = vsub.f32 %v14206_v37, %v6019_v3  ;;  %v6016_v60 = vpop.xlane.xlu0 %6015 }
 0x710   : > { %v6098_v35 = vsub.f32 %v14208_v2, %v6016_v60  ;;  %12089 = vpow2.f32 %v6148_v36 }
 0x711   : > { %v6138_v47 = vmul.f32 1.442695, %v6099_v53 }
 0x712   : > { %v6136_v10 = vmul.f32 1.442695, %v6098_v35  ;;  %v6049_v27 = vpop.xlane.xlu1 %6048 }
 0x713   : > { %v6109_v11 = vsub.f32 %v14198_v26, %v6049_v27  ;;  %v6046_v38 = vpop.xlane.xlu0 %6045 }
 0x714   : > { %12091 = vpow2.f32 %v6136_v10  ;;  %v6108_v43 = vsub.f32 %v14200_v31, %v6046_v38 }
 0x715   : > { %v14341_v15 = vpop.eup %12083  ;;  %12093 = vpow2.f32 %v6138_v47  ;;  %v6158_v14 = vmul.f32 1.442695, %v6109_v11 }
 0x716   : > { %v14344_v0 = vpop.eup %12085  ;;  %v6031_v3 = vpop.xlane.xlu1 %6030  ;;  %v6197_v37 = vsel %vm2795_vm3, %v14341_v15, 0.0  ;;  %v6156_v57 = vmul.f32 1.442695, %v6108_v43 }
 0x717   : > { %v6028_v36 = vpop.xlane.xlu0 %6027  ;;  %6198 = vadd.xlane.f32.xlu1 %v6197_v37  ;;  %v6194_v2 = vsel %vm2795_vm3, %v14344_v0, 0.0  ;;  %12095 = vpow2.f32 %v6158_v14  ;;  %v6103_v31 = vsub.f32 %v14220_v49, %v6031_v3 }
 0x718   : > { %v6102_v26 = vsub.f32 %v14224_v24, %v6028_v36  ;;  %6195 = vadd.xlane.f32.xlu0 %v6194_v2 }
 0x719   : > { %v14351_v45 = vpop.eup %12087  ;;  %v6146_v24 = vmul.f32 1.442695, %v6103_v31 }
 0x71a   : > { %v6144_v12 = vmul.f32 1.442695, %v6102_v26  ;;  %v6061_v4 = vpop.xlane.xlu1 %6060  ;;  %v6227_v53 = vsel %vm2795_vm3, %v14351_v45, 0.0  ;;  %v14356_v60 = vpop.eup %12089 }
 0x71b   : > { %v6113_v35 = vsub.f32 %v14218_v52, %v6061_v4  ;;  %v6058_v47 = vpop.xlane.xlu0 %6057  ;;  %6228 = vadd.xlane.f32.xlu1 %v6227_v53  ;;  %v6224_v38 = vsel %vm2795_vm3, %v14356_v60, 0.0 }
 0x71c   : > { %12097 = vpow2.f32 %v6144_v12  ;;  %v6112_v27 = vsub.f32 %v14222_v23, %v6058_v47 }
 0x71d   : > { %12099 = vpow2.f32 %v6156_v57  ;;  %v6166_v10 = vmul.f32 1.442695, %v6113_v35 }
 0x71e   : > { %v14360_v11 = vpop.eup %12091  ;;  %v6043_v49 = vpop.xlane.xlu1 %6042  ;;  %v6164_v37 = vmul.f32 1.442695, %v6112_v27 }
 0x71f   : > { %v14364_v14 = vpop.eup %12093  ;;  %12101 = vpow2.f32 %v6166_v10  ;;  %v6040_v43 = vpop.xlane.xlu0 %6039  ;;  %6225 = vadd.xlane.f32.xlu1 %v6224_v38  ;;  %v6206_v52 = vsel %vm2795_vm3, %v14360_v11, 0.0  ;;  %v6107_v23 = vsub.f32 %v14234_v59, %v6043_v49 }
 0x720   : > { %v6106_v3 = vsub.f32 %v14236_v17, %v6040_v43  ;;  %6207 = vadd.xlane.f32.xlu0 %v6206_v52  ;;  %12103 = vpow2.f32 %v6146_v24  ;;  %v6209_v26 = vsel %vm2795_vm3, %v14364_v14, 0.0 }
 0x721   : > { %v14372_v57 = vpop.eup %12095  ;;  %v6154_v4 = vmul.f32 1.442695, %v6107_v23 }
 0x722   : > { %v6152_v36 = vmul.f32 1.442695, %v6106_v3  ;;  %v6073_v2 = vpop.xlane.xlu1 %6072  ;;  %v6239_v47 = vsel %vm2795_vm3, %v14372_v57, 0.0 }
 0x723   : > { %v6117_v31 = vsub.f32 %v14242_v41, %v6073_v2  ;;  %v6070_v12 = vpop.xlane.xlu0 %6069  ;;  %6210 = vadd.xlane.f32.xlu1 %v6209_v26 }
 0x724   : > { %12105 = vpow2.f32 %v6152_v36  ;;  %v6116_v53 = vsub.f32 %v14244_v18, %v6070_v12 }
 0x725   : > { %12107 = vpow2.f32 %v6164_v37  ;;  %v6174_v17 = vmul.f32 1.442695, %v6117_v31 }
 0x726   : > { %v14376_v35 = vpop.eup %12097  ;;  %v6055_v59 = vpop.xlane.xlu1 %6054  ;;  %v6172_v38 = vmul.f32 1.442695, %v6116_v53 }
 0x727   : > { %v14380_v24 = vpop.eup %12099  ;;  %12109 = vpow2.f32 %v6174_v17  ;;  %v6052_v10 = vpop.xlane.xlu0 %6051  ;;  %6240 = vadd.xlane.f32.xlu1 %v6239_v47  ;;  %v6218_v41 = vsel %vm2795_vm3, %v14376_v35, 0.0  ;;  %v6111_v27 = vsub.f32 %v14250_v5, %v6055_v59 }
 0x728   : > { %v6110_v49 = vsub.f32 %v14252_v9, %v6052_v10  ;;  %6219 = vadd.xlane.f32.xlu0 %v6218_v41  ;;  %12111 = vpow2.f32 %v6154_v4  ;;  %v6236_v52 = vsel %vm2795_vm3, %v14380_v24, 0.0 }
 0x729   : > { %v14386_v18 = vpop.eup %12101  ;;  %v6162_v23 = vmul.f32 1.442695, %v6111_v27 }
 0x72a   : > { %v6160_v43 = vmul.f32 1.442695, %v6110_v49  ;;  %v6251_v3 = vsel %vm2795_vm3, %v14386_v18, 0.0  ;;  %v14392_v37 = vpop.eup %12103 }
 0x72b   : > { %6237 = vadd.xlane.f32.xlu1 %v6236_v52  ;;  %v6221_v31 = vsel %vm2795_vm3, %v14392_v37, 0.0 }
 0x72c   : > { %12113 = vpow2.f32 %v6160_v43  ;;  %6252 = vadd.xlane.f32.xlu0 %v6251_v3  ;;  %v6085_v5 = vpop.xlane.xlu1 %6084 }
 0x72d   : > { %12115 = vpow2.f32 %v6172_v38  ;;  %v6121_v9 = vsub.f32 %v14258_v51, %v6085_v5  ;;  %v6082_v36 = vpop.xlane.xlu0 %6081 }
 0x72e   : > { %v14395_v2 = vpop.eup %12105  ;;  %v6120_v26 = vsub.f32 %v14260_v34, %v6082_v36  ;;  %12117 = vpow2.f32 %v6162_v23 }
 0x72f   : > { %v14400_v12 = vpop.eup %12107  ;;  %v6182_v4 = vmul.f32 1.442695, %v6121_v9  ;;  %6222 = vadd.xlane.f32.xlu1 %v6221_v31  ;;  %v6230_v17 = vsel %vm2795_vm3, %v14395_v2, 0.0 }
 0x730   : > { %v6180_v53 = vmul.f32 1.442695, %v6120_v26  ;;  %6231 = vadd.xlane.f32.xlu0 %v6230_v17  ;;  %v6067_v59 = vpop.xlane.xlu1 %6066  ;;  %v6248_v41 = vsel %vm2795_vm3, %v14400_v12, 0.0 }
 0x731   : > { %v14404_v51 = vpop.eup %12109  ;;  %12119 = vpow2.f32 %v6182_v4  ;;  %v6115_v47 = vsub.f32 %v14264_v48, %v6067_v59  ;;  %v6064_v34 = vpop.xlane.xlu0 %6063 }
 0x732   : > { %v6114_v10 = vsub.f32 %v14268_v32, %v6064_v34  ;;  %v6263_v27 = vsel %vm2795_vm3, %v14404_v51, 0.0  ;;  %v14412_v49 = vpop.eup %12111  ;;  %12121 = vpow2.f32 %v6180_v53 }
 0x733   : > { %v6170_v38 = vmul.f32 1.442695, %v6115_v47  ;;  %6249 = vadd.xlane.f32.xlu1 %v6248_v41  ;;  %v6233_v32 = vsel %vm2795_vm3, %v14412_v49, 0.0 }
 0x734   : > { %6264 = vadd.xlane.f32.xlu0 %v6263_v27  ;;  %v6168_v43 = vmul.f32 1.442695, %v6114_v10 }
 0x735   : > { %12123 = vpow2.f32 %v6170_v38 }
 0x736   : > { %v14414_v52 = vpop.eup %12113  ;;  %v6079_v48 = vpop.xlane.xlu1 %6078  ;;  %12125 = vpow2.f32 %v6168_v43 }
 0x737   : > { %v14418_v3 = vpop.eup %12115  ;;  %v6119_v23 = vsub.f32 %v14274_v46, %v6079_v48  ;;  %v6076_v5 = vpop.xlane.xlu0 %6075  ;;  %6234 = vadd.xlane.f32.xlu1 %v6233_v32  ;;  %v6242_v9 = vsel %vm2795_vm3, %v14414_v52, 0.0 }
 0x738   : > { %v6118_v36 = vsub.f32 %v14276_v61, %v6076_v5  ;;  %6243 = vadd.xlane.f32.xlu0 %v6242_v9  ;;  %v14424_v31 = vpop.eup %12117  ;;  %v6260_v17 = vsel %vm2795_vm3, %v14418_v3, 0.0 }
 0x739   : > { %v6178_v26 = vmul.f32 1.442695, %v6119_v23  ;;  %v6245_v47 = vsel %vm2795_vm3, %v14424_v31, 0.0 }
 0x73a   : > { %v6176_v4 = vmul.f32 1.442695, %v6118_v36 }
 0x73b   : > { %v14428_v53 = vpop.eup %12119  ;;  %12127 = vpow2.f32 %v6178_v26  ;;  %6261 = vadd.xlane.f32.xlu1 %v6260_v17 }
 0x73c   : > { %v6275_v46 = vsel %vm2795_vm3, %v14428_v53, 0.0  ;;  %12129 = vpow2.f32 %v6176_v4  ;;  %v14432_v59 = vpop.eup %12121 }
 0x73d   : > { %6276 = vadd.xlane.f32.xlu0 %v6275_v46  ;;  %v6272_v32 = vsel %vm2795_vm3, %v14432_v59, 0.0 }
 0x73e   : > { %v6091_v61 = vpop.xlane.xlu1 %6090 }
 0x73f   : > { %v14436_v34 = vpop.eup %12123  ;;  %v6123_v10 = vsub.f32 %v14284_v44, %v6091_v61  ;;  %6246 = vadd.xlane.f32.xlu1 %v6245_v47  ;;  %v6088_v41 = vpop.xlane.xlu0 %6087 }
 0x740   : > { %v6122_v27 = vsub.f32 %v14286_v25, %v6088_v41  ;;  %v6257_v38 = vsel %vm2795_vm3, %v14436_v34, 0.0  ;;  %v14444_v23 = vpop.eup %12125 }
 0x741   : > { %v6186_v43 = vmul.f32 1.442695, %v6123_v10  ;;  %6258 = vadd.xlane.f32.xlu0 %v6257_v38  ;;  %v6254_v44 = vsel %vm2795_vm3, %v14444_v23, 0.0 }
 0x742   : > { %v6184_v48 = vmul.f32 1.442695, %v6122_v27 }
 0x743   : > { %12131 = vpow2.f32 %v6186_v43  ;;  %6273 = vadd.xlane.f32.xlu1 %v6272_v32  ;;  %v14472_v61 = vpop.permute.xlu0 %11850  ;;  %v11822_v43 = vunpack.i.l.bf16 %v14282_v33 }
 0x744   : > { %12133 = vpow2.f32 %v6184_v48 }
 0x745   : > { %v14446_v5 = vpop.eup %12127 }
 0x746   : > { %v6269_v25 = vsel %vm2795_vm3, %v14446_v5, 0.0  ;;  %v14452_v9 = vpop.eup %12129 }
 0x747   : > { %6255 = vadd.xlane.f32.xlu1 %v6254_v44  ;;  %6270 = vadd.xlane.f32.xlu0 %v6269_v25  ;;  %v6266_v36 = vsel %vm2795_vm3, %v14452_v9, 0.0  ;;  %v11833_v25 = vunpack.i.h.bf16 %v14294_v63 }
 0x74b   : > { %6267 = vadd.xlane.f32.xlu1 %v6266_v36  ;;  %v11832_v36 = vunpack.i.l.bf16 %v14294_v63 }
 0x74d   : > { %v14456_v26 = vpop.eup %12131  ;;  %v11495_v63 = vpack.c.bf16 %v11833_v25, %v11832_v36 }
 0x74e   : > { %v14458_v4 = vpop.eup %12133  ;;  %v6281_v17 = vsel %vm2795_vm3, %v14456_v26, 0.0 }
 0x74f   : > { %6282 = vadd.xlane.f32.xlu0 %v6281_v17  ;;  %v6278_v46 = vsel %vm2795_vm3, %v14458_v4, 0.0 }
 0x750   : > { %6279 = vadd.xlane.f32.xlu1 %v6278_v46 }
 0x75b   : > { %v6193_v47 = vpop.xlane.xlu1 %6192 }
 0x75c   : > { %12135 = vrcp.f32 %v6193_v47  ;;  %v11843_v47 = vunpack.i.h.bf16 %v14298_v13 }
 0x761   : > { %11855 = vrot.lane.b32.xlu1 %v15822_v19, %s12371_s30 }
 0x763   : > { %v6205_v41 = vpop.xlane.xlu1 %6204 }
 0x765   : > { %11860 = vrot.lane.b32.xlu0 %v13113_v42, %s12371_s30 }
 0x769   : > { %11865 = vrot.lane.b32.xlu0 %v15825_v40, %s12371_s30  ;;  %v12136_v40 = vpop.eup %12135 }
 0x76b   : > { %v6217_v27 = vpop.xlane.xlu1 %6216 }
 0x76d   : > { %11870 = vrot.lane.b32.xlu0 %v15800_v39, %s12371_s30  ;;  %v11823_v39 = vunpack.i.h.bf16 %v14282_v33 }
 0x76f   : > { %v11487_v17 = vpack.c.bf16 %v11823_v39, %v11822_v43 }
 0x771   : > { %11875 = vrot.lane.b32.xlu0 %v15828_v62, %s12371_s30  ;;  %v6317_v62 = vmul.f32 %v12136_v40, %v14306_v28 }
 0x774   : > { %v6190_v10 = vpop.xlane.xlu0 %6189 }
 0x775   : > { %12137 = vrcp.f32 %v6190_v10  ;;  %v11842_v10 = vunpack.i.l.bf16 %v14298_v13 }
 0x776   : > { %12139 = vrcp.f32 %v6205_v41 }
 0x778   : > { %v6202_v19 = vpop.xlane.xlu0 %6201 }
 0x779   : > { %12141 = vrcp.f32 %v6202_v19 }
 0x77a   : > { %12143 = vrcp.f32 %v6217_v27 }
 0x77c   : > { %v6214_v42 = vpop.xlane.xlu0 %6213 }
 0x77d   : > { %12145 = vrcp.f32 %v6214_v42 }
 0x77f   : > { %v12138_v38 = vpop.eup %12137 }
 0x780   : > { %v6316_v48 = vmul.f32 %v12138_v38, %v14322_v50  ;;  %v12140_v32 = vpop.eup %12139  ;;  %v11827_v38 = vunpack.i.l.bf16 %v14290_v8 }
 0x781   : > { %v6321_v33 = vmul.f32 %v12140_v32, %v14312_v6  ;;  %v11503_v6 = vpack.c.bf16 %v11843_v47, %v11842_v10  ;;  %v11837_v47 = vunpack.i.l.bf16 %v14296_v7 }
 0x782   : > { %10951 = vmatprep.mubr.msk.f32.mxu1 %vm2795_vm3, %v6316_v48 }
 0x783   : > { %v12142_v44 = vpop.eup %12141  ;;  %10952 = vmatmul.mubr.msk.f32.vlgmr.msra.gmra.mrb[52].mxu1 %vm2795_vm3, %v6317_v62 }
 0x784   : > { %11482 = vmatpush3.bf16.msra.mxu1 %v14095_v16  ;;  %v6320_v46 = vmul.f32 %v12142_v44, %v14326_v29  ;;  %v12144_v50 = vpop.eup %12143 }
 0x785   : > { %11488 = vmatprep.subr.bf16.mxu1 %v11487_v17  ;;  %v6325_v16 = vmul.f32 %v12144_v50, %v14318_v30  ;;  %v11828_v30 = vunpack.i.h.bf16 %v14290_v8  ;;  %v11853_v8 = vunpack.i.h.bf16 %v14472_v61 }
 0x786   : > { %10965 = vmatprep.mubr.msk.f32.mxu1 %vm2795_vm3, %v6320_v46 }
 0x787   : > { %v12146_v28 = vpop.eup %12145  ;;  %10966 = vmatmul.mubr.msk.f32.vlgmr.msra.gmra.mrb[54].mxu1 %vm2795_vm3, %v6321_v33  ;;  %v11491_v32 = vpack.c.bf16 %v11828_v30, %v11827_v38 }
 0x788   : > { %11490 = vmatpush3.bf16.msra.mxu1 %v11487_v17  ;;  %v6324_v41 = vmul.f32 %v12146_v28, %v14330_v20  ;;  %v11852_v17 = vunpack.i.l.bf16 %v14472_v61  ;;  %v11838_v28 = vunpack.i.h.bf16 %v14296_v7 }
 0x789   : > { %11496 = vmatprep.subr.bf16.mxu1 %v11495_v63 }
 0x78a   : > { %10979 = vmatprep.mubr.msk.f32.mxu1 %vm2795_vm3, %v6324_v41  ;;  %v11511_v61 = vpack.c.bf16 %v11853_v8, %v11852_v17 }
 0x78b   : > { %10980 = vmatmul.mubr.msk.f32.vlgmr.msra.gmra.mrb[56].mxu1 %vm2795_vm3, %v6325_v16 }
 0x78c   : > { %11498 = vmatpush3.bf16.msra.mxu1 %v11495_v63 }
 0x78d   : > { %11504 = vmatprep.subr.bf16.mxu1 %v11503_v6 }
 0x7a4   : > { %v6199_v29 = vpop.xlane.xlu1 %6198 }
 0x7a5   : > { %12147 = vrcp.f32 %v6199_v29  ;;  %v6196_v19 = vpop.xlane.xlu0 %6195 }
 0x7a6   : > { %12149 = vrcp.f32 %v6196_v19 }
 0x7a8   : > { %v6229_v13 = vpop.xlane.xlu1 %6228 }
 0x7a9   : > { %12151 = vrcp.f32 %v6229_v13 }
 0x7ac   : > { %v6226_v27 = vpop.xlane.xlu1 %6225 }
 0x7ad   : > { %12153 = vrcp.f32 %v6226_v27  ;;  %v6208_v42 = vpop.xlane.xlu0 %6207 }
 0x7ae   : > { %12155 = vrcp.f32 %v6208_v42 }
 0x7af   : > { %v12148_v20 = vpop.eup %12147 }
 0x7b0   : > { %v12150_v40 = vpop.eup %12149  ;;  %v6211_v39 = vpop.xlane.xlu1 %6210  ;;  %v6319_v48 = vmul.f32 %v12148_v20, %v14341_v15  ;;  %v11848_v20 = vunpack.i.h.bf16 %v14300_v1 }
 0x7b1   : > { %12157 = vrcp.f32 %v6211_v39  ;;  %v6318_v43 = vmul.f32 %v12150_v40, %v14344_v0  ;;  %v11847_v40 = vunpack.i.l.bf16 %v14300_v1 }
 0x7b3   : > { %10958 = vmatprep.mubr.msk.f32.mxu0 %vm2795_vm3, %v6318_v43  ;;  %v12152_v25 = vpop.eup %12151 }
 0x7b4   : > { %v6241_v62 = vpop.xlane.xlu1 %6240  ;;  %10959 = vmatmul.mubr.msk.f32.vlgmr.msra.gmra.mrb[76].mxu0 %vm2795_vm3, %v6319_v48 }
 0x7b5   : > { %11486 = vmatpush3.bf16.msra.mxu0 %v14107_v56  ;;  %v6220_v44 = vpop.xlane.xlu0 %6219  ;;  %v6329_v56 = vmul.f32 %v12152_v25, %v14351_v45  ;;  %v11499_v45 = vpack.c.bf16 %v11838_v28, %v11837_v47 }
 0x7b6   : > { %11492 = vmatprep.subr.bf16.mxu0 %v11491_v32  ;;  %12159 = vrcp.f32 %v6220_v44 }
 0x7b7   : > { %v12154_v36 = vpop.eup %12153  ;;  %12161 = vrcp.f32 %v6241_v62 }
 0x7b8   : > { %v12156_v0 = vpop.eup %12155  ;;  %v6238_v15 = vpop.xlane.xlu1 %6237  ;;  %v6328_v46 = vmul.f32 %v12154_v36, %v14356_v60 }
 0x7b9   : > { %12163 = vrcp.f32 %v6238_v15  ;;  %v6253_v33 = vpop.xlane.xlu0 %6252  ;;  %v6322_v50 = vmul.f32 %v12156_v0, %v14360_v11 }
 0x7ba   : > { %10993 = vmatprep.mubr.msk.f32.mxu1 %vm2795_vm3, %v6328_v46 }
 0x7bb   : > { %v12158_v10 = vpop.eup %12157  ;;  %10972 = vmatprep.mubr.msk.f32.mxu0 %vm2795_vm3, %v6322_v50  ;;  %10994 = vmatmul.mubr.msk.f32.vlgmr.msra.gmra.mrb[58].mxu1 %vm2795_vm3, %v6329_v56 }
 0x7bc   : > { %11506 = vmatpush3.bf16.msra.mxu1 %v11503_v6  ;;  %v6223_v60 = vpop.xlane.xlu1 %6222  ;;  %v6323_v63 = vmul.f32 %v12158_v10, %v14364_v14 }
 0x7bd   : > { %12165 = vrcp.f32 %v6223_v60  ;;  %11512 = vmatprep.subr.bf16.mxu1 %v11511_v61  ;;  %v6232_v11 = vpop.xlane.xlu0 %6231 }
 0x7be   : > { %12167 = vrcp.f32 %v6232_v11  ;;  %10973 = vmatmul.mubr.msk.f32.vlgmr.msra.gmra.mrb[78].mxu0 %vm2795_vm3, %v6323_v63 }
 0x7bf   : > { %11494 = vmatpush3.bf16.msra.mxu0 %v11491_v32  ;;  %12169 = vrcp.f32 %v6253_v33 }
 0x7c0   : > { %v12160_v7 = vpop.eup %12159  ;;  %11500 = vmatprep.subr.bf16.mxu0 %v11499_v45  ;;  %v6250_v41 = vpop.xlane.xlu1 %6249 }
 0x7c1   : > { %12171 = vrcp.f32 %v6250_v41  ;;  %v6265_v16 = vpop.xlane.xlu0 %6264  ;;  %v6326_v29 = vmul.f32 %v12160_v7, %v14376_v35  ;;  %v12162_v6 = vpop.eup %12161 }
 0x7c2   : > { %v6333_v42 = vmul.f32 %v12162_v6, %v14372_v57  ;;  %v11507_v57 = vpack.c.bf16 %v11848_v20, %v11847_v40 }
 0x7c3   : > { %v12164_v19 = vpop.eup %12163  ;;  %10986 = vmatprep.mubr.msk.f32.mxu0 %vm2795_vm3, %v6326_v29 }
 0x7c4   : > { %v6235_v14 = vpop.xlane.xlu1 %6234  ;;  %v6332_v13 = vmul.f32 %v12164_v19, %v14380_v24 }
 0x7c5   : > { %12173 = vrcp.f32 %v6235_v14  ;;  %v6244_v27 = vpop.xlane.xlu0 %6243 }
 0x7c6   : > { %12175 = vrcp.f32 %v6244_v27  ;;  %11007 = vmatprep.mubr.msk.f32.mxu1 %vm2795_vm3, %v6332_v13 }
 0x7c7   : > { %v12166_v30 = vpop.eup %12165  ;;  %11008 = vmatmul.mubr.msk.f32.vlgmr.msra.gmra.mrb[60].mxu1 %vm2795_vm3, %v6333_v42 }
 0x7c8   : > { %v12168_v35 = vpop.eup %12167  ;;  %11514 = vmatpush3.bf16.msra.mxu1 %v11511_v61  ;;  %v6262_v38 = vpop.xlane.xlu1 %6261  ;;  %v6327_v39 = vmul.f32 %v12166_v30, %v14392_v37 }
 0x7c9   : > { %12177 = vrcp.f32 %v6262_v38  ;;  %v6330_v24 = vmul.f32 %v12168_v35, %v14395_v2  ;;  %v12170_v43 = vpop.eup %12169 }
 0x7ca   : > { %10987 = vmatmul.mubr.msk.f32.vlgmr.msra.gmra.mrb[80].mxu0 %vm2795_vm3, %v6327_v39  ;;  %v6277_v1 = vpop.xlane.xlu0 %6276  ;;  %v6337_v44 = vmul.f32 %v12170_v43, %v14386_v18 }
 0x7cb   : > { %v12172_v48 = vpop.eup %12171  ;;  %11502 = vmatpush3.bf16.msra.mxu0 %v11499_v45  ;;  %11000 = vmatprep.mubr.msk.f32.mxu0 %vm2795_vm3, %v6330_v24 }
 0x7cc   : > { %11508 = vmatprep.subr.bf16.mxu0 %v11507_v57  ;;  %v6247_v62 = vpop.xlane.xlu1 %6246  ;;  %v6336_v32 = vmul.f32 %v12172_v48, %v14400_v12 }
 0x7cd   : > { %12179 = vrcp.f32 %v6247_v62 }
 0x7ce   : > { %11021 = vmatprep.mubr.msk.f32.mxu1 %vm2795_vm3, %v6336_v32  ;;  %v6259_v17 = vpop.xlane.xlu0 %6258 }
 0x7cf   : > { %v12174_v37 = vpop.eup %12173  ;;  %11022 = vmatmul.mubr.msk.f32.vlgmr.msra.gmra.mrb[62].mxu1 %vm2795_vm3, %v6337_v44 }
 0x7d0   : > { %v12176_v2 = vpop.eup %12175  ;;  %v6274_v25 = vpop.xlane.xlu1 %6273  ;;  %v6331_v36 = vmul.f32 %v12174_v37, %v14412_v49 }
 0x7d1   : > { %v6334_v8 = vmul.f32 %v12176_v2, %v14414_v52 }
 0x7d2   : > { %11001 = vmatmul.mubr.msk.f32.vlgmr.msra.gmra.mrb[82].mxu0 %vm2795_vm3, %v6331_v36 }
 0x7d3   : > { %v12178_v0 = vpop.eup %12177  ;;  %11510 = vmatpush3.bf16.msra.mxu0 %v11507_v57  ;;  %11014 = vmatprep.mubr.msk.f32.mxu0 %vm2795_vm3, %v6334_v8 }
 0x7d4   : > { %v6256_v12 = vpop.xlane.xlu1 %6255  ;;  %v6340_v18 = vmul.f32 %v12178_v0, %v14418_v3  ;;  %v6271_v46 = vpop.xlane.xlu0 %6270 }
 0x7d5   : > { %12181 = vrcp.f32 %v6256_v12 }
 0x7d6   : > { %11035 = vmatprep.mubr.msk.f32.mxu1 %vm2795_vm3, %v6340_v18  ;;  %12183 = vrcp.f32 %v6265_v16 }
 0x7d7   : > { %v12180_v15 = vpop.eup %12179  ;;  %12185 = vrcp.f32 %v6259_v17 }
 0x7d8   : > { %v6268_v33 = vpop.xlane.xlu1 %6267  ;;  %v6335_v49 = vmul.f32 %v12180_v15, %v14424_v31  ;;  %12187 = vrcp.f32 %v6274_v25 }
 0x7d9   : > { %12189 = vrcp.f32 %v6268_v33 }
 0x7da   : > { %11015 = vmatmul.mubr.msk.f32.vlgmr.msra.gmra.mrb[84].mxu0 %vm2795_vm3, %v6335_v49  ;;  %12191 = vrcp.f32 %v6271_v46 }
 0x7dc   : > { %v6283_v52 = vpop.xlane.xlu0 %6282 }
 0x7dd   : > { %v6280_v50 = vpop.xlane.xlu1 %6279 }
 0x7de   : > { %12193 = vrcp.f32 %v6280_v50 }
 0x7df   : > { %v12182_v56 = vpop.eup %12181  ;;  %12195 = vrcp.f32 %v6277_v1 }
 0x7e0   : > { %v11861_v3 = vpop.permute.xlu0 %11860  ;;  %v6338_v28 = vmul.f32 %v12182_v56, %v14444_v23  ;;  %v12184_v63 = vpop.eup %12183  ;;  %12197 = vrcp.f32 %v6283_v52 }
 0x7e1   : > { %v11863_v47 = vunpack.i.h.bf16 %v11861_v3  ;;  %v11862_v10 = vunpack.i.l.bf16 %v11861_v3  ;;  %v11856_v61 = vpop.permute.xlu1 %11855  ;;  %v12186_v45 = vpop.eup %12185  ;;  %v6341_v23 = vmul.f32 %v12184_v63, %v14404_v51 }
 0x7e2   : > { %v11858_v60 = vunpack.i.h.bf16 %v11856_v61  ;;  %v11857_v31 = vunpack.i.l.bf16 %v11856_v61  ;;  %11028 = vmatprep.mubr.msk.f32.mxu0 %vm2795_vm3, %v6338_v28  ;;  %v12188_v16 = vpop.eup %12187  ;;  %v6339_v27 = vmul.f32 %v12186_v45, %v14436_v34 }
 0x7e3   : > { %v11519_v11 = vpack.c.bf16 %v11863_v47, %v11862_v10  ;;  %v12190_v19 = vpop.eup %12189  ;;  %v6344_v42 = vmul.f32 %v12188_v16, %v14432_v59 }
 0x7e4   : > { %v11515_v7 = vpack.c.bf16 %v11858_v60, %v11857_v31  ;;  %v11866_v41 = vpop.permute.xlu0 %11865  ;;  %v12192_v20 = vpop.eup %12191  ;;  %v6342_v35 = vmul.f32 %v12190_v19, %v14452_v9 }
 0x7e5   : > { %v11868_v29 = vunpack.i.h.bf16 %v11866_v41  ;;  %v11867_v6 = vunpack.i.l.bf16 %v11866_v41  ;;  %11520 = vmatprep.subr.bf16.mxu1 %v11519_v11  ;;  %v6343_v59 = vmul.f32 %v12192_v20, %v14446_v5 }
 0x7e6   : > { %11516 = vmatprep.subr.bf16.mxu0 %v11515_v7  ;;  %11522 = vmatpush3.bf16.msra.mxu1 %v11519_v11 }
 0x7e7   : > { %11518 = vmatpush3.bf16.msra.mxu0 %v11515_v7  ;;  %v11523_v14 = vpack.c.bf16 %v11868_v29, %v11867_v6 }
 0x7e8   : > { %v11871_v13 = vpop.permute.xlu0 %11870  ;;  %v12194_v38 = vpop.eup %12193 }
 0x7e9   : > { %v11873_v40 = vunpack.i.h.bf16 %v11871_v13  ;;  %v11872_v30 = vunpack.i.l.bf16 %v11871_v13  ;;  %11036 = vmatmul.mubr.msk.f32.vlgmr.msra.gmra.mrb[64].mxu1 %vm2795_vm3, %v6341_v23  ;;  %11524 = vmatprep.subr.bf16.mxu0 %v11523_v14  ;;  %v12196_v34 = vpop.eup %12195  ;;  %v6346_v57 = vmul.f32 %v12194_v38, %v14458_v4  ;;  %v7900_v4 = vld [vmem:[%s15656_s5] sm:$0xff] }
 0x7ea   : > { %11029 = vmatmul.mubr.msk.f32.vlgmr.msra.gmra.mrb[86].mxu0 %vm2795_vm3, %v6339_v27  ;;  %11049 = vmatprep.mubr.msk.f32.mxu1 %vm2795_vm3, %v6344_v42  ;;  %v6345_v48 = vmul.f32 %v12196_v34, %v14428_v53  ;;  %v12198_v1 = vpop.eup %12197  ;;  %v15875_v42 = vld [vmem:[#allocation31_spill] sm:$0xff] }
 0x7eb   : > { %11526 = vmatpush3.bf16.msra.mxu0 %v11523_v14  ;;  %11042 = vmatprep.mubr.msk.f32.mxu0 %vm2795_vm3, %v6342_v35  ;;  %v11527_v51 = vpack.c.bf16 %v11873_v40, %v11872_v30  ;;  %v6347_v5 = vmul.f32 %v12198_v1, %v14456_v26  ;;  %v15876_v30 = vld [vmem:[#allocation35_spill] sm:$0xff]  ;;  %v15877_v35 = vld [vmem:[#allocation34_spill] sm:$0xff] }
 0x7ec   : > { %v11876_v39 = vpop.permute.xlu0 %11875  ;;  %v15878_v34 = vld [vmem:[#allocation19_spill] sm:$0xff] }
 0x7ed   : > { %v11878_v24 = vunpack.i.h.bf16 %v11876_v39  ;;  %v11877_v43 = vunpack.i.l.bf16 %v11876_v39  ;;  %11528 = vmatprep.subr.bf16.mxu1 %v11527_v51  ;;  %v15881_v1 = vld [vmem:[#allocation47_spill] sm:$0xff] }
 0x7ee   : > { %11043 = vmatmul.mubr.msk.f32.vlgmr.msra.gmra.mrb[88].mxu0 %vm2795_vm3, %v6343_v59  ;;  %11530 = vmatpush3.bf16.msra.mxu1 %v11527_v51  ;;  %v15879_v59 = vld [vmem:[#allocation32_spill] sm:$0xff] }
 0x7ef   : > { %v11531_v9 = vpack.c.bf16 %v11878_v24, %v11877_v43  ;;  %11056 = vmatprep.mubr.msk.f32.mxu0 %vm2795_vm3, %v6346_v57  ;;  %11543 = vmatprep.subr.mxu1 %v7900_v4 }
 0x7f1   : > { %11050 = vmatmul.mubr.msk.f32.vlgmr.msra.gmra.mrb[66].mxu1 %vm2795_vm3, %v6345_v48  ;;  %11532 = vmatprep.subr.bf16.mxu0 %v11531_v9 }
 0x7f2   : > { %11534 = vmatpush3.bf16.msra.mxu0 %v11531_v9  ;;  %11544 = vmatpush3.msra.mxu1 %v7900_v4  ;;  %v15880_v9 = vld [vmem:[#allocation22_spill] sm:$0xff] }
 0x7f3   : > { %11059 = vmatprep.subr.mxu0 %v7900_v4 }
 0x7f5   : > { %11057 = vmatmul.mubr.msk.f32.vlgmr.msra.gmra.mrb[90].mxu0 %vm2795_vm3, %v6347_v5 }
 0x7f6   : > { %11060 = vmatpush3.msra.mxu0 %v7900_v4 }
 0x856   : > { %v10953_v62 = vpop.f32.mrb[52].mxu1 }
 0x857   : > { %7774 = vrot.lane.b32.xlu0 %v10953_v62, %s12372_s17  ;;  %v6426_v53 = vpop.f32.mrb[53].mxu1 }
 0x858   : > { %7772 = vrot.lane.b32.xlu1 %v6426_v53, %s12372_s17  ;;  %v15882_v53 = vld [vmem:[#allocation14_spill] sm:$0xff] }
 0x85a   : > { %v10967_v32 = vpop.f32.mrb[54].mxu1 }
 0x85b   : > { %v6600_v44 = vpop.f32.mrb[55].mxu1 }
 0x85e   : > { %v10981_v26 = vpop.f32.mrb[56].mxu1 }
 0x85f   : > { %v6774_v37 = vpop.f32.mrb[57].mxu1 }
 0x887   : > { %v10960_v2 = vpop.f32.mrb[76].mxu0 }
 0x888   : > { %7778 = vrot.lane.b32.xlu0 %v10960_v2, %s12372_s17  ;;  %v6513_v25 = vpop.f32.mrb[77].mxu0 }
 0x889   : > { %7776 = vrot.lane.b32.xlu1 %v6513_v25, %s12372_s17  ;;  %v15884_v25 = vld [vmem:[#allocation29_spill] sm:$0xff] }
 0x88c   : > { %7782 = vrot.lane.b32.xlu0 %v10967_v32, %s12372_s17 }
 0x88d   : > { %7780 = vrot.lane.b32.xlu1 %v6600_v44, %s12372_s17  ;;  %v15883_v44 = vld [vmem:[#allocation25_spill] sm:$0xff] }
 0x88e   : > { %v10995_v36 = vpop.f32.mrb[58].mxu1 }
 0x88f   : > { %v6948_v8 = vpop.f32.mrb[59].mxu1 }
 0x891   : > { %v10974_v17 = vpop.f32.mrb[78].mxu0 }
 0x892   : > { %7786 = vrot.lane.b32.xlu0 %v10974_v17, %s12372_s17  ;;  %v6687_v0 = vpop.f32.mrb[79].mxu0 }
 0x893   : > { %7784 = vrot.lane.b32.xlu1 %v6687_v0, %s12372_s17 }
 0x896   : > { %7790 = vrot.lane.b32.xlu0 %v10981_v26, %s12372_s17 }
 0x897   : > { %7788 = vrot.lane.b32.xlu1 %v6774_v37, %s12372_s17 }
 0x89a   : > { %v11009_v12 = vpop.f32.mrb[60].mxu1 }
 0x89b   : > { %v7122_v18 = vpop.f32.mrb[61].mxu1 }
 0x89d   : > { %v10988_v15 = vpop.f32.mrb[80].mxu0 }
 0x89e   : > { %7794 = vrot.lane.b32.xlu0 %v10988_v15, %s12372_s17  ;;  %v6861_v46 = vpop.f32.mrb[81].mxu0 }
 0x89f   : > { %7792 = vrot.lane.b32.xlu1 %v6861_v46, %s12372_s17  ;;  %v15887_v46 = vld [vmem:[#allocation27_spill] sm:$0xff] }
 0x8a2   : > { %7798 = vrot.lane.b32.xlu0 %v10995_v36, %s12372_s17  ;;  %v11023_v33 = vpop.f32.mrb[62].mxu1 }
 0x8a3   : > { %7796 = vrot.lane.b32.xlu1 %v6948_v8, %s12372_s17  ;;  %v7296_v49 = vpop.f32.mrb[63].mxu1  ;;  %v15885_v8 = vld [vmem:[#allocation39_spill] sm:$0xff] }
 0x8a5   : > { %v11002_v52 = vpop.f32.mrb[82].mxu0 }
 0x8a6   : > { %7802 = vrot.lane.b32.xlu0 %v11002_v52, %s12372_s17  ;;  %v7035_v50 = vpop.f32.mrb[83].mxu0 }
 0x8a7   : > { %7800 = vrot.lane.b32.xlu1 %v7035_v50, %s12372_s17  ;;  %v15888_v50 = vld [vmem:[#allocation41_spill] sm:$0xff] }
 0x8aa   : > { %7806 = vrot.lane.b32.xlu0 %v11009_v12, %s12372_s17 }
 0x8ab   : > { %7804 = vrot.lane.b32.xlu1 %v7122_v18, %s12372_s17  ;;  %v15886_v18 = vld [vmem:[#allocation8_spill] sm:$0xff] }
 0x8ad   : > { %v11016_v56 = vpop.f32.mrb[84].mxu0 }
 0x8ae   : > { %7810 = vrot.lane.b32.xlu0 %v11016_v56, %s12372_s17  ;;  %v7209_v3 = vpop.f32.mrb[85].mxu0 }
 0x8af   : > { %7808 = vrot.lane.b32.xlu1 %v7209_v3, %s12372_s17  ;;  %v15889_v3 = vld [vmem:[#allocation3_spill] sm:$0xff] }
 0x8b2   : > { %7814 = vrot.lane.b32.xlu0 %v11023_v33, %s12372_s17 }
 0x8b3   : > { %7812 = vrot.lane.b32.xlu1 %v7296_v49, %s12372_s17 }
 0x8bc   : > { %v11037_v28 = vpop.f32.mrb[64].mxu1 }
 0x8bd   : > { %v11030_v47 = vpop.f32.mrb[86].mxu0  ;;  %v7470_v10 = vpop.f32.mrb[65].mxu1 }
 0x8be   : > { %v7383_v61 = vpop.f32.mrb[87].mxu0  ;;  %7818 = vrot.lane.b32.xlu0 %v11030_v47, %s12372_s17 }
 0x8bf   : > { %7816 = vrot.lane.b32.xlu1 %v7383_v61, %s12372_s17  ;;  %v15890_v61 = vld [vmem:[#allocation36_spill] sm:$0xff] }
 0x8c1   : > { %v11044_v60 = vpop.f32.mrb[88].mxu0 }
 0x8c2   : > { %v7557_v31 = vpop.f32.mrb[89].mxu0  ;;  %7822 = vrot.lane.b32.xlu0 %v11037_v28, %s12372_s17 }
 0x8c3   : > { %7820 = vrot.lane.b32.xlu1 %v7470_v10, %s12372_s17 }
 0x8c4   : > { %v11051_v63 = vpop.f32.mrb[66].mxu1 }
 0x8c5   : > { %v7644_v11 = vpop.f32.mrb[67].mxu1 }
 0x8c6   : > { %7826 = vrot.lane.b32.xlu0 %v11044_v60, %s12372_s17 }
 0x8c7   : > { %7824 = vrot.lane.b32.xlu1 %v7557_v31, %s12372_s17  ;;  %v15891_v31 = vld [vmem:[#allocation37_spill] sm:$0xff] }
 0x8c8   : > { %v11058_v45 = vpop.f32.mrb[90].mxu0 }
 0x8c9   : > { %v7775_v7 = vpop.permute.xlu0 %7774  ;;  %v7731_v41 = vpop.f32.mrb[91].mxu0 }
 0x8ca   : > { %v7773_v16 = vpop.permute.xlu1 %7772  ;;  %7830 = vrot.lane.b32.xlu0 %v11051_v63, %s12372_s17  ;;  %v7869_v6 = vsel %vm1344_vm1, %v14091_v54, %v7775_v7  ;;  %v15892_v7 = vld [vmem:[#allocation10_spill] sm:$0xff] }
 0x8cb   : > { %v7868_v29 = vsel %vm1344_vm1, %v14093_v55, %v7773_v16  ;;  %7828 = vrot.lane.b32.xlu1 %v7644_v11, %s12372_s17  ;;  %v15893_v16 = vld [vmem:[#allocation38_spill] sm:$0xff] }
 0x8cc   : > { %11061 = vmatprep.mubr.msk.f32.mxu0 %vm481_vm0, %v7868_v29 }
 0x8cd   : > { %11062 = vmatmul.mubr.msk.f32.vlgmr.msra.gmra.mrb[92].mxu0 %vm481_vm0, %v7869_v6 }
 0x8ce   : > { %7834 = vrot.lane.b32.xlu0 %v11058_v45, %s12372_s17 }
 0x8cf   : > { %7832 = vrot.lane.b32.xlu1 %v7731_v41, %s12372_s17 }
 0x8fa   : > { %v7779_v19 = vpop.permute.xlu0 %7778 }
 0x8fb   : > { %v7777_v23 = vpop.permute.xlu1 %7776  ;;  %v7871_v55 = vsel %vm1344_vm1, %v14100_v58, %v7779_v19 }
 0x8fc   : > { %v7870_v14 = vsel %vm1344_vm1, %v14104_v22, %v7777_v23  ;;  %v15894_v23 = vld [vmem:[#allocation16_spill] sm:$0xff] }
 0x8fd   : > { %11064 = vmatprep.mubr.msk.f32.mxu0 %vm481_vm0, %v7870_v14 }
 0x8fe   : > { %v7783_v13 = vpop.permute.xlu0 %7782  ;;  %11065 = vmatmul.mubr.msk.f32.gmra.mrb[94].mxu0 %vm481_vm0, %v7871_v55  ;;  %v15895_v55 = vld [vmem:[#allocation23_spill] sm:$0xff] }
 0x8ff   : > { %v7781_v54 = vpop.permute.xlu1 %7780  ;;  %v7873_v20 = vsel %vm1344_vm1, %v15875_v42, %v7783_v13  ;;  %v15896_v42 = vld [vmem:[#allocation21_spill] sm:$0xff] }
 0x900   : > { %v7872_v27 = vsel %vm1344_vm1, %v14112_v21, %v7781_v54 }
 0x901   : > { %11067 = vmatprep.mubr.msk.f32.mxu0 %vm481_vm0, %v7872_v27 }
 0x902   : > { %11068 = vmatmul.mubr.msk.f32.gmra.mrb[96].mxu0 %vm481_vm0, %v7873_v20 }
 0x904   : > { %v7787_v22 = vpop.permute.xlu0 %7786 }
 0x905   : > { %v7785_v40 = vpop.permute.xlu1 %7784  ;;  %v7875_v38 = vsel %vm1344_vm1, %v15877_v35, %v7787_v22  ;;  %v15897_v22 = vld [vmem:[#allocation5_spill] sm:$0xff] }
 0x906   : > { %v7874_v58 = vsel %vm1344_vm1, %v15876_v30, %v7785_v40  ;;  %v15898_v35 = vld [vmem:[#allocation17_spill] sm:$0xff] }
 0x907   : > { %11070 = vmatprep.mubr.msk.f32.mxu0 %vm481_vm0, %v7874_v58 }
 0x908   : > { %v7791_v51 = vpop.permute.xlu0 %7790  ;;  %11071 = vmatmul.mubr.msk.f32.gmra.mrb[98].mxu0 %vm481_vm0, %v7875_v38 }
 0x909   : > { %v7789_v21 = vpop.permute.xlu1 %7788  ;;  %v7877_v24 = vsel %vm1344_vm1, %v15879_v59, %v7791_v51  ;;  %v15899_v51 = vld [vmem:[#allocation49_spill] sm:$0xff]  ;;  %v15900_v59 = vld [vmem:[#allocation7_spill] sm:$0xff] }
 0x90a   : > { %v7876_v39 = vsel %vm1344_vm1, %v15878_v34, %v7789_v21 }
 0x90b   : > { %11073 = vmatprep.mubr.msk.f32.mxu0 %vm481_vm0, %v7876_v39 }
 0x90c   : > { %11074 = vmatmul.mubr.msk.f32.gmra.mrb[100].mxu0 %vm481_vm0, %v7877_v24 }
 0x910   : > { %v7795_v43 = vpop.permute.xlu0 %7794 }
 0x911   : > { %v7793_v57 = vpop.permute.xlu1 %7792  ;;  %v7879_v5 = vsel %vm1344_vm1, %v15881_v1, %v7795_v43  ;;  %v15901_v43 = vld [vmem:[#allocation13_spill] sm:$0xff] }
 0x912   : > { %v7878_v48 = vsel %vm1344_vm1, %v15880_v9, %v7793_v57  ;;  %v14690_v9 = vld [vmem:[%s15657_s6] ss:$0 sm:$0xff] }
 0x913   : > { %11076 = vmatprep.mubr.msk.f32.mxu0 %vm481_vm0, %v7878_v48 }
 0x914   : > { %v7799_v4 = vpop.permute.xlu0 %7798  ;;  %11077 = vmatmul.mubr.msk.f32.gmra.mrb[102].mxu0 %vm481_vm0, %v7879_v5 }
 0x915   : > { %v7797_v62 = vpop.permute.xlu1 %7796  ;;  %v7881_v26 = vsel %vm1344_vm1, %v15883_v44, %v7799_v4 }
 0x916   : > { %v7880_v32 = vsel %vm1344_vm1, %v15882_v53, %v7797_v62  ;;  %v12327_v62 = vld [vmem:[%s12459_s14 + $0x8] sm:$0xff] }
 0x917   : > { %11079 = vmatprep.mubr.msk.f32.mxu0 %vm481_vm0, %v7880_v32  ;;  %v12328_v32 = vld [vmem:[%s12459_s14] sm:$0xff] }
 0x918   : > { %v7803_v37 = vpop.permute.xlu0 %7802  ;;  %11080 = vmatmul.mubr.msk.f32.gmra.mrb[104].mxu0 %vm481_vm0, %v7881_v26 }
 0x919   : > { %v7801_v2 = vpop.permute.xlu1 %7800  ;;  %v7883_v17 = vsel %vm1344_vm1, %v15885_v8, %v7803_v37 }
 0x91a   : > { %v7882_v36 = vsel %vm1344_vm1, %v15884_v25, %v7801_v2 }
 0x91b   : > { %11082 = vmatprep.mubr.msk.f32.mxu1 %vm481_vm0, %v7882_v36 }
 0x91c   : > { %v7807_v0 = vpop.permute.xlu0 %7806  ;;  %11083 = vmatmul.mubr.msk.f32.vlgmr.msra.gmra.mrb[68].mxu1 %vm481_vm0, %v7883_v17  ;;  %v12329_v17 = vld [vmem:[%s12459_s14 + $0x18] sm:$0xff] }
 0x91d   : > { %v7805_v12 = vpop.permute.xlu1 %7804  ;;  %v7885_v33 = vsel %vm1344_vm1, %v15887_v46, %v7807_v0 }
 0x91e   : > { %v7884_v15 = vsel %vm1344_vm1, %v15886_v18, %v7805_v12  ;;  %v12330_v12 = vld [vmem:[%s12459_s14 + $0x10] sm:$0xff] }
 0x91f   : > { %11085 = vmatprep.mubr.msk.f32.mxu1 %vm481_vm0, %v7884_v15 }
 0x920   : > { %v7811_v49 = vpop.permute.xlu0 %7810  ;;  %11086 = vmatmul.mubr.msk.f32.gmra.mrb[70].mxu1 %vm481_vm0, %v7885_v33 }
 0x921   : > { %v7809_v52 = vpop.permute.xlu1 %7808  ;;  %v7887_v28 = vsel %vm1344_vm1, %v15889_v3, %v7811_v49 }
 0x922   : > { %v7886_v56 = vsel %vm1344_vm1, %v15888_v50, %v7809_v52 }
 0x923   : > { %11088 = vmatprep.mubr.msk.f32.mxu1 %vm481_vm0, %v7886_v56  ;;  %v12331_v56 = vld [vmem:[%s12459_s14 + $0x28] sm:$0xff] }
 0x924   : > { %11089 = vmatmul.mubr.msk.f32.gmra.mrb[72].mxu1 %vm481_vm0, %v7887_v28  ;;  %v7815_v47 = vpop.permute.xlu0 %7814  ;;  %v12332_v28 = vld [vmem:[%s12459_s14 + $0x20] sm:$0xff] }
 0x925   : > { %v7813_v10 = vpop.permute.xlu1 %7812  ;;  %v7889_v63 = vsel %vm1344_vm1, %v15891_v31, %v7815_v47 }
 0x926   : > { %v7888_v60 = vsel %vm1344_vm1, %v15890_v61, %v7813_v10 }
 0x927   : > { %11091 = vmatprep.mubr.msk.f32.mxu1 %vm481_vm0, %v7888_v60 }
 0x928   : > { %11092 = vmatmul.mubr.msk.f32.gmra.mrb[74].mxu1 %vm481_vm0, %v7889_v63 }
 0x930   : > { %v7819_v11 = vpop.permute.xlu0 %7818 }
 0x931   : > { %v7817_v45 = vpop.permute.xlu1 %7816  ;;  %v7891_v29 = vsel %vm1344_vm1, %v15893_v16, %v7819_v11 }
 0x932   : > { %v7890_v41 = vsel %vm1344_vm1, %v15892_v7, %v7817_v45  ;;  %v12333_v45 = vld [vmem:[%s12459_s14 + $0x38] sm:$0xff] }
 0x933   : > { %11094 = vmatprep.mubr.msk.f32.mxu1 %vm481_vm0, %v7890_v41  ;;  %v12334_v41 = vld [vmem:[%s12459_s14 + $0x30] sm:$0xff] }
 0x934   : > { %11095 = vmatmul.mubr.msk.f32.gmra.mrb[76].mxu1 %vm481_vm0, %v7891_v29  ;;  %v7823_v6 = vpop.permute.xlu0 %7822 }
 0x935   : > { %v7821_v19 = vpop.permute.xlu1 %7820  ;;  %v7893_v13 = vsel %vm1344_vm1, %v15895_v55, %v7823_v6 }
 0x936   : > { %v7892_v14 = vsel %vm1344_vm1, %v15894_v23, %v7821_v19 }
 0x937   : > { %11097 = vmatprep.mubr.msk.f32.mxu1 %vm481_vm0, %v7892_v14 }
 0x938   : > { %v7827_v54 = vpop.permute.xlu0 %7826  ;;  %11098 = vmatmul.mubr.msk.f32.gmra.mrb[78].mxu1 %vm481_vm0, %v7893_v13  ;;  %v12335_v13 = vld [vmem:[%s12459_s14 + $0x48] sm:$0xff] }
 0x939   : > { %v7825_v27 = vpop.permute.xlu1 %7824  ;;  %v7895_v40 = vsel %vm1344_vm1, %v15897_v22, %v7827_v54 }
 0x93a   : > { %v7894_v20 = vsel %vm1344_vm1, %v15896_v42, %v7825_v27  ;;  %v12336_v27 = vld [vmem:[%s12459_s14 + $0x40] sm:$0xff] }
 0x93b   : > { %11100 = vmatprep.mubr.msk.f32.mxu1 %vm481_vm0, %v7894_v20 }
 0x93c   : > { %11101 = vmatmul.mubr.msk.f32.gmra.mrb[80].mxu1 %vm481_vm0, %v7895_v40  ;;  %v7831_v30 = vpop.permute.xlu0 %7830 }
 0x93d   : > { %v7829_v58 = vpop.permute.xlu1 %7828  ;;  %v7897_v21 = vsel %vm1344_vm1, %v15899_v51, %v7831_v30 }
 0x93e   : > { %v7896_v38 = vsel %vm1344_vm1, %v15898_v35, %v7829_v58 }
 0x93f   : > { %11103 = vmatprep.mubr.msk.f32.mxu1 %vm481_vm0, %v7896_v38  ;;  %v12337_v38 = vld [vmem:[%s12459_s14 + $0x58] sm:$0xff] }
 0x940   : > { %v7835_v34 = vpop.permute.xlu0 %7834  ;;  %11104 = vmatmul.mubr.msk.f32.gmra.mrb[82].mxu1 %vm481_vm0, %v7897_v21  ;;  %v12338_v21 = vld [vmem:[%s12459_s14 + $0x50] sm:$0xff] }
 0x941   : > { %v7833_v39 = vpop.permute.xlu1 %7832  ;;  %v7899_v57 = vsel %vm1344_vm1, %v15901_v43, %v7835_v34 }
 0x942   : > { %v7898_v24 = vsel %vm1344_vm1, %v15900_v59, %v7833_v39 }
 0x943   : > { %11106 = vmatprep.mubr.msk.f32.mxu1 %vm481_vm0, %v7898_v24 }
 0x944   : > { %11107 = vmatmul.mubr.msk.f32.gmra.mrb[84].mxu1 %vm481_vm0, %v7899_v57 }
 0x9a0   : > { %v11063_v48 = vpop.f32.mrb[92].mxu0 }
 0x9a1   : > { %v8076_v1 = vadd.f32 %v11063_v48, %v14690_v9  ;;  %v8070_v5 = vpop.f32.mrb[93].mxu0 }
 0x9a2   : > { %v8071_v4 = vadd.f32 %v14690_v9, %v8070_v5 }
 0x9a3   : > { %v14695_v53 = vadd.f32 %v12327_v62, %v8076_v1  ;;  %v12339_v1 = vld [vmem:[%s12459_s14 + $0x68] sm:$0xff] }
 0x9a4   : > { %v14698_v44 = vadd.f32 %v12328_v32, %v8071_v4  ;;  %v12340_v4 = vld [vmem:[%s12459_s14 + $0x60] sm:$0xff] }
 0x9a5   : > { %v8264_v26 = vsel %vm481_vm0, %v14695_v53, 0.0 }
 0x9a6   : > { %8265 = vadd.xlane.f32.xlu0 %v8264_v26  ;;  %v8261_v37 = vsel %vm481_vm0, %v14698_v44, 0.0 }
 0x9a7   : > { %8262 = vadd.xlane.f32.xlu1 %v8261_v37 }
 0x9d1   : > { %v11066_v2 = vpop.f32.mrb[94].mxu0 }
 0x9d2   : > { %v8086_v25 = vadd.f32 %v11066_v2, %v14690_v9  ;;  %v8080_v36 = vpop.f32.mrb[95].mxu0 }
 0x9d3   : > { %v8081_v8 = vadd.f32 %v14690_v9, %v8080_v36 }
 0x9d4   : > { %v14707_v0 = vadd.f32 %v12329_v17, %v8086_v25 }
 0x9d5   : > { %v14710_v18 = vadd.f32 %v12330_v12, %v8081_v8  ;;  %v11069_v15 = vpop.f32.mrb[96].mxu0  ;;  %v12341_v8 = vld [vmem:[%s12459_s14 + $0x78] sm:$0xff]  ;;  %v12342_v12 = vld [vmem:[%s12459_s14 + $0x70] sm:$0xff] }
 0x9d6   : > { %v8096_v46 = vadd.f32 %v11069_v15, %v14690_v9  ;;  %v8090_v33 = vpop.f32.mrb[97].mxu0  ;;  %v8270_v49 = vsel %vm481_vm0, %v14707_v0, 0.0 }
 0x9d7   : > { %v8091_v52 = vadd.f32 %v14690_v9, %v8090_v33  ;;  %8271 = vadd.xlane.f32.xlu1 %v8270_v49  ;;  %v8267_v50 = vsel %vm481_vm0, %v14710_v18, 0.0 }
 0x9d8   : > { %v14719_v3 = vadd.f32 %v12331_v56, %v8096_v46  ;;  %8268 = vadd.xlane.f32.xlu0 %v8267_v50 }
 0x9d9   : > { %v14722_v47 = vadd.f32 %v12332_v28, %v8091_v52  ;;  %v12343_v28 = vld [vmem:[%s12459_s14 + $0x88] sm:$0xff] }
 0x9da   : > { %v8276_v10 = vsel %vm481_vm0, %v14719_v3, 0.0 }
 0x9db   : > { %v11072_v61 = vpop.f32.mrb[98].mxu0  ;;  %8277 = vadd.xlane.f32.xlu1 %v8276_v10  ;;  %v8273_v60 = vsel %vm481_vm0, %v14722_v47, 0.0 }
 0x9dc   : > { %v8106_v31 = vadd.f32 %v11072_v61, %v14690_v9  ;;  %v8100_v63 = vpop.f32.mrb[99].mxu0  ;;  %8274 = vadd.xlane.f32.xlu0 %v8273_v60  ;;  %v12344_v61 = vld [vmem:[%s12459_s14 + $0x80] sm:$0xff] }
 0x9dd   : > { %v8101_v11 = vadd.f32 %v14690_v9, %v8100_v63 }
 0x9de   : > { %v14731_v7 = vadd.f32 %v12333_v45, %v8106_v31 }
 0x9df   : > { %v14734_v16 = vadd.f32 %v12334_v41, %v8101_v11  ;;  %v11075_v29 = vpop.f32.mrb[100].mxu0 }
 0x9e0   : > { %v8116_v6 = vadd.f32 %v11075_v29, %v14690_v9  ;;  %v8110_v19 = vpop.f32.mrb[101].mxu0  ;;  %v8282_v23 = vsel %vm481_vm0, %v14731_v7, 0.0 }
 0x9e1   : > { %v8111_v14 = vadd.f32 %v14690_v9, %v8110_v19  ;;  %8283 = vadd.xlane.f32.xlu1 %v8282_v23  ;;  %v8279_v55 = vsel %vm481_vm0, %v14734_v16, 0.0  ;;  %v12346_v23 = vld [vmem:[%s12459_s14 + $0x90] sm:$0xff] }
 0x9e2   : > { %v14743_v54 = vadd.f32 %v12335_v13, %v8116_v6  ;;  %8280 = vadd.xlane.f32.xlu0 %v8279_v55  ;;  %v12345_v6 = vld [vmem:[%s12459_s14 + $0x98] sm:$0xff] }
 0x9e3   : > { %v14746_v42 = vadd.f32 %v12336_v27, %v8111_v14 }
 0x9e4   : > { %v8288_v20 = vsel %vm481_vm0, %v14743_v54, 0.0 }
 0x9e5   : > { %8289 = vadd.xlane.f32.xlu1 %v8288_v20  ;;  %v8285_v22 = vsel %vm481_vm0, %v14746_v42, 0.0 }
 0x9e6   : > { %8286 = vadd.xlane.f32.xlu0 %v8285_v22 }
 0x9e7   : > { %v11078_v40 = vpop.f32.mrb[102].mxu0 }
 0x9e8   : > { %v8126_v30 = vadd.f32 %v11078_v40, %v14690_v9  ;;  %v8120_v58 = vpop.f32.mrb[103].mxu0 }
 0x9e9   : > { %v8121_v35 = vadd.f32 %v14690_v9, %v8120_v58 }
 0x9ea   : > { %v14755_v51 = vadd.f32 %v12337_v38, %v8126_v30  ;;  %v12347_v30 = vld [vmem:[%s12459_s14 + $0xa8] sm:$0xff] }
 0x9eb   : > { %v14758_v34 = vadd.f32 %v12338_v21, %v8121_v35  ;;  %v11081_v39 = vpop.f32.mrb[104].mxu0  ;;  %v12348_v35 = vld [vmem:[%s12459_s14 + $0xa0] sm:$0xff] }
 0x9ec   : > { %v8136_v59 = vadd.f32 %v11081_v39, %v14690_v9  ;;  %v8130_v24 = vpop.f32.mrb[105].mxu0  ;;  %v8294_v43 = vsel %vm481_vm0, %v14755_v51, 0.0 }
 0x9ed   : > { %v8131_v57 = vadd.f32 %v14690_v9, %v8130_v24  ;;  %8295 = vadd.xlane.f32.xlu1 %v8294_v43  ;;  %v8291_v48 = vsel %vm481_vm0, %v14758_v34, 0.0 }
 0x9ee   : > { %v14767_v5 = vadd.f32 %v12339_v1, %v8136_v59  ;;  %8292 = vadd.xlane.f32.xlu0 %v8291_v48  ;;  %v12349_v48 = vld [vmem:[%s12459_s14 + $0xb8] sm:$0xff] }
 0x9ef   : > { %v14770_v62 = vadd.f32 %v12340_v4, %v8131_v57  ;;  %v11084_v32 = vpop.f32.mrb[68].mxu1  ;;  %v12350_v4 = vld [vmem:[%s12459_s14 + $0xb0] sm:$0xff] }
 0x9f0   : > { %v8146_v26 = vadd.f32 %v11084_v32, %v14690_v9  ;;  %v8140_v37 = vpop.f32.mrb[69].mxu1  ;;  %v8300_v2 = vsel %vm481_vm0, %v14767_v5, 0.0 }
 0x9f1   : > { %v8141_v25 = vadd.f32 %v14690_v9, %v8140_v37  ;;  %8301 = vadd.xlane.f32.xlu1 %v8300_v2  ;;  %v8297_v36 = vsel %vm481_vm0, %v14770_v62, 0.0 }
 0x9f2   : > { %v14779_v17 = vadd.f32 %v12341_v8, %v8146_v26  ;;  %8298 = vadd.xlane.f32.xlu0 %v8297_v36 }
 0x9f3   : > { %v14782_v15 = vadd.f32 %v12342_v12, %v8141_v25  ;;  %v11087_v46 = vpop.f32.mrb[70].mxu1  ;;  %v12351_v12 = vld [vmem:[%s12459_s14 + $0xc8] sm:$0xff] }
 0x9f4   : > { %15902 = vst [vmem:[#allocation9_spill] sm:$0xff] %v14779_v17  ;;  %v8156_v33 = vadd.f32 %v11087_v46, %v14690_v9  ;;  %v8150_v49 = vpop.f32.mrb[71].mxu1  ;;  %v8306_v52 = vsel %vm481_vm0, %v14779_v17, 0.0 }
 0x9f5   : > { %15903 = vst [vmem:[#allocation11_spill] sm:$0xff] %v14782_v15  ;;  %v8151_v50 = vadd.f32 %v14690_v9, %v8150_v49  ;;  %8307 = vadd.xlane.f32.xlu1 %v8306_v52  ;;  %v8303_v56 = vsel %vm481_vm0, %v14782_v15, 0.0 }
 0x9f6   : > { %v14791_v10 = vadd.f32 %v12343_v28, %v8156_v33  ;;  %8304 = vadd.xlane.f32.xlu0 %v8303_v56  ;;  %v12352_v33 = vld [vmem:[%s12459_s14 + $0xc0] sm:$0xff] }
 0x9f7   : > { %v14794_v60 = vadd.f32 %v12344_v61, %v8151_v50  ;;  %v11090_v31 = vpop.f32.mrb[72].mxu1 }
 0x9f8   : > { %15904 = vst [vmem:[#allocation24_spill] sm:$0xff] %v14791_v10  ;;  %v8166_v63 = vadd.f32 %v11090_v31, %v14690_v9  ;;  %v8160_v11 = vpop.f32.mrb[73].mxu1  ;;  %v8312_v45 = vsel %vm481_vm0, %v14791_v10, 0.0 }
 0x9f9   : > { %15905 = vst [vmem:[#allocation18_spill] sm:$0xff] %v14794_v60  ;;  %v8161_v41 = vadd.f32 %v14690_v9, %v8160_v11  ;;  %8313 = vadd.xlane.f32.xlu1 %v8312_v45  ;;  %v8309_v29 = vsel %vm481_vm0, %v14794_v60, 0.0  ;;  %v12354_v45 = vld [vmem:[%s12459_s14 + $0xd0] sm:$0xff] }
 0x9fa   : > { %v14803_v19 = vadd.f32 %v12345_v6, %v8166_v63  ;;  %8310 = vadd.xlane.f32.xlu0 %v8309_v29  ;;  %v12353_v63 = vld [vmem:[%s12459_s14 + $0xd8] sm:$0xff] }
 0x9fb   : > { %v14806_v14 = vadd.f32 %v12346_v23, %v8161_v41  ;;  %v11093_v55 = vpop.f32.mrb[74].mxu1 }
 0x9fc   : > { %15906 = vst [vmem:[#allocation12_spill] sm:$0xff] %v14803_v19  ;;  %v8176_v13 = vadd.f32 %v11093_v55, %v14690_v9  ;;  %v8170_v27 = vpop.f32.mrb[75].mxu1  ;;  %v8318_v20 = vsel %vm481_vm0, %v14803_v19, 0.0 }
 0x9fd   : > { %15907 = vst [vmem:[#allocation26_spill] sm:$0xff] %v14806_v14  ;;  %v8171_v22 = vadd.f32 %v14690_v9, %v8170_v27  ;;  %8319 = vadd.xlane.f32.xlu1 %v8318_v20  ;;  %v8315_v40 = vsel %vm481_vm0, %v14806_v14, 0.0  ;;  %v12355_v20 = vld [vmem:[%s12459_s14 + $0xe8] sm:$0xff] }
 0x9fe   : > { %v14815_v58 = vadd.f32 %v12347_v30, %v8176_v13  ;;  %8316 = vadd.xlane.f32.xlu0 %v8315_v40  ;;  %v12356_v40 = vld [vmem:[%s12459_s14 + $0xe0] sm:$0xff] }
 0x9ff   : > { %v14818_v38 = vadd.f32 %v12348_v35, %v8171_v22 }
 0xa00   : > { %15908 = vst [vmem:[#allocation20_spill] sm:$0xff] %v14815_v58  ;;  %v8324_v21 = vsel %vm481_vm0, %v14815_v58, 0.0 }
 0xa01   : > { %15909 = vst [vmem:[#allocation15_spill] sm:$0xff] %v14818_v38  ;;  %8325 = vadd.xlane.f32.xlu1 %v8324_v21  ;;  %v8321_v39 = vsel %vm481_vm0, %v14818_v38, 0.0 }
 0xa02   : > { %8322 = vadd.xlane.f32.xlu0 %v8321_v39 }
 0xa07   : > { %v11096_v59 = vpop.f32.mrb[76].mxu1 }
 0xa08   : > { %v8186_v24 = vadd.f32 %v11096_v59, %v14690_v9  ;;  %v8180_v43 = vpop.f32.mrb[77].mxu1 }
 0xa09   : > { %v8181_v57 = vadd.f32 %v14690_v9, %v8180_v43 }
 0xa0a   : > { %v14827_v1 = vadd.f32 %v12349_v48, %v8186_v24 }
 0xa0b   : > { %v14830_v32 = vadd.f32 %v12350_v4, %v8181_v57  ;;  %v11099_v26 = vpop.f32.mrb[78].mxu1  ;;  %v12357_v57 = vld [vmem:[%s12459_s14 + $0xf8] sm:$0xff]  ;;  %v12358_v4 = vld [vmem:[%s12459_s14 + $0xf0] sm:$0xff] }
 0xa0c   : > { %15910 = vst [vmem:[#allocation28_spill] sm:$0xff] %v14827_v1  ;;  %v8196_v37 = vadd.f32 %v11099_v26, %v14690_v9  ;;  %v8190_v2 = vpop.f32.mrb[79].mxu1  ;;  %v8330_v25 = vsel %vm481_vm0, %v14827_v1, 0.0 }
 0xa0d   : > { %15911 = vst [vmem:[#allocation43_spill] sm:$0xff] %v14830_v32  ;;  %v8191_v36 = vadd.f32 %v14690_v9, %v8190_v2  ;;  %8331 = vadd.xlane.f32.xlu1 %v8330_v25  ;;  %v8327_v8 = vsel %vm481_vm0, %v14830_v32, 0.0 }
 0xa0e   : > { %v14839_v46 = vadd.f32 %v12351_v12, %v8196_v37  ;;  %8328 = vadd.xlane.f32.xlu0 %v8327_v8 }
 0xa0f   : > { %v14842_v49 = vadd.f32 %v12352_v33, %v8191_v36  ;;  %v11102_v52 = vpop.f32.mrb[80].mxu1 }
 0xa10   : > { %15912 = vst [vmem:[#allocation30_spill] sm:$0xff] %v14839_v46  ;;  %v8206_v50 = vadd.f32 %v11102_v52, %v14690_v9  ;;  %v8200_v56 = vpop.f32.mrb[81].mxu1  ;;  %v8336_v28 = vsel %vm481_vm0, %v14839_v46, 0.0 }
 0xa11   : > { %15913 = vst [vmem:[#allocation44_spill] sm:$0xff] %v14842_v49  ;;  %v8201_v61 = vadd.f32 %v14690_v9, %v8200_v56  ;;  %8337 = vadd.xlane.f32.xlu1 %v8336_v28  ;;  %v8333_v31 = vsel %vm481_vm0, %v14842_v49, 0.0 }
 0xa12   : > { %v14851_v11 = vadd.f32 %v12353_v63, %v8206_v50  ;;  %8334 = vadd.xlane.f32.xlu0 %v8333_v31 }
 0xa13   : > { %v14854_v41 = vadd.f32 %v12354_v45, %v8201_v61  ;;  %v11105_v29 = vpop.f32.mrb[82].mxu1  ;;  %v8755_v61 = vld [vmem:[%s15660_s9] sm:$0xff] }
 0xa14   : > { %15914 = vst [vmem:[#allocation33_spill] sm:$0xff] %v14851_v11  ;;  %v8216_v6 = vadd.f32 %v11105_v29, %v14690_v9  ;;  %v8210_v23 = vpop.f32.mrb[83].mxu1  ;;  %v8342_v55 = vsel %vm481_vm0, %v14851_v11, 0.0  ;;  %11109 = vmatprep.subr.mxu0 %v8755_v61 }
 0xa15   : > { %15915 = vst [vmem:[#allocation40_spill] sm:$0xff] %v14854_v41  ;;  %v8211_v13 = vadd.f32 %v14690_v9, %v8210_v23  ;;  %8343 = vadd.xlane.f32.xlu1 %v8342_v55  ;;  %v8339_v27 = vsel %vm481_vm0, %v14854_v41, 0.0  ;;  %11110 = vmatpush3.msra.mxu0 %v8755_v61 }
 0xa16   : > { %v14863_v22 = vadd.f32 %v12355_v20, %v8216_v6  ;;  %8340 = vadd.xlane.f32.xlu0 %v8339_v27 }
 0xa17   : > { %v14866_v30 = vadd.f32 %v12356_v40, %v8211_v13  ;;  %v11108_v35 = vpop.f32.mrb[84].mxu1 }
 0xa18   : > { %15916 = vst [vmem:[#allocation48_spill] sm:$0xff] %v14863_v22  ;;  %v8226_v21 = vadd.f32 %v11108_v35, %v14690_v9  ;;  %v8220_v39 = vpop.f32.mrb[85].mxu1  ;;  %v8348_v59 = vsel %vm481_vm0, %v14863_v22, 0.0 }
 0xa19   : > { %15917 = vst [vmem:[#allocation2_spill] sm:$0xff] %v14866_v30  ;;  %v8221_v24 = vadd.f32 %v14690_v9, %v8220_v39  ;;  %8349 = vadd.xlane.f32.xlu1 %v8348_v59  ;;  %v8345_v43 = vsel %vm481_vm0, %v14866_v30, 0.0 }
 0xa1a   : > { %v14875_v48 = vadd.f32 %v12357_v57, %v8226_v21  ;;  %8346 = vadd.xlane.f32.xlu0 %v8345_v43 }
 0xa1b   : > { %v14878_v26 = vadd.f32 %v12358_v4, %v8221_v24 }
 0xa1c   : > { %15918 = vst [vmem:[#allocation45_spill] sm:$0xff] %v14875_v48  ;;  %v8354_v37 = vsel %vm481_vm0, %v14875_v48, 0.0 }
 0xa1d   : > { %15919 = vst [vmem:[#allocation4_spill] sm:$0xff] %v14878_v26  ;;  %8355 = vadd.xlane.f32.xlu1 %v8354_v37  ;;  %v8351_v2 = vsel %vm481_vm0, %v14878_v26, 0.0 }
 0xa1e   : > { %8352 = vadd.xlane.f32.xlu0 %v8351_v2 }
 0xa33   : > { %v8266_v9 = vpop.xlane.xlu0 %8265 }
 0xa34   : > { %v8358_v25 = vmul.f32 0.125, %v8266_v9  ;;  %v8263_v36 = vpop.xlane.xlu1 %8262 }
 0xa35   : > { %v8357_v8 = vmul.f32 0.125, %v8263_v36 }
 0xa36   : > { %v14885_v12 = vsub.f32 %v14695_v53, %v8358_v25 }
 0xa37   : > { %v14888_v33 = vsub.f32 %v14698_v44, %v8357_v8 }
 0xa38   : > { %v8422_v52 = vmul.f32 %v14885_v12, %v14885_v12 }
 0xa39   : > { %v8421_v50 = vmul.f32 %v14888_v33, %v14888_v33 }
 0xa3a   : > { %v8456_v56 = vsel %vm481_vm0, %v8422_v52, 0.0 }
 0xa3b   : > { %8457 = vadd.xlane.f32.xlu1 %v8456_v56  ;;  %v8453_v28 = vsel %vm481_vm0, %v8421_v50, 0.0 }
 0xa3c   : > { %8454 = vadd.xlane.f32.xlu0 %v8453_v28 }
 0xa64   : > { %v8272_v31 = vpop.xlane.xlu1 %8271 }
 0xa65   : > { %v8360_v63 = vmul.f32 0.125, %v8272_v31  ;;  %v8269_v45 = vpop.xlane.xlu0 %8268 }
 0xa66   : > { %v8359_v29 = vmul.f32 0.125, %v8269_v45 }
 0xa67   : > { %v14900_v6 = vsub.f32 %v14707_v0, %v8360_v63 }
 0xa68   : > { %v14903_v23 = vsub.f32 %v14710_v18, %v8359_v29  ;;  %v8278_v55 = vpop.xlane.xlu1 %8277 }
 0xa69   : > { %v8362_v13 = vmul.f32 0.125, %v8278_v55  ;;  %v8275_v27 = vpop.xlane.xlu0 %8274  ;;  %v8424_v20 = vmul.f32 %v14900_v6, %v14900_v6 }
 0xa6a   : > { %v8361_v40 = vmul.f32 0.125, %v8275_v27  ;;  %v8423_v35 = vmul.f32 %v14903_v23, %v14903_v23 }
 0xa6b   : > { %v14910_v21 = vsub.f32 %v14719_v3, %v8362_v13  ;;  %v8462_v39 = vsel %vm481_vm0, %v8424_v20, 0.0 }
 0xa6c   : > { %v14914_v59 = vsub.f32 %v14722_v47, %v8361_v40  ;;  %8463 = vadd.xlane.f32.xlu1 %v8462_v39  ;;  %v8459_v24 = vsel %vm481_vm0, %v8423_v35, 0.0 }
 0xa6d   : > { %8460 = vadd.xlane.f32.xlu0 %v8459_v24  ;;  %v8426_v43 = vmul.f32 %v14910_v21, %v14910_v21 }
 0xa6e   : > { %v8284_v57 = vpop.xlane.xlu1 %8283  ;;  %v8425_v4 = vmul.f32 %v14914_v59, %v14914_v59 }
 0xa6f   : > { %v8364_v37 = vmul.f32 0.125, %v8284_v57  ;;  %v8281_v2 = vpop.xlane.xlu0 %8280  ;;  %v8468_v9 = vsel %vm481_vm0, %v8426_v43, 0.0 }
 0xa70   : > { %v8363_v25 = vmul.f32 0.125, %v8281_v2  ;;  %8469 = vadd.xlane.f32.xlu1 %v8468_v9  ;;  %v8465_v36 = vsel %vm481_vm0, %v8425_v4, 0.0 }
 0xa71   : > { %v14924_v8 = vsub.f32 %v14731_v7, %v8364_v37  ;;  %8466 = vadd.xlane.f32.xlu0 %v8465_v36 }
 0xa72   : > { %v14927_v52 = vsub.f32 %v14734_v16, %v8363_v25  ;;  %v8290_v50 = vpop.xlane.xlu1 %8289 }
 0xa73   : > { %v8366_v56 = vmul.f32 0.125, %v8290_v50  ;;  %v8287_v28 = vpop.xlane.xlu0 %8286  ;;  %v8428_v61 = vmul.f32 %v14924_v8, %v14924_v8 }
 0xa74   : > { %v8365_v31 = vmul.f32 0.125, %v8287_v28  ;;  %v8427_v63 = vmul.f32 %v14927_v52, %v14927_v52 }
 0xa75   : > { %v14934_v45 = vsub.f32 %v14743_v54, %v8366_v56  ;;  %v8474_v29 = vsel %vm481_vm0, %v8428_v61, 0.0 }
 0xa76   : > { %v14938_v55 = vsub.f32 %v14746_v42, %v8365_v31  ;;  %8475 = vadd.xlane.f32.xlu1 %v8474_v29  ;;  %v8471_v13 = vsel %vm481_vm0, %v8427_v63, 0.0 }
 0xa77   : > { %8472 = vadd.xlane.f32.xlu0 %v8471_v13  ;;  %v8430_v27 = vmul.f32 %v14934_v45, %v14934_v45 }
 0xa78   : > { %v8429_v20 = vmul.f32 %v14938_v55, %v14938_v55 }
 0xa79   : > { %v8480_v40 = vsel %vm481_vm0, %v8430_v27, 0.0 }
 0xa7a   : > { %v8296_v35 = vpop.xlane.xlu1 %8295  ;;  %8481 = vadd.xlane.f32.xlu1 %v8480_v40  ;;  %v8477_v39 = vsel %vm481_vm0, %v8429_v20, 0.0 }
 0xa7b   : > { %v8368_v24 = vmul.f32 0.125, %v8296_v35  ;;  %v8293_v43 = vpop.xlane.xlu0 %8292  ;;  %8478 = vadd.xlane.f32.xlu0 %v8477_v39 }
 0xa7c   : > { %v8367_v57 = vmul.f32 0.125, %v8293_v43 }
 0xa7d   : > { %v14948_v4 = vsub.f32 %v14755_v51, %v8368_v24 }
 0xa7e   : > { %v14951_v37 = vsub.f32 %v14758_v34, %v8367_v57  ;;  %v8302_v2 = vpop.xlane.xlu1 %8301 }
 0xa7f   : > { %v8370_v9 = vmul.f32 0.125, %v8302_v2  ;;  %v8299_v25 = vpop.xlane.xlu0 %8298  ;;  %v8432_v36 = vmul.f32 %v14948_v4, %v14948_v4 }
 0xa80   : > { %v8369_v50 = vmul.f32 0.125, %v8299_v25  ;;  %v8431_v56 = vmul.f32 %v14951_v37, %v14951_v37 }
 0xa81   : > { %v14958_v28 = vsub.f32 %v14767_v5, %v8370_v9  ;;  %v8486_v61 = vsel %vm481_vm0, %v8432_v36, 0.0 }
 0xa82   : > { %v14962_v31 = vsub.f32 %v14770_v62, %v8369_v50  ;;  %v8308_v63 = vpop.xlane.xlu1 %8307  ;;  %8487 = vadd.xlane.f32.xlu1 %v8486_v61  ;;  %v8483_v29 = vsel %vm481_vm0, %v8431_v56, 0.0 }
 0xa83   : > { %v8372_v13 = vmul.f32 0.125, %v8308_v63  ;;  %8484 = vadd.xlane.f32.xlu0 %v8483_v29  ;;  %v8305_v27 = vpop.xlane.xlu0 %8304  ;;  %v8434_v20 = vmul.f32 %v14958_v28, %v14958_v28 }
 0xa84   : > { %v8371_v40 = vmul.f32 0.125, %v8305_v27  ;;  %v8433_v35 = vmul.f32 %v14962_v31, %v14962_v31 }
 0xa85   : > { %v14970_v39 = vsub.f32 %v14779_v17, %v8372_v13  ;;  %v8492_v24 = vsel %vm481_vm0, %v8434_v20, 0.0 }
 0xa86   : > { %v14974_v43 = vsub.f32 %v14782_v15, %v8371_v40  ;;  %v8314_v57 = vpop.xlane.xlu1 %8313  ;;  %8493 = vadd.xlane.f32.xlu1 %v8492_v24  ;;  %v8489_v2 = vsel %vm481_vm0, %v8433_v35, 0.0 }
 0xa87   : > { %v8374_v9 = vmul.f32 0.125, %v8314_v57  ;;  %8490 = vadd.xlane.f32.xlu0 %v8489_v2  ;;  %v8311_v25 = vpop.xlane.xlu0 %8310  ;;  %v8436_v36 = vmul.f32 %v14970_v39, %v14970_v39 }
 0xa88   : > { %v8373_v50 = vmul.f32 0.125, %v8311_v25  ;;  %v8435_v56 = vmul.f32 %v14974_v43, %v14974_v43 }
 0xa89   : > { %v14982_v61 = vsub.f32 %v14791_v10, %v8374_v9  ;;  %v8498_v63 = vsel %vm481_vm0, %v8436_v36, 0.0 }
 0xa8a   : > { %v14986_v29 = vsub.f32 %v14794_v60, %v8373_v50  ;;  %v8320_v13 = vpop.xlane.xlu1 %8319  ;;  %8499 = vadd.xlane.f32.xlu1 %v8498_v63  ;;  %v8495_v27 = vsel %vm481_vm0, %v8435_v56, 0.0 }
 0xa8b   : > { %v8376_v20 = vmul.f32 0.125, %v8320_v13  ;;  %8496 = vadd.xlane.f32.xlu0 %v8495_v27  ;;  %v8317_v40 = vpop.xlane.xlu0 %8316  ;;  %v8438_v35 = vmul.f32 %v14982_v61, %v14982_v61 }
 0xa8c   : > { %v8375_v24 = vmul.f32 0.125, %v8317_v40  ;;  %v8437_v57 = vmul.f32 %v14986_v29, %v14986_v29 }
 0xa8d   : > { %v14994_v2 = vsub.f32 %v14803_v19, %v8376_v20  ;;  %v8504_v9 = vsel %vm481_vm0, %v8438_v35, 0.0 }
 0xa8e   : > { %v14998_v25 = vsub.f32 %v14806_v14, %v8375_v24  ;;  %v8326_v36 = vpop.xlane.xlu1 %8325  ;;  %8505 = vadd.xlane.f32.xlu1 %v8504_v9  ;;  %v8501_v50 = vsel %vm481_vm0, %v8437_v57, 0.0 }
 0xa8f   : > { %v8378_v56 = vmul.f32 0.125, %v8326_v36  ;;  %8502 = vadd.xlane.f32.xlu0 %v8501_v50  ;;  %v8323_v63 = vpop.xlane.xlu0 %8322  ;;  %v8440_v13 = vmul.f32 %v14994_v2, %v14994_v2 }
 0xa90   : > { %v8377_v27 = vmul.f32 0.125, %v8323_v63  ;;  %v8439_v20 = vmul.f32 %v14998_v25, %v14998_v25 }
 0xa91   : > { %v15006_v40 = vsub.f32 %v14815_v58, %v8378_v56  ;;  %v8510_v35 = vsel %vm481_vm0, %v8440_v13, 0.0 }
 0xa92   : > { %v15010_v24 = vsub.f32 %v14818_v38, %v8377_v27  ;;  %8511 = vadd.xlane.f32.xlu1 %v8510_v35  ;;  %v8507_v57 = vsel %vm481_vm0, %v8439_v20, 0.0 }
 0xa93   : > { %8508 = vadd.xlane.f32.xlu0 %v8507_v57  ;;  %v8442_v9 = vmul.f32 %v15006_v40, %v15006_v40 }
 0xa94   : > { %v8441_v36 = vmul.f32 %v15010_v24, %v15010_v24 }
 0xa95   : > { %v8516_v50 = vsel %vm481_vm0, %v8442_v9, 0.0 }
 0xa96   : > { %8517 = vadd.xlane.f32.xlu1 %v8516_v50  ;;  %v8513_v56 = vsel %vm481_vm0, %v8441_v36, 0.0 }
 0xa97   : > { %8514 = vadd.xlane.f32.xlu0 %v8513_v56 }
 0xa9a   : > { %v8332_v63 = vpop.xlane.xlu1 %8331 }
 0xa9b   : > { %v8380_v13 = vmul.f32 0.125, %v8332_v63  ;;  %v8329_v27 = vpop.xlane.xlu0 %8328 }
 0xa9c   : > { %v8379_v38 = vmul.f32 0.125, %v8329_v27 }
 0xa9d   : > { %v15020_v35 = vsub.f32 %v14827_v1, %v8380_v13 }
 0xa9e   : > { %v15023_v20 = vsub.f32 %v14830_v32, %v8379_v38  ;;  %v8338_v57 = vpop.xlane.xlu1 %8337 }
 0xa9f   : > { %v8382_v58 = vmul.f32 0.125, %v8338_v57  ;;  %v8335_v14 = vpop.xlane.xlu0 %8334  ;;  %v8444_v9 = vmul.f32 %v15020_v35, %v15020_v35 }
 0xaa0   : > { %v8381_v50 = vmul.f32 0.125, %v8335_v14  ;;  %v8443_v36 = vmul.f32 %v15023_v20, %v15023_v20 }
 0xaa1   : > { %v15030_v56 = vsub.f32 %v14839_v46, %v8382_v58  ;;  %v8522_v63 = vsel %vm481_vm0, %v8444_v9, 0.0 }
 0xaa2   : > { %v15034_v13 = vsub.f32 %v14842_v49, %v8381_v50  ;;  %v8344_v38 = vpop.xlane.xlu1 %8343  ;;  %8523 = vadd.xlane.f32.xlu1 %v8522_v63  ;;  %v8519_v27 = vsel %vm481_vm0, %v8443_v36, 0.0 }
 0xaa3   : > { %v8384_v57 = vmul.f32 0.125, %v8344_v38  ;;  %8520 = vadd.xlane.f32.xlu0 %v8519_v27  ;;  %v8341_v32 = vpop.xlane.xlu0 %8340  ;;  %v8446_v14 = vmul.f32 %v15030_v56, %v15030_v56 }
 0xaa4   : > { %v8383_v1 = vmul.f32 0.125, %v8341_v32  ;;  %v8445_v58 = vmul.f32 %v15034_v13, %v15034_v13 }
 0xaa5   : > { %v15042_v46 = vsub.f32 %v14851_v11, %v8384_v57  ;;  %v8528_v9 = vsel %vm481_vm0, %v8446_v14, 0.0 }
 0xaa6   : > { %v15046_v50 = vsub.f32 %v14854_v41, %v8383_v1  ;;  %v8350_v63 = vpop.xlane.xlu1 %8349  ;;  %8529 = vadd.xlane.f32.xlu1 %v8528_v9  ;;  %v8525_v36 = vsel %vm481_vm0, %v8445_v58, 0.0 }
 0xaa7   : > { %v8386_v38 = vmul.f32 0.125, %v8350_v63  ;;  %8526 = vadd.xlane.f32.xlu0 %v8525_v36  ;;  %v8347_v27 = vpop.xlane.xlu0 %8346  ;;  %v8448_v32 = vmul.f32 %v15042_v46, %v15042_v46 }
 0xaa8   : > { %v8385_v49 = vmul.f32 0.125, %v8347_v27  ;;  %v8447_v57 = vmul.f32 %v15046_v50, %v15046_v50 }
 0xaa9   : > { %v15054_v11 = vsub.f32 %v14863_v22, %v8386_v38  ;;  %v8534_v1 = vsel %vm481_vm0, %v8448_v32, 0.0 }
 0xaaa   : > { %v15058_v14 = vsub.f32 %v14866_v30, %v8385_v49  ;;  %8535 = vadd.xlane.f32.xlu1 %v8534_v1  ;;  %v8356_v58 = vpop.xlane.xlu1 %8355  ;;  %v8531_v9 = vsel %vm481_vm0, %v8447_v57, 0.0 }
 0xaab   : > { %v8388_v63 = vmul.f32 0.125, %v8356_v58  ;;  %8532 = vadd.xlane.f32.xlu0 %v8531_v9  ;;  %v8353_v36 = vpop.xlane.xlu0 %8352  ;;  %v8450_v27 = vmul.f32 %v15054_v11, %v15054_v11 }
 0xaac   : > { %v8387_v41 = vmul.f32 0.125, %v8353_v36  ;;  %v8449_v38 = vmul.f32 %v15058_v14, %v15058_v14 }
 0xaad   : > { %v15066_v22 = vsub.f32 %v14875_v48, %v8388_v63  ;;  %v8540_v49 = vsel %vm481_vm0, %v8450_v27, 0.0 }
 0xaae   : > { %v15070_v32 = vsub.f32 %v14878_v26, %v8387_v41  ;;  %8541 = vadd.xlane.f32.xlu1 %v8540_v49  ;;  %v8537_v57 = vsel %vm481_vm0, %v8449_v38, 0.0 }
 0xaaf   : > { %8538 = vadd.xlane.f32.xlu0 %v8537_v57  ;;  %v8452_v1 = vmul.f32 %v15066_v22, %v15066_v22  ;;  %v15082_v57 = vld [vmem:[%s15658_s7] ss:$0 sm:$0xff] }
 0xab0   : > { %v8451_v58 = vmul.f32 %v15070_v32, %v15070_v32 }
 0xab1   : > { %v8546_v9 = vsel %vm481_vm0, %v8452_v1, 0.0 }
 0xab2   : > { %8547 = vadd.xlane.f32.xlu1 %v8546_v9  ;;  %v8543_v63 = vsel %vm481_vm0, %v8451_v58, 0.0  ;;  %v15089_v9 = vld [vmem:[%s15659_s8] ss:$0 sm:$0xff] }
 0xab3   : > { %8544 = vadd.xlane.f32.xlu0 %v8543_v63 }
 0xac8   : > { %v8458_v36 = vpop.xlane.xlu1 %8457 }
 0xac9   : > { %v8550_v27 = vmul.f32 0.125, %v8458_v36  ;;  %v8455_v41 = vpop.xlane.xlu0 %8454 }
 0xaca   : > { %v8549_v26 = vmul.f32 0.125, %v8455_v41 }
 0xacb   : > { %v8582_v49 = vadd.f32 1e-05, %v8550_v27 }
 0xacc   : > { %v8581_v48 = vadd.f32 1e-05, %v8549_v26 }
 0xacd   : > { %12199 = vrsqrt.f32 %v8582_v49 }
 0xace   : > { %12201 = vrsqrt.f32 %v8581_v48 }
 0xad7   : > { %v12200_v38 = vpop.eup %12199 }
 0xad8   : > { %v12202_v30 = vpop.eup %12201  ;;  %v8646_v1 = vmul.f32 %v12200_v38, %v14885_v12 }
 0xad9   : > { %v8645_v58 = vmul.f32 %v12202_v30, %v14888_v33 }
 0xada   : > { %v8685_v26 = vmul.f32 %v15082_v57, %v8646_v1 }
 0xadb   : > { %v8684_v48 = vmul.f32 %v15082_v57, %v8645_v58 }
 0xadc   : > { %v8724_v36 = vadd.f32 %v15089_v9, %v8685_v26 }
 0xadd   : > { %v8723_v63 = vadd.f32 %v15089_v9, %v8684_v48 }
 0xadf   : > { %11111 = vmatprep.mubr.msk.f32.mxu0 %vm481_vm0, %v8723_v63 }
 0xae0   : > { %11112 = vmatmul.mubr.msk.f32.vlgmr.msra.gmra.mrb[106].mxu0 %vm481_vm0, %v8724_v36 }
 0xaf9   : > { %v8464_v12 = vpop.xlane.xlu1 %8463 }
 0xafa   : > { %v8552_v27 = vmul.f32 0.125, %v8464_v12  ;;  %v8461_v30 = vpop.xlane.xlu0 %8460 }
 0xafb   : > { %v8551_v33 = vmul.f32 0.125, %v8461_v30 }
 0xafc   : > { %v8584_v41 = vadd.f32 1e-05, %v8552_v27 }
 0xafd   : > { %v8583_v49 = vadd.f32 1e-05, %v8551_v33  ;;  %v8470_v38 = vpop.xlane.xlu1 %8469 }
 0xafe   : > { %12203 = vrsqrt.f32 %v8584_v41  ;;  %v8554_v19 = vmul.f32 0.125, %v8470_v38  ;;  %v8467_v1 = vpop.xlane.xlu0 %8466 }
 0xaff   : > { %12205 = vrsqrt.f32 %v8583_v49  ;;  %v8553_v58 = vmul.f32 0.125, %v8467_v1 }
 0xb00   : > { %v8586_v60 = vadd.f32 1e-05, %v8554_v19 }
 0xb01   : > { %v8585_v48 = vadd.f32 1e-05, %v8553_v58 }
 0xb02   : > { %12207 = vrsqrt.f32 %v8586_v60 }
 0xb03   : > { %12209 = vrsqrt.f32 %v8585_v48  ;;  %v8476_v26 = vpop.xlane.xlu1 %8475 }
 0xb04   : > { %v8556_v63 = vmul.f32 0.125, %v8476_v26  ;;  %v8473_v10 = vpop.xlane.xlu0 %8472 }
 0xb05   : > { %v8555_v36 = vmul.f32 0.125, %v8473_v10 }
 0xb06   : > { %v8588_v15 = vadd.f32 1e-05, %v8556_v63 }
 0xb07   : > { %v8587_v12 = vadd.f32 1e-05, %v8555_v36  ;;  %v8482_v17 = vpop.xlane.xlu1 %8481 }
 0xb08   : > { %v12204_v30 = vpop.eup %12203  ;;  %12211 = vrsqrt.f32 %v8588_v15  ;;  %v8558_v27 = vmul.f32 0.125, %v8482_v17  ;;  %v8479_v33 = vpop.xlane.xlu0 %8478 }
 0xb09   : > { %v12206_v41 = vpop.eup %12205  ;;  %12213 = vrsqrt.f32 %v8587_v12  ;;  %v8557_v38 = vmul.f32 0.125, %v8479_v33  ;;  %v8648_v49 = vmul.f32 %v12204_v30, %v14900_v6 }
 0xb0a   : > { %v8590_v19 = vadd.f32 1e-05, %v8558_v27  ;;  %v8647_v60 = vmul.f32 %v12206_v41, %v14903_v23 }
 0xb0b   : > { %v8589_v1 = vadd.f32 1e-05, %v8557_v38  ;;  %v8687_v58 = vmul.f32 %v15082_v57, %v8648_v49 }
 0xb0c   : > { %v12208_v48 = vpop.eup %12207  ;;  %12215 = vrsqrt.f32 %v8590_v19  ;;  %v8686_v10 = vmul.f32 %v15082_v57, %v8647_v60 }
 0xb0d   : > { %v12210_v26 = vpop.eup %12209  ;;  %12217 = vrsqrt.f32 %v8589_v1  ;;  %v8650_v17 = vmul.f32 %v12208_v48, %v14910_v21  ;;  %v8726_v6 = vadd.f32 %v15089_v9, %v8687_v58 }
 0xb0e   : > { %v8725_v15 = vadd.f32 %v15089_v9, %v8686_v10  ;;  %v8649_v63 = vmul.f32 %v12210_v26, %v14914_v59 }
 0xb0f   : > { %v8488_v36 = vpop.xlane.xlu1 %8487  ;;  %v8689_v23 = vmul.f32 %v15082_v57, %v8650_v17 }
 0xb10   : > { %v8560_v12 = vmul.f32 0.125, %v8488_v36  ;;  %11114 = vmatprep.mubr.msk.f32.mxu0 %vm481_vm0, %v8725_v15  ;;  %v8485_v30 = vpop.xlane.xlu0 %8484  ;;  %v8688_v27 = vmul.f32 %v15082_v57, %v8649_v63 }
 0xb11   : > { %v8559_v33 = vmul.f32 0.125, %v8485_v30  ;;  %11115 = vmatmul.mubr.msk.f32.gmra.mrb[108].mxu0 %vm481_vm0, %v8726_v6  ;;  %v8728_v60 = vadd.f32 %v15089_v9, %v8689_v23 }
 0xb12   : > { %v12212_v41 = vpop.eup %12211  ;;  %v8592_v21 = vadd.f32 1e-05, %v8560_v12  ;;  %v8727_v38 = vadd.f32 %v15089_v9, %v8688_v27 }
 0xb13   : > { %v12214_v49 = vpop.eup %12213  ;;  %v8591_v59 = vadd.f32 1e-05, %v8559_v33  ;;  %v8494_v19 = vpop.xlane.xlu1 %8493  ;;  %v8652_v1 = vmul.f32 %v12212_v41, %v14924_v8 }
 0xb14   : > { %12219 = vrsqrt.f32 %v8592_v21  ;;  %v8562_v58 = vmul.f32 0.125, %v8494_v19  ;;  %11117 = vmatprep.mubr.msk.f32.mxu0 %vm481_vm0, %v8727_v38  ;;  %v8491_v48 = vpop.xlane.xlu0 %8490  ;;  %v8651_v10 = vmul.f32 %v12214_v49, %v14927_v52 }
 0xb15   : > { %12221 = vrsqrt.f32 %v8591_v59  ;;  %v8561_v26 = vmul.f32 0.125, %v8491_v48  ;;  %11118 = vmatmul.mubr.msk.f32.gmra.mrb[110].mxu0 %vm481_vm0, %v8728_v60  ;;  %v8691_v17 = vmul.f32 %v15082_v57, %v8652_v1 }
 0xb16   : > { %v12216_v15 = vpop.eup %12215  ;;  %v8594_v63 = vadd.f32 1e-05, %v8562_v58  ;;  %v8690_v36 = vmul.f32 %v15082_v57, %v8651_v10 }
 0xb17   : > { %v12218_v6 = vpop.eup %12217  ;;  %v8593_v23 = vadd.f32 1e-05, %v8561_v26  ;;  %v8500_v8 = vpop.xlane.xlu1 %8499  ;;  %v8654_v12 = vmul.f32 %v12216_v15, %v14934_v45  ;;  %v8730_v21 = vadd.f32 %v15089_v9, %v8691_v17 }
 0xb18   : > { %12223 = vrsqrt.f32 %v8594_v63  ;;  %v8564_v30 = vmul.f32 0.125, %v8500_v8  ;;  %v8497_v27 = vpop.xlane.xlu0 %8496  ;;  %v8729_v52 = vadd.f32 %v15089_v9, %v8690_v36  ;;  %v8653_v33 = vmul.f32 %v12218_v6, %v14938_v55 }
 0xb19   : > { %12225 = vrsqrt.f32 %v8593_v23  ;;  %v8563_v41 = vmul.f32 0.125, %v8497_v27  ;;  %v8693_v38 = vmul.f32 %v15082_v57, %v8654_v12 }
 0xb1a   : > { %v8596_v49 = vadd.f32 1e-05, %v8564_v30  ;;  %11120 = vmatprep.mubr.msk.f32.mxu0 %vm481_vm0, %v8729_v52  ;;  %v8692_v59 = vmul.f32 %v15082_v57, %v8653_v33 }
 0xb1b   : > { %v8595_v19 = vadd.f32 1e-05, %v8563_v41  ;;  %v8506_v45 = vpop.xlane.xlu1 %8505  ;;  %11121 = vmatmul.mubr.msk.f32.gmra.mrb[112].mxu0 %vm481_vm0, %v8730_v21  ;;  %v8732_v48 = vadd.f32 %v15089_v9, %v8693_v38 }
 0xb1c   : > { %12227 = vrsqrt.f32 %v8596_v49  ;;  %v8566_v60 = vmul.f32 0.125, %v8506_v45  ;;  %v8503_v1 = vpop.xlane.xlu0 %8502  ;;  %v8731_v55 = vadd.f32 %v15089_v9, %v8692_v59 }
 0xb1d   : > { %12229 = vrsqrt.f32 %v8595_v19  ;;  %v8565_v58 = vmul.f32 0.125, %v8503_v1 }
 0xb1e   : > { %v12220_v10 = vpop.eup %12219  ;;  %v8598_v26 = vadd.f32 1e-05, %v8566_v60  ;;  %11123 = vmatprep.mubr.msk.f32.mxu0 %vm481_vm0, %v8731_v55 }
 0xb1f   : > { %v12222_v17 = vpop.eup %12221  ;;  %v8597_v15 = vadd.f32 1e-05, %v8565_v58  ;;  %v8512_v63 = vpop.xlane.xlu1 %8511  ;;  %11124 = vmatmul.mubr.msk.f32.gmra.mrb[114].mxu0 %vm481_vm0, %v8732_v48  ;;  %v8656_v36 = vmul.f32 %v12220_v10, %v14948_v4 }
 0xb20   : > { %12231 = vrsqrt.f32 %v8598_v26  ;;  %v8568_v6 = vmul.f32 0.125, %v8512_v63  ;;  %v8509_v23 = vpop.xlane.xlu0 %8508  ;;  %v8655_v8 = vmul.f32 %v12222_v17, %v14951_v37 }
 0xb21   : > { %12233 = vrsqrt.f32 %v8597_v15  ;;  %v8567_v12 = vmul.f32 0.125, %v8509_v23  ;;  %v8695_v30 = vmul.f32 %v15082_v57, %v8656_v36 }
 0xb22   : > { %v12224_v27 = vpop.eup %12223  ;;  %v8600_v52 = vadd.f32 1e-05, %v8568_v6  ;;  %v8694_v33 = vmul.f32 %v15082_v57, %v8655_v8 }
 0xb23   : > { %v12226_v41 = vpop.eup %12225  ;;  %v8599_v21 = vadd.f32 1e-05, %v8567_v12  ;;  %v8518_v38 = vpop.xlane.xlu1 %8517  ;;  %v8658_v49 = vmul.f32 %v12224_v27, %v14958_v28  ;;  %v8734_v60 = vadd.f32 %v15089_v9, %v8695_v30 }
 0xb24   : > { %12235 = vrsqrt.f32 %v8600_v52  ;;  %v8570_v4 = vmul.f32 0.125, %v8518_v38  ;;  %v8515_v59 = vpop.xlane.xlu0 %8514  ;;  %v8733_v19 = vadd.f32 %v15089_v9, %v8694_v33  ;;  %v8657_v37 = vmul.f32 %v12226_v41, %v14962_v31 }
 0xb25   : > { %12237 = vrsqrt.f32 %v8599_v21  ;;  %v8569_v45 = vmul.f32 0.125, %v8515_v59  ;;  %v8697_v1 = vmul.f32 %v15082_v57, %v8658_v49 }
 0xb26   : > { %v12228_v55 = vpop.eup %12227  ;;  %v8602_v58 = vadd.f32 1e-05, %v8570_v4  ;;  %11126 = vmatprep.mubr.msk.f32.mxu0 %vm481_vm0, %v8733_v19  ;;  %v8696_v48 = vmul.f32 %v15082_v57, %v8657_v37 }
 0xb27   : > { %v12230_v28 = vpop.eup %12229  ;;  %v8601_v10 = vadd.f32 1e-05, %v8569_v45  ;;  %11127 = vmatmul.mubr.msk.f32.gmra.mrb[116].mxu0 %vm481_vm0, %v8734_v60  ;;  %v8660_v26 = vmul.f32 %v12228_v55, %v14970_v39  ;;  %v8736_v15 = vadd.f32 %v15089_v9, %v8697_v1 }
 0xb28   : > { %12239 = vrsqrt.f32 %v8602_v58  ;;  %v8735_v31 = vadd.f32 %v15089_v9, %v8696_v48  ;;  %v8659_v17 = vmul.f32 %v12230_v28, %v14974_v43 }
 0xb29   : > { %12241 = vrsqrt.f32 %v8601_v10  ;;  %v8699_v63 = vmul.f32 %v15082_v57, %v8660_v26 }
 0xb2a   : > { %v12232_v36 = vpop.eup %12231  ;;  %11129 = vmatprep.mubr.msk.f32.mxu0 %vm481_vm0, %v8735_v31  ;;  %v8698_v6 = vmul.f32 %v15082_v57, %v8659_v17 }
 0xb2b   : > { %v12234_v23 = vpop.eup %12233  ;;  %11130 = vmatmul.mubr.msk.f32.gmra.mrb[118].mxu0 %vm481_vm0, %v8736_v15  ;;  %v8662_v39 = vmul.f32 %v12232_v36, %v14982_v61  ;;  %v8738_v43 = vadd.f32 %v15089_v9, %v8699_v63 }
 0xb2c   : > { %v8737_v8 = vadd.f32 %v15089_v9, %v8698_v6  ;;  %v8661_v12 = vmul.f32 %v12234_v23, %v14986_v29 }
 0xb2d   : > { %v8701_v30 = vmul.f32 %v15082_v57, %v8662_v39 }
 0xb2e   : > { %v12236_v27 = vpop.eup %12235  ;;  %11132 = vmatprep.mubr.msk.f32.mxu0 %vm481_vm0, %v8737_v8  ;;  %v8700_v52 = vmul.f32 %v15082_v57, %v8661_v12 }
 0xb2f   : > { %v12238_v33 = vpop.eup %12237  ;;  %v8524_v41 = vpop.xlane.xlu1 %8523  ;;  %11133 = vmatmul.mubr.msk.f32.gmra.mrb[120].mxu0 %vm481_vm0, %v8738_v43  ;;  %v8664_v21 = vmul.f32 %v12236_v27, %v14994_v2  ;;  %v8740_v59 = vadd.f32 %v15089_v9, %v8701_v30 }
 0xb30   : > { %v8572_v61 = vmul.f32 0.125, %v8524_v41  ;;  %v8521_v38 = vpop.xlane.xlu0 %8520  ;;  %v8739_v49 = vadd.f32 %v15089_v9, %v8700_v52  ;;  %v8663_v29 = vmul.f32 %v12238_v33, %v14998_v25 }
 0xb31   : > { %v8571_v4 = vmul.f32 0.125, %v8521_v38  ;;  %v8703_v19 = vmul.f32 %v15082_v57, %v8664_v21 }
 0xb32   : > { %v12240_v37 = vpop.eup %12239  ;;  %v8604_v45 = vadd.f32 1e-05, %v8572_v61  ;;  %11135 = vmatprep.mubr.msk.f32.mxu0 %vm481_vm0, %v8739_v49  ;;  %v8702_v60 = vmul.f32 %v15082_v57, %v8663_v29 }
 0xb33   : > { %v12242_v1 = vpop.eup %12241  ;;  %v8603_v55 = vadd.f32 1e-05, %v8571_v4  ;;  %v8530_v2 = vpop.xlane.xlu1 %8529  ;;  %11136 = vmatmul.mubr.msk.f32.gmra.mrb[122].mxu0 %vm481_vm0, %v8740_v59  ;;  %v8666_v58 = vmul.f32 %v12240_v37, %v15006_v40  ;;  %v8742_v31 = vadd.f32 %v15089_v9, %v8703_v19 }
 0xb34   : > { %12243 = vrsqrt.f32 %v8604_v45  ;;  %v8574_v25 = vmul.f32 0.125, %v8530_v2  ;;  %v8527_v48 = vpop.xlane.xlu0 %8526  ;;  %v8741_v28 = vadd.f32 %v15089_v9, %v8702_v60  ;;  %v8665_v10 = vmul.f32 %v12242_v1, %v15010_v24 }
 0xb35   : > { %12245 = vrsqrt.f32 %v8603_v55  ;;  %v8573_v26 = vmul.f32 0.125, %v8527_v48  ;;  %v8705_v17 = vmul.f32 %v15082_v57, %v8666_v58 }
 0xb36   : > { %v8606_v15 = vadd.f32 1e-05, %v8574_v25  ;;  %11138 = vmatprep.mubr.msk.f32.mxu0 %vm481_vm0, %v8741_v28  ;;  %v8704_v63 = vmul.f32 %v15082_v57, %v8665_v10 }
 0xb37   : > { %v8605_v36 = vadd.f32 1e-05, %v8573_v26  ;;  %v8536_v40 = vpop.xlane.xlu1 %8535  ;;  %11139 = vmatmul.mubr.msk.f32.gmra.mrb[124].mxu0 %vm481_vm0, %v8742_v31  ;;  %v8744_v8 = vadd.f32 %v15089_v9, %v8705_v17 }
 0xb38   : > { %12247 = vrsqrt.f32 %v8606_v15  ;;  %v8576_v6 = vmul.f32 0.125, %v8536_v40  ;;  %v8533_v23 = vpop.xlane.xlu0 %8532  ;;  %v8743_v24 = vadd.f32 %v15089_v9, %v8704_v63 }
 0xb39   : > { %12249 = vrsqrt.f32 %v8605_v36  ;;  %v8575_v39 = vmul.f32 0.125, %v8533_v23 }
 0xb3a   : > { %v8608_v12 = vadd.f32 1e-05, %v8576_v6  ;;  %11141 = vmatprep.mubr.msk.f32.mxu0 %vm481_vm0, %v8743_v24 }
 0xb3b   : > { %v8607_v43 = vadd.f32 1e-05, %v8575_v39  ;;  %v8542_v30 = vpop.xlane.xlu1 %8541  ;;  %11142 = vmatmul.mubr.msk.f32.gmra.mrb[126].mxu0 %vm481_vm0, %v8744_v8 }
 0xb3c   : > { %12251 = vrsqrt.f32 %v8608_v12  ;;  %v8578_v27 = vmul.f32 0.125, %v8542_v30  ;;  %v8539_v52 = vpop.xlane.xlu0 %8538 }
 0xb3d   : > { %12253 = vrsqrt.f32 %v8607_v43  ;;  %v8577_v33 = vmul.f32 0.125, %v8539_v52 }
 0xb3e   : > { %v12244_v41 = vpop.eup %12243  ;;  %v8610_v21 = vadd.f32 1e-05, %v8578_v27 }
 0xb3f   : > { %v12246_v61 = vpop.eup %12245  ;;  %v8609_v38 = vadd.f32 1e-05, %v8577_v33  ;;  %v8548_v49 = vpop.xlane.xlu1 %8547  ;;  %v8668_v29 = vmul.f32 %v12244_v41, %v15020_v35  ;;  %v9375_v33 = vld [vmem:[%s15662_s11 + $0x18] sm:$0xff] }
 0xb40   : > { %12255 = vrsqrt.f32 %v8610_v21  ;;  %v8580_v4 = vmul.f32 0.125, %v8548_v49  ;;  %v8545_v59 = vpop.xlane.xlu0 %8544  ;;  %v8667_v19 = vmul.f32 %v12246_v61, %v15023_v20 }
 0xb41   : > { %12257 = vrsqrt.f32 %v8609_v38  ;;  %v8579_v37 = vmul.f32 0.125, %v8545_v59  ;;  %v8707_v45 = vmul.f32 %v15082_v57, %v8668_v29 }
 0xb42   : > { %v12248_v60 = vpop.eup %12247  ;;  %v8612_v1 = vadd.f32 1e-05, %v8580_v4  ;;  %v8706_v55 = vmul.f32 %v15082_v57, %v8667_v19 }
 0xb43   : > { %v12250_v2 = vpop.eup %12249  ;;  %v8611_v58 = vadd.f32 1e-05, %v8579_v37  ;;  %v8670_v25 = vmul.f32 %v12248_v60, %v15030_v56  ;;  %v8746_v20 = vadd.f32 %v15089_v9, %v8707_v45 }
 0xb44   : > { %12259 = vrsqrt.f32 %v8612_v1  ;;  %v8745_v35 = vadd.f32 %v15089_v9, %v8706_v55  ;;  %v8669_v48 = vmul.f32 %v12250_v2, %v15034_v13 }
 0xb45   : > { %12261 = vrsqrt.f32 %v8611_v58  ;;  %v8709_v28 = vmul.f32 %v15082_v57, %v8670_v25 }
 0xb46   : > { %v12252_v10 = vpop.eup %12251  ;;  %11144 = vmatprep.mubr.msk.f32.mxu0 %vm481_vm0, %v8745_v35  ;;  %v8708_v26 = vmul.f32 %v15082_v57, %v8669_v48 }
 0xb47   : > { %v12254_v31 = vpop.eup %12253  ;;  %11145 = vmatmul.mubr.msk.f32.gmra.mrb[128].mxu0 %vm481_vm0, %v8746_v20  ;;  %v8672_v56 = vmul.f32 %v12252_v10, %v15042_v46  ;;  %v8748_v13 = vadd.f32 %v15089_v9, %v8709_v28  ;;  %v9372_v46 = vld [vmem:[%s15662_s11] sm:$0xff] }
 0xb48   : > { %v8747_v17 = vadd.f32 %v15089_v9, %v8708_v26  ;;  %v8671_v15 = vmul.f32 %v12254_v31, %v15046_v50  ;;  %v9373_v50 = vld [vmem:[%s15662_s11 + $0x8] sm:$0xff] }
 0xb49   : > { %v8711_v63 = vmul.f32 %v15082_v57, %v8672_v56  ;;  %v11535_v8 = vpack.c.bf16 %v9373_v50, %v9372_v46 }
 0xb4a   : > { %v12256_v36 = vpop.eup %12255  ;;  %11147 = vmatprep.mubr.msk.f32.mxu0 %vm481_vm0, %v8747_v17  ;;  %v8710_v40 = vmul.f32 %v15082_v57, %v8671_v15 }
 0xb4b   : > { %v12258_v6 = vpop.eup %12257  ;;  %11148 = vmatmul.mubr.msk.f32.gmra.mrb[130].mxu0 %vm481_vm0, %v8748_v13  ;;  %v8674_v23 = vmul.f32 %v12256_v36, %v15054_v11  ;;  %v8750_v12 = vadd.f32 %v15089_v9, %v8711_v63  ;;  %11536 = vmatprep.subr.bf16.mxu1 %v11535_v8 }
 0xb4c   : > { %v8749_v24 = vadd.f32 %v15089_v9, %v8710_v40  ;;  %v8673_v39 = vmul.f32 %v12258_v6, %v15058_v14  ;;  %11538 = vmatpush3.bf16.msra.mxu1 %v11535_v8  ;;  %v9374_v14 = vld [vmem:[%s15662_s11 + $0x10] sm:$0xff] }
 0xb4d   : > { %v8713_v43 = vmul.f32 %v15082_v57, %v8674_v23  ;;  %v11539_v61 = vpack.c.bf16 %v9375_v33, %v9374_v14 }
 0xb4e   : > { %v12260_v30 = vpop.eup %12259  ;;  %11150 = vmatprep.mubr.msk.f32.mxu0 %vm481_vm0, %v8749_v24  ;;  %v8712_v11 = vmul.f32 %v15082_v57, %v8673_v39 }
 0xb4f   : > { %v12262_v27 = vpop.eup %12261  ;;  %11151 = vmatmul.mubr.msk.f32.gmra.mrb[132].mxu0 %vm481_vm0, %v8750_v12  ;;  %v8676_v52 = vmul.f32 %v12260_v30, %v15066_v22  ;;  %v8752_v38 = vadd.f32 %v15089_v9, %v8713_v43  ;;  %11540 = vmatprep.subr.bf16.mxu1 %v11539_v61 }
 0xb50   : > { %v8751_v41 = vadd.f32 %v15089_v9, %v8712_v11  ;;  %v8675_v21 = vmul.f32 %v12262_v27, %v15070_v32  ;;  %11542 = vmatpush3.bf16.msra.mxu1 %v11539_v61  ;;  %v15232_v32 = vld [vmem:[%s15661_s10] ss:$0 sm:$0xff] }
 0xb51   : > { %v8715_v49 = vmul.f32 %v15082_v57, %v8676_v52 }
 0xb52   : > { %11153 = vmatprep.mubr.msk.f32.mxu0 %vm481_vm0, %v8751_v41  ;;  %v8714_v22 = vmul.f32 %v15082_v57, %v8675_v21 }
 0xb53   : > { %11154 = vmatmul.mubr.msk.f32.gmra.mrb[134].mxu0 %vm481_vm0, %v8752_v38  ;;  %v8754_v4 = vadd.f32 %v15089_v9, %v8715_v49 }
 0xb54   : > { %v8753_v29 = vadd.f32 %v15089_v9, %v8714_v22 }
 0xb56   : > { %11156 = vmatprep.mubr.msk.f32.mxu0 %vm481_vm0, %v8753_v29 }
 0xb57   : > { %11157 = vmatmul.mubr.msk.f32.gmra.mrb[136].mxu0 %vm481_vm0, %v8754_v4 }
 0xbb3   : > { %v11113_v59 = vpop.f32.mrb[106].mxu0 }
 0xbb4   : > { %v8931_v57 = vadd.f32 %v11113_v59, %v15232_v32  ;;  %v8925_v19 = vpop.f32.mrb[107].mxu0 }
 0xbb5   : > { %v8926_v37 = vadd.f32 %v15232_v32, %v8925_v19 }
 0xbb6   : > { %v9085_v45 = vmul.f32 %v8931_v57, %v8931_v57 }
 0xbb7   : > { %v9084_v60 = vmul.f32 %v8926_v37, %v8926_v37 }
 0xbb8   : > { %v9117_v1 = vmul.f32 %v9085_v45, %v8931_v57 }
 0xbb9   : > { %v9116_v55 = vmul.f32 %v9084_v60, %v8926_v37 }
 0xbba   : > { %v9149_v9 = vmul.f32 0.044715, %v9117_v1 }
 0xbbb   : > { %v9148_v2 = vmul.f32 0.044715, %v9116_v55 }
 0xbbc   : > { %v9181_v58 = vadd.f32 %v9149_v9, %v8931_v57 }
 0xbbd   : > { %v9180_v25 = vadd.f32 %v9148_v2, %v8926_v37 }
 0xbbe   : > { %v9213_v35 = vmul.f32 0.7978846, %v9181_v58 }
 0xbbf   : > { %v9212_v48 = vmul.f32 0.7978846, %v9180_v25 }
 0xbc0   : > { %12263 = vtanh.f32 %v9213_v35 }
 0xbc1   : > { %12265 = vtanh.f32 %v9212_v48 }
 0xbca   : > { %v12264_v20 = vpop.eup %12263 }
 0xbcb   : > { %v12266_v28 = vpop.eup %12265  ;;  %v9277_v10 = vadd.f32 1.0, %v12264_v20 }
 0xbcc   : > { %v9276_v26 = vadd.f32 1.0, %v12266_v28 }
 0xbcd   : > { %v9309_v31 = vmul.f32 0.5, %v9277_v10 }
 0xbce   : > { %v9308_v56 = vmul.f32 0.5, %v9276_v26 }
 0xbcf   : > { %v9341_v15 = vmul.f32 %v9309_v31, %v8931_v57 }
 0xbd0   : > { %v9340_v17 = vmul.f32 %v9308_v56, %v8926_v37 }
 0xbd2   : > { %11167 = vmatprep.mubr.msk.f32.mxu1 %vm9383_vm4, %v9340_v17 }
 0xbd3   : > { %11168 = vmatmul.mubr.msk.f32.vlgmr.msra.gmra.mrb[86].mxu1 %vm9383_vm4, %v9341_v15 }
 0xbe4   : > { %v11116_v13 = vpop.f32.mrb[108].mxu0 }
 0xbe5   : > { %v15239_v63 = vadd.f32 %v11116_v13, %v15232_v32  ;;  %v8935_v36 = vpop.f32.mrb[109].mxu0 }
 0xbe6   : > { %v15242_v40 = vadd.f32 %v15232_v32, %v8935_v36 }
 0xbe7   : > { %v9087_v6 = vmul.f32 %v15239_v63, %v15239_v63 }
 0xbe8   : > { %v9086_v23 = vmul.f32 %v15242_v40, %v15242_v40  ;;  %v11119_v46 = vpop.f32.mrb[110].mxu0 }
 0xbe9   : > { %v9119_v50 = vmul.f32 %v9087_v6, %v15239_v63  ;;  %v15250_v24 = vadd.f32 %v11119_v46, %v15232_v32  ;;  %v8945_v39 = vpop.f32.mrb[111].mxu0 }
 0xbea   : > { %v9118_v8 = vmul.f32 %v9086_v23, %v15242_v40  ;;  %v15254_v12 = vadd.f32 %v15232_v32, %v8945_v39 }
 0xbeb   : > { %v9151_v43 = vmul.f32 0.044715, %v9119_v50  ;;  %v9089_v30 = vmul.f32 %v15250_v24, %v15250_v24 }
 0xbec   : > { %v9150_v11 = vmul.f32 0.044715, %v9118_v8  ;;  %v9088_v27 = vmul.f32 %v15254_v12, %v15254_v12 }
 0xbed   : > { %v9183_v52 = vadd.f32 %v9151_v43, %v15239_v63  ;;  %v9121_v14 = vmul.f32 %v9089_v30, %v15250_v24 }
 0xbee   : > { %v9182_v33 = vadd.f32 %v9150_v11, %v15242_v40  ;;  %v9120_v41 = vmul.f32 %v9088_v27, %v15254_v12  ;;  %v11122_v21 = vpop.f32.mrb[112].mxu0 }
 0xbef   : > { %v9215_v61 = vmul.f32 0.7978846, %v9183_v52  ;;  %v9153_v38 = vmul.f32 0.044715, %v9121_v14  ;;  %v15265_v49 = vadd.f32 %v11122_v21, %v15232_v32  ;;  %v8955_v22 = vpop.f32.mrb[113].mxu0 }
 0xbf0   : > { %v9214_v29 = vmul.f32 0.7978846, %v9182_v33  ;;  %v9152_v4 = vmul.f32 0.044715, %v9120_v41  ;;  %v15268_v59 = vadd.f32 %v15232_v32, %v8955_v22 }
 0xbf1   : > { %12267 = vtanh.f32 %v9215_v61  ;;  %v9185_v57 = vadd.f32 %v9153_v38, %v15250_v24  ;;  %v9091_v19 = vmul.f32 %v15265_v49, %v15265_v49 }
 0xbf2   : > { %12269 = vtanh.f32 %v9214_v29  ;;  %v9184_v37 = vadd.f32 %v9152_v4, %v15254_v12  ;;  %v9090_v45 = vmul.f32 %v15268_v59, %v15268_v59  ;;  %v11125_v60 = vpop.f32.mrb[114].mxu0 }
 0xbf3   : > { %v9217_v1 = vmul.f32 0.7978846, %v9185_v57  ;;  %v9123_v55 = vmul.f32 %v9091_v19, %v15265_v49  ;;  %v15278_v9 = vadd.f32 %v11125_v60, %v15232_v32  ;;  %v8965_v2 = vpop.f32.mrb[115].mxu0 }
 0xbf4   : > { %v9216_v58 = vmul.f32 0.7978846, %v9184_v37  ;;  %v9122_v25 = vmul.f32 %v9090_v45, %v15268_v59  ;;  %v15282_v35 = vadd.f32 %v15232_v32, %v8965_v2 }
 0xbf5   : > { %12271 = vtanh.f32 %v9217_v1  ;;  %v9155_v48 = vmul.f32 0.044715, %v9123_v55  ;;  %v9093_v20 = vmul.f32 %v15278_v9, %v15278_v9 }
 0xbf6   : > { %12273 = vtanh.f32 %v9216_v58  ;;  %v9154_v28 = vmul.f32 0.044715, %v9122_v25  ;;  %v9092_v10 = vmul.f32 %v15282_v35, %v15282_v35 }
 0xbf7   : > { %v9187_v26 = vadd.f32 %v9155_v48, %v15265_v49  ;;  %v9125_v31 = vmul.f32 %v9093_v20, %v15278_v9 }
 0xbf8   : > { %v9186_v56 = vadd.f32 %v9154_v28, %v15268_v59  ;;  %v9124_v17 = vmul.f32 %v9092_v10, %v15282_v35 }
 0xbf9   : > { %v9219_v15 = vmul.f32 0.7978846, %v9187_v26  ;;  %v9157_v13 = vmul.f32 0.044715, %v9125_v31 }
 0xbfa   : > { %v9218_v36 = vmul.f32 0.7978846, %v9186_v56  ;;  %v9156_v6 = vmul.f32 0.044715, %v9124_v17  ;;  %v11128_v23 = vpop.f32.mrb[116].mxu0 }
 0xbfb   : > { %v12268_v46 = vpop.eup %12267  ;;  %v9189_v50 = vadd.f32 %v9157_v13, %v15278_v9  ;;  %v15294_v39 = vadd.f32 %v11128_v23, %v15232_v32  ;;  %v8975_v8 = vpop.f32.mrb[117].mxu0 }
 0xbfc   : > { %v12270_v43 = vpop.eup %12269  ;;  %12275 = vtanh.f32 %v9218_v36  ;;  %v9188_v30 = vadd.f32 %v9156_v6, %v15282_v35  ;;  %v15298_v11 = vadd.f32 %v15232_v32, %v8975_v8  ;;  %v9279_v27 = vadd.f32 1.0, %v12268_v46 }
 0xbfd   : > { %12277 = vtanh.f32 %v9219_v15  ;;  %v9221_v52 = vmul.f32 0.7978846, %v9189_v50  ;;  %v9095_v14 = vmul.f32 %v15294_v39, %v15294_v39  ;;  %v9278_v33 = vadd.f32 1.0, %v12270_v43 }
 0xbfe   : > { %v9220_v41 = vmul.f32 0.7978846, %v9188_v30  ;;  %v9094_v21 = vmul.f32 %v15298_v11, %v15298_v11  ;;  %v11131_v61 = vpop.f32.mrb[118].mxu0  ;;  %v9311_v38 = vmul.f32 0.5, %v9279_v27 }
 0xbff   : > { %v12272_v22 = vpop.eup %12271  ;;  %12279 = vtanh.f32 %v9221_v52  ;;  %v9127_v29 = vmul.f32 %v9095_v14, %v15294_v39  ;;  %v15306_v4 = vadd.f32 %v11131_v61, %v15232_v32  ;;  %v8985_v57 = vpop.f32.mrb[119].mxu0  ;;  %v9310_v19 = vmul.f32 0.5, %v9278_v33 }
 0xc00   : > { %v12274_v37 = vpop.eup %12273  ;;  %12281 = vtanh.f32 %v9220_v41  ;;  %v9126_v45 = vmul.f32 %v9094_v21, %v15298_v11  ;;  %v15310_v60 = vadd.f32 %v15232_v32, %v8985_v57  ;;  %v9343_v28 = vmul.f32 %v9311_v38, %v15239_v63 }
 0xc01   : > { %v9159_v1 = vmul.f32 0.044715, %v9127_v29  ;;  %v9097_v55 = vmul.f32 %v15306_v4, %v15306_v4  ;;  %v9342_v2 = vmul.f32 %v9310_v19, %v15242_v40  ;;  %v9280_v58 = vadd.f32 1.0, %v12274_v37 }
 0xc02   : > { %v9158_v25 = vmul.f32 0.044715, %v9126_v45  ;;  %v9096_v48 = vmul.f32 %v15310_v60, %v15310_v60  ;;  %v11134_v20 = vpop.f32.mrb[120].mxu0  ;;  %v9281_v10 = vadd.f32 1.0, %v12272_v22 }
 0xc03   : > { %v9191_v26 = vadd.f32 %v9159_v1, %v15294_v39  ;;  %v9129_v31 = vmul.f32 %v9097_v55, %v15306_v4  ;;  %v15321_v56 = vadd.f32 %v11134_v20, %v15232_v32  ;;  %v8995_v17 = vpop.f32.mrb[121].mxu0  ;;  %11170 = vmatprep.mubr.msk.f32.mxu1 %vm9383_vm4, %v9342_v2  ;;  %v9312_v40 = vmul.f32 0.5, %v9280_v58 }
 0xc04   : > { %v9190_v15 = vadd.f32 %v9158_v25, %v15298_v11  ;;  %v9128_v13 = vmul.f32 %v9096_v48, %v15310_v60  ;;  %v15327_v36 = vadd.f32 %v15232_v32, %v8995_v17  ;;  %11171 = vmatmul.mubr.msk.f32.gmra.mrb[88].mxu1 %vm9383_vm4, %v9343_v28  ;;  %v9313_v63 = vmul.f32 0.5, %v9281_v10 }
 0xc05   : > { %v9223_v6 = vmul.f32 0.7978846, %v9191_v26  ;;  %v9161_v23 = vmul.f32 0.044715, %v9129_v31  ;;  %v9099_v46 = vmul.f32 %v15321_v56, %v15321_v56  ;;  %v9344_v50 = vmul.f32 %v9312_v40, %v15254_v12 }
 0xc06   : > { %v12276_v8 = vpop.eup %12275  ;;  %v9222_v43 = vmul.f32 0.7978846, %v9190_v15  ;;  %v9160_v30 = vmul.f32 0.044715, %v9128_v13  ;;  %v9098_v27 = vmul.f32 %v15327_v36, %v15327_v36  ;;  %v11137_v52 = vpop.f32.mrb[122].mxu0  ;;  %v9345_v14 = vmul.f32 %v9313_v63, %v15250_v24 }
 0xc07   : > { %v12278_v33 = vpop.eup %12277  ;;  %12283 = vtanh.f32 %v9223_v6  ;;  %v9193_v41 = vadd.f32 %v9161_v23, %v15306_v4  ;;  %v9131_v21 = vmul.f32 %v9099_v46, %v15321_v56  ;;  %v15339_v61 = vadd.f32 %v11137_v52, %v15232_v32  ;;  %v9005_v38 = vpop.f32.mrb[123].mxu0  ;;  %11173 = vmatprep.mubr.msk.f32.mxu1 %vm9383_vm4, %v9344_v50 }
 0xc08   : > { %12285 = vtanh.f32 %v9222_v43  ;;  %v9192_v12 = vadd.f32 %v9160_v30, %v15310_v60  ;;  %v9130_v22 = vmul.f32 %v9098_v27, %v15327_v36  ;;  %v15345_v29 = vadd.f32 %v15232_v32, %v9005_v38  ;;  %11174 = vmatmul.mubr.msk.f32.gmra.mrb[90].mxu1 %vm9383_vm4, %v9345_v14 }
 0xc09   : > { %v12280_v24 = vpop.eup %12279  ;;  %v9225_v57 = vmul.f32 0.7978846, %v9193_v41  ;;  %v9163_v19 = vmul.f32 0.044715, %v9131_v21  ;;  %v9101_v37 = vmul.f32 %v15339_v61, %v15339_v61  ;;  %v9282_v45 = vadd.f32 1.0, %v12276_v8 }
 0xc0a   : > { %v12282_v1 = vpop.eup %12281  ;;  %v9224_v55 = vmul.f32 0.7978846, %v9192_v12  ;;  %v9162_v2 = vmul.f32 0.044715, %v9130_v22  ;;  %v9100_v58 = vmul.f32 %v15345_v29, %v15345_v29  ;;  %v11140_v25 = vpop.f32.mrb[124].mxu0  ;;  %v9283_v48 = vadd.f32 1.0, %v12278_v33 }
 0xc0b   : > { %12287 = vtanh.f32 %v9225_v57  ;;  %v9195_v20 = vadd.f32 %v9163_v19, %v15321_v56  ;;  %v9133_v28 = vmul.f32 %v9101_v37, %v15339_v61  ;;  %v15355_v10 = vadd.f32 %v11140_v25, %v15232_v32  ;;  %v9015_v26 = vpop.f32.mrb[125].mxu0 }
 0xc0c   : > { %12289 = vtanh.f32 %v9224_v55  ;;  %v9194_v31 = vadd.f32 %v9162_v2, %v15327_v36  ;;  %v9132_v17 = vmul.f32 %v9100_v58, %v15345_v29  ;;  %v15360_v40 = vadd.f32 %v15232_v32, %v9015_v26 }
 0xc0d   : > { %v9227_v15 = vmul.f32 0.7978846, %v9195_v20  ;;  %v9165_v13 = vmul.f32 0.044715, %v9133_v28  ;;  %v9103_v63 = vmul.f32 %v15355_v10, %v15355_v10  ;;  %v9314_v6 = vmul.f32 0.5, %v9282_v45 }
 0xc0e   : > { %v9226_v23 = vmul.f32 0.7978846, %v9194_v31  ;;  %v9164_v46 = vmul.f32 0.044715, %v9132_v17  ;;  %v9102_v50 = vmul.f32 %v15360_v40, %v15360_v40  ;;  %v11143_v8 = vpop.f32.mrb[126].mxu0  ;;  %v9315_v43 = vmul.f32 0.5, %v9283_v48 }
 0xc0f   : > { %12291 = vtanh.f32 %v9227_v15  ;;  %v9197_v30 = vadd.f32 %v9165_v13, %v15339_v61  ;;  %v9135_v27 = vmul.f32 %v9103_v63, %v15355_v10  ;;  %v9346_v52 = vmul.f32 %v9314_v6, %v15268_v59  ;;  %v9025_v14 = vpop.f32.mrb[127].mxu0 }
 0xc10   : > { %12293 = vtanh.f32 %v9226_v23  ;;  %v9196_v33 = vadd.f32 %v9164_v46, %v15345_v29  ;;  %v9134_v41 = vmul.f32 %v9102_v50, %v15360_v40  ;;  %v15372_v21 = vadd.f32 %v11143_v8, %v15232_v32 }
 0xc11   : > { %v12284_v38 = vpop.eup %12283  ;;  %v9229_v12 = vmul.f32 0.7978846, %v9197_v30  ;;  %v9167_v22 = vmul.f32 0.044715, %v9135_v27  ;;  %11176 = vmatprep.mubr.msk.f32.mxu1 %vm9383_vm4, %v9346_v52  ;;  %v9347_v57 = vmul.f32 %v9315_v43, %v15265_v49  ;;  %v15377_v19 = vadd.f32 %v15232_v32, %v9025_v14 }
 0xc12   : > { %v12286_v59 = vpop.eup %12285  ;;  %v9228_v37 = vmul.f32 0.7978846, %v9196_v33  ;;  %v9166_v45 = vmul.f32 0.044715, %v9134_v41  ;;  %v9105_v55 = vmul.f32 %v15372_v21, %v15372_v21  ;;  %v9284_v2 = vadd.f32 1.0, %v12282_v1 }
 0xc13   : > { %12295 = vtanh.f32 %v9229_v12  ;;  %v9199_v58 = vadd.f32 %v9167_v22, %v15355_v10  ;;  %11177 = vmatmul.mubr.msk.f32.gmra.mrb[92].mxu1 %vm9383_vm4, %v9347_v57  ;;  %v9104_v25 = vmul.f32 %v15377_v19, %v15377_v19  ;;  %v9285_v48 = vadd.f32 1.0, %v12280_v24 }
 0xc14   : > { %12297 = vtanh.f32 %v9228_v37  ;;  %v9198_v49 = vadd.f32 %v9166_v45, %v15360_v40  ;;  %v9137_v20 = vmul.f32 %v9105_v55, %v15372_v21  ;;  %v9316_v28 = vmul.f32 0.5, %v9284_v2 }
 0xc15   : > { %v12288_v26 = vpop.eup %12287  ;;  %v9231_v31 = vmul.f32 0.7978846, %v9199_v58  ;;  %v9136_v17 = vmul.f32 %v9104_v25, %v15377_v19  ;;  %v9317_v1 = vmul.f32 0.5, %v9285_v48  ;;  %v9286_v15 = vadd.f32 1.0, %v12286_v59 }
 0xc16   : > { %v12290_v13 = vpop.eup %12289  ;;  %v9230_v63 = vmul.f32 0.7978846, %v9198_v49  ;;  %v9169_v6 = vmul.f32 0.044715, %v9137_v20  ;;  %v9348_v23 = vmul.f32 %v9316_v28, %v15282_v35  ;;  %v9287_v46 = vadd.f32 1.0, %v12284_v38 }
 0xc17   : > { %12299 = vtanh.f32 %v9231_v31  ;;  %v9168_v24 = vmul.f32 0.044715, %v9136_v17  ;;  %v9349_v50 = vmul.f32 %v9317_v1, %v15278_v9  ;;  %v9318_v8 = vmul.f32 0.5, %v9286_v15 }
 0xc18   : > { %12301 = vtanh.f32 %v9230_v63  ;;  %v9201_v43 = vadd.f32 %v9169_v6, %v15372_v21  ;;  %11179 = vmatprep.mubr.msk.f32.mxu1 %vm9383_vm4, %v9348_v23  ;;  %v9319_v30 = vmul.f32 0.5, %v9287_v46  ;;  %v9288_v27 = vadd.f32 1.0, %v12290_v13 }
 0xc19   : > { %v12292_v52 = vpop.eup %12291  ;;  %v9200_v14 = vadd.f32 %v9168_v24, %v15377_v19  ;;  %11180 = vmatmul.mubr.msk.f32.gmra.mrb[94].mxu1 %vm9383_vm4, %v9349_v50  ;;  %v9350_v35 = vmul.f32 %v9318_v8, %v15298_v11  ;;  %v9289_v33 = vadd.f32 1.0, %v12288_v26 }
 0xc1a   : > { %v12294_v41 = vpop.eup %12293  ;;  %v9233_v38 = vmul.f32 0.7978846, %v9201_v43  ;;  %v11146_v12 = vpop.f32.mrb[128].mxu0  ;;  %v9320_v9 = vmul.f32 0.5, %v9288_v27  ;;  %v9291_v22 = vadd.f32 1.0, %v12292_v52  ;;  %v9351_v59 = vmul.f32 %v9319_v30, %v15294_v39 }
 0xc1b   : > { %11182 = vmatprep.mubr.msk.f32.mxu1 %vm9383_vm4, %v9350_v35  ;;  %v15397_v57 = vadd.f32 %v11146_v12, %v15232_v32  ;;  %v9035_v37 = vpop.f32.mrb[129].mxu0  ;;  %v9321_v45 = vmul.f32 0.5, %v9289_v33  ;;  %v9290_v55 = vadd.f32 1.0, %v12294_v41  ;;  %v9232_v2 = vmul.f32 0.7978846, %v9200_v14 }
 0xc1c   : > { %v15401_v58 = vadd.f32 %v15232_v32, %v9035_v37  ;;  %v9352_v11 = vmul.f32 %v9320_v9, %v15310_v60  ;;  %v9323_v20 = vmul.f32 0.5, %v9291_v22  ;;  %12303 = vtanh.f32 %v9233_v38 }
 0xc1d   : > { %v12296_v25 = vpop.eup %12295  ;;  %v9107_v48 = vmul.f32 %v15397_v57, %v15397_v57  ;;  %11183 = vmatmul.mubr.msk.f32.gmra.mrb[96].mxu1 %vm9383_vm4, %v9351_v59  ;;  %v9322_v49 = vmul.f32 0.5, %v9290_v55  ;;  %v9353_v31 = vmul.f32 %v9321_v45, %v15306_v4  ;;  %12305 = vtanh.f32 %v9232_v2 }
 0xc1e   : > { %v12298_v28 = vpop.eup %12297  ;;  %v9106_v39 = vmul.f32 %v15401_v58, %v15401_v58  ;;  %11185 = vmatprep.mubr.msk.f32.mxu1 %vm9383_vm4, %v9352_v11  ;;  %v11149_v26 = vpop.f32.mrb[130].mxu0  ;;  %v9293_v17 = vadd.f32 1.0, %v12296_v25  ;;  %v9355_v8 = vmul.f32 %v9323_v20, %v15321_v56 }
 0xc1f   : > { %v9139_v60 = vmul.f32 %v9107_v48, %v15397_v57  ;;  %v15413_v1 = vadd.f32 %v11149_v26, %v15232_v32  ;;  %v9045_v15 = vpop.f32.mrb[131].mxu0  ;;  %v9354_v13 = vmul.f32 %v9322_v49, %v15327_v36  ;;  %v9292_v63 = vadd.f32 1.0, %v12298_v28 }
 0xc20   : > { %v9138_v6 = vmul.f32 %v9106_v39, %v15401_v58  ;;  %v15418_v23 = vadd.f32 %v15232_v32, %v9045_v15  ;;  %v9325_v46 = vmul.f32 0.5, %v9293_v17 }
 0xc21   : > { %v12300_v24 = vpop.eup %12299  ;;  %v9171_v50 = vmul.f32 0.044715, %v9139_v60  ;;  %v9109_v4 = vmul.f32 %v15413_v1, %v15413_v1  ;;  %11186 = vmatmul.mubr.msk.f32.gmra.mrb[98].mxu1 %vm9383_vm4, %v9353_v31  ;;  %v9324_v43 = vmul.f32 0.5, %v9292_v63 }
 0xc22   : > { %v12302_v30 = vpop.eup %12301  ;;  %v9170_v36 = vmul.f32 0.044715, %v9138_v6  ;;  %v9108_v27 = vmul.f32 %v15418_v23, %v15418_v23  ;;  %11188 = vmatprep.mubr.msk.f32.mxu1 %vm9383_vm4, %v9354_v13  ;;  %v11152_v52 = vpop.f32.mrb[132].mxu0  ;;  %v9357_v14 = vmul.f32 %v9325_v46, %v15339_v61  ;;  %v9295_v35 = vadd.f32 1.0, %v12300_v24 }
 0xc23   : > { %v9203_v33 = vadd.f32 %v9171_v50, %v15397_v57  ;;  %v9141_v41 = vmul.f32 %v9109_v4, %v15413_v1  ;;  %v15431_v38 = vadd.f32 %v11152_v52, %v15232_v32  ;;  %v9055_v56 = vpop.f32.mrb[133].mxu0  ;;  %v9356_v12 = vmul.f32 %v9324_v43, %v15345_v29 }
 0xc24   : > { %v9202_v9 = vadd.f32 %v9170_v36, %v15401_v58  ;;  %v9140_v22 = vmul.f32 %v9108_v27, %v15418_v23  ;;  %v15437_v59 = vadd.f32 %v15232_v32, %v9055_v56  ;;  %v9294_v37 = vadd.f32 1.0, %v12302_v30 }
 0xc25   : > { %v9235_v61 = vmul.f32 0.7978846, %v9203_v33  ;;  %v9173_v45 = vmul.f32 0.044715, %v9141_v41  ;;  %v9111_v55 = vmul.f32 %v15431_v38, %v15431_v38  ;;  %11189 = vmatmul.mubr.msk.f32.gmra.mrb[100].mxu1 %vm9383_vm4, %v9355_v8  ;;  %v9327_v2 = vmul.f32 0.5, %v9295_v35 }
 0xc26   : > { %v9234_v11 = vmul.f32 0.7978846, %v9202_v9  ;;  %v9172_v25 = vmul.f32 0.044715, %v9140_v22  ;;  %v9110_v29 = vmul.f32 %v15437_v59, %v15437_v59  ;;  %11191 = vmatprep.mubr.msk.f32.mxu1 %vm9383_vm4, %v9356_v12  ;;  %v11155_v48 = vpop.f32.mrb[134].mxu0  ;;  %v9326_v49 = vmul.f32 0.5, %v9294_v37  ;;  %v12304_v31 = vpop.eup %12303 }
 0xc27   : > { %12307 = vtanh.f32 %v9235_v61  ;;  %v9205_v20 = vadd.f32 %v9173_v45, %v15413_v1  ;;  %v9143_v28 = vmul.f32 %v9111_v55, %v15431_v38  ;;  %v15448_v39 = vadd.f32 %v11155_v48, %v15232_v32  ;;  %v9065_v26 = vpop.f32.mrb[135].mxu0  ;;  %v12306_v24 = vpop.eup %12305 }
 0xc28   : > { %12309 = vtanh.f32 %v9234_v11  ;;  %v9204_v17 = vadd.f32 %v9172_v25, %v15418_v23  ;;  %v9142_v60 = vmul.f32 %v9110_v29, %v15437_v59  ;;  %v15453_v15 = vadd.f32 %v15232_v32, %v9065_v26 }
 0xc29   : > { %v9237_v13 = vmul.f32 0.7978846, %v9205_v20  ;;  %v9175_v63 = vmul.f32 0.044715, %v9143_v28  ;;  %v9113_v6 = vmul.f32 %v15448_v39, %v15448_v39  ;;  %11192 = vmatmul.mubr.msk.f32.gmra.mrb[102].mxu1 %vm9383_vm4, %v9357_v14  ;;  %v9358_v46 = vmul.f32 %v9326_v49, %v15360_v40 }
 0xc2a   : > { %v9236_v50 = vmul.f32 0.7978846, %v9204_v17  ;;  %v9174_v4 = vmul.f32 0.044715, %v9142_v60  ;;  %v9112_v8 = vmul.f32 %v15453_v15, %v15453_v15  ;;  %v11158_v43 = vpop.f32.mrb[136].mxu0  ;;  %v9359_v30 = vmul.f32 %v9327_v2, %v15355_v10 }
 0xc2b   : > { %12311 = vtanh.f32 %v9237_v13  ;;  %v9207_v36 = vadd.f32 %v9175_v63, %v15431_v38  ;;  %v9145_v27 = vmul.f32 %v9113_v6, %v15448_v39  ;;  %11194 = vmatprep.mubr.msk.f32.mxu1 %vm9383_vm4, %v9358_v46  ;;  %v15466_v52 = vadd.f32 %v11158_v43, %v15232_v32  ;;  %v9075_v40 = vpop.f32.mrb[137].mxu0 }
 0xc2c   : > { %12313 = vtanh.f32 %v9236_v50  ;;  %v9206_v14 = vadd.f32 %v9174_v4, %v15437_v59  ;;  %v9144_v35 = vmul.f32 %v9112_v8, %v15453_v15  ;;  %v15471_v33 = vadd.f32 %v15232_v32, %v9075_v40 }
 0xc2d   : > { %v9239_v10 = vmul.f32 0.7978846, %v9207_v36  ;;  %v9177_v41 = vmul.f32 0.044715, %v9145_v27  ;;  %v9115_v56 = vmul.f32 %v15466_v52, %v15466_v52  ;;  %11195 = vmatmul.mubr.msk.f32.gmra.mrb[104].mxu1 %vm9383_vm4, %v9359_v30  ;;  %v9296_v12 = vadd.f32 1.0, %v12306_v24 }
 0xc2e   : > { %v9238_v9 = vmul.f32 0.7978846, %v9206_v14  ;;  %v9176_v22 = vmul.f32 0.044715, %v9144_v35  ;;  %v9114_v37 = vmul.f32 %v15471_v33, %v15471_v33  ;;  %v9297_v61 = vadd.f32 1.0, %v12304_v31 }
 0xc2f   : > { %12315 = vtanh.f32 %v9239_v10  ;;  %v9209_v45 = vadd.f32 %v9177_v41, %v15448_v39  ;;  %v9147_v32 = vmul.f32 %v9115_v56, %v15466_v52  ;;  %v9328_v55 = vmul.f32 0.5, %v9296_v12 }
 0xc30   : > { %12317 = vtanh.f32 %v9238_v9  ;;  %v9208_v2 = vadd.f32 %v9176_v22, %v15453_v15  ;;  %v9146_v11 = vmul.f32 %v9114_v37, %v15471_v33  ;;  %v9329_v25 = vmul.f32 0.5, %v9297_v61 }
 0xc31   : > { %v12308_v29 = vpop.eup %12307  ;;  %v9241_v48 = vmul.f32 0.7978846, %v9209_v45  ;;  %v9179_v49 = vmul.f32 0.044715, %v9147_v32  ;;  %v9360_v20 = vmul.f32 %v9328_v55, %v15377_v19 }
 0xc32   : > { %v12310_v28 = vpop.eup %12309  ;;  %v9240_v26 = vmul.f32 0.7978846, %v9208_v2  ;;  %v9178_v31 = vmul.f32 0.044715, %v9146_v11  ;;  %v9361_v17 = vmul.f32 %v9329_v25, %v15372_v21  ;;  %v9299_v60 = vadd.f32 1.0, %v12308_v29 }
 0xc33   : > { %12319 = vtanh.f32 %v9241_v48  ;;  %v9211_v13 = vadd.f32 %v9179_v49, %v15466_v52  ;;  %11197 = vmatprep.mubr.msk.f32.mxu1 %vm9383_vm4, %v9360_v20  ;;  %v9298_v63 = vadd.f32 1.0, %v12310_v28 }
 0xc34   : > { %12321 = vtanh.f32 %v9240_v26  ;;  %v9210_v6 = vadd.f32 %v9178_v31, %v15471_v33  ;;  %11198 = vmatmul.mubr.msk.f32.gmra.mrb[106].mxu1 %vm9383_vm4, %v9361_v17  ;;  %v9331_v46 = vmul.f32 0.5, %v9299_v60 }
 0xc35   : > { %v12312_v24 = vpop.eup %12311  ;;  %v9243_v19 = vmul.f32 0.7978846, %v9211_v13  ;;  %v9330_v50 = vmul.f32 0.5, %v9298_v63 }
 0xc36   : > { %v12314_v4 = vpop.eup %12313  ;;  %v9242_v8 = vmul.f32 0.7978846, %v9210_v6  ;;  %v9301_v43 = vadd.f32 1.0, %v12312_v24  ;;  %v9363_v36 = vmul.f32 %v9331_v46, %v15397_v57 }
 0xc37   : > { %12323 = vtanh.f32 %v9243_v19  ;;  %v9362_v21 = vmul.f32 %v9330_v50, %v15401_v58  ;;  %v9300_v30 = vadd.f32 1.0, %v12314_v4 }
 0xc38   : > { %12325 = vtanh.f32 %v9242_v8  ;;  %v9333_v27 = vmul.f32 0.5, %v9301_v43 }
 0xc39   : > { %v12316_v40 = vpop.eup %12315  ;;  %11200 = vmatprep.mubr.msk.f32.mxu1 %vm9383_vm4, %v9362_v21  ;;  %v9332_v14 = vmul.f32 0.5, %v9300_v30 }
 0xc3a   : > { %v12318_v35 = vpop.eup %12317  ;;  %11201 = vmatmul.mubr.msk.f32.gmra.mrb[108].mxu1 %vm9383_vm4, %v9363_v36  ;;  %v9303_v10 = vadd.f32 1.0, %v12316_v40  ;;  %v9365_v12 = vmul.f32 %v9333_v27, %v15413_v1 }
 0xc3b   : > { %v9364_v41 = vmul.f32 %v9332_v14, %v15418_v23  ;;  %v9302_v56 = vadd.f32 1.0, %v12318_v35 }
 0xc3c   : > { %v9335_v9 = vmul.f32 0.5, %v9303_v10 }
 0xc3d   : > { %v12320_v58 = vpop.eup %12319  ;;  %11203 = vmatprep.mubr.msk.f32.mxu1 %vm9383_vm4, %v9364_v41  ;;  %v9334_v22 = vmul.f32 0.5, %v9302_v56 }
 0xc3e   : > { %v12322_v57 = vpop.eup %12321  ;;  %11204 = vmatmul.mubr.msk.f32.gmra.mrb[110].mxu1 %vm9383_vm4, %v9365_v12  ;;  %v9305_v37 = vadd.f32 1.0, %v12320_v58  ;;  %v9367_v32 = vmul.f32 %v9335_v9, %v15431_v38 }
 0xc3f   : > { %v9366_v61 = vmul.f32 %v9334_v22, %v15437_v59  ;;  %v9304_v45 = vadd.f32 1.0, %v12322_v57 }
 0xc40   : > { %v9337_v55 = vmul.f32 0.5, %v9305_v37 }
 0xc41   : > { %v12324_v2 = vpop.eup %12323  ;;  %11206 = vmatprep.mubr.msk.f32.mxu1 %vm9383_vm4, %v9366_v61  ;;  %v9336_v23 = vmul.f32 0.5, %v9304_v45  ;;  %v15920_v61 = vld [vmem:[#allocation9_spill] sm:$0xff] }
 0xc42   : > { %v12326_v1 = vpop.eup %12325  ;;  %11207 = vmatmul.mubr.msk.f32.gmra.mrb[112].mxu1 %vm9383_vm4, %v9367_v32  ;;  %v9307_v11 = vadd.f32 1.0, %v12324_v2  ;;  %v9369_v48 = vmul.f32 %v9337_v55, %v15448_v39  ;;  %v15921_v32 = vld [vmem:[#allocation11_spill] sm:$0xff] }
 0xc43   : > { %v9368_v25 = vmul.f32 %v9336_v23, %v15453_v15  ;;  %v9306_v29 = vadd.f32 1.0, %v12326_v1  ;;  %v15511_v15 = vld [vmem:[%s15663_s12] ss:$0 sm:$0xff]  ;;  %v15922_v1 = vld [vmem:[#allocation24_spill] sm:$0xff] }
 0xc44   : > { %v9339_v49 = vmul.f32 0.5, %v9307_v11 }
 0xc45   : > { %11209 = vmatprep.mubr.msk.f32.mxu1 %vm9383_vm4, %v9368_v25  ;;  %v9338_v59 = vmul.f32 0.5, %v9306_v29  ;;  %v15923_v25 = vld [vmem:[#allocation18_spill] sm:$0xff] }
 0xc46   : > { %11210 = vmatmul.mubr.msk.f32.gmra.mrb[114].mxu1 %vm9383_vm4, %v9369_v48  ;;  %v9371_v20 = vmul.f32 %v9339_v49, %v15466_v52 }
 0xc47   : > { %v9370_v38 = vmul.f32 %v9338_v59, %v15471_v33 }
 0xc49   : > { %11212 = vmatprep.mubr.msk.f32.mxu1 %vm9383_vm4, %v9370_v38 }
 0xc4a   : > { %11213 = vmatmul.mubr.msk.f32.gmra.mrb[116].mxu1 %vm9383_vm4, %v9371_v20  ;;  %v15924_v20 = vld [vmem:[#allocation12_spill] sm:$0xff] }
 0xca6   : > { %v11169_v39 = vpop.f32.mrb[86].mxu1 }
 0xca7   : > { %v9552_v28 = vadd.f32 %v11169_v39, %v15511_v15  ;;  %v9546_v26 = vpop.f32.mrb[87].mxu1 }
 0xca8   : > { %v9547_v52 = vadd.f32 %v15511_v15, %v9546_v26 }
 0xca9   : > { %v9706_v33 = vadd.f32 %v9552_v28, %v14695_v53  ;;  %v15925_v28 = vld [vmem:[#allocation26_spill] sm:$0xff] }
 0xcaa   : > { %v9705_v31 = vadd.f32 %v9547_v52, %v14698_v44 }
 0xcab   : > { %9738 = vst.msk [vmem:[%s15519_s26 + $0x8] sm:$0xff] %vm481_vm0, %v9706_v33 }
 0xcac   : > { %9737 = vst.msk [vmem:[%s15519_s26] sm:$0xff] %vm481_vm0, %v9705_v31 }
 0xcd7   : > { %v11172_v17 = vpop.f32.mrb[88].mxu1 }
 0xcd8   : > { %v9562_v60 = vadd.f32 %v11172_v17, %v15511_v15  ;;  %v9556_v13 = vpop.f32.mrb[89].mxu1 }
 0xcd9   : > { %v9557_v63 = vadd.f32 %v15511_v15, %v9556_v13 }
 0xcda   : > { %v9708_v6 = vadd.f32 %v9562_v60, %v14707_v0  ;;  %v15926_v60 = vld [vmem:[#allocation20_spill] sm:$0xff] }
 0xcdb   : > { %v9707_v46 = vadd.f32 %v9557_v63, %v14710_v18  ;;  %v11175_v24 = vpop.f32.mrb[90].mxu1  ;;  %v15927_v63 = vld [vmem:[#allocation15_spill] sm:$0xff] }
 0xcdc   : > { %9740 = vst.msk [vmem:[%s15519_s26 + $0x18] sm:$0xff] %vm481_vm0, %v9708_v6  ;;  %v9572_v53 = vadd.f32 %v11175_v24, %v15511_v15  ;;  %v9566_v44 = vpop.f32.mrb[91].mxu1 }
 0xcdd   : > { %9739 = vst.msk [vmem:[%s15519_s26 + $0x10] sm:$0xff] %vm481_vm0, %v9707_v46  ;;  %v9567_v19 = vadd.f32 %v15511_v15, %v9566_v44 }
 0xcde   : > { %v9710_v50 = vadd.f32 %v9572_v53, %v14719_v3 }
 0xcdf   : > { %v9709_v4 = vadd.f32 %v9567_v19, %v14722_v47  ;;  %v15928_v19 = vld [vmem:[#allocation28_spill] sm:$0xff] }
 0xce0   : > { %9742 = vst.msk [vmem:[%s15519_s26 + $0x28] sm:$0xff] %vm481_vm0, %v9710_v50 }
 0xce1   : > { %9741 = vst.msk [vmem:[%s15519_s26 + $0x20] sm:$0xff] %vm481_vm0, %v9709_v4  ;;  %v15929_v4 = vld [vmem:[#allocation43_spill] sm:$0xff] }
 0xce6   : > { %v11178_v0 = vpop.f32.mrb[92].mxu1 }
 0xce7   : > { %v9582_v18 = vadd.f32 %v11178_v0, %v15511_v15  ;;  %v9576_v8 = vpop.f32.mrb[93].mxu1 }
 0xce8   : > { %v9577_v43 = vadd.f32 %v15511_v15, %v9576_v8 }
 0xce9   : > { %v9712_v21 = vadd.f32 %v9582_v18, %v14731_v7 }
 0xcea   : > { %v9711_v30 = vadd.f32 %v9577_v43, %v14734_v16 }
 0xceb   : > { %9744 = vst.msk [vmem:[%s15519_s26 + $0x38] sm:$0xff] %vm481_vm0, %v9712_v21 }
 0xcec   : > { %9743 = vst.msk [vmem:[%s15519_s26 + $0x30] sm:$0xff] %vm481_vm0, %v9711_v30  ;;  %v11181_v3 = vpop.f32.mrb[94].mxu1  ;;  %v15930_v30 = vld [vmem:[#allocation30_spill] sm:$0xff] }
 0xced   : > { %v9592_v47 = vadd.f32 %v11181_v3, %v15511_v15  ;;  %v9586_v36 = vpop.f32.mrb[95].mxu1 }
 0xcee   : > { %v9587_v27 = vadd.f32 %v15511_v15, %v9586_v36 }
 0xcef   : > { %v9714_v40 = vadd.f32 %v9592_v47, %v14743_v54  ;;  %v15931_v47 = vld [vmem:[#allocation44_spill] sm:$0xff] }
 0xcf0   : > { %v9713_v14 = vadd.f32 %v9587_v27, %v14746_v42  ;;  %v11184_v35 = vpop.f32.mrb[96].mxu1 }
 0xcf1   : > { %9746 = vst.msk [vmem:[%s15519_s26 + $0x48] sm:$0xff] %vm481_vm0, %v9714_v40  ;;  %v9602_v7 = vadd.f32 %v11184_v35, %v15511_v15  ;;  %v9596_v16 = vpop.f32.mrb[97].mxu1 }
 0xcf2   : > { %9745 = vst.msk [vmem:[%s15519_s26 + $0x40] sm:$0xff] %vm481_vm0, %v9713_v14  ;;  %v9597_v10 = vadd.f32 %v15511_v15, %v9596_v16 }
 0xcf3   : > { %v9716_v41 = vadd.f32 %v9602_v7, %v14755_v51  ;;  %v15932_v7 = vld [vmem:[#allocation33_spill] sm:$0xff] }
 0xcf4   : > { %v9715_v56 = vadd.f32 %v9597_v10, %v14758_v34  ;;  %v11187_v12 = vpop.f32.mrb[98].mxu1  ;;  %v15933_v10 = vld [vmem:[#allocation40_spill] sm:$0xff] }
 0xcf5   : > { %9748 = vst.msk [vmem:[%s15519_s26 + $0x58] sm:$0xff] %vm481_vm0, %v9716_v41  ;;  %v9612_v54 = vadd.f32 %v11187_v12, %v15511_v15  ;;  %v9606_v42 = vpop.f32.mrb[99].mxu1 }
 0xcf6   : > { %9747 = vst.msk [vmem:[%s15519_s26 + $0x50] sm:$0xff] %vm481_vm0, %v9715_v56  ;;  %v9607_v9 = vadd.f32 %v15511_v15, %v9606_v42 }
 0xcf7   : > { %v9718_v58 = vadd.f32 %v9612_v54, %v14767_v5 }
 0xcf8   : > { %v9717_v22 = vadd.f32 %v9607_v9, %v14770_v62  ;;  %v11190_v57 = vpop.f32.mrb[100].mxu1  ;;  %v15934_v9 = vld [vmem:[#allocation48_spill] sm:$0xff] }
 0xcf9   : > { %9750 = vst.msk [vmem:[%s15519_s26 + $0x68] sm:$0xff] %vm481_vm0, %v9718_v58  ;;  %v9622_v51 = vadd.f32 %v11190_v57, %v15511_v15  ;;  %v9616_v34 = vpop.f32.mrb[101].mxu1 }
 0xcfa   : > { %9749 = vst.msk [vmem:[%s15519_s26 + $0x60] sm:$0xff] %vm481_vm0, %v9717_v22  ;;  %v9617_v37 = vadd.f32 %v15511_v15, %v9616_v34  ;;  %v15935_v22 = vld [vmem:[#allocation2_spill] sm:$0xff] }
 0xcfb   : > { %v9720_v45 = vadd.f32 %v9622_v51, %v15920_v61 }
 0xcfc   : > { %v9719_v55 = vadd.f32 %v9617_v37, %v15921_v32  ;;  %v11193_v2 = vpop.f32.mrb[102].mxu1 }
 0xcfd   : > { %9752 = vst.msk [vmem:[%s15519_s26 + $0x78] sm:$0xff] %vm481_vm0, %v9720_v45  ;;  %v9632_v5 = vadd.f32 %v11193_v2, %v15511_v15  ;;  %v9626_v62 = vpop.f32.mrb[103].mxu1  ;;  %v15936_v45 = vld [vmem:[#allocation45_spill] sm:$0xff] }
 0xcfe   : > { %9751 = vst.msk [vmem:[%s15519_s26 + $0x70] sm:$0xff] %vm481_vm0, %v9719_v55  ;;  %v9627_v23 = vadd.f32 %v15511_v15, %v9626_v62  ;;  %v15937_v55 = vld [vmem:[#allocation4_spill] sm:$0xff] }
 0xcff   : > { %v9722_v11 = vadd.f32 %v9632_v5, %v15922_v1 }
 0xd00   : > { %v9721_v29 = vadd.f32 %v9627_v23, %v15923_v25  ;;  %v11196_v48 = vpop.f32.mrb[104].mxu1 }
 0xd01   : > { %9754 = vst.msk [vmem:[%s15519_s26 + $0x88] sm:$0xff] %vm481_vm0, %v9722_v11  ;;  %v9642_v49 = vadd.f32 %v11196_v48, %v15511_v15  ;;  %v9636_v59 = vpop.f32.mrb[105].mxu1 }
 0xd02   : > { %9753 = vst.msk [vmem:[%s15519_s26 + $0x80] sm:$0xff] %vm481_vm0, %v9721_v29  ;;  %v9637_v38 = vadd.f32 %v15511_v15, %v9636_v59 }
 0xd03   : > { %v9724_v39 = vadd.f32 %v9642_v49, %v15924_v20 }
 0xd04   : > { %v9723_v26 = vadd.f32 %v9637_v38, %v15925_v28 }
 0xd05   : > { %9756 = vst.msk [vmem:[%s15519_s26 + $0x98] sm:$0xff] %vm481_vm0, %v9724_v39 }
 0xd06   : > { %9755 = vst.msk [vmem:[%s15519_s26 + $0x90] sm:$0xff] %vm481_vm0, %v9723_v26 }
 0xd07   : > { %v11199_v52 = vpop.f32.mrb[106].mxu1 }
 0xd08   : > { %v9652_v33 = vadd.f32 %v11199_v52, %v15511_v15  ;;  %v9646_v31 = vpop.f32.mrb[107].mxu1 }
 0xd09   : > { %v9647_v17 = vadd.f32 %v15511_v15, %v9646_v31 }
 0xd0a   : > { %v9726_v13 = vadd.f32 %v9652_v33, %v15926_v60 }
 0xd0b   : > { %v9725_v6 = vadd.f32 %v9647_v17, %v15927_v63 }
 0xd0c   : > { %9758 = vst.msk [vmem:[%s15519_s26 + $0xa8] sm:$0xff] %vm481_vm0, %v9726_v13 }
 0xd0d   : > { %9757 = vst.msk [vmem:[%s15519_s26 + $0xa0] sm:$0xff] %vm481_vm0, %v9725_v6  ;;  %v11202_v46 = vpop.f32.mrb[108].mxu1 }
 0xd0e   : > { %v9662_v24 = vadd.f32 %v11202_v46, %v15511_v15  ;;  %v9656_v53 = vpop.f32.mrb[109].mxu1 }
 0xd0f   : > { %v9657_v44 = vadd.f32 %v15511_v15, %v9656_v53 }
 0xd10   : > { %v9728_v50 = vadd.f32 %v9662_v24, %v15928_v19 }
 0xd11   : > { %v9727_v0 = vadd.f32 %v9657_v44, %v15929_v4  ;;  %v11205_v18 = vpop.f32.mrb[110].mxu1 }
 0xd12   : > { %9760 = vst.msk [vmem:[%s15519_s26 + $0xb8] sm:$0xff] %vm481_vm0, %v9728_v50  ;;  %v9672_v8 = vadd.f32 %v11205_v18, %v15511_v15  ;;  %v9666_v43 = vpop.f32.mrb[111].mxu1 }
 0xd13   : > { %9759 = vst.msk [vmem:[%s15519_s26 + $0xb0] sm:$0xff] %vm481_vm0, %v9727_v0  ;;  %v9667_v21 = vadd.f32 %v15511_v15, %v9666_v43 }
 0xd14   : > { %v9730_v3 = vadd.f32 %v9672_v8, %v15930_v30 }
 0xd15   : > { %v9729_v36 = vadd.f32 %v9667_v21, %v15931_v47  ;;  %v11208_v27 = vpop.f32.mrb[112].mxu1 }
 0xd16   : > { %9762 = vst.msk [vmem:[%s15519_s26 + $0xc8] sm:$0xff] %vm481_vm0, %v9730_v3  ;;  %v9682_v40 = vadd.f32 %v11208_v27, %v15511_v15  ;;  %v9676_v14 = vpop.f32.mrb[113].mxu1 }
 0xd17   : > { %9761 = vst.msk [vmem:[%s15519_s26 + $0xc0] sm:$0xff] %vm481_vm0, %v9729_v36  ;;  %v9677_v35 = vadd.f32 %v15511_v15, %v9676_v14 }
 0xd18   : > { %v9732_v16 = vadd.f32 %v9682_v40, %v15932_v7 }
 0xd19   : > { %v9731_v41 = vadd.f32 %v9677_v35, %v15933_v10  ;;  %v11211_v56 = vpop.f32.mrb[114].mxu1 }
 0xd1a   : > { %9764 = vst.msk [vmem:[%s15519_s26 + $0xd8] sm:$0xff] %vm481_vm0, %v9732_v16  ;;  %v9692_v12 = vadd.f32 %v11211_v56, %v15511_v15  ;;  %v9686_v54 = vpop.f32.mrb[115].mxu1 }
 0xd1b   : > { %9763 = vst.msk [vmem:[%s15519_s26 + $0xd0] sm:$0xff] %vm481_vm0, %v9731_v41  ;;  %v9687_v42 = vadd.f32 %v15511_v15, %v9686_v54 }
 0xd1c   : > { %v9734_v58 = vadd.f32 %v9692_v12, %v15934_v9 }
 0xd1d   : > { %v9733_v57 = vadd.f32 %v9687_v42, %v15935_v22  ;;  %v11214_v51 = vpop.f32.mrb[116].mxu1 }
 0xd1e   : > { %9766 = vst.msk [vmem:[%s15519_s26 + $0xe8] sm:$0xff] %vm481_vm0, %v9734_v58  ;;  %v9702_v34 = vadd.f32 %v11214_v51, %v15511_v15  ;;  %v9696_v37 = vpop.f32.mrb[117].mxu1 }
 0xd1f   : > { %9765 = vst.msk [vmem:[%s15519_s26 + $0xe0] sm:$0xff] %vm481_vm0, %v9733_v57  ;;  %v9697_v61 = vadd.f32 %v15511_v15, %v9696_v37 }
 0xd20   : > { %v9736_v32 = vadd.f32 %v9702_v34, %v15936_v45 }
 0xd21   : > { %v9735_v2 = vadd.f32 %v9697_v61, %v15937_v55 }
 0xd22   : > { %9768 = vst.msk [vmem:[%s15519_s26 + $0xf8] sm:$0xff] %vm481_vm0, %v9736_v32 }
 0xd23   : > { %9767 = vst.msk [vmem:[%s15519_s26 + $0xf0] sm:$0xff] %vm481_vm0, %v9735_v2 }
 0xd24 PF: > { %s23_s25 = sadd.s32 1, %s12365_s25  }
 0xd25   : > { %p20_p4 = scmp.ge.s32.totalorder %s23_s25, 4  }
 0xd27   :  { %22 = sbr.rel (!%p20_p4) target bundleno = 1 (0x1), region = 102 }

</bundles_post_ra>
